<compile_context>
chip_gen: v7x
topology: tpu7x:2x2x1
jax: 0.10.0
libtpu: 0.0.40
codegen_flags: <defaults>
</compile_context>

<pallas_src>
import functools

import numpy as np
import jax
import jax.numpy as jnp
from jax.experimental import pallas as pl
from jax.experimental.pallas import tpu as pltpu

_EPS = 1e-5  # nn.GroupNorm default eps


def _round_up(v, m):
    return (v + m - 1) // m * m


# ---------------------------------------------------------------------------
# Kernel
# ---------------------------------------------------------------------------
def _conv_lstm_kernel(x_ref, h_ref, c_ref,                 # (1, C, L) folded activations
                      wx_ref, wh_ref,                      # (4H, Kx), (4H, Kh) GEMM weights
                      g_i_ref, g_h_ref, bias_ref,          # (4H, 1) columns
                      g_c_ref, b_c_ref,                    # (H, 1) columns
                      xs_ref, ys_ref, seg_ref,             # (1, L) int32 lane coordinates
                      h_out_ref, c_out_ref,                # (1, H, L) outputs
                      *, hidden, spatial, pix, bt, kx_pad, kh_pad):
    H, S, P = hidden, spatial, pix
    L = bt * pix

    xs = xs_ref[...]    # in-sample x coordinate of each lane
    ys = ys_ref[...]    # in-sample y coordinate of each lane
    seg = seg_ref[...]  # sample (segment) index of each lane

    # 3x3 / pad-1 tap validity masks, hoisted once and shared by both convs.
    masks = []
    for ky in range(3):
        for kx in range(3):
            dy, dx = ky - 1, kx - 1
            masks.append((ys + dy >= 0) & (ys + dy < S) &
                         (xs + dx >= 0) & (xs + dx < S))

    def im2col(v, k_pad):
        # v: (C, L) f32.  Tap t = ky*3+kx is v shifted by (dy*S+dx) lanes within
        # each sample (pltpu.roll on the lane axis), out-of-image lanes zeroed.
        # Rolls never leak across samples: any lane whose tap would cross a
        # sample boundary is masked by construction.
        taps = []
        for ky in range(3):
            for kx in range(3):
                dy, dx = ky - 1, kx - 1
                amt = dy * S + dx
                if amt == 0:
                    taps.append(v)
                else:
                    rolled = pltpu.roll(v, shift=(-amt) % L, axis=1)
                    taps.append(jnp.where(masks[ky * 3 + kx], rolled,
                                          jnp.zeros_like(rolled)))
        rows = 9 * v.shape[0]
        if k_pad > rows:  # zero rows so K is bf16-packing / MXU friendly
            taps.append(jnp.zeros((k_pad - rows, L), v.dtype))
        return jnp.concatenate(taps, axis=0)          # (k_pad, L)

    def seg_norm(v):
        # GroupNorm(num_groups=1) stats per lane segment (= per sample):
        # single-pass sum / sum-of-squares, biased variance (PyTorch semantics),
        # returned as (1, L) rows broadcast over channels.
        n = float(v.shape[0] * P)
        colsum = jnp.sum(v, axis=0, keepdims=True)       # (1, L)
        colsq = jnp.sum(v * v, axis=0, keepdims=True)    # (1, L)
        mu_row = jnp.zeros((1, L), jnp.float32)
        rstd_row = jnp.zeros((1, L), jnp.float32)
        for b in range(bt):
            m = seg == b
            s = jnp.sum(jnp.where(m, colsum, 0.0), keepdims=True)    # (1, 1)
            sq = jnp.sum(jnp.where(m, colsq, 0.0), keepdims=True)    # (1, 1)
            mu = s / n
            var = jnp.maximum(sq / n - mu * mu, 0.0)
            rstd = jax.lax.rsqrt(var + _EPS)
            mu_row = jnp.where(m, mu, mu_row)
            rstd_row = jnp.where(m, rstd, rstd_row)
        return mu_row, rstd_row

    # --- conv-as-GEMM: in-kernel im2col + one fused 4-gate matmul per conv ---
    xp = im2col(x_ref[0].astype(jnp.float32), kx_pad).astype(wx_ref.dtype)
    i2h = jnp.dot(wx_ref[...], xp, preferred_element_type=jnp.float32)   # (4H, L)
    hp = im2col(h_ref[0].astype(jnp.float32), kh_pad).astype(wh_ref.dtype)
    h2h = jnp.dot(wh_ref[...], hp, preferred_element_type=jnp.float32)   # (4H, L)

    # --- fused GroupNorm_i + GroupNorm_h + folded bias (one streaming pass) ---
    mu_i, rs_i = seg_norm(i2h)
    mu_h, rs_h = seg_norm(h2h)
    logits = (((i2h - mu_i) * rs_i) * g_i_ref[...]
              + ((h2h - mu_h) * rs_h) * g_h_ref[...]
              + bias_ref[...])                           # bias = b_i + b_h + bias (pre-folded)

    # logits.chunk(4, dim=channel) -> 8-aligned sublane slices.
    f = logits[0 * H:1 * H, :]
    i = logits[1 * H:2 * H, :]
    o = logits[2 * H:3 * H, :]
    g = logits[3 * H:4 * H, :]

    c_prev = c_ref[0].astype(jnp.float32)
    c_new = jax.nn.sigmoid(f) * c_prev + jax.nn.sigmoid(i) * jnp.tanh(g)

    mu_c, rs_c = seg_norm(c_new)
    c_norm = (c_new - mu_c) * rs_c * g_c_ref[...] + b_c_ref[...]
    h_new = jax.nn.sigmoid(o) * jnp.tanh(c_norm)

    h_out_ref[0] = h_new.astype(h_out_ref.dtype)
    c_out_ref[0] = c_new.astype(c_out_ref.dtype)


# ---------------------------------------------------------------------------
# Wrapper
# ---------------------------------------------------------------------------
def _conv_weight_to_gemm(w, k_pad, dtype):
    """PyTorch OIHW conv weight (O, I, 3, 3) -> (O, k_pad) GEMM weight, tap-major rows."""
    o, i, kh, kw = w.shape
    wg = jnp.transpose(w, (0, 2, 3, 1)).reshape(o, kh * kw * i)
    if k_pad > kh * kw * i:
        wg = jnp.pad(wg, ((0, 0), (0, k_pad - kh * kw * i)))
    return wg.astype(dtype)


def _pick_batch_tile(batch, pix):
    """Largest divisor of `batch` that keeps <= ~2048 lanes per grid step."""
    max_bt = max(1, min(8, 2048 // max(pix, 1)))
    bt = 1
    for d in range(1, min(batch, max_bt) + 1):
        if batch % d == 0:
            bt = d
    return bt


def _vmem_limit_bytes(c_in, hidden, L, kx_pad, kh_pad, compute_dtype):
    """~4x the real per-step footprint, capped at 48 MiB (safe on v7x's 64 MiB)."""
    cb = jnp.dtype(compute_dtype).itemsize
    H = hidden
    resident = (4 * H * (kx_pad + kh_pad)) * cb + (3 * 4 * H + 2 * H) * 4 + 3 * L * 4
    per_step = (c_in + 4 * H) * L * 4                    # x/h/c in + h'/c' out blocks
    interm = ((9 * c_in + 9 * H) * L * 4                 # f32 taps
              + (kx_pad + kh_pad) * L * cb               # cast patch matrices
              + 3 * 4 * H * L * 4                        # i2h, h2h, logits
              + 6 * H * L * 4)                           # gate / c' / h' temporaries
    est = 2 * (resident + per_step) + interm             # x2 ~ double buffering
    return int(min(max(4 * est, 16 << 20), 48 << 20))


def conv_layer_norm_lstm_cell(x, state, params, *, compute_dtype=jnp.bfloat16,
                              batch_tile=None):
    """Forward of ConvLayerNormLSTMCell.

    x:     (B, C_in, S, S) float32
    state: None or (h, c), each (B, H, S, S) float32
    Returns (h', c'), each (B, H, S, S) float32.
    """
    B, c_in, S, S2 = x.shape
    assert S == S2, "square spatial maps expected"
    H = params["g_c"].shape[0]
    P = S * S

    if state is None:
        h = jnp.broadcast_to(params["h0"], (B, H, S, S))
        c = jnp.broadcast_to(params["c0"], (B, H, S, S))
    else:
        h, c = state

    bt = _pick_batch_tile(B, P) if batch_tile is None else batch_tile
    assert B % bt == 0, "batch_tile must divide batch"
    nb = B // bt
    L = bt * P

    # Fold bt samples onto the lane axis: (B, C, S, S) -> (nb, C, bt*P).
    fold = lambda v: (v.astype(jnp.float32).reshape(nb, bt, -1, P)
                      .transpose(0, 2, 1, 3).reshape(nb, -1, L))
    x_f, h_f, c_f = fold(x), fold(h), fold(c)

    # Fused conv-as-GEMM weights; K padded to a multiple of 32.
    kx_pad = _round_up(9 * c_in, 32)
    kh_pad = _round_up(9 * H, 32)
    wx = _conv_weight_to_gemm(params["w_i2h"], kx_pad, compute_dtype)   # (4H, Kx)
    wh = _conv_weight_to_gemm(params["w_h2h"], kh_pad, compute_dtype)   # (4H, Kh)

    col = lambda v: v.astype(jnp.float32).reshape(-1, 1)
    g_i, g_h = col(params["g_i"]), col(params["g_h"])
    g_c, b_c = col(params["g_c"]), col(params["b_c"])
    bias_sum = col(params["b_i"]) + col(params["b_h"]) + col(params["bias"])

    # Static per-lane coordinates (x, y within the sample; sample segment index).
    lane = np.arange(L, dtype=np.int32)
    pixel = lane % P
    xs = jnp.asarray((pixel % S).reshape(1, L))
    ys = jnp.asarray((pixel // S).reshape(1, L))
    seg = jnp.asarray((lane // P).reshape(1, L))

    per_step = lambda ch: pl.BlockSpec((1, ch, L), lambda b: (b, 0, 0))
    resident = lambda r, cc: pl.BlockSpec((r, cc), lambda b: (0, 0))   # VMEM-resident

    kernel = functools.partial(_conv_lstm_kernel, hidden=H, spatial=S, pix=P,
                               bt=bt, kx_pad=kx_pad, kh_pad=kh_pad)

    h_new, c_new = pl.pallas_call(
        kernel,
        grid=(nb,),
        in_specs=[
            per_step(c_in),                 # x  (folded)
            per_step(H),                    # h  (folded)
            per_step(H),                    # c  (folded)
            resident(4 * H, kx_pad),        # W_x
            resident(4 * H, kh_pad),        # W_h
            resident(4 * H, 1),             # gamma_i
            resident(4 * H, 1),             # gamma_h
            resident(4 * H, 1),             # b_i + b_h + bias (folded)
            resident(H, 1),                 # gamma_c
            resident(H, 1),                 # beta_c
            resident(1, L),                 # x coord per lane
            resident(1, L),                 # y coord per lane
            resident(1, L),                 # segment (sample) index per lane
        ],
        out_specs=(per_step(H), per_step(H)),
        out_shape=(jax.ShapeDtypeStruct((nb, H, L), jnp.float32),
                   jax.ShapeDtypeStruct((nb, H, L), jnp.float32)),
        compiler_params=pltpu.CompilerParams(
            dimension_semantics=("parallel",),
            vmem_limit_bytes=_vmem_limit_bytes(c_in, H, L, kx_pad, kh_pad,
                                               compute_dtype),
        ),
    )(x_f, h_f, c_f, wx, wh, g_i, g_h, bias_sum, g_c, b_c, xs, ys, seg)

    # (nb, H, bt*P) lanes are already NCHW pixel order per sample -> unfold.
    unfold = lambda v: (v.reshape(nb, H, bt, P).transpose(0, 2, 1, 3)
                        .reshape(B, H, S, S))
    return unfold(h_new), unfold(c_new)


# ---------------------------------------------------------------------------
# Parameters + pure-JAX reference
# ---------------------------------------------------------------------------
def init_params(key, input_size, hidden_size, spatial_size, k=3):
    ks = jax.random.split(key, 9)
    H = hidden_size

    def xavier_conv(kk, c_out, c_inn):
        fan_in, fan_out = c_inn * k * k, c_out * k * k
        bound = float(jnp.sqrt(6.0 / (fan_in + fan_out)))
        return jax.random.uniform(kk, (c_out, c_inn, k, k), jnp.float32, -bound, bound)

    return {
        # Conv weights, PyTorch OIHW layout (bias=False in the module).
        "w_i2h": xavier_conv(ks[0], 4 * H, input_size),
        "w_h2h": xavier_conv(ks[1], 4 * H, hidden_size),
        # GroupNorm affines + learned bias (perturbed from defaults so the test
        # actually exercises the affine/bias paths).
        "g_i": 1.0 + 0.1 * jax.random.normal(ks[2], (4 * H,), jnp.float32),
        "b_i": 0.1 * jax.random.normal(ks[3], (4 * H,), jnp.float32),
        "g_h": 1.0 + 0.1 * jax.random.normal(ks[4], (4 * H,), jnp.float32),
        "b_h": 0.1 * jax.random.normal(ks[5], (4 * H,), jnp.float32),
        "g_c": 1.0 + 0.1 * jax.random.normal(ks[6], (H,), jnp.float32),
        "b_c": 0.1 * jax.random.normal(ks[7], (H,), jnp.float32),
        "bias": 0.1 * jax.random.normal(ks[8], (4 * H,), jnp.float32),
        # Learned initial state (zero-initialized in the module).
        "h0": jnp.zeros((1, H, spatial_size, spatial_size), jnp.float32),
        "c0": jnp.zeros((1, H, spatial_size, spatial_size), jnp.float32),
    }


def _conv3x3_ref(x, w):
    return jax.lax.conv_general_dilated(
        x, w, window_strides=(1, 1), padding=((1, 1), (1, 1)),
        dimension_numbers=("NCHW", "OIHW", "NCHW"),
        precision=jax.lax.Precision.HIGHEST)


def _group_norm_ref(v, gamma, beta):
    mu = jnp.mean(v, axis=(1, 2, 3), keepdims=True)
    var = jnp.mean(jnp.square(v - mu), axis=(1, 2, 3), keepdims=True)
    return ((v - mu) * jax.lax.rsqrt(var + _EPS)
            * gamma[None, :, None, None] + beta[None, :, None, None])


def reference_cell(x, state, params):
    B, _, S, _ = x.shape
    H = params["g_c"].shape[0]
    if state is None:
        h = jnp.broadcast_to(params["h0"], (B, H, S, S))
        c = jnp.broadcast_to(params["c0"], (B, H, S, S))
    else:
        h, c = state
    i2h = _conv3x3_ref(x, params["w_i2h"])
    h2h = _conv3x3_ref(h, params["w_h2h"])
    logits = (_group_norm_ref(i2h, params["g_i"], params["b_i"])
              + _group_norm_ref(h2h, params["g_h"], params["b_h"])
              + params["bias"][None, :, None, None])
    f, i, o, g = jnp.split(logits, 4, axis=1)
    c_new = jax.nn.sigmoid(f) * c + jax.nn.sigmoid(i) * jnp.tanh(g)
    h_new = jax.nn.sigmoid(o) * jnp.tanh(
        _group_norm_ref(c_new, params["g_c"], params["b_c"]))
    return h_new, c_new


# ---------------------------------------------------------------------------
if __name__ == "__main__":
    batch, input_size, hidden_size, spatial_size = 2, 8, 32, 16

    key = jax.random.PRNGKey(0)
    k_p, k_x, k_h, k_c = jax.random.split(key, 4)

    params = init_params(k_p, input_size, hidden_size, spatial_size)
    x = jax.random.normal(k_x, (batch, input_size, spatial_size, spatial_size), jnp.float32)
    h_in = jax.random.normal(k_h, (batch, hidden_size, spatial_size, spatial_size), jnp.float32)
    c_in = jax.random.normal(k_c, (batch, hidden_size, spatial_size, spatial_size), jnp.float32)

    h_want, c_want = reference_cell(x, (h_in, c_in), params)

    # f32 matmul operands, batch folded onto the lane axis (bt=2 -> 512-lane GEMM N).
    cell_f32 = jax.jit(functools.partial(conv_layer_norm_lstm_cell,
                                         compute_dtype=jnp.float32))
    h1, c1 = cell_f32(x, (h_in, c_in), params)
    jax.block_until_ready((h1, c1))
    assert h1.shape == h_in.shape and c1.shape == c_in.shape
    # Tolerance allows for MXU precision-mode differences vs XLA's HIGHEST conv;
    # any semantic bug would produce O(1) errors.
    assert bool(jnp.allclose(h1, h_want, atol=5e-2)), float(jnp.max(jnp.abs(h1 - h_want)))
    assert bool(jnp.allclose(c1, c_want, atol=5e-2)), float(jnp.max(jnp.abs(c1 - c_want)))

    # Multi-step grid path (batch_tile=1 -> grid=(2,)) to exercise pipelining.
    cell_bt1 = jax.jit(functools.partial(conv_layer_norm_lstm_cell,
                                         compute_dtype=jnp.float32, batch_tile=1))
    h1b, c1b = cell_bt1(x, (h_in, c_in), params)
    jax.block_until_ready((h1b, c1b))
    assert bool(jnp.allclose(h1b, h_want, atol=5e-2))
    assert bool(jnp.allclose(c1b, c_want, atol=5e-2))

    # state=None path: learned zero-initialized (h0, c0), like the module.
    h_want0, c_want0 = reference_cell(x, None, params)
    h2, c2 = cell_f32(x, None, params)
    jax.block_until_ready((h2, c2))
    assert bool(jnp.allclose(h2, h_want0, atol=5e-2))
    assert bool(jnp.allclose(c2, c_want0, atol=5e-2))

    # Default path: bf16 matmul operands (f32 accumulation; GN / gating stay f32).
    cell_bf16 = jax.jit(conv_layer_norm_lstm_cell)
    h3, c3 = cell_bf16(x, (h_in, c_in), params)
    jax.block_until_ready((h3, c3))
    assert bool(jnp.allclose(h3, h_want, atol=2.5e-1)), float(jnp.max(jnp.abs(h3 - h_want)))
    assert bool(jnp.allclose(c3, c_want, atol=2.5e-1)), float(jnp.max(jnp.abs(c3 - c_want)))

    print("KERNEL_OK")
</pallas_src>

<mosaic_0001>
module attributes {stable_mosaic.version = 11 : i64} {
  func.func @_conv_lstm_kernel(%arg0: i32, %arg1: memref<1x8x512xf32, #tpu.memory_space<vmem>>, %arg2: memref<1x32x512xf32, #tpu.memory_space<vmem>>, %arg3: memref<1x32x512xf32, #tpu.memory_space<vmem>>, %arg4: memref<128x96xf32, #tpu.memory_space<vmem>>, %arg5: memref<128x288xf32, #tpu.memory_space<vmem>>, %arg6: memref<128x1xf32, #tpu.memory_space<vmem>>, %arg7: memref<128x1xf32, #tpu.memory_space<vmem>>, %arg8: memref<128x1xf32, #tpu.memory_space<vmem>>, %arg9: memref<32x1xf32, #tpu.memory_space<vmem>>, %arg10: memref<32x1xf32, #tpu.memory_space<vmem>>, %arg11: memref<1x512xi32, #tpu.memory_space<vmem>>, %arg12: memref<1x512xi32, #tpu.memory_space<vmem>>, %arg13: memref<1x512xi32, #tpu.memory_space<vmem>>, %arg14: memref<1x32x512xf32, #tpu.memory_space<vmem>>, %arg15: memref<1x32x512xf32, #tpu.memory_space<vmem>>) attributes {dimension_semantics = [#tpu.dimension_semantics<parallel>], iteration_bounds = array<i64: 1>, scalar_prefetch = 0 : i64, scratch_operands = 0 : i64, tpu.core_type = #tpu.core_type<tc>, window_params = [{transform_indices = @transform_0, window_bounds = array<i64: 1, 8, 512>}, {transform_indices = @transform_1, window_bounds = array<i64: 1, 32, 512>}, {transform_indices = @transform_2, window_bounds = array<i64: 1, 32, 512>}, {pipeline_mode = #tpu.pipeline_mode<synchronous>, transform_indices = @transform_3, window_bounds = array<i64: 128, 96>}, {pipeline_mode = #tpu.pipeline_mode<synchronous>, transform_indices = @transform_4, window_bounds = array<i64: 128, 288>}, {pipeline_mode = #tpu.pipeline_mode<synchronous>, transform_indices = @transform_5, window_bounds = array<i64: 128, 1>}, {pipeline_mode = #tpu.pipeline_mode<synchronous>, transform_indices = @transform_6, window_bounds = array<i64: 128, 1>}, {pipeline_mode = #tpu.pipeline_mode<synchronous>, transform_indices = @transform_7, window_bounds = array<i64: 128, 1>}, {pipeline_mode = #tpu.pipeline_mode<synchronous>, transform_indices = @transform_8, window_bounds = array<i64: 32, 1>}, {pipeline_mode = #tpu.pipeline_mode<synchronous>, transform_indices = @transform_9, window_bounds = array<i64: 32, 1>}, {pipeline_mode = #tpu.pipeline_mode<synchronous>, transform_indices = @transform_10, window_bounds = array<i64: 1, 512>}, {pipeline_mode = #tpu.pipeline_mode<synchronous>, transform_indices = @transform_11, window_bounds = array<i64: 1, 512>}, {pipeline_mode = #tpu.pipeline_mode<synchronous>, transform_indices = @transform_12, window_bounds = array<i64: 1, 512>}, {transform_indices = @transform_13, window_bounds = array<i64: 1, 32, 512>}, {transform_indices = @transform_14, window_bounds = array<i64: 1, 32, 512>}]} {
    %c0 = arith.constant 0 : index
    %c0_0 = arith.constant 0 : index
    %0 = vector.load %arg11[%c0, %c0_0] : memref<1x512xi32, #tpu.memory_space<vmem>>, vector<1x512xi32>
    %c0_1 = arith.constant 0 : index
    %c0_2 = arith.constant 0 : index
    %1 = vector.load %arg12[%c0_1, %c0_2] : memref<1x512xi32, #tpu.memory_space<vmem>>, vector<1x512xi32>
    %c0_3 = arith.constant 0 : index
    %c0_4 = arith.constant 0 : index
    %2 = vector.load %arg13[%c0_3, %c0_4] : memref<1x512xi32, #tpu.memory_space<vmem>>, vector<1x512xi32>
    %c-1_i32 = arith.constant -1 : i32
    %3 = vector.broadcast %c-1_i32 : i32 to vector<1x512xi32>
    %4 = arith.addi %1, %3 : vector<1x512xi32>
    %c0_i32 = arith.constant 0 : i32
    %5 = vector.broadcast %c0_i32 : i32 to vector<1x512xi32>
    %6 = arith.cmpi sge, %4, %5 : vector<1x512xi32>
    %c-1_i32_5 = arith.constant -1 : i32
    %7 = vector.broadcast %c-1_i32_5 : i32 to vector<1x512xi32>
    %8 = arith.addi %1, %7 : vector<1x512xi32>
    %c16_i32 = arith.constant 16 : i32
    %9 = vector.broadcast %c16_i32 : i32 to vector<1x512xi32>
    %10 = arith.cmpi slt, %8, %9 : vector<1x512xi32>
    %11 = arith.andi %6, %10 : vector<1x512xi1>
    %c-1_i32_6 = arith.constant -1 : i32
    %12 = vector.broadcast %c-1_i32_6 : i32 to vector<1x512xi32>
    %13 = arith.addi %0, %12 : vector<1x512xi32>
    %c0_i32_7 = arith.constant 0 : i32
    %14 = vector.broadcast %c0_i32_7 : i32 to vector<1x512xi32>
    %15 = arith.cmpi sge, %13, %14 : vector<1x512xi32>
    %16 = arith.andi %11, %15 : vector<1x512xi1>
    %c-1_i32_8 = arith.constant -1 : i32
    %17 = vector.broadcast %c-1_i32_8 : i32 to vector<1x512xi32>
    %18 = arith.addi %0, %17 : vector<1x512xi32>
    %c16_i32_9 = arith.constant 16 : i32
    %19 = vector.broadcast %c16_i32_9 : i32 to vector<1x512xi32>
    %20 = arith.cmpi slt, %18, %19 : vector<1x512xi32>
    %21 = arith.andi %16, %20 : vector<1x512xi1>
    %c-1_i32_10 = arith.constant -1 : i32
    %22 = vector.broadcast %c-1_i32_10 : i32 to vector<1x512xi32>
    %23 = arith.addi %1, %22 : vector<1x512xi32>
    %c0_i32_11 = arith.constant 0 : i32
    %24 = vector.broadcast %c0_i32_11 : i32 to vector<1x512xi32>
    %25 = arith.cmpi sge, %23, %24 : vector<1x512xi32>
    %c-1_i32_12 = arith.constant -1 : i32
    %26 = vector.broadcast %c-1_i32_12 : i32 to vector<1x512xi32>
    %27 = arith.addi %1, %26 : vector<1x512xi32>
    %c16_i32_13 = arith.constant 16 : i32
    %28 = vector.broadcast %c16_i32_13 : i32 to vector<1x512xi32>
    %29 = arith.cmpi slt, %27, %28 : vector<1x512xi32>
    %30 = arith.andi %25, %29 : vector<1x512xi1>
    %c0_i32_14 = arith.constant 0 : i32
    %31 = vector.broadcast %c0_i32_14 : i32 to vector<1x512xi32>
    %32 = arith.addi %0, %31 : vector<1x512xi32>
    %c0_i32_15 = arith.constant 0 : i32
    %33 = vector.broadcast %c0_i32_15 : i32 to vector<1x512xi32>
    %34 = arith.cmpi sge, %32, %33 : vector<1x512xi32>
    %35 = arith.andi %30, %34 : vector<1x512xi1>
    %c0_i32_16 = arith.constant 0 : i32
    %36 = vector.broadcast %c0_i32_16 : i32 to vector<1x512xi32>
    %37 = arith.addi %0, %36 : vector<1x512xi32>
    %c16_i32_17 = arith.constant 16 : i32
    %38 = vector.broadcast %c16_i32_17 : i32 to vector<1x512xi32>
    %39 = arith.cmpi slt, %37, %38 : vector<1x512xi32>
    %40 = arith.andi %35, %39 : vector<1x512xi1>
    %c-1_i32_18 = arith.constant -1 : i32
    %41 = vector.broadcast %c-1_i32_18 : i32 to vector<1x512xi32>
    %42 = arith.addi %1, %41 : vector<1x512xi32>
    %c0_i32_19 = arith.constant 0 : i32
    %43 = vector.broadcast %c0_i32_19 : i32 to vector<1x512xi32>
    %44 = arith.cmpi sge, %42, %43 : vector<1x512xi32>
    %c-1_i32_20 = arith.constant -1 : i32
    %45 = vector.broadcast %c-1_i32_20 : i32 to vector<1x512xi32>
    %46 = arith.addi %1, %45 : vector<1x512xi32>
    %c16_i32_21 = arith.constant 16 : i32
    %47 = vector.broadcast %c16_i32_21 : i32 to vector<1x512xi32>
    %48 = arith.cmpi slt, %46, %47 : vector<1x512xi32>
    %49 = arith.andi %44, %48 : vector<1x512xi1>
    %c1_i32 = arith.constant 1 : i32
    %50 = vector.broadcast %c1_i32 : i32 to vector<1x512xi32>
    %51 = arith.addi %0, %50 : vector<1x512xi32>
    %c0_i32_22 = arith.constant 0 : i32
    %52 = vector.broadcast %c0_i32_22 : i32 to vector<1x512xi32>
    %53 = arith.cmpi sge, %51, %52 : vector<1x512xi32>
    %54 = arith.andi %49, %53 : vector<1x512xi1>
    %c1_i32_23 = arith.constant 1 : i32
    %55 = vector.broadcast %c1_i32_23 : i32 to vector<1x512xi32>
    %56 = arith.addi %0, %55 : vector<1x512xi32>
    %c16_i32_24 = arith.constant 16 : i32
    %57 = vector.broadcast %c16_i32_24 : i32 to vector<1x512xi32>
    %58 = arith.cmpi slt, %56, %57 : vector<1x512xi32>
    %59 = arith.andi %54, %58 : vector<1x512xi1>
    %c0_i32_25 = arith.constant 0 : i32
    %60 = vector.broadcast %c0_i32_25 : i32 to vector<1x512xi32>
    %61 = arith.addi %1, %60 : vector<1x512xi32>
    %c0_i32_26 = arith.constant 0 : i32
    %62 = vector.broadcast %c0_i32_26 : i32 to vector<1x512xi32>
    %63 = arith.cmpi sge, %61, %62 : vector<1x512xi32>
    %c0_i32_27 = arith.constant 0 : i32
    %64 = vector.broadcast %c0_i32_27 : i32 to vector<1x512xi32>
    %65 = arith.addi %1, %64 : vector<1x512xi32>
    %c16_i32_28 = arith.constant 16 : i32
    %66 = vector.broadcast %c16_i32_28 : i32 to vector<1x512xi32>
    %67 = arith.cmpi slt, %65, %66 : vector<1x512xi32>
    %68 = arith.andi %63, %67 : vector<1x512xi1>
    %c-1_i32_29 = arith.constant -1 : i32
    %69 = vector.broadcast %c-1_i32_29 : i32 to vector<1x512xi32>
    %70 = arith.addi %0, %69 : vector<1x512xi32>
    %c0_i32_30 = arith.constant 0 : i32
    %71 = vector.broadcast %c0_i32_30 : i32 to vector<1x512xi32>
    %72 = arith.cmpi sge, %70, %71 : vector<1x512xi32>
    %73 = arith.andi %68, %72 : vector<1x512xi1>
    %c-1_i32_31 = arith.constant -1 : i32
    %74 = vector.broadcast %c-1_i32_31 : i32 to vector<1x512xi32>
    %75 = arith.addi %0, %74 : vector<1x512xi32>
    %c16_i32_32 = arith.constant 16 : i32
    %76 = vector.broadcast %c16_i32_32 : i32 to vector<1x512xi32>
    %77 = arith.cmpi slt, %75, %76 : vector<1x512xi32>
    %78 = arith.andi %73, %77 : vector<1x512xi1>
    %c0_i32_33 = arith.constant 0 : i32
    %79 = vector.broadcast %c0_i32_33 : i32 to vector<1x512xi32>
    %80 = arith.addi %1, %79 : vector<1x512xi32>
    %c0_i32_34 = arith.constant 0 : i32
    %81 = vector.broadcast %c0_i32_34 : i32 to vector<1x512xi32>
    %82 = arith.cmpi sge, %80, %81 : vector<1x512xi32>
    %c0_i32_35 = arith.constant 0 : i32
    %83 = vector.broadcast %c0_i32_35 : i32 to vector<1x512xi32>
    %84 = arith.addi %1, %83 : vector<1x512xi32>
    %c16_i32_36 = arith.constant 16 : i32
    %85 = vector.broadcast %c16_i32_36 : i32 to vector<1x512xi32>
    %86 = arith.cmpi slt, %84, %85 : vector<1x512xi32>
    %87 = arith.andi %82, %86 : vector<1x512xi1>
    %c1_i32_37 = arith.constant 1 : i32
    %88 = vector.broadcast %c1_i32_37 : i32 to vector<1x512xi32>
    %89 = arith.addi %0, %88 : vector<1x512xi32>
    %c0_i32_38 = arith.constant 0 : i32
    %90 = vector.broadcast %c0_i32_38 : i32 to vector<1x512xi32>
    %91 = arith.cmpi sge, %89, %90 : vector<1x512xi32>
    %92 = arith.andi %87, %91 : vector<1x512xi1>
    %c1_i32_39 = arith.constant 1 : i32
    %93 = vector.broadcast %c1_i32_39 : i32 to vector<1x512xi32>
    %94 = arith.addi %0, %93 : vector<1x512xi32>
    %c16_i32_40 = arith.constant 16 : i32
    %95 = vector.broadcast %c16_i32_40 : i32 to vector<1x512xi32>
    %96 = arith.cmpi slt, %94, %95 : vector<1x512xi32>
    %97 = arith.andi %92, %96 : vector<1x512xi1>
    %c1_i32_41 = arith.constant 1 : i32
    %98 = vector.broadcast %c1_i32_41 : i32 to vector<1x512xi32>
    %99 = arith.addi %1, %98 : vector<1x512xi32>
    %c0_i32_42 = arith.constant 0 : i32
    %100 = vector.broadcast %c0_i32_42 : i32 to vector<1x512xi32>
    %101 = arith.cmpi sge, %99, %100 : vector<1x512xi32>
    %c1_i32_43 = arith.constant 1 : i32
    %102 = vector.broadcast %c1_i32_43 : i32 to vector<1x512xi32>
    %103 = arith.addi %1, %102 : vector<1x512xi32>
    %c16_i32_44 = arith.constant 16 : i32
    %104 = vector.broadcast %c16_i32_44 : i32 to vector<1x512xi32>
    %105 = arith.cmpi slt, %103, %104 : vector<1x512xi32>
    %106 = arith.andi %101, %105 : vector<1x512xi1>
    %c-1_i32_45 = arith.constant -1 : i32
    %107 = vector.broadcast %c-1_i32_45 : i32 to vector<1x512xi32>
    %108 = arith.addi %0, %107 : vector<1x512xi32>
    %c0_i32_46 = arith.constant 0 : i32
    %109 = vector.broadcast %c0_i32_46 : i32 to vector<1x512xi32>
    %110 = arith.cmpi sge, %108, %109 : vector<1x512xi32>
    %111 = arith.andi %106, %110 : vector<1x512xi1>
    %c-1_i32_47 = arith.constant -1 : i32
    %112 = vector.broadcast %c-1_i32_47 : i32 to vector<1x512xi32>
    %113 = arith.addi %0, %112 : vector<1x512xi32>
    %c16_i32_48 = arith.constant 16 : i32
    %114 = vector.broadcast %c16_i32_48 : i32 to vector<1x512xi32>
    %115 = arith.cmpi slt, %113, %114 : vector<1x512xi32>
    %116 = arith.andi %111, %115 : vector<1x512xi1>
    %c1_i32_49 = arith.constant 1 : i32
    %117 = vector.broadcast %c1_i32_49 : i32 to vector<1x512xi32>
    %118 = arith.addi %1, %117 : vector<1x512xi32>
    %c0_i32_50 = arith.constant 0 : i32
    %119 = vector.broadcast %c0_i32_50 : i32 to vector<1x512xi32>
    %120 = arith.cmpi sge, %118, %119 : vector<1x512xi32>
    %c1_i32_51 = arith.constant 1 : i32
    %121 = vector.broadcast %c1_i32_51 : i32 to vector<1x512xi32>
    %122 = arith.addi %1, %121 : vector<1x512xi32>
    %c16_i32_52 = arith.constant 16 : i32
    %123 = vector.broadcast %c16_i32_52 : i32 to vector<1x512xi32>
    %124 = arith.cmpi slt, %122, %123 : vector<1x512xi32>
    %125 = arith.andi %120, %124 : vector<1x512xi1>
    %c0_i32_53 = arith.constant 0 : i32
    %126 = vector.broadcast %c0_i32_53 : i32 to vector<1x512xi32>
    %127 = arith.addi %0, %126 : vector<1x512xi32>
    %c0_i32_54 = arith.constant 0 : i32
    %128 = vector.broadcast %c0_i32_54 : i32 to vector<1x512xi32>
    %129 = arith.cmpi sge, %127, %128 : vector<1x512xi32>
    %130 = arith.andi %125, %129 : vector<1x512xi1>
    %c0_i32_55 = arith.constant 0 : i32
    %131 = vector.broadcast %c0_i32_55 : i32 to vector<1x512xi32>
    %132 = arith.addi %0, %131 : vector<1x512xi32>
    %c16_i32_56 = arith.constant 16 : i32
    %133 = vector.broadcast %c16_i32_56 : i32 to vector<1x512xi32>
    %134 = arith.cmpi slt, %132, %133 : vector<1x512xi32>
    %135 = arith.andi %130, %134 : vector<1x512xi1>
    %c1_i32_57 = arith.constant 1 : i32
    %136 = vector.broadcast %c1_i32_57 : i32 to vector<1x512xi32>
    %137 = arith.addi %1, %136 : vector<1x512xi32>
    %c0_i32_58 = arith.constant 0 : i32
    %138 = vector.broadcast %c0_i32_58 : i32 to vector<1x512xi32>
    %139 = arith.cmpi sge, %137, %138 : vector<1x512xi32>
    %c1_i32_59 = arith.constant 1 : i32
    %140 = vector.broadcast %c1_i32_59 : i32 to vector<1x512xi32>
    %141 = arith.addi %1, %140 : vector<1x512xi32>
    %c16_i32_60 = arith.constant 16 : i32
    %142 = vector.broadcast %c16_i32_60 : i32 to vector<1x512xi32>
    %143 = arith.cmpi slt, %141, %142 : vector<1x512xi32>
    %144 = arith.andi %139, %143 : vector<1x512xi1>
    %c1_i32_61 = arith.constant 1 : i32
    %145 = vector.broadcast %c1_i32_61 : i32 to vector<1x512xi32>
    %146 = arith.addi %0, %145 : vector<1x512xi32>
    %c0_i32_62 = arith.constant 0 : i32
    %147 = vector.broadcast %c0_i32_62 : i32 to vector<1x512xi32>
    %148 = arith.cmpi sge, %146, %147 : vector<1x512xi32>
    %149 = arith.andi %144, %148 : vector<1x512xi1>
    %c1_i32_63 = arith.constant 1 : i32
    %150 = vector.broadcast %c1_i32_63 : i32 to vector<1x512xi32>
    %151 = arith.addi %0, %150 : vector<1x512xi32>
    %c16_i32_64 = arith.constant 16 : i32
    %152 = vector.broadcast %c16_i32_64 : i32 to vector<1x512xi32>
    %153 = arith.cmpi slt, %151, %152 : vector<1x512xi32>
    %154 = arith.andi %149, %153 : vector<1x512xi1>
    %c0_65 = arith.constant 0 : index
    %c0_66 = arith.constant 0 : index
    %c0_67 = arith.constant 0 : index
    %155 = vector.load %arg1[%c0_65, %c0_66, %c0_67] : memref<1x8x512xf32, #tpu.memory_space<vmem>>, vector<1x8x512xf32>
    %156 = vector.shape_cast %155 : vector<1x8x512xf32> to vector<8x512xf32>
    %c17_i32 = arith.constant 17 : i32
    %157 = tpu.dynamic_rotate %156 by %c17_i32 dim 1 : vector<8x512xf32>, i32 -> vector<8x512xf32>
    %cst = arith.constant 0.000000e+00 : f32
    %158 = vector.broadcast %cst : f32 to vector<8x512xf32>
    %159 = vector.shape_cast %21 : vector<1x512xi1> to vector<1x512xi1>
    %160 = vector.broadcast %159 : vector<1x512xi1> to vector<8x512xi1>
    %161 = arith.select %160, %157, %158 : vector<8x512xi1>, vector<8x512xf32>
    %c16_i32_68 = arith.constant 16 : i32
    %162 = tpu.dynamic_rotate %156 by %c16_i32_68 dim 1 : vector<8x512xf32>, i32 -> vector<8x512xf32>
    %cst_69 = arith.constant 0.000000e+00 : f32
    %163 = vector.broadcast %cst_69 : f32 to vector<8x512xf32>
    %164 = vector.shape_cast %40 : vector<1x512xi1> to vector<1x512xi1>
    %165 = vector.broadcast %164 : vector<1x512xi1> to vector<8x512xi1>
    %166 = arith.select %165, %162, %163 : vector<8x512xi1>, vector<8x512xf32>
    %c15_i32 = arith.constant 15 : i32
    %167 = tpu.dynamic_rotate %156 by %c15_i32 dim 1 : vector<8x512xf32>, i32 -> vector<8x512xf32>
    %cst_70 = arith.constant 0.000000e+00 : f32
    %168 = vector.broadcast %cst_70 : f32 to vector<8x512xf32>
    %169 = vector.shape_cast %59 : vector<1x512xi1> to vector<1x512xi1>
    %170 = vector.broadcast %169 : vector<1x512xi1> to vector<8x512xi1>
    %171 = arith.select %170, %167, %168 : vector<8x512xi1>, vector<8x512xf32>
    %c1_i32_71 = arith.constant 1 : i32
    %172 = tpu.dynamic_rotate %156 by %c1_i32_71 dim 1 : vector<8x512xf32>, i32 -> vector<8x512xf32>
    %cst_72 = arith.constant 0.000000e+00 : f32
    %173 = vector.broadcast %cst_72 : f32 to vector<8x512xf32>
    %174 = vector.shape_cast %78 : vector<1x512xi1> to vector<1x512xi1>
    %175 = vector.broadcast %174 : vector<1x512xi1> to vector<8x512xi1>
    %176 = arith.select %175, %172, %173 : vector<8x512xi1>, vector<8x512xf32>
    %c511_i32 = arith.constant 511 : i32
    %177 = tpu.dynamic_rotate %156 by %c511_i32 dim 1 : vector<8x512xf32>, i32 -> vector<8x512xf32>
    %cst_73 = arith.constant 0.000000e+00 : f32
    %178 = vector.broadcast %cst_73 : f32 to vector<8x512xf32>
    %179 = vector.shape_cast %97 : vector<1x512xi1> to vector<1x512xi1>
    %180 = vector.broadcast %179 : vector<1x512xi1> to vector<8x512xi1>
    %181 = arith.select %180, %177, %178 : vector<8x512xi1>, vector<8x512xf32>
    %c497_i32 = arith.constant 497 : i32
    %182 = tpu.dynamic_rotate %156 by %c497_i32 dim 1 : vector<8x512xf32>, i32 -> vector<8x512xf32>
    %cst_74 = arith.constant 0.000000e+00 : f32
    %183 = vector.broadcast %cst_74 : f32 to vector<8x512xf32>
    %184 = vector.shape_cast %116 : vector<1x512xi1> to vector<1x512xi1>
    %185 = vector.broadcast %184 : vector<1x512xi1> to vector<8x512xi1>
    %186 = arith.select %185, %182, %183 : vector<8x512xi1>, vector<8x512xf32>
    %c496_i32 = arith.constant 496 : i32
    %187 = tpu.dynamic_rotate %156 by %c496_i32 dim 1 : vector<8x512xf32>, i32 -> vector<8x512xf32>
    %cst_75 = arith.constant 0.000000e+00 : f32
    %188 = vector.broadcast %cst_75 : f32 to vector<8x512xf32>
    %189 = vector.shape_cast %135 : vector<1x512xi1> to vector<1x512xi1>
    %190 = vector.broadcast %189 : vector<1x512xi1> to vector<8x512xi1>
    %191 = arith.select %190, %187, %188 : vector<8x512xi1>, vector<8x512xf32>
    %c495_i32 = arith.constant 495 : i32
    %192 = tpu.dynamic_rotate %156 by %c495_i32 dim 1 : vector<8x512xf32>, i32 -> vector<8x512xf32>
    %cst_76 = arith.constant 0.000000e+00 : f32
    %193 = vector.broadcast %cst_76 : f32 to vector<8x512xf32>
    %194 = vector.shape_cast %154 : vector<1x512xi1> to vector<1x512xi1>
    %195 = vector.broadcast %194 : vector<1x512xi1> to vector<8x512xi1>
    %196 = arith.select %195, %192, %193 : vector<8x512xi1>, vector<8x512xf32>
    %cst_77 = arith.constant 0.000000e+00 : f32
    %197 = vector.broadcast %cst_77 : f32 to vector<24x512xf32>
    %198 = tpu.concatenate %161, %166, %171, %176, %156, %181, %186, %191, %196, %197 in 0 : vector<8x512xf32>, vector<8x512xf32>, vector<8x512xf32>, vector<8x512xf32>, vector<8x512xf32>, vector<8x512xf32>, vector<8x512xf32>, vector<8x512xf32>, vector<8x512xf32>, vector<24x512xf32> -> vector<96x512xf32>
    %c0_78 = arith.constant 0 : index
    %c0_79 = arith.constant 0 : index
    %199 = vector.load %arg4[%c0_78, %c0_79] : memref<128x96xf32, #tpu.memory_space<vmem>>, vector<128x96xf32>
    %cst_80 = arith.constant dense<0.000000e+00> : vector<128x512xf32>
    %200 = tpu.matmul %199, %198, %cst_80 {dimension_numbers = #tpu.dot_dimension_numbers<[1], [0], [0], [1], [0, 0, 1, 1], [], []>} : vector<128x96xf32>, vector<96x512xf32>, vector<128x512xf32> -> vector<128x512xf32>
    %c0_81 = arith.constant 0 : index
    %c0_82 = arith.constant 0 : index
    %c0_83 = arith.constant 0 : index
    %201 = vector.load %arg2[%c0_81, %c0_82, %c0_83] : memref<1x32x512xf32, #tpu.memory_space<vmem>>, vector<1x32x512xf32>
    %202 = vector.shape_cast %201 : vector<1x32x512xf32> to vector<32x512xf32>
    %c17_i32_84 = arith.constant 17 : i32
    %203 = tpu.dynamic_rotate %202 by %c17_i32_84 dim 1 : vector<32x512xf32>, i32 -> vector<32x512xf32>
    %cst_85 = arith.constant 0.000000e+00 : f32
    %204 = vector.broadcast %cst_85 : f32 to vector<32x512xf32>
    %205 = vector.shape_cast %21 : vector<1x512xi1> to vector<1x512xi1>
    %206 = vector.broadcast %205 : vector<1x512xi1> to vector<32x512xi1>
    %207 = arith.select %206, %203, %204 : vector<32x512xi1>, vector<32x512xf32>
    %c16_i32_86 = arith.constant 16 : i32
    %208 = tpu.dynamic_rotate %202 by %c16_i32_86 dim 1 : vector<32x512xf32>, i32 -> vector<32x512xf32>
    %cst_87 = arith.constant 0.000000e+00 : f32
    %209 = vector.broadcast %cst_87 : f32 to vector<32x512xf32>
    %210 = vector.shape_cast %40 : vector<1x512xi1> to vector<1x512xi1>
    %211 = vector.broadcast %210 : vector<1x512xi1> to vector<32x512xi1>
    %212 = arith.select %211, %208, %209 : vector<32x512xi1>, vector<32x512xf32>
    %c15_i32_88 = arith.constant 15 : i32
    %213 = tpu.dynamic_rotate %202 by %c15_i32_88 dim 1 : vector<32x512xf32>, i32 -> vector<32x512xf32>
    %cst_89 = arith.constant 0.000000e+00 : f32
    %214 = vector.broadcast %cst_89 : f32 to vector<32x512xf32>
    %215 = vector.shape_cast %59 : vector<1x512xi1> to vector<1x512xi1>
    %216 = vector.broadcast %215 : vector<1x512xi1> to vector<32x512xi1>
    %217 = arith.select %216, %213, %214 : vector<32x512xi1>, vector<32x512xf32>
    %c1_i32_90 = arith.constant 1 : i32
    %218 = tpu.dynamic_rotate %202 by %c1_i32_90 dim 1 : vector<32x512xf32>, i32 -> vector<32x512xf32>
    %cst_91 = arith.constant 0.000000e+00 : f32
    %219 = vector.broadcast %cst_91 : f32 to vector<32x512xf32>
    %220 = vector.shape_cast %78 : vector<1x512xi1> to vector<1x512xi1>
    %221 = vector.broadcast %220 : vector<1x512xi1> to vector<32x512xi1>
    %222 = arith.select %221, %218, %219 : vector<32x512xi1>, vector<32x512xf32>
    %c511_i32_92 = arith.constant 511 : i32
    %223 = tpu.dynamic_rotate %202 by %c511_i32_92 dim 1 : vector<32x512xf32>, i32 -> vector<32x512xf32>
    %cst_93 = arith.constant 0.000000e+00 : f32
    %224 = vector.broadcast %cst_93 : f32 to vector<32x512xf32>
    %225 = vector.shape_cast %97 : vector<1x512xi1> to vector<1x512xi1>
    %226 = vector.broadcast %225 : vector<1x512xi1> to vector<32x512xi1>
    %227 = arith.select %226, %223, %224 : vector<32x512xi1>, vector<32x512xf32>
    %c497_i32_94 = arith.constant 497 : i32
    %228 = tpu.dynamic_rotate %202 by %c497_i32_94 dim 1 : vector<32x512xf32>, i32 -> vector<32x512xf32>
    %cst_95 = arith.constant 0.000000e+00 : f32
    %229 = vector.broadcast %cst_95 : f32 to vector<32x512xf32>
    %230 = vector.shape_cast %116 : vector<1x512xi1> to vector<1x512xi1>
    %231 = vector.broadcast %230 : vector<1x512xi1> to vector<32x512xi1>
    %232 = arith.select %231, %228, %229 : vector<32x512xi1>, vector<32x512xf32>
    %c496_i32_96 = arith.constant 496 : i32
    %233 = tpu.dynamic_rotate %202 by %c496_i32_96 dim 1 : vector<32x512xf32>, i32 -> vector<32x512xf32>
    %cst_97 = arith.constant 0.000000e+00 : f32
    %234 = vector.broadcast %cst_97 : f32 to vector<32x512xf32>
    %235 = vector.shape_cast %135 : vector<1x512xi1> to vector<1x512xi1>
    %236 = vector.broadcast %235 : vector<1x512xi1> to vector<32x512xi1>
    %237 = arith.select %236, %233, %234 : vector<32x512xi1>, vector<32x512xf32>
    %c495_i32_98 = arith.constant 495 : i32
    %238 = tpu.dynamic_rotate %202 by %c495_i32_98 dim 1 : vector<32x512xf32>, i32 -> vector<32x512xf32>
    %cst_99 = arith.constant 0.000000e+00 : f32
    %239 = vector.broadcast %cst_99 : f32 to vector<32x512xf32>
    %240 = vector.shape_cast %154 : vector<1x512xi1> to vector<1x512xi1>
    %241 = vector.broadcast %240 : vector<1x512xi1> to vector<32x512xi1>
    %242 = arith.select %241, %238, %239 : vector<32x512xi1>, vector<32x512xf32>
    %243 = tpu.concatenate %207, %212, %217, %222, %202, %227, %232, %237, %242 in 0 : vector<32x512xf32>, vector<32x512xf32>, vector<32x512xf32>, vector<32x512xf32>, vector<32x512xf32>, vector<32x512xf32>, vector<32x512xf32>, vector<32x512xf32>, vector<32x512xf32> -> vector<288x512xf32>
    %c0_100 = arith.constant 0 : index
    %c0_101 = arith.constant 0 : index
    %244 = vector.load %arg5[%c0_100, %c0_101] : memref<128x288xf32, #tpu.memory_space<vmem>>, vector<128x288xf32>
    %cst_102 = arith.constant dense<0.000000e+00> : vector<128x512xf32>
    %245 = tpu.matmul %244, %243, %cst_102 {dimension_numbers = #tpu.dot_dimension_numbers<[1], [0], [0], [1], [0, 0, 1, 1], [], []>} : vector<128x288xf32>, vector<288x512xf32>, vector<128x512xf32> -> vector<128x512xf32>
    %cst_103 = arith.constant dense<0.000000e+00> : vector<512xf32>
    %246 = vector.multi_reduction <add>, %200, %cst_103 [0] : vector<128x512xf32> to vector<512xf32>
    %247 = vector.shape_cast %246 : vector<512xf32> to vector<1x512xf32>
    %248 = arith.mulf %200, %200 : vector<128x512xf32>
    %cst_104 = arith.constant dense<0.000000e+00> : vector<512xf32>
    %249 = vector.multi_reduction <add>, %248, %cst_104 [0] : vector<128x512xf32> to vector<512xf32>
    %250 = vector.shape_cast %249 : vector<512xf32> to vector<1x512xf32>
    %cst_105 = arith.constant 0.000000e+00 : f32
    %251 = vector.broadcast %cst_105 : f32 to vector<1x512xf32>
    %cst_106 = arith.constant 0.000000e+00 : f32
    %252 = vector.broadcast %cst_106 : f32 to vector<1x512xf32>
    %c0_i32_107 = arith.constant 0 : i32
    %253 = vector.broadcast %c0_i32_107 : i32 to vector<1x512xi32>
    %254 = arith.cmpi eq, %2, %253 : vector<1x512xi32>
    %cst_108 = arith.constant 0.000000e+00 : f32
    %255 = vector.broadcast %cst_108 : f32 to vector<1x512xf32>
    %256 = arith.select %254, %247, %255 : vector<1x512xi1>, vector<1x512xf32>
    %257 = vector.shape_cast %256 : vector<1x512xf32> to vector<1x1x512xf32>
    %cst_109 = arith.constant dense<0.000000e+00> : vector<1xf32>
    %258 = vector.multi_reduction <add>, %257, %cst_109 [1, 2] : vector<1x1x512xf32> to vector<1xf32>
    %259 = vector.shape_cast %258 : vector<1xf32> to vector<1x1x1xf32>
    %260 = vector.extract %259[0, 0, 0] : f32 from vector<1x1x1xf32>
    %261 = vector.broadcast %260 : f32 to vector<1x1xf32>
    %cst_110 = arith.constant 0.000000e+00 : f32
    %262 = vector.broadcast %cst_110 : f32 to vector<1x512xf32>
    %263 = arith.select %254, %250, %262 : vector<1x512xi1>, vector<1x512xf32>
    %264 = vector.shape_cast %263 : vector<1x512xf32> to vector<1x1x512xf32>
    %cst_111 = arith.constant dense<0.000000e+00> : vector<1xf32>
    %265 = vector.multi_reduction <add>, %264, %cst_111 [1, 2] : vector<1x1x512xf32> to vector<1xf32>
    %266 = vector.shape_cast %265 : vector<1xf32> to vector<1x1x1xf32>
    %267 = vector.extract %266[0, 0, 0] : f32 from vector<1x1x1xf32>
    %268 = vector.broadcast %267 : f32 to vector<1x1xf32>
    %cst_112 = arith.constant 3.276800e+04 : f32
    %269 = vector.broadcast %cst_112 : f32 to vector<1x1xf32>
    %270 = arith.divf %261, %269 : vector<1x1xf32>
    %cst_113 = arith.constant 3.276800e+04 : f32
    %271 = vector.broadcast %cst_113 : f32 to vector<1x1xf32>
    %272 = arith.divf %268, %271 : vector<1x1xf32>
    %273 = arith.mulf %270, %270 : vector<1x1xf32>
    %274 = arith.subf %272, %273 : vector<1x1xf32>
    %cst_114 = arith.constant 0.000000e+00 : f32
    %275 = vector.broadcast %cst_114 : f32 to vector<1x1xf32>
    %276 = arith.maximumf %274, %275 : vector<1x1xf32>
    %cst_115 = arith.constant 9.99999974E-6 : f32
    %277 = vector.broadcast %cst_115 : f32 to vector<1x1xf32>
    %278 = arith.addf %276, %277 : vector<1x1xf32>
    %279 = math.rsqrt %278 : vector<1x1xf32>
    %280 = vector.shape_cast %270 : vector<1x1xf32> to vector<1x1xf32>
    %281 = vector.broadcast %280 : vector<1x1xf32> to vector<1x512xf32>
    %282 = arith.select %254, %281, %251 : vector<1x512xi1>, vector<1x512xf32>
    %283 = vector.shape_cast %279 : vector<1x1xf32> to vector<1x1xf32>
    %284 = vector.broadcast %283 : vector<1x1xf32> to vector<1x512xf32>
    %285 = arith.select %254, %284, %252 : vector<1x512xi1>, vector<1x512xf32>
    %c1_i32_116 = arith.constant 1 : i32
    %286 = vector.broadcast %c1_i32_116 : i32 to vector<1x512xi32>
    %287 = arith.cmpi eq, %2, %286 : vector<1x512xi32>
    %cst_117 = arith.constant 0.000000e+00 : f32
    %288 = vector.broadcast %cst_117 : f32 to vector<1x512xf32>
    %289 = arith.select %287, %247, %288 : vector<1x512xi1>, vector<1x512xf32>
    %290 = vector.shape_cast %289 : vector<1x512xf32> to vector<1x1x512xf32>
    %cst_118 = arith.constant dense<0.000000e+00> : vector<1xf32>
    %291 = vector.multi_reduction <add>, %290, %cst_118 [1, 2] : vector<1x1x512xf32> to vector<1xf32>
    %292 = vector.shape_cast %291 : vector<1xf32> to vector<1x1x1xf32>
    %293 = vector.extract %292[0, 0, 0] : f32 from vector<1x1x1xf32>
    %294 = vector.broadcast %293 : f32 to vector<1x1xf32>
    %cst_119 = arith.constant 0.000000e+00 : f32
    %295 = vector.broadcast %cst_119 : f32 to vector<1x512xf32>
    %296 = arith.select %287, %250, %295 : vector<1x512xi1>, vector<1x512xf32>
    %297 = vector.shape_cast %296 : vector<1x512xf32> to vector<1x1x512xf32>
    %cst_120 = arith.constant dense<0.000000e+00> : vector<1xf32>
    %298 = vector.multi_reduction <add>, %297, %cst_120 [1, 2] : vector<1x1x512xf32> to vector<1xf32>
    %299 = vector.shape_cast %298 : vector<1xf32> to vector<1x1x1xf32>
    %300 = vector.extract %299[0, 0, 0] : f32 from vector<1x1x1xf32>
    %301 = vector.broadcast %300 : f32 to vector<1x1xf32>
    %cst_121 = arith.constant 3.276800e+04 : f32
    %302 = vector.broadcast %cst_121 : f32 to vector<1x1xf32>
    %303 = arith.divf %294, %302 : vector<1x1xf32>
    %cst_122 = arith.constant 3.276800e+04 : f32
    %304 = vector.broadcast %cst_122 : f32 to vector<1x1xf32>
    %305 = arith.divf %301, %304 : vector<1x1xf32>
    %306 = arith.mulf %303, %303 : vector<1x1xf32>
    %307 = arith.subf %305, %306 : vector<1x1xf32>
    %cst_123 = arith.constant 0.000000e+00 : f32
    %308 = vector.broadcast %cst_123 : f32 to vector<1x1xf32>
    %309 = arith.maximumf %307, %308 : vector<1x1xf32>
    %cst_124 = arith.constant 9.99999974E-6 : f32
    %310 = vector.broadcast %cst_124 : f32 to vector<1x1xf32>
    %311 = arith.addf %309, %310 : vector<1x1xf32>
    %312 = math.rsqrt %311 : vector<1x1xf32>
    %313 = vector.shape_cast %303 : vector<1x1xf32> to vector<1x1xf32>
    %314 = vector.broadcast %313 : vector<1x1xf32> to vector<1x512xf32>
    %315 = arith.select %287, %314, %282 : vector<1x512xi1>, vector<1x512xf32>
    %316 = vector.shape_cast %312 : vector<1x1xf32> to vector<1x1xf32>
    %317 = vector.broadcast %316 : vector<1x1xf32> to vector<1x512xf32>
    %318 = arith.select %287, %317, %285 : vector<1x512xi1>, vector<1x512xf32>
    %cst_125 = arith.constant dense<0.000000e+00> : vector<512xf32>
    %319 = vector.multi_reduction <add>, %245, %cst_125 [0] : vector<128x512xf32> to vector<512xf32>
    %320 = vector.shape_cast %319 : vector<512xf32> to vector<1x512xf32>
    %321 = arith.mulf %245, %245 : vector<128x512xf32>
    %cst_126 = arith.constant dense<0.000000e+00> : vector<512xf32>
    %322 = vector.multi_reduction <add>, %321, %cst_126 [0] : vector<128x512xf32> to vector<512xf32>
    %323 = vector.shape_cast %322 : vector<512xf32> to vector<1x512xf32>
    %cst_127 = arith.constant 0.000000e+00 : f32
    %324 = vector.broadcast %cst_127 : f32 to vector<1x512xf32>
    %cst_128 = arith.constant 0.000000e+00 : f32
    %325 = vector.broadcast %cst_128 : f32 to vector<1x512xf32>
    %c0_i32_129 = arith.constant 0 : i32
    %326 = vector.broadcast %c0_i32_129 : i32 to vector<1x512xi32>
    %327 = arith.cmpi eq, %2, %326 : vector<1x512xi32>
    %cst_130 = arith.constant 0.000000e+00 : f32
    %328 = vector.broadcast %cst_130 : f32 to vector<1x512xf32>
    %329 = arith.select %327, %320, %328 : vector<1x512xi1>, vector<1x512xf32>
    %330 = vector.shape_cast %329 : vector<1x512xf32> to vector<1x1x512xf32>
    %cst_131 = arith.constant dense<0.000000e+00> : vector<1xf32>
    %331 = vector.multi_reduction <add>, %330, %cst_131 [1, 2] : vector<1x1x512xf32> to vector<1xf32>
    %332 = vector.shape_cast %331 : vector<1xf32> to vector<1x1x1xf32>
    %333 = vector.extract %332[0, 0, 0] : f32 from vector<1x1x1xf32>
    %334 = vector.broadcast %333 : f32 to vector<1x1xf32>
    %cst_132 = arith.constant 0.000000e+00 : f32
    %335 = vector.broadcast %cst_132 : f32 to vector<1x512xf32>
    %336 = arith.select %327, %323, %335 : vector<1x512xi1>, vector<1x512xf32>
    %337 = vector.shape_cast %336 : vector<1x512xf32> to vector<1x1x512xf32>
    %cst_133 = arith.constant dense<0.000000e+00> : vector<1xf32>
    %338 = vector.multi_reduction <add>, %337, %cst_133 [1, 2] : vector<1x1x512xf32> to vector<1xf32>
    %339 = vector.shape_cast %338 : vector<1xf32> to vector<1x1x1xf32>
    %340 = vector.extract %339[0, 0, 0] : f32 from vector<1x1x1xf32>
    %341 = vector.broadcast %340 : f32 to vector<1x1xf32>
    %cst_134 = arith.constant 3.276800e+04 : f32
    %342 = vector.broadcast %cst_134 : f32 to vector<1x1xf32>
    %343 = arith.divf %334, %342 : vector<1x1xf32>
    %cst_135 = arith.constant 3.276800e+04 : f32
    %344 = vector.broadcast %cst_135 : f32 to vector<1x1xf32>
    %345 = arith.divf %341, %344 : vector<1x1xf32>
    %346 = arith.mulf %343, %343 : vector<1x1xf32>
    %347 = arith.subf %345, %346 : vector<1x1xf32>
    %cst_136 = arith.constant 0.000000e+00 : f32
    %348 = vector.broadcast %cst_136 : f32 to vector<1x1xf32>
    %349 = arith.maximumf %347, %348 : vector<1x1xf32>
    %cst_137 = arith.constant 9.99999974E-6 : f32
    %350 = vector.broadcast %cst_137 : f32 to vector<1x1xf32>
    %351 = arith.addf %349, %350 : vector<1x1xf32>
    %352 = math.rsqrt %351 : vector<1x1xf32>
    %353 = vector.shape_cast %343 : vector<1x1xf32> to vector<1x1xf32>
    %354 = vector.broadcast %353 : vector<1x1xf32> to vector<1x512xf32>
    %355 = arith.select %327, %354, %324 : vector<1x512xi1>, vector<1x512xf32>
    %356 = vector.shape_cast %352 : vector<1x1xf32> to vector<1x1xf32>
    %357 = vector.broadcast %356 : vector<1x1xf32> to vector<1x512xf32>
    %358 = arith.select %327, %357, %325 : vector<1x512xi1>, vector<1x512xf32>
    %c1_i32_138 = arith.constant 1 : i32
    %359 = vector.broadcast %c1_i32_138 : i32 to vector<1x512xi32>
    %360 = arith.cmpi eq, %2, %359 : vector<1x512xi32>
    %cst_139 = arith.constant 0.000000e+00 : f32
    %361 = vector.broadcast %cst_139 : f32 to vector<1x512xf32>
    %362 = arith.select %360, %320, %361 : vector<1x512xi1>, vector<1x512xf32>
    %363 = vector.shape_cast %362 : vector<1x512xf32> to vector<1x1x512xf32>
    %cst_140 = arith.constant dense<0.000000e+00> : vector<1xf32>
    %364 = vector.multi_reduction <add>, %363, %cst_140 [1, 2] : vector<1x1x512xf32> to vector<1xf32>
    %365 = vector.shape_cast %364 : vector<1xf32> to vector<1x1x1xf32>
    %366 = vector.extract %365[0, 0, 0] : f32 from vector<1x1x1xf32>
    %367 = vector.broadcast %366 : f32 to vector<1x1xf32>
    %cst_141 = arith.constant 0.000000e+00 : f32
    %368 = vector.broadcast %cst_141 : f32 to vector<1x512xf32>
    %369 = arith.select %360, %323, %368 : vector<1x512xi1>, vector<1x512xf32>
    %370 = vector.shape_cast %369 : vector<1x512xf32> to vector<1x1x512xf32>
    %cst_142 = arith.constant dense<0.000000e+00> : vector<1xf32>
    %371 = vector.multi_reduction <add>, %370, %cst_142 [1, 2] : vector<1x1x512xf32> to vector<1xf32>
    %372 = vector.shape_cast %371 : vector<1xf32> to vector<1x1x1xf32>
    %373 = vector.extract %372[0, 0, 0] : f32 from vector<1x1x1xf32>
    %374 = vector.broadcast %373 : f32 to vector<1x1xf32>
    %cst_143 = arith.constant 3.276800e+04 : f32
    %375 = vector.broadcast %cst_143 : f32 to vector<1x1xf32>
    %376 = arith.divf %367, %375 : vector<1x1xf32>
    %cst_144 = arith.constant 3.276800e+04 : f32
    %377 = vector.broadcast %cst_144 : f32 to vector<1x1xf32>
    %378 = arith.divf %374, %377 : vector<1x1xf32>
    %379 = arith.mulf %376, %376 : vector<1x1xf32>
    %380 = arith.subf %378, %379 : vector<1x1xf32>
    %cst_145 = arith.constant 0.000000e+00 : f32
    %381 = vector.broadcast %cst_145 : f32 to vector<1x1xf32>
    %382 = arith.maximumf %380, %381 : vector<1x1xf32>
    %cst_146 = arith.constant 9.99999974E-6 : f32
    %383 = vector.broadcast %cst_146 : f32 to vector<1x1xf32>
    %384 = arith.addf %382, %383 : vector<1x1xf32>
    %385 = math.rsqrt %384 : vector<1x1xf32>
    %386 = vector.shape_cast %376 : vector<1x1xf32> to vector<1x1xf32>
    %387 = vector.broadcast %386 : vector<1x1xf32> to vector<1x512xf32>
    %388 = arith.select %360, %387, %355 : vector<1x512xi1>, vector<1x512xf32>
    %389 = vector.shape_cast %385 : vector<1x1xf32> to vector<1x1xf32>
    %390 = vector.broadcast %389 : vector<1x1xf32> to vector<1x512xf32>
    %391 = arith.select %360, %390, %358 : vector<1x512xi1>, vector<1x512xf32>
    %392 = vector.broadcast %315 : vector<1x512xf32> to vector<128x512xf32>
    %393 = arith.subf %200, %392 : vector<128x512xf32>
    %394 = vector.broadcast %318 : vector<1x512xf32> to vector<128x512xf32>
    %395 = arith.mulf %393, %394 : vector<128x512xf32>
    %c0_147 = arith.constant 0 : index
    %c0_148 = arith.constant 0 : index
    %396 = vector.load %arg6[%c0_147, %c0_148] : memref<128x1xf32, #tpu.memory_space<vmem>>, vector<128x1xf32>
    %397 = vector.broadcast %396 : vector<128x1xf32> to vector<128x512xf32>
    %398 = arith.mulf %395, %397 : vector<128x512xf32>
    %399 = vector.broadcast %388 : vector<1x512xf32> to vector<128x512xf32>
    %400 = arith.subf %245, %399 : vector<128x512xf32>
    %401 = vector.broadcast %391 : vector<1x512xf32> to vector<128x512xf32>
    %402 = arith.mulf %400, %401 : vector<128x512xf32>
    %c0_149 = arith.constant 0 : index
    %c0_150 = arith.constant 0 : index
    %403 = vector.load %arg7[%c0_149, %c0_150] : memref<128x1xf32, #tpu.memory_space<vmem>>, vector<128x1xf32>
    %404 = vector.broadcast %403 : vector<128x1xf32> to vector<128x512xf32>
    %405 = arith.mulf %402, %404 : vector<128x512xf32>
    %406 = arith.addf %398, %405 : vector<128x512xf32>
    %c0_151 = arith.constant 0 : index
    %c0_152 = arith.constant 0 : index
    %407 = vector.load %arg8[%c0_151, %c0_152] : memref<128x1xf32, #tpu.memory_space<vmem>>, vector<128x1xf32>
    %408 = vector.broadcast %407 : vector<128x1xf32> to vector<128x512xf32>
    %409 = arith.addf %406, %408 : vector<128x512xf32>
    %410 = vector.extract_strided_slice %409 {offsets = [0, 0], sizes = [32, 512], strides = [1, 1]} : vector<128x512xf32> to vector<32x512xf32>
    %411 = vector.extract_strided_slice %409 {offsets = [32, 0], sizes = [32, 512], strides = [1, 1]} : vector<128x512xf32> to vector<32x512xf32>
    %412 = vector.extract_strided_slice %409 {offsets = [64, 0], sizes = [32, 512], strides = [1, 1]} : vector<128x512xf32> to vector<32x512xf32>
    %413 = vector.extract_strided_slice %409 {offsets = [96, 0], sizes = [32, 512], strides = [1, 1]} : vector<128x512xf32> to vector<32x512xf32>
    %c0_153 = arith.constant 0 : index
    %c0_154 = arith.constant 0 : index
    %c0_155 = arith.constant 0 : index
    %414 = vector.load %arg3[%c0_153, %c0_154, %c0_155] : memref<1x32x512xf32, #tpu.memory_space<vmem>>, vector<1x32x512xf32>
    %415 = vector.shape_cast %414 : vector<1x32x512xf32> to vector<32x512xf32>
    %416 = arith.negf %410 : vector<32x512xf32>
    %417 = math.exp %416 : vector<32x512xf32>
    %cst_156 = arith.constant 1.000000e+00 : f32
    %418 = vector.broadcast %cst_156 : f32 to vector<32x512xf32>
    %419 = arith.addf %418, %417 : vector<32x512xf32>
    %420 = arith.divf %418, %419 : vector<32x512xf32>
    %421 = arith.mulf %420, %415 : vector<32x512xf32>
    %422 = arith.negf %411 : vector<32x512xf32>
    %423 = math.exp %422 : vector<32x512xf32>
    %cst_157 = arith.constant 1.000000e+00 : f32
    %424 = vector.broadcast %cst_157 : f32 to vector<32x512xf32>
    %425 = arith.addf %424, %423 : vector<32x512xf32>
    %426 = arith.divf %424, %425 : vector<32x512xf32>
    %427 = math.tanh %413 : vector<32x512xf32>
    %428 = arith.mulf %426, %427 : vector<32x512xf32>
    %429 = arith.addf %421, %428 : vector<32x512xf32>
    %cst_158 = arith.constant dense<0.000000e+00> : vector<512xf32>
    %430 = vector.multi_reduction <add>, %429, %cst_158 [0] : vector<32x512xf32> to vector<512xf32>
    %431 = vector.shape_cast %430 : vector<512xf32> to vector<1x512xf32>
    %432 = arith.mulf %429, %429 : vector<32x512xf32>
    %cst_159 = arith.constant dense<0.000000e+00> : vector<512xf32>
    %433 = vector.multi_reduction <add>, %432, %cst_159 [0] : vector<32x512xf32> to vector<512xf32>
    %434 = vector.shape_cast %433 : vector<512xf32> to vector<1x512xf32>
    %cst_160 = arith.constant 0.000000e+00 : f32
    %435 = vector.broadcast %cst_160 : f32 to vector<1x512xf32>
    %cst_161 = arith.constant 0.000000e+00 : f32
    %436 = vector.broadcast %cst_161 : f32 to vector<1x512xf32>
    %c0_i32_162 = arith.constant 0 : i32
    %437 = vector.broadcast %c0_i32_162 : i32 to vector<1x512xi32>
    %438 = arith.cmpi eq, %2, %437 : vector<1x512xi32>
    %cst_163 = arith.constant 0.000000e+00 : f32
    %439 = vector.broadcast %cst_163 : f32 to vector<1x512xf32>
    %440 = arith.select %438, %431, %439 : vector<1x512xi1>, vector<1x512xf32>
    %441 = vector.shape_cast %440 : vector<1x512xf32> to vector<1x1x512xf32>
    %cst_164 = arith.constant dense<0.000000e+00> : vector<1xf32>
    %442 = vector.multi_reduction <add>, %441, %cst_164 [1, 2] : vector<1x1x512xf32> to vector<1xf32>
    %443 = vector.shape_cast %442 : vector<1xf32> to vector<1x1x1xf32>
    %444 = vector.extract %443[0, 0, 0] : f32 from vector<1x1x1xf32>
    %445 = vector.broadcast %444 : f32 to vector<1x1xf32>
    %cst_165 = arith.constant 0.000000e+00 : f32
    %446 = vector.broadcast %cst_165 : f32 to vector<1x512xf32>
    %447 = arith.select %438, %434, %446 : vector<1x512xi1>, vector<1x512xf32>
    %448 = vector.shape_cast %447 : vector<1x512xf32> to vector<1x1x512xf32>
    %cst_166 = arith.constant dense<0.000000e+00> : vector<1xf32>
    %449 = vector.multi_reduction <add>, %448, %cst_166 [1, 2] : vector<1x1x512xf32> to vector<1xf32>
    %450 = vector.shape_cast %449 : vector<1xf32> to vector<1x1x1xf32>
    %451 = vector.extract %450[0, 0, 0] : f32 from vector<1x1x1xf32>
    %452 = vector.broadcast %451 : f32 to vector<1x1xf32>
    %cst_167 = arith.constant 8.192000e+03 : f32
    %453 = vector.broadcast %cst_167 : f32 to vector<1x1xf32>
    %454 = arith.divf %445, %453 : vector<1x1xf32>
    %cst_168 = arith.constant 8.192000e+03 : f32
    %455 = vector.broadcast %cst_168 : f32 to vector<1x1xf32>
    %456 = arith.divf %452, %455 : vector<1x1xf32>
    %457 = arith.mulf %454, %454 : vector<1x1xf32>
    %458 = arith.subf %456, %457 : vector<1x1xf32>
    %cst_169 = arith.constant 0.000000e+00 : f32
    %459 = vector.broadcast %cst_169 : f32 to vector<1x1xf32>
    %460 = arith.maximumf %458, %459 : vector<1x1xf32>
    %cst_170 = arith.constant 9.99999974E-6 : f32
    %461 = vector.broadcast %cst_170 : f32 to vector<1x1xf32>
    %462 = arith.addf %460, %461 : vector<1x1xf32>
    %463 = math.rsqrt %462 : vector<1x1xf32>
    %464 = vector.shape_cast %454 : vector<1x1xf32> to vector<1x1xf32>
    %465 = vector.broadcast %464 : vector<1x1xf32> to vector<1x512xf32>
    %466 = arith.select %438, %465, %435 : vector<1x512xi1>, vector<1x512xf32>
    %467 = vector.shape_cast %463 : vector<1x1xf32> to vector<1x1xf32>
    %468 = vector.broadcast %467 : vector<1x1xf32> to vector<1x512xf32>
    %469 = arith.select %438, %468, %436 : vector<1x512xi1>, vector<1x512xf32>
    %c1_i32_171 = arith.constant 1 : i32
    %470 = vector.broadcast %c1_i32_171 : i32 to vector<1x512xi32>
    %471 = arith.cmpi eq, %2, %470 : vector<1x512xi32>
    %cst_172 = arith.constant 0.000000e+00 : f32
    %472 = vector.broadcast %cst_172 : f32 to vector<1x512xf32>
    %473 = arith.select %471, %431, %472 : vector<1x512xi1>, vector<1x512xf32>
    %474 = vector.shape_cast %473 : vector<1x512xf32> to vector<1x1x512xf32>
    %cst_173 = arith.constant dense<0.000000e+00> : vector<1xf32>
    %475 = vector.multi_reduction <add>, %474, %cst_173 [1, 2] : vector<1x1x512xf32> to vector<1xf32>
    %476 = vector.shape_cast %475 : vector<1xf32> to vector<1x1x1xf32>
    %477 = vector.extract %476[0, 0, 0] : f32 from vector<1x1x1xf32>
    %478 = vector.broadcast %477 : f32 to vector<1x1xf32>
    %cst_174 = arith.constant 0.000000e+00 : f32
    %479 = vector.broadcast %cst_174 : f32 to vector<1x512xf32>
    %480 = arith.select %471, %434, %479 : vector<1x512xi1>, vector<1x512xf32>
    %481 = vector.shape_cast %480 : vector<1x512xf32> to vector<1x1x512xf32>
    %cst_175 = arith.constant dense<0.000000e+00> : vector<1xf32>
    %482 = vector.multi_reduction <add>, %481, %cst_175 [1, 2] : vector<1x1x512xf32> to vector<1xf32>
    %483 = vector.shape_cast %482 : vector<1xf32> to vector<1x1x1xf32>
    %484 = vector.extract %483[0, 0, 0] : f32 from vector<1x1x1xf32>
    %485 = vector.broadcast %484 : f32 to vector<1x1xf32>
    %cst_176 = arith.constant 8.192000e+03 : f32
    %486 = vector.broadcast %cst_176 : f32 to vector<1x1xf32>
    %487 = arith.divf %478, %486 : vector<1x1xf32>
    %cst_177 = arith.constant 8.192000e+03 : f32
    %488 = vector.broadcast %cst_177 : f32 to vector<1x1xf32>
    %489 = arith.divf %485, %488 : vector<1x1xf32>
    %490 = arith.mulf %487, %487 : vector<1x1xf32>
    %491 = arith.subf %489, %490 : vector<1x1xf32>
    %cst_178 = arith.constant 0.000000e+00 : f32
    %492 = vector.broadcast %cst_178 : f32 to vector<1x1xf32>
    %493 = arith.maximumf %491, %492 : vector<1x1xf32>
    %cst_179 = arith.constant 9.99999974E-6 : f32
    %494 = vector.broadcast %cst_179 : f32 to vector<1x1xf32>
    %495 = arith.addf %493, %494 : vector<1x1xf32>
    %496 = math.rsqrt %495 : vector<1x1xf32>
    %497 = vector.shape_cast %487 : vector<1x1xf32> to vector<1x1xf32>
    %498 = vector.broadcast %497 : vector<1x1xf32> to vector<1x512xf32>
    %499 = arith.select %471, %498, %466 : vector<1x512xi1>, vector<1x512xf32>
    %500 = vector.shape_cast %496 : vector<1x1xf32> to vector<1x1xf32>
    %501 = vector.broadcast %500 : vector<1x1xf32> to vector<1x512xf32>
    %502 = arith.select %471, %501, %469 : vector<1x512xi1>, vector<1x512xf32>
    %503 = vector.broadcast %499 : vector<1x512xf32> to vector<32x512xf32>
    %504 = arith.subf %429, %503 : vector<32x512xf32>
    %505 = vector.broadcast %502 : vector<1x512xf32> to vector<32x512xf32>
    %506 = arith.mulf %504, %505 : vector<32x512xf32>
    %c0_180 = arith.constant 0 : index
    %c0_181 = arith.constant 0 : index
    %507 = vector.load %arg9[%c0_180, %c0_181] : memref<32x1xf32, #tpu.memory_space<vmem>>, vector<32x1xf32>
    %508 = vector.broadcast %507 : vector<32x1xf32> to vector<32x512xf32>
    %509 = arith.mulf %506, %508 : vector<32x512xf32>
    %c0_182 = arith.constant 0 : index
    %c0_183 = arith.constant 0 : index
    %510 = vector.load %arg10[%c0_182, %c0_183] : memref<32x1xf32, #tpu.memory_space<vmem>>, vector<32x1xf32>
    %511 = vector.broadcast %510 : vector<32x1xf32> to vector<32x512xf32>
    %512 = arith.addf %509, %511 : vector<32x512xf32>
    %513 = arith.negf %412 : vector<32x512xf32>
    %514 = math.exp %513 : vector<32x512xf32>
    %cst_184 = arith.constant 1.000000e+00 : f32
    %515 = vector.broadcast %cst_184 : f32 to vector<32x512xf32>
    %516 = arith.addf %515, %514 : vector<32x512xf32>
    %517 = arith.divf %515, %516 : vector<32x512xf32>
    %518 = math.tanh %512 : vector<32x512xf32>
    %519 = arith.mulf %517, %518 : vector<32x512xf32>
    %c0_185 = arith.constant 0 : index
    %c0_186 = arith.constant 0 : index
    %c0_187 = arith.constant 0 : index
    %520 = vector.load %arg14[%c0_185, %c0_186, %c0_187] : memref<1x32x512xf32, #tpu.memory_space<vmem>>, vector<1x32x512xf32>
    %521 = vector.shape_cast %520 : vector<1x32x512xf32> to vector<32x512xf32>
    %522 = vector.shape_cast %519 : vector<32x512xf32> to vector<1x32x512xf32>
    tpu.vector_store %arg14[%c0_185, %c0_186, %c0_187], %522 {strides = array<i32>} : memref<1x32x512xf32, #tpu.memory_space<vmem>>, vector<1x32x512xf32>,
    %c0_188 = arith.constant 0 : index
    %c0_189 = arith.constant 0 : index
    %c0_190 = arith.constant 0 : index
    %523 = vector.load %arg15[%c0_188, %c0_189, %c0_190] : memref<1x32x512xf32, #tpu.memory_space<vmem>>, vector<1x32x512xf32>
    %524 = vector.shape_cast %523 : vector<1x32x512xf32> to vector<32x512xf32>
    %525 = vector.shape_cast %429 : vector<32x512xf32> to vector<1x32x512xf32>
    tpu.vector_store %arg15[%c0_188, %c0_189, %c0_190], %525 {strides = array<i32>} : memref<1x32x512xf32, #tpu.memory_space<vmem>>, vector<1x32x512xf32>,
    return
  }
  func.func @transform_0(%arg0: i32) -> (i32, i32, i32) {
    %c0_i32 = arith.constant 0 : i32
    %c0_i32_0 = arith.constant 0 : i32
    %c0_i32_1 = arith.constant 0 : i32
    return %arg0, %c0_i32, %c0_i32_0 : i32, i32, i32
  }
  func.func @transform_1(%arg0: i32) -> (i32, i32, i32) {
    %c0_i32 = arith.constant 0 : i32
    %c0_i32_0 = arith.constant 0 : i32
    %c0_i32_1 = arith.constant 0 : i32
    return %arg0, %c0_i32, %c0_i32_0 : i32, i32, i32
  }
  func.func @transform_2(%arg0: i32) -> (i32, i32, i32) {
    %c0_i32 = arith.constant 0 : i32
    %c0_i32_0 = arith.constant 0 : i32
    %c0_i32_1 = arith.constant 0 : i32
    return %arg0, %c0_i32, %c0_i32_0 : i32, i32, i32
  }
  func.func @transform_3(%arg0: i32) -> (i32, i32) {
    %c0_i32 = arith.constant 0 : i32
    %c0_i32_0 = arith.constant 0 : i32
    %c0_i32_1 = arith.constant 0 : i32
    return %c0_i32, %c0_i32_0 : i32, i32
  }
  func.func @transform_4(%arg0: i32) -> (i32, i32) {
    %c0_i32 = arith.constant 0 : i32
    %c0_i32_0 = arith.constant 0 : i32
    %c0_i32_1 = arith.constant 0 : i32
    return %c0_i32, %c0_i32_0 : i32, i32
  }
  func.func @transform_5(%arg0: i32) -> (i32, i32) {
    %c0_i32 = arith.constant 0 : i32
    %c0_i32_0 = arith.constant 0 : i32
    %c0_i32_1 = arith.constant 0 : i32
    return %c0_i32, %c0_i32_0 : i32, i32
  }
  func.func @transform_6(%arg0: i32) -> (i32, i32) {
    %c0_i32 = arith.constant 0 : i32
    %c0_i32_0 = arith.constant 0 : i32
    %c0_i32_1 = arith.constant 0 : i32
    return %c0_i32, %c0_i32_0 : i32, i32
  }
  func.func @transform_7(%arg0: i32) -> (i32, i32) {
    %c0_i32 = arith.constant 0 : i32
    %c0_i32_0 = arith.constant 0 : i32
    %c0_i32_1 = arith.constant 0 : i32
    return %c0_i32, %c0_i32_0 : i32, i32
  }
  func.func @transform_8(%arg0: i32) -> (i32, i32) {
    %c0_i32 = arith.constant 0 : i32
    %c0_i32_0 = arith.constant 0 : i32
    %c0_i32_1 = arith.constant 0 : i32
    return %c0_i32, %c0_i32_0 : i32, i32
  }
  func.func @transform_9(%arg0: i32) -> (i32, i32) {
    %c0_i32 = arith.constant 0 : i32
    %c0_i32_0 = arith.constant 0 : i32
    %c0_i32_1 = arith.constant 0 : i32
    return %c0_i32, %c0_i32_0 : i32, i32
  }
  func.func @transform_10(%arg0: i32) -> (i32, i32) {
    %c0_i32 = arith.constant 0 : i32
    %c0_i32_0 = arith.constant 0 : i32
    %c0_i32_1 = arith.constant 0 : i32
    return %c0_i32, %c0_i32_0 : i32, i32
  }
  func.func @transform_11(%arg0: i32) -> (i32, i32) {
    %c0_i32 = arith.constant 0 : i32
    %c0_i32_0 = arith.constant 0 : i32
    %c0_i32_1 = arith.constant 0 : i32
    return %c0_i32, %c0_i32_0 : i32, i32
  }
  func.func @transform_12(%arg0: i32) -> (i32, i32) {
    %c0_i32 = arith.constant 0 : i32
    %c0_i32_0 = arith.constant 0 : i32
    %c0_i32_1 = arith.constant 0 : i32
    return %c0_i32, %c0_i32_0 : i32, i32
  }
  func.func @transform_13(%arg0: i32) -> (i32, i32, i32) {
    %c0_i32 = arith.constant 0 : i32
    %c0_i32_0 = arith.constant 0 : i32
    %c0_i32_1 = arith.constant 0 : i32
    return %arg0, %c0_i32, %c0_i32_0 : i32, i32, i32
  }
  func.func @transform_14(%arg0: i32) -> (i32, i32, i32) {
    %c0_i32 = arith.constant 0 : i32
    %c0_i32_0 = arith.constant 0 : i32
    %c0_i32_1 = arith.constant 0 : i32
    return %arg0, %c0_i32, %c0_i32_0 : i32, i32, i32
  }
}

</mosaic_0001>

<bundles_post_ra>
// kernel: conv_layer_norm_lstm_cell.1
= control target key start
LH: loop header
LB: loop body
LE: loop exit
PB: predicated region body
PF: predicated region fallthrough
CT: control target
= control target key end

     0   :  { %v6089_v3 = vmov 0   ;;  %s6090_s21 = smov 16   ;;  %s6091_s22 = smov 17   ;;  %v10508_v11 = vmov 0.0   ;;  %v96_v38 = vlaneseq  ;;  %v10789_v57 = vmov 0  ;;  %s10489_s0 = inlined_call_operand.vmem [shape: f32[1,8,512], index: 0, kind: input, shape index: {}]   ;;  %s10490_s1 = inlined_call_operand.vmem [shape: f32[1,32,512], index: 1, kind: input, shape index: {}]   ;;  %s10491_s11 = inlined_call_operand.vmem [shape: s32[1,512], index: 11, kind: input, shape index: {}]   ;;  %s10492_s10 = inlined_call_operand.vmem [shape: s32[1,512], index: 10, kind: input, shape index: {}]   ;;  %s10493_s3 = inlined_call_operand.vmem [shape: f32[128,96], index: 3, kind: input, shape index: {}]   ;;  %s10494_s4 = inlined_call_operand.vmem [shape: f32[128,288], index: 4, kind: input, shape index: {}]   ;;  %s10495_s12 = inlined_call_operand.vmem [shape: s32[1,512], index: 12, kind: input, shape index: {}]   ;;  %s10496_s5 = inlined_call_operand.vmem [shape: f32[128,1], index: 5, kind: input, shape index: {}]   ;;  %s10497_s6 = inlined_call_operand.vmem [shape: f32[128,1], index: 6, kind: input, shape index: {}]   ;;  %s10498_s7 = inlined_call_operand.vmem [shape: f32[128,1], index: 7, kind: input, shape index: {}]   ;;  %s10499_s2 = inlined_call_operand.vmem [shape: f32[1,32,512], index: 2, kind: input, shape index: {}]   ;;  %s10500_s14 = inlined_call_operand.vmem [shape: f32[1,32,512], index: 14, kind: output, shape index: {1}]   ;;  %s10501_s8 = inlined_call_operand.vmem [shape: f32[32,1], index: 8, kind: input, shape index: {}]   ;;  %s10502_s9 = inlined_call_operand.vmem [shape: f32[32,1], index: 9, kind: input, shape index: {}]   ;;  %s10503_s13 = inlined_call_operand.vmem [shape: f32[1,32,512], index: 13, kind: output, shape index: {0}]  }
   0x1   :  { %v6179_v0 = vld [vmem:[%s10489_s0] sm:$0xff]  ;;  %v6184_v1 = vld [vmem:[%s10489_s0 + $0x8] sm:$0xff]  ;;  %v6189_v2 = vld [vmem:[%s10489_s0 + $0x10] sm:$0xff]  ;;  %5799 = vset.pattern.permute.xlu1 %v6089_v3  ;;  %5800 = vset.pattern.permute.xlu0 %v6089_v3  ;;  %s6092_s23 = smov 15   ;;  %s6094_s24 = smov 127   ;;  %v10791_v61 = vmov 0 }
   0x2   :  { %v5419_v4 = vpack.i.bf16 %v6184_v1, %v6179_v0  ;;  %v6198_v5 = vld [vmem:[%s10489_s0 + $0x18] sm:$0xff]  ;;  %s6093_s0 = smov 1   ;;  %s6095_s25 = smov 113   ;;  %v782_v7 = vld [vmem:[%s10490_s1 + $0x8] sm:$0xff]  ;;  %v781_v9 = vld [vmem:[%s10490_s1] sm:$0xff]  ;;  %523 = vmatprep.mubr.f32.mxu0 %v10508_v11  ;;  %684 = vmatprep.mubr.f32.mxu1 %v10508_v11  ;;  %v6377_v40 = vshrl.u32 %v96_v38, 7 }
   0x3   :  { %v5424_v6 = vpack.i.bf16 %v6198_v5, %v6189_v2  ;;  %s6096_s26 = smov 112   ;;  %s6097_s27 = smov 111   ;;  %v786_v8 = vld [vmem:[%s10490_s1 + $0x28] sm:$0xff]  ;;  %v785_v10 = vld [vmem:[%s10490_s1 + $0x20] sm:$0xff]  ;;  %v784_v14 = vld [vmem:[%s10490_s1 + $0x18] sm:$0xff]  ;;  %v6397_v43 = vand.u32 127, %v96_v38 }
   0x4   :  { %5420 = vrot.lane.b32.xlu1 %v5419_v4, %s6090_s21  ;;  %5410 = vrot.lane.b32.xlu0 %v5419_v4, %s6091_s22  ;;  %v6238_v12 = vpack.i.bf16 %v786_v8, %v782_v7  ;;  %v6240_v13 = vpack.i.bf16 %v785_v10, %v781_v9  ;;  %v788_v15 = vld [vmem:[%s10490_s1 + $0x38] sm:$0xff]  ;;  %v783_v16 = vld [vmem:[%s10490_s1 + $0x10] sm:$0xff]  ;;  %v6392_v42 = vsub.s32 1, %v6377_v40  ;;  %v6401_v45 = vsub.s32 0, %v6377_v40 }
   0x5   :  { %v787_v17 = vld [vmem:[%s10490_s1 + $0x30] sm:$0xff]  ;;  %v6258_v18 = vpack.i.bf16 %v788_v15, %v784_v14  ;;  %v790_v20 = vld [vmem:[%s10490_s1 + $0x48] sm:$0xff]  ;;  %v789_v22 = vld [vmem:[%s10490_s1 + $0x40] sm:$0xff]  ;;  %v6414_v47 = vsub.s32 3, %v6377_v40  ;;  %v6427_v51 = vsub.s32 2, %v6377_v40  ;;  %v10793_v62 = vmov 0 }
   0x6   :  { %v6260_v19 = vpack.i.bf16 %v787_v17, %v783_v16  ;;  %v794_v21 = vld [vmem:[%s10490_s1 + $0x68] sm:$0xff]  ;;  %v793_v23 = vld [vmem:[%s10490_s1 + $0x60] sm:$0xff]  ;;  %v792_v26 = vld [vmem:[%s10490_s1 + $0x58] sm:$0xff]  ;;  %10781 = vst [vmem:[#allocation2_spill] sm:$0xff] %v6392_v42  ;;  %v10795_v63 = vmov 0  ;;  %v10799_v7 = vmov 0 }
   0x7   :  { %v6278_v24 = vpack.i.bf16 %v794_v21, %v790_v20  ;;  %v6280_v25 = vpack.i.bf16 %v793_v23, %v789_v22  ;;  %v796_v27 = vld [vmem:[%s10490_s1 + $0x78] sm:$0xff]  ;;  %v791_v28 = vld [vmem:[%s10490_s1 + $0x50] sm:$0xff]  ;;  %v47_v32 = vld [vmem:[%s10491_s11] sm:$0xf]  ;;  %10782 = vst [vmem:[#allocation3_spill] sm:$0xff] %v6401_v45  ;;  %v10801_v9 = vmov 0 }
   0x8   :  { %5425 = vrot.lane.b32.xlu1 %v5424_v6, %s6090_s21  ;;  %5415 = vrot.lane.b32.xlu0 %v5424_v6, %s6091_s22  ;;  %v795_v29 = vld [vmem:[%s10490_s1 + $0x70] sm:$0xff]  ;;  %v6298_v30 = vpack.i.bf16 %v796_v27, %v792_v26  ;;  %v46_v33 = vld [vmem:[%s10492_s10] sm:$0xf]  ;;  %v49_v34 = vadd.s32 4294967295, %v47_v32  ;;  %v74_v37 = vadd.s32 1, %v47_v32  ;;  %vm67_vm15 = vcmp.ge.s32.totalorder %v47_v32, 0 }
   0x9   :  { %v6300_v31 = vpack.i.bf16 %v795_v29, %v791_v28  ;;  %v6352_v35 = vadd.s32 4294967295, %v46_v33  ;;  %vm58_vm4 = vcmp.ge.s32.totalorder %v46_v33, 0  ;;  %v6372_v39 = vadd.s32 1, %v46_v33  ;;  %10783 = vst [vmem:[#allocation4_spill] sm:$0xff] %v6414_v47  ;;  %10788 = vst [vmem:[#allocation5_spill] sm:$0xff] %v6427_v51 }
   0xa   :  { %vm50_vm0 = vcmp.ge.s32.totalorder %v49_v34, 0  ;;  %vm51_vm1 = vcmp.lt.s32.totalorder %v49_v34, 16  ;;  %vm75_vm7 = vcmp.ge.s32.totalorder %v74_v37, 0  ;;  %vm76_vm8 = vcmp.lt.s32.totalorder %v74_v37, 16 }
   0xb   :  { %vm6358_vm2 = vmand %vm50_vm0, %vm51_vm1  ;;  %vm10504_vm3 = vcmp.ge.s32.totalorder %v6352_v35, 0  ;;  %vm10507_vm6 = vcmp.lt.s32.totalorder %v6352_v35, 16  ;;  %vm60_vm10 = vcmp.lt.s32.totalorder %v46_v33, 16  ;;  %vm10505_vm14 = vcmp.ge.s32.totalorder %v6372_v39, 0 }
   0xc   :  { %5435 = vrot.lane.b32.xlu1 %v5424_v6, %s6092_s23  ;;  %5430 = vrot.lane.b32.xlu0 %v5419_v4, %s6092_s23  ;;  %vm55_vm5 = vmand %vm6358_vm2, %vm10504_vm3  ;;  %vm68_vm0 = vcmp.lt.s32.totalorder %v47_v32, 16  ;;  %v10803_v10 = vmov 0  ;;  %v10848_v41 = vmov 0 }
   0xd   :  { %vm59_vm9 = vmand %vm6358_vm2, %vm58_vm4 }
   0xe   :  { %vm57_vm11 = vmand %vm55_vm5, %vm10507_vm6 }
   0xf   :  { %vm6381_vm12 = vmand %vm75_vm7, %vm76_vm8  ;;  %v103_v44 = vsel %vm57_vm11, 1, %v6089_v3  ;;  %vm10506_vm7 = vcmp.lt.s32.totalorder %v6372_v39, 16  ;;  %vm10513_vm11 = vcmp.lt.s32.totalorder %v6397_v43, 16 }
  0x10   :  { %5445 = vrot.lane.b32.xlu1 %v5424_v6, %s6093_s0  ;;  %5440 = vrot.lane.b32.xlu0 %v5419_v4, %s6093_s0  ;;  %vm61_vm13 = vmand %vm59_vm9, %vm60_vm10  ;;  %v111_v50 = vrot.slane %v103_v44, %v6392_v42  ;;  %v107_v53 = vrot.slane %v103_v44, %v6401_v45  ;;  %v119_v55 = vrot.slane %v103_v44, %v6414_v47 }
  0x11   :  { %vm80_vm1 = vmand %vm6381_vm12, %vm58_vm4  ;;  %v141_v46 = vsel %vm61_vm13, 1, %v6089_v3  ;;  %v115_v58 = vrot.slane %v103_v44, %v6427_v51 }
  0x12   :  { %vm64_vm5 = vmand %vm6358_vm2, %vm10505_vm14  ;;  %vm10510_vm2 = vcmp.lt.s32.totalorder %v6397_v43, 17  ;;  %v149_v52 = vrot.slane %v141_v46, %v6392_v42  ;;  %v145_v54 = vrot.slane %v141_v46, %v6401_v45  ;;  %v157_v56 = vrot.slane %v141_v46, %v6414_v47 }
  0x13   :  { %vm6416_vm4 = vmand %vm67_vm15, %vm68_vm0  ;;  %vm6446_vm13 = vcmp.eq.s32.totalorder %v111_v50, 1  ;;  %v153_v59 = vrot.slane %v141_v46, %v6427_v51  ;;  %vm6459_vm0 = vcmp.eq.s32.totalorder %v107_v53, 1 }
  0x14   :  { %5455 = vrot.lane.b32.xlu1 %v5424_v6, %s6094_s24  ;;  %5450 = vrot.lane.b32.xlu0 %v5419_v4, %s6094_s24  ;;  %vm6421_vm8 = vmand %vm80_vm1, %vm60_vm10  ;;  %v10790_v57 = vsel %vm6446_vm13, 4294967295, %v10789_v57  ;;  %vm6455_vm15 = vcmp.eq.s32.totalorder %v149_v52, 1  ;;  %v10794_v62 = vsel %vm6459_vm0, 4294967295, %v10793_v62  ;;  %vm6463_vm1 = vcmp.eq.s32.totalorder %v145_v54, 1 }
  0x15   :  { %vm66_vm9 = vmand %vm64_vm5, %vm10506_vm7  ;;  %v10792_v61 = vsel %vm6455_vm15, 4294967295, %v10791_v61  ;;  %v10796_v63 = vsel %vm6463_vm1, 4294967295, %v10795_v63 }
  0x16   :  { %vm70_vm10 = vmand %vm6416_vm4, %vm10504_vm3  ;;  %v6453_v60 = vsel %vm66_vm9, 1, %v6089_v3  ;;  %vm6482_vm3 = vcmp.eq.s32.totalorder %v119_v55, 1 }
  0x17   :  { %vm71_vm5 = vmand %vm70_vm10, %vm10507_vm6  ;;  %vm6486_vm10 = vcmp.eq.s32.totalorder %v157_v56, 1  ;;  %v187_v8 = vrot.slane %v6453_v60, %v6392_v42  ;;  %v195_v33 = vrot.slane %v6453_v60, %v6414_v47  ;;  %v183_v34 = vrot.slane %v6453_v60, %v6401_v45 }
  0x18   :  { %5465 = vrot.lane.b32.xlu1 %v5424_v6, %s6095_s25  ;;  %5460 = vrot.lane.b32.xlu0 %v5419_v4, %s6095_s25  ;;  %vm72_vm9 = vmand %vm6416_vm4, %vm10505_vm14  ;;  %v10800_v7 = vsel %vm6486_vm10, 4294967295, %v10799_v7  ;;  %vm6496_vm4 = vcmp.eq.s32.totalorder %v153_v59, 1  ;;  %v6503_v17 = vsel %vm71_vm5, 1, %v6089_v3  ;;  %v191_v36 = vrot.slane %v6453_v60, %v6427_v51 }
  0x19   :  { %v10804_v10 = vsel %vm6496_vm4, 4294967295, %v10803_v10  ;;  %vm6507_vm14 = vmand %vm72_vm9, %vm10506_vm7  ;;  %vm6522_vm9 = vcmp.eq.s32.totalorder %v187_v8, 1  ;;  %v225_v44 = vrot.slane %v6503_v17, %v6392_v42  ;;  %v233_v52 = vrot.slane %v6503_v17, %v6414_v47 }
  0x1a   :  { %v6541_v46 = vsel %vm6507_vm14, 1, %v6089_v3  ;;  %vm5054_vm7 = vmpackc.low %vm6455_vm15, %vm6446_vm13  ;;  %v221_v53 = vrot.slane %v6503_v17, %v6401_v45  ;;  %v229_v54 = vrot.slane %v6503_v17, %v6427_v51  ;;  %vm6558_vm14 = vcmp.eq.s32.totalorder %v195_v33, 1 }
  0x1b   :  { %v263_v8 = vrot.slane %v6541_v46, %v6392_v42  ;;  %vm10811_vm6 = vcmp.ge.s32.totalorder %v6352_v35, 0  ;;  %vm6597_vm15 = vcmp.eq.s32.totalorder %v183_v34, 1  ;;  %v10818_v34 = vmov 0 }
  0x1c   :  { %5475 = vrot.lane.b32.xlu1 %v5424_v6, %s6096_s26  ;;  %5470 = vrot.lane.b32.xlu0 %v5419_v4, %s6096_s26  ;;  %v6472_v4 = vsel %vm6421_vm8, 1, %v6089_v3  ;;  %v10797_v6 = vmov 0  ;;  %vm6492_vm8 = vcmp.eq.s32.totalorder %v115_v58, 1  ;;  %vm6589_vm5 = vmand %vm6381_vm12, %vm10811_vm6  ;;  %vm6622_vm13 = vcmp.eq.s32.totalorder %v233_v52, 1 }
  0x1d   :  { %v10798_v6 = vsel %vm6482_vm3, 4294967295, %v10797_v6  ;;  %v10802_v9 = vsel %vm6492_vm8, 4294967295, %v10801_v9  ;;  %v339_v14 = vrot.slane %v6472_v4, %v6392_v42  ;;  %v347_v21 = vrot.slane %v6472_v4, %v6414_v47  ;;  %vm5081_vm6 = vmpackc.low %vm6496_vm4, %vm6492_vm8 }
  0x1e   :  { %v335_v22 = vrot.slane %v6472_v4, %v6401_v45  ;;  %vm10827_vm4 = vcmp.lt.s32.totalorder %v6352_v35, 16  ;;  %vm10831_vm8 = vmpackc.low %vm6486_vm10, %vm6482_vm3  ;;  %v10834_v35 = vmov 0 }
  0x20   :  { %358 = vrot.lane.b32.xlu1 %v6184_v1, %s6097_s27  ;;  %356 = vrot.lane.b32.xlu0 %v6179_v0, %s6097_s27 }
  0x24   :  { %362 = vrot.lane.b32.xlu1 %v6198_v5, %s6097_s27  ;;  %360 = vrot.lane.b32.xlu0 %v6189_v2, %s6097_s27 }
  0x28   :  { %5485 = vrot.lane.b32.xlu1 %v6238_v12, %s6091_s22  ;;  %5480 = vrot.lane.b32.xlu0 %v6240_v13, %s6091_s22 }
  0x2c   :  { %5495 = vrot.lane.b32.xlu1 %v6258_v18, %s6091_s22  ;;  %5490 = vrot.lane.b32.xlu0 %v6260_v19, %s6091_s22 }
  0x30   :  { %5505 = vrot.lane.b32.xlu1 %v6278_v24, %s6091_s22  ;;  %5500 = vrot.lane.b32.xlu0 %v6280_v25, %s6091_s22 }
  0x34   :  { %5515 = vrot.lane.b32.xlu1 %v6298_v30, %s6091_s22  ;;  %5510 = vrot.lane.b32.xlu0 %v6300_v31, %s6091_s22 }
  0x38   :  { %5525 = vrot.lane.b32.xlu1 %v6238_v12, %s6090_s21  ;;  %5520 = vrot.lane.b32.xlu0 %v6240_v13, %s6090_s21 }
  0x3c   :  { %5535 = vrot.lane.b32.xlu1 %v6258_v18, %s6090_s21  ;;  %5530 = vrot.lane.b32.xlu0 %v6260_v19, %s6090_s21 }
  0x40   :  { %5545 = vrot.lane.b32.xlu1 %v6278_v24, %s6090_s21  ;;  %5540 = vrot.lane.b32.xlu0 %v6280_v25, %s6090_s21 }
  0x44   :  { %5555 = vrot.lane.b32.xlu1 %v6298_v30, %s6090_s21  ;;  %5550 = vrot.lane.b32.xlu0 %v6300_v31, %s6090_s21 }
  0x48   :  { %5565 = vrot.lane.b32.xlu1 %v6238_v12, %s6092_s23  ;;  %5560 = vrot.lane.b32.xlu0 %v6240_v13, %s6092_s23 }
  0x4c   :  { %5575 = vrot.lane.b32.xlu1 %v6258_v18, %s6092_s23  ;;  %5570 = vrot.lane.b32.xlu0 %v6260_v19, %s6092_s23 }
  0x50   :  { %5585 = vrot.lane.b32.xlu1 %v6278_v24, %s6092_s23  ;;  %5580 = vrot.lane.b32.xlu0 %v6280_v25, %s6092_s23 }
  0x54   :  { %5595 = vrot.lane.b32.xlu1 %v6298_v30, %s6092_s23  ;;  %5590 = vrot.lane.b32.xlu0 %v6300_v31, %s6092_s23 }
  0x58   :  { %5605 = vrot.lane.b32.xlu1 %v6238_v12, %s6093_s0  ;;  %5600 = vrot.lane.b32.xlu0 %v6240_v13, %s6093_s0 }
  0x5c   :  { %5615 = vrot.lane.b32.xlu1 %v6258_v18, %s6093_s0  ;;  %5610 = vrot.lane.b32.xlu0 %v6260_v19, %s6093_s0 }
  0x60   :  { %5625 = vrot.lane.b32.xlu1 %v6278_v24, %s6093_s0  ;;  %5620 = vrot.lane.b32.xlu0 %v6280_v25, %s6093_s0 }
  0x64   :  { %5635 = vrot.lane.b32.xlu1 %v6298_v30, %s6093_s0  ;;  %5630 = vrot.lane.b32.xlu0 %v6300_v31, %s6093_s0 }
  0x68   :  { %5645 = vrot.lane.b32.xlu1 %v6238_v12, %s6094_s24  ;;  %5640 = vrot.lane.b32.xlu0 %v6240_v13, %s6094_s24 }
  0x6c   :  { %5655 = vrot.lane.b32.xlu1 %v6258_v18, %s6094_s24  ;;  %5650 = vrot.lane.b32.xlu0 %v6260_v19, %s6094_s24 }
  0x70   :  { %5665 = vrot.lane.b32.xlu1 %v6278_v24, %s6094_s24  ;;  %5660 = vrot.lane.b32.xlu0 %v6280_v25, %s6094_s24 }
  0x74   :  { %5675 = vrot.lane.b32.xlu1 %v6298_v30, %s6094_s24  ;;  %5670 = vrot.lane.b32.xlu0 %v6300_v31, %s6094_s24 }
  0x76   :  { %v5421_v15 = vpop.permute.xlu1 %5420  ;;  %v5411_v16 = vpop.permute.xlu0 %5410 }
  0x77   :  { %v5423_v26 = vunpack.i.h.bf16 %v5421_v15  ;;  %v5422_v27 = vunpack.i.l.bf16 %v5421_v15  ;;  %v5413_v28 = vunpack.i.h.bf16 %v5411_v16  ;;  %v5412_v29 = vunpack.i.l.bf16 %v5411_v16 }
  0x78   :  { %5685 = vrot.lane.b32.xlu1 %v6238_v12, %s6095_s25  ;;  %5680 = vrot.lane.b32.xlu0 %v6240_v13, %s6095_s25  ;;  %v271_v15 = vrot.slane %v6541_v46, %v6414_v47  ;;  %v259_v16 = vrot.slane %v6541_v46, %v6401_v45 }
  0x79   :  { %v101_v37 = vsel %vm10510_vm2, %v5412_v29, %v5413_v28  ;;  %v139_v38 = vsel %vm10513_vm11, %v5422_v27, %v5423_v26 }
  0x7a   :  { %v5426_v48 = vpop.permute.xlu1 %5425  ;;  %v5416_v49 = vpop.permute.xlu0 %5415  ;;  %v5053_v50 = vpack.c.bf16 %v139_v38, %v101_v37 }
  0x7b   :  { %v5428_v55 = vunpack.i.h.bf16 %v5426_v48  ;;  %v5427_v56 = vunpack.i.l.bf16 %v5426_v48  ;;  %v5418_v58 = vunpack.i.h.bf16 %v5416_v49  ;;  %v5417_v59 = vunpack.i.l.bf16 %v5416_v49 }
  0x7c   :  { %5695 = vrot.lane.b32.xlu1 %v6258_v18, %s6095_s25  ;;  %5690 = vrot.lane.b32.xlu0 %v6260_v19, %s6095_s25 }
  0x7d   :  { %5055 = vmatprep.subr.msk.bf16.mxu0 %vm5054_vm7, %v5053_v50  ;;  %v102_v17 = vsel %vm10510_vm2, %v5418_v58, %v5412_v29  ;;  %v140_v20 = vsel %vm10513_vm11, %v5428_v55, %v5422_v27  ;;  %v99_v33 = vsel %vm10510_vm2, %v5417_v59, %v5418_v58  ;;  %v137_v37 = vsel %vm10513_vm11, %v5427_v56, %v5428_v55 }
  0x7e   :  { %v5436_v38 = vpop.permute.xlu1 %5435  ;;  %v5431_v48 = vpop.permute.xlu0 %5430  ;;  %v5056_v49 = vpack.c.bf16 %v140_v20, %v102_v17  ;;  %v5077_v50 = vpack.c.bf16 %v137_v37, %v99_v33  ;;  %v100_v29 = vsel %vm10510_vm2, %v5413_v28, %v5417_v59  ;;  %v138_v27 = vsel %vm10513_vm11, %v5423_v26, %v5427_v56  ;;  %vm10820_vm2 = vmpackc.low %vm6463_vm1, %vm6459_vm0 }
  0x7f   :  { %v5438_v55 = vunpack.i.h.bf16 %v5436_v38  ;;  %v5437_v11 = vunpack.i.l.bf16 %v5436_v38  ;;  %v10814_v28 = vmov 0  ;;  %vm6601_vm11 = vcmp.eq.s32.totalorder %v191_v36, 1 }
  0x80   :  { %v10815_v28 = vsel %vm6597_vm15, 4294967295, %v10814_v28  ;;  %v10816_v26 = vmov 0  ;;  %v5433_v56 = vunpack.i.h.bf16 %v5431_v48  ;;  %v5432_v59 = vunpack.i.l.bf16 %v5431_v48  ;;  %5705 = vrot.lane.b32.xlu1 %v6278_v24, %s6095_s25  ;;  %5700 = vrot.lane.b32.xlu0 %v6280_v25, %s6095_s25 }
  0x81   :  { %v10817_v26 = vsel %vm6601_vm11, 4294967295, %v10816_v26  ;;  %v5080_v17 = vpack.c.bf16 %v138_v27, %v100_v29  ;;  %vm6613_vm7 = vcmp.eq.s32.totalorder %v225_v44, 1  ;;  %5058 = vmatpush1.bf16.msk.msra.mxu0 %vm10820_vm2, %v5056_v49  ;;  %v10821_v36 = vmov 0  ;;  %vm6640_vm2 = vmand %vm6589_vm5, %vm10827_vm4  ;;  %5079 = vmatprep.subr.msk.bf16.mxu1 %vm10831_vm8, %v5077_v50 }
  0x82   :  { %v10819_v34 = vsel %vm6613_vm7, 4294967295, %v10818_v34  ;;  %v10822_v36 = vsel %vm6622_vm13, 4294967295, %v10821_v36  ;;  %vm6626_vm11 = vcmp.eq.s32.totalorder %v221_v53, 1  ;;  %v10823_v20 = vmov 0  ;;  %v5441_v37 = vpop.permute.xlu0 %5440 }
  0x83   :  { %v10824_v20 = vsel %vm6626_vm11, 4294967295, %v10823_v20  ;;  %vm6630_vm15 = vcmp.eq.s32.totalorder %v229_v54, 1  ;;  %v10825_v33 = vmov 0  ;;  %v267_v44 = vrot.slane %v6541_v46, %v6427_v51  ;;  %v5446_v54 = vpop.permute.xlu1 %5445  ;;  %5082 = vmatpush1.bf16.msk.msra.mxu1 %vm5081_vm6, %v5080_v17 }
  0x84   :  { %v10826_v33 = vsel %vm6630_vm15, 4294967295, %v10825_v33  ;;  %vm10830_vm1 = vcmp.lt.s32.totalorder %v6397_v43, 15  ;;  %vm6651_vm0 = vcmp.eq.s32.totalorder %v263_v8, 1  ;;  %v10832_v46 = vmov 0  ;;  %5715 = vrot.lane.b32.xlu1 %v6298_v30, %s6095_s25  ;;  %5710 = vrot.lane.b32.xlu0 %v6300_v31, %s6095_s25 }
  0x85   :  { %v175_v53 = vsel %vm10830_vm1, %v5437_v11, %v5438_v55  ;;  %v10833_v46 = vsel %vm6651_vm0, 4294967295, %v10832_v46  ;;  %vm6655_vm15 = vcmp.eq.s32.totalorder %v271_v15, 1  ;;  %vm6659_vm4 = vcmp.eq.s32.totalorder %v259_v16, 1  ;;  %vm10838_vm5 = vmmov %vm10830_vm1 }
  0x86   :  { %v10835_v35 = vsel %vm6655_vm15, 4294967295, %v10834_v35  ;;  %v10836_v38 = vmov 0  ;;  %v5448_v48 = vunpack.i.h.bf16 %v5446_v54  ;;  %v5447_v49 = vunpack.i.l.bf16 %v5446_v54  ;;  %vm10839_vm10 = vmmov %vm10830_vm1  ;;  %v5451_v52 = vpop.permute.xlu0 %5450 }
  0x87   :  { %v10837_v38 = vsel %vm6659_vm4, 4294967295, %v10836_v38  ;;  %v5443_v29 = vunpack.i.h.bf16 %v5441_v37  ;;  %v5442_v27 = vunpack.i.l.bf16 %v5441_v37  ;;  %v176_v8 = vsel %vm10838_vm5, %v5433_v56, %v5437_v11  ;;  %vm10840_vm3 = vmmov %vm10830_vm1  ;;  %v5456_v17 = vpop.permute.xlu1 %5455 }
  0x88   :  { %v177_v15 = vsel %vm10839_vm10, %v5432_v59, %v5433_v56  ;;  %v178_v16 = vsel %vm10840_vm3, %v5438_v55, %v5432_v59  ;;  %v6681_v50 = vsel %vm6640_vm2, 1, %v6089_v3  ;;  %vm10841_vm6 = vcmp.ge.s32.totalorder %v6372_v39, 0  ;;  %5725 = vrot.lane.b32.xlu1 %v6238_v12, %s6096_s26  ;;  %5720 = vrot.lane.b32.xlu0 %v6240_v13, %s6096_s26  ;;  %vm10862_vm4 = vmpackc.low %vm6613_vm7, %vm6522_vm9 }
  0x89   :  { %vm6687_vm5 = vmand %vm6381_vm12, %vm10841_vm6  ;;  %vm10844_vm3 = vcmp.lt.s32.totalorder %v6397_v43, 1  ;;  %vm6706_vm6 = vcmp.eq.s32.totalorder %v339_v14, 1  ;;  %v5453_v23 = vunpack.i.h.bf16 %v5451_v52  ;;  %v5452_v14 = vunpack.i.l.bf16 %v5451_v52 }
  0x8a   :  { %v213_v58 = vsel %vm10844_vm3, %v5447_v49, %v5448_v48  ;;  %vm10845_vm10 = vmmov %vm10844_vm3  ;;  %v10849_v41 = vsel %vm6706_vm6, 4294967295, %v10848_v41  ;;  %vm6731_vm6 = vcmp.eq.s32.totalorder %v267_v44, 1 }
  0x8b   :  { %v214_v55 = vsel %vm10845_vm10, %v5443_v29, %v5447_v49  ;;  %vm10846_vm8 = vmmov %vm10844_vm3  ;;  %v5083_v37 = vpack.c.bf16 %v213_v58, %v175_v53  ;;  %v10856_v53 = vmov 0  ;;  %vm6099_vm10 = vmmov 1  }
  0x8c   :  { %v215_v56 = vsel %vm10846_vm8, %v5442_v27, %v5443_v29  ;;  %vm10847_vm2 = vmmov %vm10844_vm3  ;;  %vm10850_vm8 = vnez %v10815_v28  ;;  %v5458_v29 = vunpack.i.h.bf16 %v5456_v17  ;;  %vm10855_vm3 = vnez %v10826_v33  ;;  %5735 = vrot.lane.b32.xlu1 %v6258_v18, %s6096_s26  ;;  %5730 = vrot.lane.b32.xlu0 %v6260_v19, %s6096_s26 }
  0x8d   :  { %v216_v59 = vsel %vm10847_vm2, %v5448_v48, %v5442_v27  ;;  %v5059_v54 = vpack.c.bf16 %v215_v56, %v177_v15  ;;  %v5086_v48 = vpack.c.bf16 %v214_v55, %v176_v8  ;;  %v5457_v27 = vunpack.i.l.bf16 %v5456_v17 }
  0x8e   :  { %v5062_v49 = vpack.c.bf16 %v216_v59, %v178_v16  ;;  %vm10851_vm2 = vcmp.lt.s32.totalorder %v6372_v39, 16  ;;  %v10857_v53 = vsel %vm6731_vm6, 4294967295, %v10856_v53  ;;  %v301_v39 = vrot.slane %v6681_v50, %v6392_v42  ;;  %v5461_v59 = vpop.permute.xlu0 %5460 }
  0x8f   :  { %vm6719_vm12 = vmand %vm6687_vm5, %vm10851_vm2  ;;  %v309_v8 = vrot.slane %v6681_v50, %v6414_v47  ;;  %v297_v16 = vrot.slane %v6681_v50, %v6401_v45  ;;  %vm10858_vm5 = vcmp.lt.s32.totalorder %v6397_v43, 127  ;;  %5061 = vmatprep.subr.msk.bf16.mxu0 %vm10862_vm4, %v5059_v54 }
  0x90   :  { %v251_v11 = vsel %vm10858_vm5, %v5457_v27, %v5458_v29  ;;  %vm10859_vm2 = vmmov %vm10858_vm5  ;;  %5745 = vrot.lane.b32.xlu1 %v6278_v24, %s6096_s26  ;;  %5740 = vrot.lane.b32.xlu0 %v6280_v25, %s6096_s26 }
  0x91   :  { %v252_v58 = vsel %vm10859_vm2, %v5453_v23, %v5457_v27  ;;  %vm10860_vm1 = vmmov %vm10859_vm2  ;;  %vm10869_vm2 = vnez %v10817_v26  ;;  %v5462_v27 = vunpack.i.l.bf16 %v5461_v59 }
  0x92   :  { %v253_v44 = vsel %vm10860_vm1, %v5452_v14, %v5453_v23  ;;  %vm10861_vm6 = vmmov %vm10860_vm1  ;;  %v5466_v23 = vpop.permute.xlu1 %5465  ;;  %v5065_v17 = vpack.c.bf16 %v252_v58, %v6184_v1  ;;  %v5471_v58 = vpop.permute.xlu0 %5470 }
  0x93   :  { %v254_v55 = vsel %vm10861_vm6, %v5458_v29, %v5452_v14  ;;  %vm6757_vm5 = vmpackc.low %vm6651_vm0, %vm6099_vm10  ;;  %v6784_v29 = vsel %vm6719_vm12, 1, %v6089_v3  ;;  %v5468_v1 = vunpack.i.h.bf16 %v5466_v23  ;;  %vm6801_vm12 = vcmp.eq.s32.totalorder %v347_v21, 1 }
  0x94   :  { %vm10865_vm1 = vmpackc.low %vm6622_vm13, %vm6558_vm14  ;;  %v5089_v52 = vpack.c.bf16 %v254_v55, %v6198_v5  ;;  %v5467_v5 = vunpack.i.l.bf16 %v5466_v23  ;;  %v10876_v3 = vmov 0  ;;  %v5092_v21 = vpack.c.bf16 %v251_v11, %v6189_v2  ;;  %5755 = vrot.lane.b32.xlu1 %v6298_v30, %s6096_s26  ;;  %5750 = vrot.lane.b32.xlu0 %v6300_v31, %s6096_s26 }
  0x95   :  { %5085 = vmatprep.subr.msk.bf16.mxu1 %vm10865_vm1, %v5083_v37  ;;  %vm10866_vm6 = vmpackc.low %vm6626_vm11, %vm10850_vm8  ;;  %v5068_v37 = vpack.c.bf16 %v253_v44, %v6179_v0  ;;  %v10874_v0 = vmov 0  ;;  %vm6828_vm13 = vcmp.eq.s32.totalorder %v309_v8, 1  ;;  %v10883_v2 = vrot.slane %v6472_v4, %v6427_v51 }
  0x96   :  { %5064 = vmatpush1.bf16.msk.msra.mxu0 %vm10866_vm6, %v5062_v49  ;;  %vm6776_vm4 = vmpackc.low %vm6655_vm15, %vm6099_vm10  ;;  %vm10871_vm6 = vnez %v10837_v38  ;;  %v10875_v0 = vsel %vm6801_vm12, 4294967295, %v10874_v0  ;;  %v10884_v11 = vmov 0  ;;  %v5476_v8 = vpop.permute.xlu1 %5475  ;;  %v10887_v4 = vmov 0 }
  0x97   :  { %vm10870_vm1 = vmpackc.low %vm10855_vm3, %vm10869_vm2  ;;  %5067 = vmatprep.subr.msk.bf16.mxu0 %vm6757_vm5, %v5065_v17  ;;  %vm6824_vm3 = vcmp.eq.s32.totalorder %v301_v39, 1  ;;  %vm6835_vm11 = vcmp.eq.s32.totalorder %v10883_v2, 1  ;;  %vm6847_vm5 = vcmp.eq.s32.totalorder %v297_v16, 1  ;;  %v385_v44 = vrot.slane %v6784_v29, %v6414_v47 }
  0x98   :  { %5088 = vmatpush1.bf16.msk.msra.mxu1 %vm10870_vm1, %v5086_v48  ;;  %vm6794_vm15 = vmpackc.low %vm10871_vm6, %vm6099_vm10  ;;  %vm6808_vm1 = vcmp.eq.s32.totalorder %v335_v22, 1  ;;  %v5463_v48 = vunpack.i.h.bf16 %v5461_v59  ;;  %vm10878_vm6 = vnez %v10857_v53  ;;  %v305_v22 = vrot.slane %v6681_v50, %v6427_v51  ;;  %5765 = vrot.lane.b32.xlu1 %v6238_v12, %s6097_s27 }
  0x99   :  { %v10877_v3 = vsel %vm6808_vm1, 4294967295, %v10876_v3  ;;  %vm5093_vm0 = vmpackc.low %vm10878_vm6, %vm6099_vm10  ;;  %v10885_v11 = vsel %vm6835_vm11, 4294967295, %v10884_v11  ;;  %v377_v50 = vrot.slane %v6784_v29, %v6392_v42  ;;  %vm10886_vm10 = vcmp.lt.s32.totalorder %v6397_v43, 113  ;;  %5091 = vmatprep.subr.msk.bf16.mxu1 %vm6776_vm4, %v5089_v52  ;;  %5760 = vrot.lane.b32.xlu0 %v6240_v13, %s6097_s27 }
  0x9a   :  { %v289_v39 = vsel %vm10886_vm10, %v5467_v5, %v5468_v1  ;;  %5070 = vmatpush1.bf16.msk.msra.mxu0 %vm6794_vm15, %v5068_v37  ;;  %v10888_v4 = vsel %vm6847_vm5, 4294967295, %v10887_v4  ;;  %v373_v55 = vrot.slane %v6784_v29, %v6401_v45  ;;  %v5478_v56 = vunpack.i.h.bf16 %v5476_v8  ;;  %vm10889_vm4 = vmmov %vm10886_vm10 }
  0x9b   :  { %v5477_v23 = vunpack.i.l.bf16 %v5476_v8  ;;  %v5473_v59 = vunpack.i.h.bf16 %v5471_v58  ;;  %v5472_v17 = vunpack.i.l.bf16 %v5471_v58  ;;  %v290_v52 = vsel %vm10889_vm4, %v5463_v48, %v5467_v5  ;;  %vm10890_vm15 = vmmov %vm10889_vm4 }
  0x9c   :  { %5094 = vmatpush1.bf16.msk.msra.mxu1 %vm5093_vm0, %v5092_v21  ;;  %v291_v16 = vsel %vm10890_vm15, %v5462_v27, %v5463_v48  ;;  %vm10891_vm10 = vmmov %vm10889_vm4  ;;  %vm10892_vm0 = vnez %v10849_v41  ;;  %vm6869_vm7 = vcmp.eq.s32.totalorder %v305_v22, 1  ;;  %vm10895_vm4 = vcmp.lt.s32.totalorder %v6397_v43, 112  ;;  %v357_v21 = vpop.permute.xlu0 %356  ;;  %5775 = vrot.lane.b32.xlu1 %v6258_v18, %s6097_s27 }
  0x9d   :  { %v292_v54 = vsel %vm10891_vm10, %v5468_v1, %v5462_v27  ;;  %v327_v5 = vsel %vm10895_vm4, %v5477_v23, %v5478_v56  ;;  %vm10896_vm15 = vmmov %vm10895_vm4  ;;  %v359_v27 = vpop.permute.xlu1 %358  ;;  %5770 = vrot.lane.b32.xlu0 %v6260_v19, %s6097_s27 }
  0x9e   :  { %v328_v1 = vsel %vm10896_vm15, %v5473_v59, %v5477_v23  ;;  %vm10897_vm10 = vmmov %vm10895_vm4  ;;  %v5098_v58 = vpack.c.bf16 %v327_v5, %v289_v39 }
  0x9f   :  { %v329_v49 = vsel %vm10897_vm10, %v5472_v17, %v5473_v59  ;;  %vm10898_vm2 = vmmov %vm10895_vm4  ;;  %v5071_v22 = vpack.c.bf16 %v328_v1, %v290_v52  ;;  %vm10551_vm10 = vcmp.lt.s32.totalorder %v6397_v43, 111  ;;  %v10902_v59 = vmov 0 }
  0xa0   :  { %v330_v48 = vsel %vm10898_vm2, %v5478_v56, %v5472_v17  ;;  %vm5096_vm6 = vmpackc.low %vm6801_vm12, %vm6828_vm13  ;;  %v5074_v8 = vpack.c.bf16 %v329_v49, %v291_v16  ;;  %v381_v56 = vrot.slane %v6784_v29, %v6427_v51  ;;  %v361_v23 = vpop.permute.xlu0 %360  ;;  %v10900_v29 = vmov 0  ;;  %5785 = vrot.lane.b32.xlu1 %v6278_v24, %s6097_s27 }
  0xa1   :  { %v5095_v2 = vpack.c.bf16 %v330_v48, %v292_v54  ;;  %vm5075_vm4 = vmpackc.low %vm6808_vm1, %vm6847_vm5  ;;  %v363_v39 = vpop.permute.xlu1 %362  ;;  %vm6905_vm1 = vcmp.eq.s32.totalorder %v377_v50, 1  ;;  %vm6909_vm12 = vcmp.eq.s32.totalorder %v385_v44, 1  ;;  %v10904_v17 = vmov 0  ;;  %v394_v44 = vld [vmem:[%s10493_s3] sm:$0xff]  ;;  %5780 = vrot.lane.b32.xlu0 %v6280_v25, %s6097_s27 }
  0xa2   :  { %vm5099_vm2 = vmpackc.low %vm6835_vm11, %vm6869_vm7  ;;  %v10901_v29 = vsel %vm6905_vm1, 4294967295, %v10900_v29  ;;  %v10903_v59 = vsel %vm6909_vm12, 4294967295, %v10902_v59  ;;  %vm6913_vm11 = vcmp.eq.s32.totalorder %v373_v55, 1  ;;  %v366_v52 = vsel %vm10551_vm10, %v359_v27, %v361_v23 }
  0xa3   :  { %vm10899_vm15 = vmpackc.low %vm10892_vm0, %vm6824_vm3  ;;  %5097 = vmatprep.subr.msk.bf16.mxu1 %vm5096_vm6, %v5095_v2  ;;  %v10905_v17 = vsel %vm6913_vm11, 4294967295, %v10904_v17  ;;  %v368_v16 = vsel %vm10551_vm10, %v363_v39, %v357_v21  ;;  %v365_v50 = vsel %vm10551_vm10, %v361_v23, %v363_v39  ;;  %vm6923_vm6 = vcmp.eq.s32.totalorder %v381_v56, 1 }
  0xa4   :  { %5073 = vmatprep.subr.msk.bf16.mxu0 %vm10899_vm15, %v5071_v22  ;;  %5100 = vmatpush1.bf16.msk.msra.mxu1 %vm5099_vm2, %v5098_v58  ;;  %v10906_v54 = vmov 0  ;;  %v367_v55 = vsel %vm10551_vm10, %v357_v21, %v359_v27  ;;  %v5481_v13 = vpop.permute.xlu0 %5480  ;;  %v395_v27 = vld [vmem:[%s10493_s3 + $0x8] sm:$0xff]  ;;  %vm10908_vm2 = vnez %v10790_v57  ;;  %vm10909_vm10 = vcmp.lt.s32.totalorder %v6397_v43, 17 }
  0xa5   :  { %5076 = vmatpush1.bf16.msk.msra.mxu0 %vm5075_vm4, %v5074_v8  ;;  %v10907_v54 = vsel %vm6923_vm6, 4294967295, %v10906_v54  ;;  %vm10556_vm4 = vcmask 785408   ;;  %4827 = vmatprep.subr.msk.mxu1 %vm6909_vm12, %v368_v16  ;;  %v5486_v12 = vpop.permute.xlu1 %5485  ;;  %v5483_v49 = vunpack.i.h.bf16 %v5481_v13  ;;  %v5482_v48 = vunpack.i.l.bf16 %v5481_v13  ;;  %vm10559_vm15 = vmpackc.low %vm10908_vm2, %vm10908_vm2 }
  0xa6   :  { %4795 = vmatprep.subr.msk.mxu0 %vm6905_vm1, %v366_v52  ;;  %v5488_v5 = vunpack.i.h.bf16 %v5486_v12  ;;  %v5487_v1 = vunpack.i.l.bf16 %v5486_v12  ;;  %v10911_v2 = vmov 0.0   ;;  %v396_v52 = vld [vmem:[%s10493_s3 + $0x10] sm:$0xff]  ;;  %5790 = vrot.lane.b32.xlu0 %v6300_v31, %s6097_s27  ;;  %v398_v31 = vld [vmem:[%s10493_s3 + $0x20] sm:$0xff] }
  0xa7   :  { %5795 = vrot.lane.b32.xlu1 %v6298_v30, %s6097_s27  ;;  %v399_v30 = vld [vmem:[%s10493_s3 + $0x28] sm:$0xff] }
  0xa8   :  { %4828 = vmatpush1.msk.msra.mxu1 %vm6923_vm6, %v365_v50  ;;  %v838_v21 = vsel %vm10909_vm10, %v5483_v49, %v5488_v5  ;;  %vm10910_vm6 = vmmov %vm10909_vm10  ;;  %v5491_v19 = vpop.permute.xlu0 %5490  ;;  %vm10912_vm10 = vnez %v10794_v62 }
  0xa9   :  { %4796 = vmatpush1.msk.msra.mxu0 %vm6913_vm11, %v367_v55  ;;  %4829 = vmatmul.mubr.msk.f32.vlgmr.msra.gmra.mrb[0].mxu1 %vm10556_vm4, %v394_v44  ;;  %v837_v22 = vsel %vm10910_vm6, %v5482_v48, %v5487_v1  ;;  %v5496_v18 = vpop.permute.xlu1 %5495  ;;  %v5493_v39 = vunpack.i.h.bf16 %v5491_v19  ;;  %v5492_v23 = vunpack.i.l.bf16 %v5491_v19  ;;  %vm10913_vm1 = vmmov %vm10910_vm6 }
  0xaa   :  { %4797 = vmatmul.mubr.msk.f32.vlgmr.msra.gmra.mrb[0].mxu0 %vm10556_vm4, %v394_v44  ;;  %690 = vmatprep.mubr.f32.mxu1 %v10911_v2  ;;  %v5101_v8 = vpack.c.bf16 %v838_v21, %v837_v22  ;;  %v5498_v58 = vunpack.i.h.bf16 %v5496_v18  ;;  %v5497_v56 = vunpack.i.l.bf16 %v5496_v18  ;;  %vm10915_vm12 = vmmov %vm10913_vm1 }
  0xab   :  { %529 = vmatprep.mubr.f32.mxu0 %v10911_v2  ;;  %vm10917_vm11 = vmmov %vm10913_vm1 }
  0xac   :  { %5103 = vmatprep.subr.msk.bf16.mxu0 %vm10559_vm15, %v5101_v8  ;;  %v841_v16 = vsel %vm10913_vm1, %v5497_v56, %v5482_v48  ;;  %v830_v44 = vsel %vm10915_vm12, %v5493_v39, %v5498_v58  ;;  %vm10916_vm15 = vmmov %vm10913_vm1  ;;  %v829_v13 = vsel %vm10917_vm11, %v5492_v23, %v5497_v56  ;;  %v5501_v48 = vpop.permute.xlu0 %5500  ;;  %vm10919_vm12 = vnez %v10798_v6 }
  0xad   :  { %4830 = vmatmul.mubr.msk.f32.gmra.mrb[2].mxu1 %vm10556_vm4, %v395_v27  ;;  %v834_v55 = vsel %vm10916_vm15, %v5488_v5, %v5493_v39  ;;  %vm10918_vm6 = vmmov %vm10913_vm1  ;;  %v5506_v21 = vpop.permute.xlu1 %5505  ;;  %v5503_v18 = vunpack.i.h.bf16 %v5501_v48  ;;  %vm10920_vm11 = vcmask 785408   ;;  %vm10922_vm15 = vnez %v10802_v9 }
  0xae   :  { %4798 = vmatmul.mubr.msk.f32.gmra.mrb[2].mxu0 %vm10556_vm4, %v395_v27  ;;  %vm10914_vm4 = vmmov %vm10913_vm1  ;;  %696 = vmatprep.mubr.f32.mxu1 %v10911_v2  ;;  %v833_v27 = vsel %vm10918_vm6, %v5487_v1, %v5492_v23  ;;  %v5507_v22 = vunpack.i.l.bf16 %v5506_v21  ;;  %v5502_v25 = vunpack.i.l.bf16 %v5501_v48  ;;  %v5205_v24 = vpack.c.bf16 %v830_v44, %v829_v13  ;;  %v397_v1 = vld [vmem:[%s10493_s3 + $0x18] sm:$0xff] }
  0xaf   :  { %535 = vmatprep.mubr.f32.mxu0 %v10911_v2  ;;  %v842_v50 = vsel %vm10914_vm4, %v5498_v58, %v5483_v49  ;;  %vm10564_vm1 = vmpackc.low %vm10919_vm12, %vm10919_vm12  ;;  %v5208_v5 = vpack.c.bf16 %v834_v55, %v833_v27  ;;  %v5508_v49 = vunpack.i.h.bf16 %v5506_v21 }
  0xb0   :  { %v5104_v12 = vpack.c.bf16 %v842_v50, %v841_v16  ;;  %vm10921_vm4 = vmmov %vm10920_vm11  ;;  %5207 = vmatprep.subr.msk.bf16.mxu1 %vm10564_vm1, %v5205_v24  ;;  %v5511_v56 = vpop.permute.xlu0 %5510 }
  0xb1   :  { %4831 = vmatmul.mubr.msk.f32.gmra.mrb[4].mxu1 %vm10921_vm4, %v396_v52  ;;  %vm10563_vm6 = vmpackc.low %vm10922_vm15, %vm10922_vm15  ;;  %v5516_v58 = vpop.permute.xlu1 %5515  ;;  %v5512_v16 = vunpack.i.l.bf16 %v5511_v56 }
  0xb2   :  { %4799 = vmatmul.mubr.msk.f32.gmra.mrb[4].mxu0 %vm10920_vm11, %v396_v52  ;;  %vm10923_vm0 = vmpackc.low %vm10912_vm10, %vm10912_vm10  ;;  %vm10924_vm11 = vcmp.lt.s32.totalorder %v6397_v43, 17  ;;  %702 = vmatprep.mubr.f32.mxu1 %v10911_v2  ;;  %v5518_v39 = vunpack.i.h.bf16 %v5516_v58  ;;  %v5517_v23 = vunpack.i.l.bf16 %v5516_v58  ;;  %v5513_v52 = vunpack.i.h.bf16 %v5511_v56 }
  0xb3   :  { %5106 = vmatpush1.bf16.msk.msra.mxu0 %vm10923_vm0, %v5104_v12  ;;  %541 = vmatprep.mubr.f32.mxu0 %v10911_v2  ;;  %v840_v19 = vsel %vm10924_vm11, %v5503_v18, %v5508_v49  ;;  %vm10925_vm4 = vmmov %vm10924_vm11  ;;  %vm10926_vm0 = vcmask 785408  }
  0xb4   :  { %v839_v8 = vsel %vm10925_vm4, %v5502_v25, %v5507_v22  ;;  %5210 = vmatpush1.bf16.msk.msra.mxu1 %vm10563_vm6, %v5208_v5  ;;  %vm10927_vm11 = vmmov %vm10926_vm0  ;;  %v843_v44 = vsel %vm10925_vm4, %v5517_v23, %v5502_v25 }
  0xb5   :  { %4832 = vmatmul.mubr.msk.f32.gmra.mrb[6].mxu1 %vm10927_vm11, %v397_v1  ;;  %v5107_v50 = vpack.c.bf16 %v840_v19, %v839_v8  ;;  %vm10928_vm6 = vmmov %vm10925_vm4  ;;  %v5526_v5 = vpop.permute.xlu1 %5525 }
  0xb6   :  { %4800 = vmatmul.mubr.msk.f32.gmra.mrb[6].mxu0 %vm10926_vm0, %v397_v1  ;;  %v844_v55 = vsel %vm10928_vm6, %v5518_v39, %v5503_v18  ;;  %vm10929_vm1 = vmmov %vm10925_vm4  ;;  %708 = vmatprep.mubr.f32.mxu1 %v10911_v2  ;;  %v5521_v18 = vpop.permute.xlu0 %5520  ;;  %v5528_v25 = vunpack.i.h.bf16 %v5526_v5  ;;  %v5527_v24 = vunpack.i.l.bf16 %v5526_v5 }
  0xb7   :  { %547 = vmatprep.mubr.f32.mxu0 %v10911_v2  ;;  %v832_v12 = vsel %vm10929_vm1, %v5513_v52, %v5518_v39  ;;  %vm10930_vm0 = vmmov %vm10929_vm1  ;;  %v5110_v27 = vpack.c.bf16 %v844_v55, %v843_v44  ;;  %v5523_v1 = vunpack.i.h.bf16 %v5521_v18  ;;  %vm10934_vm1 = vcmask 785408  }
  0xb8   :  { %v836_v13 = vsel %vm10930_vm0, %v5508_v49, %v5513_v52  ;;  %vm10931_vm11 = vmmov %vm10930_vm0  ;;  %v5522_v19 = vunpack.i.l.bf16 %v5521_v18 }
  0xb9   :  { %v831_v21 = vsel %vm10931_vm11, %v5512_v16, %v5517_v23  ;;  %vm10932_vm5 = vmmov %vm10930_vm0  ;;  %v5536_v62 = vpop.permute.xlu1 %5535  ;;  %vm10940_vm11 = vnez %v10792_v61 }
  0xba   :  { %v835_v48 = vsel %vm10932_vm5, %v5507_v22, %v5512_v16  ;;  %vm10933_vm6 = vmpackc.low %vm10908_vm2, %vm10908_vm2  ;;  %4801 = vmatmul.mubr.msk.f32.gmra.mrb[8].mxu0 %vm10934_vm1, %v398_v31  ;;  %v5211_v57 = vpack.c.bf16 %v832_v12, %v831_v21  ;;  %vm10937_vm2 = vcmp.lt.s32.totalorder %v6397_v43, 16  ;;  %v5531_v58 = vpop.permute.xlu0 %5530  ;;  %v5538_v56 = vunpack.i.h.bf16 %v5536_v62  ;;  %v400_v16 = vld [vmem:[%s10493_s3 + $0x30] sm:$0xff] }
  0xbb   :  { %5109 = vmatprep.subr.msk.bf16.mxu0 %vm10933_vm6, %v5107_v50  ;;  %v5214_v49 = vpack.c.bf16 %v836_v13, %v835_v48  ;;  %vm10935_vm4 = vmmov %vm10934_vm1  ;;  %v902_v22 = vsel %vm10937_vm2, %v5523_v1, %v5528_v25  ;;  %553 = vmatprep.mubr.f32.mxu0 %v10911_v2  ;;  %v5537_v39 = vunpack.i.l.bf16 %v5536_v62  ;;  %v5533_v23 = vunpack.i.h.bf16 %v5531_v58 }
  0xbc   :  { %4833 = vmatmul.mubr.msk.f32.gmra.mrb[8].mxu1 %vm10935_vm4, %v398_v31  ;;  %vm10936_vm5 = vmpackc.low %vm10912_vm10, %vm10912_vm10  ;;  %v5532_v52 = vunpack.i.l.bf16 %v5531_v58 }
  0xbd   :  { %5112 = vmatpush1.bf16.msk.msra.mxu0 %vm10936_vm5, %v5110_v27  ;;  %714 = vmatprep.mubr.f32.mxu1 %v10911_v2  ;;  %vm10938_vm0 = vmmov %vm10937_vm2  ;;  %vm10943_vm5 = vnez %v10796_v63  ;;  %v5546_v27 = vpop.permute.xlu1 %5545 }
  0xbe   :  { %v901_v8 = vsel %vm10938_vm0, %v5522_v19, %v5527_v24  ;;  %vm10939_vm10 = vmpackc.low %vm10919_vm12, %vm10919_vm12  ;;  %4802 = vmatmul.mubr.msk.f32.gmra.mrb[10].mxu0 %vm10935_vm4, %v399_v30  ;;  %v906_v50 = vsel %vm10938_vm0, %v5538_v56, %v5523_v1  ;;  %v5541_v21 = vpop.permute.xlu0 %5540  ;;  %v5548_v5 = vunpack.i.h.bf16 %v5546_v27  ;;  %v5547_v18 = vunpack.i.l.bf16 %v5546_v27  ;;  %v401_v1 = vld [vmem:[%s10493_s3 + $0x38] sm:$0xff] }
  0xbf   :  { %5213 = vmatprep.subr.msk.bf16.mxu1 %vm10939_vm10, %v5211_v57  ;;  %vm10570_vm6 = vmpackc.low %vm10940_vm11, %vm10940_vm11  ;;  %v5113_v6 = vpack.c.bf16 %v902_v22, %v901_v8  ;;  %559 = vmatprep.mubr.f32.mxu0 %v10911_v2 }
  0xc0   :  { %vm10941_vm1 = vmpackc.low %vm10922_vm15, %vm10922_vm15 }
  0xc1   :  { %5216 = vmatpush1.bf16.msk.msra.mxu1 %vm10941_vm1, %v5214_v49  ;;  %vm10942_vm12 = vmmov %vm10935_vm4  ;;  %5115 = vmatprep.subr.msk.bf16.mxu0 %vm10570_vm6, %v5113_v6  ;;  %v5543_v49 = vunpack.i.h.bf16 %v5541_v21 }
  0xc2   :  { %4834 = vmatmul.mubr.msk.f32.gmra.mrb[10].mxu1 %vm10942_vm12, %v399_v30  ;;  %vm10569_vm15 = vmpackc.low %vm10943_vm5, %vm10943_vm5  ;;  %v5556_v30 = vpop.permute.xlu1 %5555  ;;  %v5551_v22 = vpop.permute.xlu0 %5550 }
  0xc3   :  { %vm10944_vm2 = vmmov %vm10938_vm0  ;;  %720 = vmatprep.mubr.f32.mxu1 %v10911_v2  ;;  %v5558_v8 = vunpack.i.h.bf16 %v5556_v30  ;;  %v5557_v62 = vunpack.i.l.bf16 %v5556_v30  ;;  %v5553_v58 = vunpack.i.h.bf16 %v5551_v22 }
  0xc4   :  { %v905_v9 = vsel %vm10944_vm2, %v5537_v39, %v5522_v19  ;;  %vm10945_vm10 = vmmov %vm10938_vm0  ;;  %vm10949_vm2 = vnez %v10800_v7 }
  0xc5   :  { %v894_v31 = vsel %vm10945_vm10, %v5533_v23, %v5538_v56  ;;  %vm10946_vm1 = vmmov %vm10938_vm0  ;;  %v5116_v55 = vpack.c.bf16 %v906_v50, %v905_v9  ;;  %vm10950_vm10 = vcmask 785408   ;;  %v5552_v56 = vunpack.i.l.bf16 %v5551_v22 }
  0xc6   :  { %v898_v44 = vsel %vm10946_vm1, %v5528_v25, %v5533_v23  ;;  %vm10947_vm4 = vmmov %vm10938_vm0  ;;  %4803 = vmatmul.mubr.msk.f32.gmra.mrb[12].mxu0 %vm10950_vm10, %v400_v16  ;;  %vm10951_vm1 = vnez %v10804_v10  ;;  %v5542_v25 = vunpack.i.l.bf16 %v5541_v21  ;;  %v402_v23 = vld [vmem:[%s10493_s3 + $0x40] sm:$0xff]  ;;  %v404_v10 = vld [vmem:[%s10493_s3 + $0x50] sm:$0xff] }
  0xc7   :  { %v893_v12 = vsel %vm10947_vm4, %v5532_v52, %v5537_v39  ;;  %vm10948_vm12 = vmmov %vm10938_vm0  ;;  %5118 = vmatpush1.bf16.msk.msra.mxu0 %vm10569_vm15, %v5116_v55  ;;  %565 = vmatprep.mubr.f32.mxu0 %v10911_v2  ;;  %v5566_v55 = vpop.permute.xlu1 %5565 }
  0xc8   :  { %v897_v13 = vsel %vm10948_vm12, %v5527_v24, %v5532_v52  ;;  %vm10567_vm0 = vmpackc.low %vm10949_vm2, %vm10949_vm2  ;;  %v5217_v24 = vpack.c.bf16 %v894_v31, %v893_v12  ;;  %v5561_v12 = vpop.permute.xlu0 %5560  ;;  %v5568_v27 = vunpack.i.h.bf16 %v5566_v55  ;;  %v5567_v21 = vunpack.i.l.bf16 %v5566_v55 }
  0xc9   :  { %v5220_v48 = vpack.c.bf16 %v898_v44, %v897_v13  ;;  %vm10568_vm4 = vmpackc.low %vm10951_vm1, %vm10951_vm1 }
  0xca   :  { %vm10952_vm12 = vmmov %vm10950_vm10  ;;  %vm10953_vm10 = vcmp.lt.s32.totalorder %v6397_v43, 16  ;;  %5219 = vmatprep.subr.msk.bf16.mxu1 %vm10567_vm0, %v5217_v24  ;;  %vm10957_vm0 = vcmp.lt.s32.totalorder %v6397_v43, 16 }
  0xcb   :  { %4835 = vmatmul.mubr.msk.f32.gmra.mrb[12].mxu1 %vm10952_vm12, %v400_v16  ;;  %v904_v19 = vsel %vm10953_vm10, %v5543_v49, %v5548_v5  ;;  %vm10954_vm12 = vmmov %vm10953_vm10  ;;  %vm10955_vm10 = vcmask 785408   ;;  %v907_v52 = vsel %vm10957_vm0, %v5557_v62, %v5542_v25  ;;  %v5576_v63 = vpop.permute.xlu1 %5575 }
  0xcc   :  { %726 = vmatprep.mubr.f32.mxu1 %v10911_v2  ;;  %v903_v57 = vsel %vm10954_vm12, %v5542_v25, %v5547_v18  ;;  %5222 = vmatpush1.bf16.msk.msra.mxu1 %vm10568_vm4, %v5220_v48  ;;  %vm10956_vm12 = vmmov %vm10955_vm10  ;;  %v5563_v48 = vunpack.i.h.bf16 %v5561_v12  ;;  %v5571_v24 = vpop.permute.xlu0 %5570 }
  0xcd   :  { %4804 = vmatmul.mubr.msk.f32.gmra.mrb[14].mxu0 %vm10955_vm10, %v401_v1  ;;  %v5119_v39 = vpack.c.bf16 %v904_v19, %v903_v57  ;;  %vm10958_vm4 = vmmov %vm10957_vm0  ;;  %v5577_v19 = vunpack.i.l.bf16 %v5576_v63  ;;  %v5573_v57 = vunpack.i.h.bf16 %v5571_v24  ;;  %v5572_v30 = vunpack.i.l.bf16 %v5571_v24 }
  0xce   :  { %571 = vmatprep.mubr.f32.mxu0 %v10911_v2  ;;  %v908_v6 = vsel %vm10958_vm4, %v5558_v8, %v5543_v49  ;;  %vm10959_vm15 = vmmov %vm10957_vm0 }
  0xcf   :  { %4836 = vmatmul.mubr.msk.f32.gmra.mrb[14].mxu1 %vm10956_vm12, %v401_v1  ;;  %v896_v16 = vsel %vm10959_vm15, %v5553_v58, %v5558_v8  ;;  %vm10960_vm10 = vmmov %vm10957_vm0  ;;  %v5122_v50 = vpack.c.bf16 %v908_v6, %v907_v52  ;;  %vm10964_vm15 = vcmask 785408   ;;  %v5578_v1 = vunpack.i.h.bf16 %v5576_v63  ;;  %v5586_v52 = vpop.permute.xlu1 %5585  ;;  %v406_v63 = vld [vmem:[%s10493_s3 + $0x60] sm:$0xff] }
  0xd0   :  { %v900_v9 = vsel %vm10960_vm10, %v5548_v5, %v5553_v58  ;;  %732 = vmatprep.mubr.f32.mxu1 %v10911_v2  ;;  %vm10961_vm12 = vmmov %vm10957_vm0  ;;  %v5562_v5 = vunpack.i.l.bf16 %v5561_v12  ;;  %v5581_v6 = vpop.permute.xlu0 %5580  ;;  %v405_v12 = vld [vmem:[%s10493_s3 + $0x58] sm:$0xff] }
  0xd1   :  { %v895_v31 = vsel %vm10961_vm12, %v5552_v56, %v5557_v62  ;;  %vm10962_vm6 = vmmov %vm10957_vm0  ;;  %4805 = vmatmul.mubr.msk.f32.gmra.mrb[16].mxu0 %vm10964_vm15, %v402_v23 }
  0xd2   :  { %v899_v44 = vsel %vm10962_vm6, %v5547_v18, %v5552_v56  ;;  %vm10963_vm0 = vmpackc.low %vm10940_vm11, %vm10940_vm11  ;;  %v5223_v61 = vpack.c.bf16 %v896_v16, %v895_v31  ;;  %v403_v18 = vld [vmem:[%s10493_s3 + $0x48] sm:$0xff]  ;;  %vm10967_vm11 = vcmp.lt.s32.totalorder %v6397_v43, 15  ;;  %577 = vmatprep.mubr.f32.mxu0 %v10911_v2  ;;  %v5583_v31 = vunpack.i.h.bf16 %v5581_v6 }
  0xd3   :  { %5121 = vmatprep.subr.msk.bf16.mxu0 %vm10963_vm0, %v5119_v39  ;;  %v5226_v13 = vpack.c.bf16 %v900_v9, %v899_v44  ;;  %vm10965_vm4 = vmmov %vm10964_vm15  ;;  %v966_v49 = vsel %vm10967_vm11, %v5563_v48, %v5568_v27  ;;  %v5588_v9 = vunpack.i.h.bf16 %v5586_v52  ;;  %v5582_v44 = vunpack.i.l.bf16 %v5581_v6 }
  0xd4   :  { %4837 = vmatmul.mubr.msk.f32.gmra.mrb[16].mxu1 %vm10965_vm4, %v402_v23  ;;  %vm10966_vm6 = vmpackc.low %vm10943_vm5, %vm10943_vm5 }
  0xd5   :  { %5124 = vmatpush1.bf16.msk.msra.mxu0 %vm10966_vm6, %v5122_v50  ;;  %738 = vmatprep.mubr.f32.mxu1 %v10911_v2  ;;  %vm10968_vm10 = vmmov %vm10967_vm11  ;;  %v5587_v50 = vunpack.i.l.bf16 %v5586_v52  ;;  %v407_v52 = vld [vmem:[%s10493_s3 + $0x68] sm:$0xff] }
  0xd6   :  { %v965_v25 = vsel %vm10968_vm10, %v5562_v5, %v5567_v21  ;;  %vm10969_vm5 = vmpackc.low %vm10949_vm2, %vm10949_vm2 }
  0xd7   :  { %5225 = vmatprep.subr.msk.bf16.mxu1 %vm10969_vm5, %v5223_v61  ;;  %vm10970_vm12 = vmpackc.low %vm10951_vm1, %vm10951_vm1  ;;  %v5125_v7 = vpack.c.bf16 %v966_v49, %v965_v25 }
  0xd8   :  { %5228 = vmatpush1.bf16.msk.msra.mxu1 %vm10970_vm12, %v5226_v13  ;;  %vm10971_vm0 = vmmov %vm10965_vm4 }
  0xd9   :  { %4806 = vmatmul.mubr.msk.f32.gmra.mrb[18].mxu0 %vm10971_vm0, %v403_v18  ;;  %vm5126_vm15 = vmpackc.low %vm6522_vm9, %vm6522_vm9  ;;  %vm10990_vm9 = vcmp.lt.s32.totalorder %v6397_v43, 1 }
  0xda   :  { %vm10972_vm2 = vmmov %vm10971_vm0  ;;  %583 = vmatprep.mubr.f32.mxu0 %v10911_v2  ;;  %5127 = vmatprep.subr.msk.bf16.mxu0 %vm5126_vm15, %v5125_v7 }
  0xdb   :  { %4838 = vmatmul.mubr.msk.f32.gmra.mrb[18].mxu1 %vm10972_vm2, %v403_v18  ;;  %vm5129_vm1 = vmpackc.low %vm10850_vm8, %vm10850_vm8 }
  0xdc   :  { %vm10973_vm4 = vmmov %vm10968_vm10  ;;  %744 = vmatprep.mubr.f32.mxu1 %v10911_v2 }
  0xdd   :  { %v969_v22 = vsel %vm10973_vm4, %v5577_v19, %v5562_v5  ;;  %vm10974_vm6 = vmmov %vm10973_vm4  ;;  %4807 = vmatmul.mubr.msk.f32.gmra.mrb[20].mxu0 %vm10971_vm0, %v404_v10 }
  0xde   :  { %v970_v8 = vsel %vm10974_vm6, %v5578_v1, %v5563_v48  ;;  %vm10975_vm11 = vmmov %vm10973_vm4  ;;  %589 = vmatprep.mubr.f32.mxu0 %v10911_v2  ;;  %v5591_v48 = vpop.permute.xlu0 %5590 }
  0xdf   :  { %v958_v62 = vsel %vm10975_vm11, %v5573_v57, %v5578_v1  ;;  %vm10976_vm10 = vmmov %vm10973_vm4  ;;  %v5128_v56 = vpack.c.bf16 %v970_v8, %v969_v22  ;;  %v5593_v18 = vunpack.i.h.bf16 %v5591_v48  ;;  %v5592_v49 = vunpack.i.l.bf16 %v5591_v48 }
  0xe0   :  { %v962_v58 = vsel %vm10976_vm10, %v5568_v27, %v5573_v57  ;;  %vm10977_vm5 = vmmov %vm10973_vm4 }
  0xe1   :  { %v957_v39 = vsel %vm10977_vm5, %v5572_v30, %v5577_v19  ;;  %vm10978_vm12 = vmmov %vm10973_vm4  ;;  %vm10979_vm4 = vnez %v10817_v26  ;;  %5130 = vmatpush1.bf16.msk.msra.mxu0 %vm5129_vm1, %v5128_v56  ;;  %v967_v27 = vsel %vm10977_vm5, %v5582_v44, %v5587_v50  ;;  %v408_v26 = vld [vmem:[%s10493_s3 + $0x70] sm:$0xff] }
  0xe2   :  { %v961_v23 = vsel %vm10978_vm12, %v5567_v21, %v5572_v30  ;;  %vm5230_vm2 = vmpackc.low %vm6558_vm14, %vm6558_vm14  ;;  %v5229_v55 = vpack.c.bf16 %v958_v62, %v957_v39  ;;  %v5596_v21 = vpop.permute.xlu1 %5595  ;;  %v5601_v8 = vpop.permute.xlu0 %5600 }
  0xe3   :  { %v5232_v16 = vpack.c.bf16 %v962_v58, %v961_v23  ;;  %vm10571_vm6 = vmpackc.low %vm10979_vm4, %vm10979_vm4  ;;  %v5598_v5 = vunpack.i.h.bf16 %v5596_v21  ;;  %v5597_v61 = vunpack.i.l.bf16 %v5596_v21  ;;  %v5603_v39 = vunpack.i.h.bf16 %v5601_v8 }
  0xe4   :  { %vm10980_vm11 = vmmov %vm10971_vm0  ;;  %5231 = vmatprep.subr.msk.bf16.mxu1 %vm5230_vm2, %v5229_v55  ;;  %v5602_v23 = vunpack.i.l.bf16 %v5601_v8 }
  0xe5   :  { %4839 = vmatmul.mubr.msk.f32.gmra.mrb[20].mxu1 %vm10980_vm11, %v404_v10  ;;  %vm10981_vm10 = vmmov %vm10977_vm5  ;;  %v960_v19 = vsel %vm10977_vm5, %v5593_v18, %v5598_v5 }
  0xe6   :  { %v968_v13 = vsel %vm10981_vm10, %v5583_v31, %v5588_v9  ;;  %750 = vmatprep.mubr.f32.mxu1 %v10911_v2  ;;  %5234 = vmatpush1.bf16.msk.msra.mxu1 %vm10571_vm6, %v5232_v16  ;;  %vm10982_vm12 = vmmov %vm10971_vm0  ;;  %v5606_v22 = vpop.permute.xlu1 %5605 }
  0xe7   :  { %4808 = vmatmul.mubr.msk.f32.gmra.mrb[22].mxu0 %vm10982_vm12, %v405_v12  ;;  %v5131_v25 = vpack.c.bf16 %v968_v13, %v967_v27  ;;  %vm10983_vm11 = vmmov %vm10977_vm5  ;;  %v5608_v58 = vunpack.i.h.bf16 %v5606_v22  ;;  %v5607_v56 = vunpack.i.l.bf16 %v5606_v22 }
  0xe8   :  { %595 = vmatprep.mubr.f32.mxu0 %v10911_v2  ;;  %v971_v24 = vsel %vm10983_vm11, %v5597_v61, %v5582_v44  ;;  %vm10984_vm10 = vmmov %vm10977_vm5  ;;  %vm10988_vm11 = vcmask 785408  }
  0xe9   :  { %4840 = vmatmul.mubr.msk.f32.gmra.mrb[22].mxu1 %vm10971_vm0, %v405_v12  ;;  %v972_v1 = vsel %vm10984_vm10, %v5598_v5, %v5583_v31  ;;  %vm10985_vm12 = vmmov %vm10977_vm5  ;;  %5133 = vmatprep.subr.msk.bf16.mxu0 %vm5126_vm15, %v5131_v25  ;;  %v1030_v6 = vsel %vm10990_vm9, %v5603_v39, %v5608_v58 }
  0xea   :  { %v964_v57 = vsel %vm10985_vm12, %v5588_v9, %v5593_v18  ;;  %756 = vmatprep.mubr.f32.mxu1 %v10911_v2  ;;  %v5134_v30 = vpack.c.bf16 %v972_v1, %v971_v24  ;;  %vm10986_vm0 = vmmov %vm10977_vm5  ;;  %v5616_v28 = vpop.permute.xlu1 %5615  ;;  %v5611_v9 = vpop.permute.xlu0 %5610 }
  0xeb   :  { %v959_v7 = vsel %vm10986_vm0, %v5592_v49, %v5597_v61  ;;  %vm10987_vm6 = vmmov %vm10986_vm0  ;;  %4809 = vmatmul.mubr.msk.f32.gmra.mrb[24].mxu0 %vm10988_vm11, %v406_v63  ;;  %v5617_v31 = vunpack.i.l.bf16 %v5616_v28  ;;  %v5613_v44 = vunpack.i.h.bf16 %v5611_v9  ;;  %v5612_v55 = vunpack.i.l.bf16 %v5611_v9 }
  0xec   :  { %v963_v10 = vsel %vm10987_vm6, %v5587_v50, %v5592_v49  ;;  %vm10989_vm10 = vmmov %vm10988_vm11  ;;  %5136 = vmatpush1.bf16.msk.msra.mxu0 %vm5129_vm1, %v5134_v30  ;;  %v5235_v32 = vpack.c.bf16 %v960_v19, %v959_v7  ;;  %601 = vmatprep.mubr.f32.mxu0 %v10911_v2  ;;  %v5618_v50 = vunpack.i.h.bf16 %v5616_v28  ;;  %vm10994_vm6 = vnez %v10819_v34  ;;  %v409_v30 = vld [vmem:[%s10493_s3 + $0x78] sm:$0xff] }
  0xed   :  { %v5238_v62 = vpack.c.bf16 %v964_v57, %v963_v10  ;;  %4841 = vmatmul.mubr.msk.f32.gmra.mrb[24].mxu1 %vm10989_vm10, %v406_v63  ;;  %vm10991_vm15 = vmmov %vm10990_vm9  ;;  %v1310_v10 = vld [vmem:[%s10494_s4 + $0x8] sm:$0xff]  ;;  %v6072_v34 = vld [vmem:[%s10490_s1 + $0x38] sm:$0xff] }
  0xee   :  { %762 = vmatprep.mubr.f32.mxu1 %v10911_v2  ;;  %v1029_v16 = vsel %vm10991_vm15, %v5602_v23, %v5607_v56  ;;  %5237 = vmatprep.subr.msk.bf16.mxu1 %vm5230_vm2, %v5235_v32  ;;  %vm10992_vm8 = vmpackc.low %vm10979_vm4, %vm10979_vm4  ;;  %vm10996_vm2 = vnez %v10824_v20  ;;  %v5626_v18 = vpop.permute.xlu1 %5625  ;;  %v5621_v49 = vpop.permute.xlu0 %5620  ;;  %v6075_v20 = vld [vmem:[%s10490_s1 + $0x10] sm:$0xff] }
  0xef   :  { %5240 = vmatpush1.bf16.msk.msra.mxu1 %vm10992_vm8, %v5238_v62  ;;  %vm10993_vm1 = vmmov %vm10989_vm10  ;;  %v5137_v60 = vpack.c.bf16 %v1030_v6, %v1029_v16  ;;  %v5628_v63 = vunpack.i.h.bf16 %v5626_v18  ;;  %v5627_v24 = vunpack.i.l.bf16 %v5626_v18  ;;  %v5623_v1 = vunpack.i.h.bf16 %v5621_v49  ;;  %v6070_v6 = vld [vmem:[%s10490_s1 + $0x28] sm:$0xff] }
  0xf0   :  { %4810 = vmatmul.mubr.msk.f32.gmra.mrb[26].mxu0 %vm10993_vm1, %v407_v52  ;;  %vm5138_vm5 = vmpackc.low %vm10994_vm6, %vm10994_vm6  ;;  %v5622_v19 = vunpack.i.l.bf16 %v5621_v49  ;;  %v6076_v49 = vld [vmem:[%s10490_s1 + $0x30] sm:$0xff]  ;;  %vm11014_vm6 = vcmp.lt.s32.totalorder %v6397_v43, 127 }
  0xf1   :  { %vm10995_vm14 = vmmov %vm10993_vm1  ;;  %607 = vmatprep.mubr.f32.mxu0 %v10911_v2  ;;  %5139 = vmatprep.subr.msk.bf16.mxu0 %vm5138_vm5, %v5137_v60 }
  0xf2   :  { %4842 = vmatmul.mubr.msk.f32.gmra.mrb[26].mxu1 %vm10995_vm14, %v407_v52  ;;  %vm5141_vm4 = vmpackc.low %vm10996_vm2, %vm10996_vm2  ;;  %v5636_v8 = vpop.permute.xlu1 %5635  ;;  %v5631_v62 = vpop.permute.xlu0 %5630  ;;  %v6069_v52 = vld [vmem:[%s10490_s1 + $0x8] sm:$0xff] }
  0xf3   :  { %vm10997_vm12 = vmmov %vm10990_vm9  ;;  %768 = vmatprep.mubr.f32.mxu1 %v10911_v2  ;;  %v5632_v32 = vunpack.i.l.bf16 %v5631_v62  ;;  %v5149_v16 = vpack.c.bf16 %v6070_v6, %v6069_v52 }
  0xf4   :  { %v1033_v12 = vsel %vm10997_vm12, %v5617_v31, %v5602_v23  ;;  %vm10998_vm0 = vmmov %vm10990_vm9  ;;  %vm11005_vm12 = vnez %v10826_v33  ;;  %v5633_v23 = vunpack.i.h.bf16 %v5631_v62  ;;  %v6081_v33 = vld [vmem:[%s10490_s1 + $0x40] sm:$0xff] }
  0xf5   :  { %v1034_v13 = vsel %vm10998_vm0, %v5618_v50, %v5603_v39  ;;  %vm10999_vm11 = vmmov %vm10998_vm0  ;;  %v5637_v39 = vunpack.i.l.bf16 %v5636_v8 }
  0xf6   :  { %v1022_v27 = vsel %vm10999_vm11, %v5613_v44, %v5618_v50  ;;  %vm11000_vm10 = vmmov %vm10998_vm0  ;;  %v5140_v48 = vpack.c.bf16 %v1034_v13, %v1033_v12  ;;  %v5641_v12 = vpop.permute.xlu0 %5640 }
  0xf7   :  { %v1026_v21 = vsel %vm11000_vm10, %v5608_v58, %v5613_v44  ;;  %vm11001_vm9 = vmmov %vm10998_vm0  ;;  %v5642_v62 = vunpack.i.l.bf16 %v5641_v12 }
  0xf8   :  { %v1021_v5 = vsel %vm11001_vm9, %v5612_v55, %v5617_v31  ;;  %vm11002_vm15 = vmmov %vm10998_vm0  ;;  %5142 = vmatpush1.bf16.msk.msra.mxu0 %vm5141_vm4, %v5140_v48  ;;  %v1031_v22 = vsel %vm11001_vm9, %v5622_v19, %v5627_v24 }
  0xf9   :  { %v1025_v61 = vsel %vm11002_vm15, %v5607_v56, %v5612_v55  ;;  %vm11003_vm8 = vmmov %vm10993_vm1  ;;  %vm11004_vm1 = vnez %v10822_v36  ;;  %v5241_v57 = vpack.c.bf16 %v1022_v27, %v1021_v5  ;;  %v5638_v56 = vunpack.i.h.bf16 %v5636_v8  ;;  %v6073_v5 = vld [vmem:[%s10490_s1] sm:$0xff]  ;;  %v6078_v36 = vld [vmem:[%s10490_s1 + $0x68] sm:$0xff] }
  0xfa   :  { %v5244_v25 = vpack.c.bf16 %v1026_v21, %v1025_v61  ;;  %4811 = vmatmul.mubr.msk.f32.gmra.mrb[28].mxu0 %vm11003_vm8, %v408_v26  ;;  %vm5242_vm14 = vmpackc.low %vm11004_vm1, %vm11004_vm1  ;;  %v6071_v21 = vld [vmem:[%s10490_s1 + $0x18] sm:$0xff]  ;;  %v6074_v61 = vld [vmem:[%s10490_s1 + $0x20] sm:$0xff]  ;;  %vm11018_vm1 = vnez %v10833_v46 }
  0xfb   :  { %vm5245_vm0 = vmpackc.low %vm11005_vm12, %vm11005_vm12  ;;  %613 = vmatprep.mubr.f32.mxu0 %v10911_v2  ;;  %5243 = vmatprep.subr.msk.bf16.mxu1 %vm5242_vm14, %v5241_v57  ;;  %v1024_v50 = vsel %vm11001_vm9, %v5633_v23, %v5638_v56  ;;  %v5253_v48 = vpack.c.bf16 %v6072_v34, %v6071_v21  ;;  %v5151_v18 = vpack.c.bf16 %v6074_v61, %v6073_v5  ;;  %v5643_v57 = vunpack.i.h.bf16 %v5641_v12 }
  0xfc   :  { %vm11006_vm11 = vmmov %vm11003_vm8  ;;  %5246 = vmatpush1.bf16.msk.msra.mxu1 %vm5245_vm0, %v5244_v25  ;;  %v5255_v25 = vpack.c.bf16 %v6076_v49, %v6075_v20 }
  0xfd   :  { %4843 = vmatmul.mubr.msk.f32.gmra.mrb[28].mxu1 %vm11006_vm11, %v408_v26  ;;  %vm11007_vm10 = vmmov %vm11001_vm9  ;;  %v5646_v26 = vpop.permute.xlu1 %5645 }
  0xfe   :  { %v1032_v7 = vsel %vm11007_vm10, %v5623_v1, %v5628_v63  ;;  %774 = vmatprep.mubr.f32.mxu1 %v10911_v2  ;;  %vm11008_vm15 = vmmov %vm11003_vm8 }
  0xff   :  { %v5143_v58 = vpack.c.bf16 %v1032_v7, %v1031_v22  ;;  %4812 = vmatmul.mubr.msk.f32.gmra.mrb[30].mxu0 %vm11008_vm15, %v409_v30  ;;  %vm11009_vm11 = vmmov %vm11001_vm9  ;;  %v5651_v7 = vpop.permute.xlu0 %5650  ;;  %v6080_v22 = vld [vmem:[%s10490_s1 + $0x78] sm:$0xff] }
 0x100   :  { %1470 = vmatprep.mubr.f32.mxu0 %v1310_v10  ;;  %v1035_v28 = vsel %vm11009_vm11, %v5637_v39, %v5622_v19  ;;  %vm11010_vm10 = vmmov %vm11001_vm9  ;;  %v5647_v19 = vunpack.i.l.bf16 %v5646_v26 }
 0x101   :  { %4844 = vmatmul.mubr.msk.f32.gmra.mrb[30].mxu1 %vm11003_vm8, %v409_v30  ;;  %v1036_v9 = vsel %vm11010_vm10, %v5638_v56, %v5623_v1  ;;  %vm11011_vm15 = vmmov %vm11001_vm9  ;;  %5145 = vmatprep.subr.msk.bf16.mxu0 %vm5138_vm5, %v5143_v58  ;;  %v5648_v1 = vunpack.i.h.bf16 %v5646_v26  ;;  %v5656_v30 = vpop.permute.xlu1 %5655  ;;  %vm11021_vm10 = vnez %v10835_v35 }
 0x102   :  { %v1028_v31 = vsel %vm11011_vm15, %v5628_v63, %v5633_v23  ;;  %v5146_v44 = vpack.c.bf16 %v1036_v9, %v1035_v28  ;;  %vm11012_vm8 = vmmov %vm11001_vm9  ;;  %1792 = vmatprep.mubr.f32.mxu1 %v1310_v10  ;;  %v6077_v63 = vld [vmem:[%s10490_s1 + $0x48] sm:$0xff]  ;;  %v6079_v10 = vld [vmem:[%s10490_s1 + $0x58] sm:$0xff]  ;;  %v5658_v58 = vunpack.i.h.bf16 %v5656_v30  ;;  %v5657_v56 = vunpack.i.l.bf16 %v5656_v30 }
 0x103   :  { %v1023_v55 = vsel %vm11012_vm8, %v5632_v32, %v5637_v39  ;;  %vm11013_vm11 = vmmov %vm11012_vm8  ;;  %v5257_v8 = vpack.c.bf16 %v6080_v22, %v6079_v10  ;;  %v5653_v39 = vunpack.i.h.bf16 %v5651_v7  ;;  %v5652_v23 = vunpack.i.l.bf16 %v5651_v7 }
 0x104   :  { %v1027_v60 = vsel %vm11013_vm11, %v5627_v24, %v5632_v32  ;;  %v5247_v13 = vpack.c.bf16 %v1024_v50, %v1023_v55  ;;  %5148 = vmatpush1.bf16.msk.msra.mxu0 %vm5141_vm4, %v5146_v44  ;;  %v5153_v24 = vpack.c.bf16 %v6078_v36, %v6077_v63  ;;  %v6082_v32 = vld [vmem:[%s10490_s1 + $0x60] sm:$0xff]  ;;  %vm11015_vm5 = vmmov %vm11014_vm6  ;;  %v6083_v44 = vld [vmem:[%s10490_s1 + $0x50] sm:$0xff]  ;;  %vm11022_vm15 = vnez %v10837_v38 }
 0x105   :  { %v5250_v27 = vpack.c.bf16 %v1028_v31, %v1027_v60  ;;  %5150 = vmatprep.subr.bf16.mxu0 %v5149_v16  ;;  %v5155_v52 = vpack.c.bf16 %v6082_v32, %v6081_v33  ;;  %v1090_v6 = vsel %vm11014_vm6, %v5648_v1, %v5653_v39  ;;  %v1097_v16 = vsel %vm11015_vm5, %v5657_v56, %v5642_v62  ;;  %vm11016_vm2 = vmmov %vm11015_vm5  ;;  %v5666_v50 = vpop.permute.xlu1 %5665  ;;  %v5661_v31 = vpop.permute.xlu0 %5660  ;;  %v6084_v55 = vld [vmem:[%s10490_s1 + $0x70] sm:$0xff] }
 0x106   :  { %5249 = vmatprep.subr.msk.bf16.mxu1 %vm5242_vm14, %v5247_v13  ;;  %v1098_v28 = vsel %vm11016_vm2, %v5658_v58, %v5643_v57  ;;  %vm11017_vm4 = vmmov %vm11016_vm2  ;;  %v5259_v60 = vpack.c.bf16 %v6084_v55, %v6083_v44  ;;  %v5667_v21 = vunpack.i.l.bf16 %v5666_v50  ;;  %v5663_v34 = vunpack.i.h.bf16 %v5661_v31 }
 0x107   :  { %5252 = vmatpush1.bf16.msk.msra.mxu1 %vm5245_vm0, %v5250_v27  ;;  %v1089_v9 = vsel %vm11017_vm4, %v5647_v19, %v5652_v23  ;;  %vm10572_vm14 = vmpackc.low %vm11018_vm1, %vm11018_vm1  ;;  %v5668_v27 = vunpack.i.h.bf16 %v5666_v50  ;;  %vm11025_vm5 = vnez %v10857_v53 }
 0x108   :  { %5254 = vmatprep.subr.bf16.mxu1 %v5253_v48  ;;  %5152 = vmatpush1.bf16.msra.mxu0 %v5151_v18  ;;  %vm11019_vm12 = vmmov %vm11016_vm2  ;;  %v5157_v13 = vpack.c.bf16 %v1090_v6, %v1089_v9  ;;  %v5662_v48 = vunpack.i.l.bf16 %v5661_v31  ;;  %v5261_v18 = vpack.c.bf16 %v1098_v28, %v1097_v16 }
 0x109   :  { %5154 = vmatprep.subr.bf16.mxu0 %v5153_v24  ;;  %v1094_v26 = vsel %vm11019_vm12, %v5643_v57, %v5648_v1  ;;  %vm11020_vm0 = vmmov %vm11016_vm2  ;;  %v5676_v49 = vpop.permute.xlu1 %5675 }
 0x10a   :  { %v1093_v12 = vsel %vm11020_vm0, %v5642_v62, %v5647_v19  ;;  %vm5262_vm9 = vmpackc.low %vm11021_vm10, %vm11021_vm10  ;;  %v5678_v63 = vunpack.i.h.bf16 %v5676_v49  ;;  %v5677_v36 = vunpack.i.l.bf16 %v5676_v49  ;;  %vm11034_vm10 = vcmp.lt.s32.totalorder %v6397_v43, 113 }
 0x10b   :  { %5256 = vmatpush1.bf16.msra.mxu1 %v5255_v25  ;;  %vm5161_vm8 = vmpackc.low %vm11022_vm15, %vm11022_vm15  ;;  %v5160_v20 = vpack.c.bf16 %v1094_v26, %v1093_v12  ;;  %v5671_v25 = vpop.permute.xlu0 %5670 }
 0x10c   :  { %5258 = vmatprep.subr.bf16.mxu1 %v5257_v8  ;;  %5156 = vmatpush1.bf16.msra.mxu0 %v5155_v52  ;;  %vm11023_vm11 = vmmov %vm11020_vm0  ;;  %v5673_v24 = vunpack.i.h.bf16 %v5671_v25  ;;  %v5672_v30 = vunpack.i.l.bf16 %v5671_v25  ;;  %v1099_v7 = vsel %vm11020_vm0, %v5677_v36, %v5662_v48 }
 0x10d   :  { %v1086_v5 = vsel %vm11023_vm11, %v5653_v39, %v5658_v58  ;;  %vm11024_vm6 = vmmov %vm11020_vm0  ;;  %5159 = vmatprep.subr.msk.bf16.mxu0 %vm10572_vm14, %v5157_v13 }
 0x10e   :  { %v1085_v61 = vsel %vm11024_vm6, %v5652_v23, %v5657_v56  ;;  %vm5265_vm2 = vmpackc.low %vm11025_vm5, %vm11025_vm5  ;;  %v5686_v56 = vpop.permute.xlu1 %5685 }
 0x10f   :  { %5260 = vmatpush1.bf16.msra.mxu1 %v5259_v60  ;;  %v5264_v1 = vpack.c.bf16 %v1086_v5, %v1085_v61  ;;  %vm11026_vm4 = vmmov %vm11020_vm0  ;;  %v5681_v39 = vpop.permute.xlu0 %5680  ;;  %v5688_v6 = vunpack.i.h.bf16 %v5686_v56  ;;  %v5687_v16 = vunpack.i.l.bf16 %v5686_v56 }
 0x110   :  { %5263 = vmatprep.subr.msk.bf16.mxu1 %vm5262_vm9, %v5261_v18  ;;  %v1096_v19 = vsel %vm11026_vm4, %v5663_v34, %v5668_v27  ;;  %vm11027_vm12 = vmmov %vm11020_vm0  ;;  %5162 = vmatpush1.bf16.msk.msra.mxu0 %vm5161_vm8, %v5160_v20  ;;  %v5683_v28 = vunpack.i.h.bf16 %v5681_v39  ;;  %v5682_v9 = vunpack.i.l.bf16 %v5681_v39 }
 0x111   :  { %v1095_v57 = vsel %vm11027_vm12, %v5662_v48, %v5667_v21  ;;  %vm11028_vm11 = vmmov %vm11020_vm0 }
 0x112   :  { %v1100_v10 = vsel %vm11028_vm11, %v5678_v63, %v5663_v34  ;;  %vm11029_vm6 = vmmov %vm11020_vm0  ;;  %v5166_v33 = vpack.c.bf16 %v1096_v19, %v1095_v57  ;;  %v5696_v35 = vpop.permute.xlu1 %5695  ;;  %v1158_v46 = vsel %vm11034_vm10, %v5683_v28, %v5688_v6 }
 0x113   :  { %v1088_v22 = vsel %vm11029_vm6, %v5673_v24, %v5678_v63  ;;  %vm11030_vm4 = vmmov %vm11020_vm0  ;;  %5266 = vmatpush1.bf16.msk.msra.mxu1 %vm5265_vm2, %v5264_v1  ;;  %v5267_v23 = vpack.c.bf16 %v1100_v10, %v1099_v7  ;;  %v5691_v50 = vpop.permute.xlu0 %5690  ;;  %v5698_v31 = vunpack.i.h.bf16 %v5696_v35  ;;  %v5697_v44 = vunpack.i.l.bf16 %v5696_v35 }
 0x114   :  { %v1092_v8 = vsel %vm11030_vm4, %v5668_v27, %v5673_v24  ;;  %vm11031_vm12 = vmmov %vm11020_vm0  ;;  %v5693_v55 = vunpack.i.h.bf16 %v5691_v50  ;;  %v5692_v60 = vunpack.i.l.bf16 %v5691_v50 }
 0x115   :  { %v1087_v62 = vsel %vm11031_vm12, %v5672_v30, %v5677_v36  ;;  %vm11032_vm14 = vmmov %vm11020_vm0  ;;  %5269 = vmatprep.subr.msk.bf16.mxu1 %vm5262_vm9, %v5267_v23  ;;  %vm11042_vm12 = vnez %v10888_v4 }
 0x116   :  { %v1091_v58 = vsel %vm11032_vm14, %v5667_v21, %v5672_v30  ;;  %v5270_v52 = vpack.c.bf16 %v1088_v22, %v1087_v62  ;;  %vm11033_vm14 = vmpackc.low %vm11018_vm1, %vm11018_vm1  ;;  %v5706_v48 = vpop.permute.xlu1 %5705 }
 0x117   :  { %v5163_v32 = vpack.c.bf16 %v1092_v8, %v1091_v58  ;;  %vm5277_vm1 = vmpackc.low %vm6869_vm7, %vm6869_vm7  ;;  %v5701_v5 = vpop.permute.xlu0 %5700  ;;  %v5708_v49 = vunpack.i.h.bf16 %v5706_v48  ;;  %v5707_v25 = vunpack.i.l.bf16 %v5706_v48 }
 0x118   :  { %5272 = vmatpush1.bf16.msk.msra.mxu1 %vm5265_vm2, %v5270_v52  ;;  %vm11035_vm9 = vmmov %vm11034_vm10  ;;  %v5703_v63 = vunpack.i.h.bf16 %v5701_v5  ;;  %v5702_v36 = vunpack.i.l.bf16 %v5701_v5 }
 0x119   :  { %5165 = vmatprep.subr.msk.bf16.mxu0 %vm11033_vm14, %v5163_v32  ;;  %v1157_v38 = vsel %vm11035_vm9, %v5682_v9, %v5687_v16  ;;  %vm11036_vm15 = vmmov %vm11035_vm9 }
 0x11a   :  { %5168 = vmatpush1.bf16.msk.msra.mxu0 %vm5161_vm8, %v5166_v33  ;;  %v1161_v53 = vsel %vm11036_vm15, %v5697_v44, %v5682_v9  ;;  %vm11037_vm8 = vmmov %vm11035_vm9  ;;  %v5172_v61 = vpack.c.bf16 %v1158_v46, %v1157_v38  ;;  %v5716_v24 = vpop.permute.xlu1 %5715 }
 0x11b   :  { %v1162_v26 = vsel %vm11037_vm8, %v5698_v31, %v5683_v28  ;;  %vm11038_vm5 = vmmov %vm11037_vm8  ;;  %v5711_v1 = vpop.permute.xlu0 %5710  ;;  %v5718_v19 = vunpack.i.h.bf16 %v5716_v24  ;;  %v5717_v57 = vunpack.i.l.bf16 %v5716_v24 }
 0x11c   :  { %v1150_v12 = vsel %vm11038_vm5, %v5693_v55, %v5698_v31  ;;  %vm11039_vm2 = vmmov %vm11038_vm5  ;;  %v5273_v27 = vpack.c.bf16 %v1162_v26, %v1161_v53  ;;  %v5713_v30 = vunpack.i.h.bf16 %v5711_v1  ;;  %v5712_v22 = vunpack.i.l.bf16 %v5711_v1 }
 0x11d   :  { %v1154_v13 = vsel %vm11039_vm2, %v5688_v6, %v5693_v55  ;;  %vm5274_vm0 = vmpackc.low %vm6828_vm13, %vm6828_vm13  ;;  %vm11050_vm13 = vnez %v10885_v11 }
 0x11e   :  { %vm11040_vm11 = vmmov %vm11039_vm2  ;;  %5275 = vmatprep.subr.msk.bf16.mxu1 %vm5274_vm0, %v5273_v27  ;;  %v1156_v56 = vsel %vm11039_vm2, %v5708_v49, %v5713_v30  ;;  %v5726_v32 = vpop.permute.xlu1 %5725 }
 0x11f   :  { %v1149_v21 = vsel %vm11040_vm11, %v5692_v60, %v5697_v44  ;;  %vm11041_vm6 = vmmov %vm11039_vm2  ;;  %v5721_v52 = vpop.permute.xlu0 %5720  ;;  %v5728_v9 = vunpack.i.h.bf16 %v5726_v32  ;;  %v5727_v35 = vunpack.i.l.bf16 %v5726_v32 }
 0x120   :  { %v1153_v34 = vsel %vm11041_vm6, %v5687_v16, %v5692_v60  ;;  %vm5170_vm4 = vmpackc.low %vm6824_vm3, %vm6824_vm3  ;;  %v5276_v20 = vpack.c.bf16 %v1150_v12, %v1149_v21  ;;  %v5723_v50 = vunpack.i.h.bf16 %v5721_v52  ;;  %v5722_v31 = vunpack.i.l.bf16 %v5721_v52 }
 0x121   :  { %vm5173_vm14 = vmpackc.low %vm11042_vm12, %vm11042_vm12  ;;  %v5169_v18 = vpack.c.bf16 %v1154_v13, %v1153_v34 }
 0x122   :  { %5278 = vmatpush1.bf16.msk.msra.mxu1 %vm5277_vm1, %v5276_v20  ;;  %vm11043_vm10 = vmmov %vm11039_vm2  ;;  %v5736_v15 = vpop.permute.xlu1 %5735 }
 0x123   :  { %5171 = vmatprep.subr.msk.bf16.mxu0 %vm5170_vm4, %v5169_v18  ;;  %v1160_v7 = vsel %vm11043_vm10, %v5703_v63, %v5708_v49  ;;  %vm11044_vm9 = vmmov %vm11039_vm2  ;;  %v5731_v44 = vpop.permute.xlu0 %5730  ;;  %v5738_v55 = vunpack.i.h.bf16 %v5736_v15  ;;  %v5737_v46 = vunpack.i.l.bf16 %v5736_v15  ;;  %vm11057_vm10 = vnez %v10875_v0 }
 0x124   :  { %5174 = vmatpush1.bf16.msk.msra.mxu0 %vm5173_vm14, %v5172_v61  ;;  %v1159_v10 = vsel %vm11044_vm9, %v5702_v36, %v5707_v25  ;;  %vm11045_vm15 = vmmov %vm11039_vm2  ;;  %v5733_v38 = vunpack.i.h.bf16 %v5731_v44  ;;  %v5732_v60 = vunpack.i.l.bf16 %v5731_v44 }
 0x125   :  { %v1163_v8 = vsel %vm11045_vm15, %v5717_v57, %v5702_v36  ;;  %vm11046_vm8 = vmmov %vm11039_vm2  ;;  %v5178_v6 = vpack.c.bf16 %v1160_v7, %v1159_v10 }
 0x126   :  { %v1164_v62 = vsel %vm11046_vm8, %v5718_v19, %v5703_v63  ;;  %vm11047_vm5 = vmmov %vm11039_vm2  ;;  %v5746_v34 = vpop.permute.xlu1 %5745 }
 0x127   :  { %v1152_v58 = vsel %vm11047_vm5, %v5713_v30, %v5718_v19  ;;  %v5279_v39 = vpack.c.bf16 %v1164_v62, %v1163_v8  ;;  %vm11048_vm11 = vmmov %vm11039_vm2  ;;  %v5741_v48 = vpop.permute.xlu0 %5740  ;;  %vm11060_vm5 = vnez %v10849_v41  ;;  %v5748_v20 = vunpack.i.h.bf16 %v5746_v34 }
 0x128   :  { %v1151_v23 = vsel %vm11048_vm11, %v5712_v22, %v5717_v57  ;;  %vm11049_vm6 = vmmov %vm11039_vm2  ;;  %vm11061_vm11 = vnez %v10877_v3  ;;  %v5747_v49 = vunpack.i.l.bf16 %v5746_v34  ;;  %v5742_v63 = vunpack.i.l.bf16 %v5741_v48 }
 0x129   :  { %v1155_v33 = vsel %vm11049_vm6, %v5707_v25, %v5712_v22  ;;  %v5282_v28 = vpack.c.bf16 %v1152_v58, %v1151_v23  ;;  %5281 = vmatprep.subr.msk.bf16.mxu1 %vm5274_vm0, %v5279_v39  ;;  %vm5289_vm3 = vmpackc.low %vm11050_vm13, %vm11050_vm13  ;;  %vm11051_vm0 = vcmp.lt.s32.totalorder %v6397_v43, 112  ;;  %v5743_v25 = vunpack.i.h.bf16 %v5741_v48  ;;  %v1316_v48 = vld [vmem:[%s10494_s4 + $0x38] sm:$0xff] }
 0x12a   :  { %v5175_v16 = vpack.c.bf16 %v1156_v56, %v1155_v33  ;;  %v1222_v14 = vsel %vm11051_vm0, %v5723_v50, %v5728_v9  ;;  %vm11052_vm7 = vmmov %vm11051_vm0  ;;  %v5756_v36 = vpop.permute.xlu1 %5755  ;;  %vm11071_vm13 = vnez %v10905_v17  ;;  %v1327_v17 = vld [vmem:[%s10494_s4 + $0x90] sm:$0xff] }
 0x12b   :  { %5284 = vmatpush1.bf16.msk.msra.mxu1 %vm5277_vm1, %v5282_v28  ;;  %v1221_v37 = vsel %vm11052_vm7, %v5722_v31, %v5727_v35  ;;  %vm11053_vm1 = vmmov %vm11051_vm0  ;;  %v5751_v24 = vpop.permute.xlu0 %5750  ;;  %v5758_v1 = vunpack.i.h.bf16 %v5756_v36  ;;  %v5757_v19 = vunpack.i.l.bf16 %v5756_v36  ;;  %v1224_v30 = vsel %vm11051_vm0, %v5743_v25, %v5748_v20  ;;  %v1319_v36 = vld [vmem:[%s10494_s4 + $0x50] sm:$0xff] }
 0x12c   :  { %5177 = vmatprep.subr.msk.bf16.mxu0 %vm5170_vm4, %v5175_v16  ;;  %v1225_v4 = vsel %vm11053_vm1, %v5737_v46, %v5722_v31  ;;  %vm11054_vm4 = vmmov %vm11051_vm0  ;;  %v5184_v5 = vpack.c.bf16 %v1222_v14, %v1221_v37  ;;  %v5753_v57 = vunpack.i.h.bf16 %v5751_v24  ;;  %v5752_v10 = vunpack.i.l.bf16 %v5751_v24  ;;  %v1309_v31 = vld [vmem:[%s10494_s4] sm:$0xff] }
 0x12d   :  { %5180 = vmatpush1.bf16.msk.msra.mxu0 %vm5173_vm14, %v5178_v6  ;;  %v1226_v53 = vsel %vm11054_vm4, %v5738_v55, %v5723_v50  ;;  %vm11055_vm12 = vmmov %vm11051_vm0 }
 0x12e   :  { %v1214_v26 = vsel %vm11055_vm12, %v5733_v38, %v5738_v55  ;;  %vm11056_vm14 = vmmov %vm11051_vm0  ;;  %v5285_v13 = vpack.c.bf16 %v1226_v53, %v1225_v4  ;;  %v5766_v33 = vpop.permute.xlu1 %5765 }
 0x12f   :  { %v1218_v12 = vsel %vm11056_vm14, %v5728_v9, %v5733_v38  ;;  %vm5286_vm9 = vmpackc.low %vm11057_vm10, %vm11057_vm10  ;;  %v5761_v32 = vpop.permute.xlu0 %5760  ;;  %v5768_v16 = vunpack.i.h.bf16 %v5766_v33  ;;  %v5767_v28 = vunpack.i.l.bf16 %v5766_v33  ;;  %v1313_v38 = vld [vmem:[%s10494_s4 + $0x20] sm:$0xff] }
 0x130   :  { %vm11058_vm15 = vmmov %vm11051_vm0  ;;  %5287 = vmatprep.subr.msk.bf16.mxu1 %vm5286_vm9, %v5285_v13  ;;  %v5762_v50 = vunpack.i.l.bf16 %v5761_v32 }
 0x131   :  { %v1213_v27 = vsel %vm11058_vm15, %v5732_v60, %v5737_v46  ;;  %vm11059_vm8 = vmmov %vm11051_vm0 }
 0x132   :  { %v1217_v21 = vsel %vm11059_vm8, %v5727_v35, %v5732_v60  ;;  %vm5182_vm2 = vmpackc.low %vm11060_vm5, %vm11060_vm5  ;;  %v5288_v18 = vpack.c.bf16 %v1214_v26, %v1213_v27  ;;  %v5763_v35 = vunpack.i.h.bf16 %v5761_v32  ;;  %v5776_v41 = vpop.permute.xlu1 %5775  ;;  %v1312_v26 = vld [vmem:[%s10494_s4 + $0x18] sm:$0xff]  ;;  %v1325_v32 = vld [vmem:[%s10494_s4 + $0x80] sm:$0xff] }
 0x133   :  { %vm5185_vm6 = vmpackc.low %vm11061_vm11, %vm11061_vm11  ;;  %v5181_v61 = vpack.c.bf16 %v1218_v12, %v1217_v21  ;;  %v5771_v11 = vpop.permute.xlu0 %5770  ;;  %v5778_v44 = vunpack.i.h.bf16 %v5776_v41  ;;  %v5777_v55 = vunpack.i.l.bf16 %v5776_v41  ;;  %v1340_v41 = vld [vmem:[%s10494_s4 + $0xf8] sm:$0xff] }
 0x134   :  { %5290 = vmatpush1.bf16.msk.msra.mxu1 %vm5289_vm3, %v5288_v18  ;;  %vm11062_vm7 = vmmov %vm11051_vm0  ;;  %v5773_v46 = vunpack.i.h.bf16 %v5771_v11  ;;  %v5772_v37 = vunpack.i.l.bf16 %v5771_v11  ;;  %v1315_v18 = vld [vmem:[%s10494_s4 + $0x30] sm:$0xff] }
 0x135   :  { %5183 = vmatprep.subr.msk.bf16.mxu0 %vm5182_vm2, %v5181_v61  ;;  %v1223_v7 = vsel %vm11062_vm7, %v5742_v63, %v5747_v49  ;;  %vm11063_vm1 = vmmov %vm11051_vm0  ;;  %v1339_v11 = vld [vmem:[%s10494_s4 + $0xf0] sm:$0xff] }
 0x136   :  { %5186 = vmatpush1.bf16.msk.msra.mxu0 %vm5185_vm6, %v5184_v5  ;;  %v1227_v22 = vsel %vm11063_vm1, %v5757_v19, %v5742_v63  ;;  %vm11064_vm4 = vmmov %vm11051_vm0  ;;  %v5190_v9 = vpack.c.bf16 %v1224_v30, %v1223_v7  ;;  %v5786_v61 = vpop.permute.xlu1 %5785 }
 0x137   :  { %v1228_v8 = vsel %vm11064_vm4, %v5758_v1, %v5743_v25  ;;  %vm11065_vm12 = vmmov %vm11051_vm0  ;;  %v5781_v5 = vpop.permute.xlu0 %5780  ;;  %v5788_v25 = vunpack.i.h.bf16 %v5786_v61  ;;  %v5787_v63 = vunpack.i.l.bf16 %v5786_v61  ;;  %v1335_v61 = vld [vmem:[%s10494_s4 + $0xd0] sm:$0xff] }
 0x138   :  { %v1216_v62 = vsel %vm11065_vm12, %v5753_v57, %v5758_v1  ;;  %vm11066_vm14 = vmmov %vm11051_vm0  ;;  %v5291_v56 = vpack.c.bf16 %v1228_v8, %v1227_v22  ;;  %vm11079_vm12 = vnez %v10901_v29 }
 0x139   :  { %v1220_v58 = vsel %vm11066_vm14, %v5748_v20, %v5753_v57  ;;  %vm11067_vm15 = vmmov %vm11051_vm0  ;;  %v5783_v20 = vunpack.i.h.bf16 %v5781_v5  ;;  %v1318_v57 = vld [vmem:[%s10494_s4 + $0x48] sm:$0xff] }
 0x13a   :  { %v1215_v39 = vsel %vm11067_vm15, %v5752_v10, %v5757_v19  ;;  %vm11068_vm8 = vmmov %vm11051_vm0  ;;  %5293 = vmatprep.subr.msk.bf16.mxu1 %vm5286_vm9, %v5291_v56  ;;  %vm11069_vm0 = vcmp.lt.s32.totalorder %v6397_v43, 111  ;;  %vm11080_vm15 = vnez %v10907_v54  ;;  %v5796_v56 = vpop.permute.xlu1 %5795  ;;  %v1328_v43 = vld [vmem:[%s10494_s4 + $0x98] sm:$0xff]  ;;  %v1330_v54 = vld [vmem:[%s10494_s4 + $0xa8] sm:$0xff] }
 0x13b   :  { %v1219_v23 = vsel %vm11068_vm8, %v5747_v49, %v5752_v10  ;;  %v5294_v6 = vpack.c.bf16 %v1216_v62, %v1215_v39  ;;  %v1286_v0 = vsel %vm11069_vm0, %v5763_v35, %v5768_v16  ;;  %vm11070_vm10 = vmmov %vm11069_vm0  ;;  %v5782_v49 = vunpack.i.l.bf16 %v5781_v5  ;;  %v5791_v19 = vpop.permute.xlu0 %5790  ;;  %v1322_v10 = vld [vmem:[%s10494_s4 + $0x68] sm:$0xff]  ;;  %v1321_v39 = vld [vmem:[%s10494_s4 + $0x60] sm:$0xff] }
 0x13c   :  { %v5187_v52 = vpack.c.bf16 %v1220_v58, %v1219_v23  ;;  %v1285_v15 = vsel %vm11070_vm10, %v5762_v50, %v5767_v28  ;;  %vm11072_vm9 = vmmov %vm11069_vm0  ;;  %v5793_v30 = vunpack.i.h.bf16 %v5791_v19  ;;  %v5792_v7 = vunpack.i.l.bf16 %v5791_v19  ;;  %v1332_v5 = vld [vmem:[%s10494_s4 + $0xb8] sm:$0xff] }
 0x13d   :  { %5296 = vmatpush1.bf16.msk.msra.mxu1 %vm5289_vm3, %v5294_v6  ;;  %vm5197_vm3 = vmpackc.low %vm11071_vm13, %vm11071_vm13  ;;  %v5196_v14 = vpack.c.bf16 %v1286_v0, %v1285_v15  ;;  %v1289_v3 = vsel %vm11072_vm9, %v5777_v55, %v5762_v50  ;;  %v1287_v24 = vsel %vm11069_vm0, %v5782_v49, %v5787_v63  ;;  %v5798_v23 = vunpack.i.h.bf16 %v5796_v56  ;;  %v1334_v50 = vld [vmem:[%s10494_s4 + $0xc8] sm:$0xff]  ;;  %v1337_v0 = vld [vmem:[%s10494_s4 + $0xe0] sm:$0xff] }
 0x13e   :  { %5189 = vmatprep.subr.msk.bf16.mxu0 %vm5182_vm2, %v5187_v52  ;;  %vm11073_vm5 = vmmov %vm11069_vm0  ;;  %v5797_v33 = vunpack.i.l.bf16 %v5796_v56  ;;  %v1336_v15 = vld [vmem:[%s10494_s4 + $0xd8] sm:$0xff]  ;;  %vm1357_vm13 = vcmask 261120  }
 0x13f   :  { %5192 = vmatpush1.bf16.msk.msra.mxu0 %vm5185_vm6, %v5190_v9  ;;  %v1290_v60 = vsel %vm11073_vm5, %v5778_v44, %v5763_v35  ;;  %vm11074_vm2 = vmmov %vm11069_vm0  ;;  %vm11076_vm6 = vnez %v10903_v59  ;;  %v1324_v35 = vld [vmem:[%s10494_s4 + $0x78] sm:$0xff]  ;;  %v1331_v59 = vld [vmem:[%s10494_s4 + $0xb0] sm:$0xff] }
 0x140   :  { %1793 = vmatmul.mubr.f32.vlgmr.msra.gmra.mrb[32].mxu1 %v1309_v31  ;;  %v1278_v4 = vsel %vm11074_vm2, %v5773_v46, %v5778_v44  ;;  %vm11075_vm11 = vmmov %vm11069_vm0  ;;  %v5297_v12 = vpack.c.bf16 %v1290_v60, %v1289_v3  ;;  %v1343_v44 = vld [vmem:[%s10494_s4 + $0x110] sm:$0xff]  ;;  %v1352_v3 = vld [vmem:[%s10494_s4 + $0x158] sm:$0xff] }
 0x141   :  { %v1282_v53 = vsel %vm11075_vm11, %v5768_v16, %v5773_v46  ;;  %vm5298_vm7 = vmpackc.low %vm11076_vm6, %vm11076_vm6  ;;  %1798 = vmatprep.mubr.f32.mxu1 %v1313_v38  ;;  %v1346_v46 = vld [vmem:[%s10494_s4 + $0x128] sm:$0xff]  ;;  %v1351_v60 = vld [vmem:[%s10494_s4 + $0x150] sm:$0xff] }
 0x142   :  { %1471 = vmatmul.mubr.f32.vlgmr.msra.gmra.mrb[32].mxu0 %v1309_v31  ;;  %vm11077_vm1 = vmmov %vm11069_vm0  ;;  %5299 = vmatprep.subr.msk.bf16.mxu1 %vm5298_vm7, %v5297_v12  ;;  %v1333_v31 = vld [vmem:[%s10494_s4 + $0xc0] sm:$0xff]  ;;  %v1314_v12 = vld [vmem:[%s10494_s4 + $0x28] sm:$0xff] }
 0x143   :  { %v1277_v13 = vsel %vm11077_vm1, %v5772_v37, %v5777_v55  ;;  %vm11078_vm4 = vmmov %vm11069_vm0  ;;  %1476 = vmatprep.mubr.f32.mxu0 %v1313_v38  ;;  %v1342_v55 = vld [vmem:[%s10494_s4 + $0x108] sm:$0xff]  ;;  %v1345_v38 = vld [vmem:[%s10494_s4 + $0x120] sm:$0xff] }
 0x144   :  { %v1281_v27 = vsel %vm11078_vm4, %v5767_v28, %v5772_v37  ;;  %vm5194_vm14 = vmpackc.low %vm11079_vm12, %vm11079_vm12  ;;  %v5300_v34 = vpack.c.bf16 %v1278_v4, %v1277_v13  ;;  %1799 = vmatmul.mubr.f32.gmra.mrb[34].mxu1 %v1312_v26  ;;  %v1348_v37 = vld [vmem:[%s10494_s4 + $0x138] sm:$0xff]  ;;  %v1355_v4 = vld [vmem:[%s10494_s4 + $0x170] sm:$0xff] }
 0x145   :  { %vm5301_vm8 = vmpackc.low %vm11080_vm15, %vm11080_vm15  ;;  %v5193_v21 = vpack.c.bf16 %v1282_v53, %v1281_v27  ;;  %1804 = vmatprep.mubr.f32.mxu1 %v1316_v48  ;;  %v1354_v53 = vld [vmem:[%s10494_s4 + $0x168] sm:$0xff]  ;;  %v1317_v13 = vld [vmem:[%s10494_s4 + $0x40] sm:$0xff] }
 0x146   :  { %1477 = vmatmul.mubr.f32.gmra.mrb[34].mxu0 %v1312_v26  ;;  %5302 = vmatpush1.bf16.msk.msra.mxu1 %vm5301_vm8, %v5300_v34  ;;  %vm11081_vm10 = vmmov %vm11069_vm0  ;;  %v1311_v26 = vld [vmem:[%s10494_s4 + $0x10] sm:$0xff]  ;;  %v1320_v27 = vld [vmem:[%s10494_s4 + $0x58] sm:$0xff] }
 0x147   :  { %5195 = vmatprep.subr.msk.bf16.mxu0 %vm5194_vm14, %v5193_v21  ;;  %1482 = vmatprep.mubr.f32.mxu0 %v1316_v48  ;;  %v1288_v1 = vsel %vm11081_vm10, %v5783_v20, %v5788_v25  ;;  %vm11082_vm9 = vmmov %vm11069_vm0  ;;  %v1323_v21 = vld [vmem:[%s10494_s4 + $0x70] sm:$0xff]  ;;  %v1326_v34 = vld [vmem:[%s10494_s4 + $0x88] sm:$0xff] }
 0x148   :  { %5198 = vmatpush1.bf16.msk.msra.mxu0 %vm5197_vm3, %v5196_v14  ;;  %1805 = vmatmul.mubr.f32.gmra.mrb[36].mxu1 %v1315_v18  ;;  %v5202_v22 = vpack.c.bf16 %v1288_v1, %v1287_v24  ;;  %v1284_v8 = vsel %vm11082_vm9, %v5788_v25, %v5793_v30  ;;  %vm11083_vm5 = vmmov %vm11069_vm0  ;;  %v1349_v14 = vld [vmem:[%s10494_s4 + $0x140] sm:$0xff] }
 0x149   :  { %1810 = vmatprep.mubr.f32.mxu1 %v1319_v36  ;;  %v1283_v62 = vsel %vm11083_vm5, %v5787_v63, %v5792_v7  ;;  %vm11084_vm2 = vmmov %vm11069_vm0  ;;  %v1329_v48 = vld [vmem:[%s10494_s4 + $0xa0] sm:$0xff]  ;;  %v1338_v63 = vld [vmem:[%s10494_s4 + $0xe8] sm:$0xff] }
 0x14a   :  { %1483 = vmatmul.mubr.f32.gmra.mrb[36].mxu0 %v1315_v18  ;;  %v5199_v58 = vpack.c.bf16 %v1284_v8, %v1283_v62  ;;  %v1279_v52 = vsel %vm11084_vm2, %v5792_v7, %v5797_v33  ;;  %vm11085_vm11 = vmmov %vm11069_vm0 }
 0x14b   :  { %1488 = vmatprep.mubr.f32.mxu0 %v1319_v36  ;;  %v1280_v6 = vsel %vm11085_vm11, %v5793_v30, %v5798_v23  ;;  %vm11086_vm1 = vmmov %vm11069_vm0 }
 0x14c   :  { %1811 = vmatmul.mubr.f32.gmra.mrb[38].mxu1 %v1318_v57  ;;  %5201 = vmatprep.subr.msk.bf16.mxu0 %vm5194_vm14, %v5199_v58  ;;  %v1291_v16 = vsel %vm11086_vm1, %v5797_v33, %v5782_v49  ;;  %vm11087_vm4 = vmmov %vm11069_vm0  ;;  %v5306_v9 = vpack.c.bf16 %v1280_v6, %v1279_v52 }
 0x14d   :  { %1816 = vmatprep.mubr.f32.mxu1 %v1322_v10  ;;  %v1292_v28 = vsel %vm11087_vm4, %v5798_v23, %v5783_v20  ;;  %5204 = vmatpush1.bf16.msk.msra.mxu0 %vm5197_vm3, %v5202_v22 }
 0x14e   :  { %1489 = vmatmul.mubr.f32.gmra.mrb[38].mxu0 %v1318_v57  ;;  %v5303_v29 = vpack.c.bf16 %v1292_v28, %v1291_v16 }
 0x14f   :  { %1494 = vmatprep.mubr.f32.mxu0 %v1322_v10 }
 0x150   :  { %1817 = vmatmul.mubr.f32.gmra.mrb[40].mxu1 %v1321_v39  ;;  %5305 = vmatprep.subr.msk.bf16.mxu1 %vm5298_vm7, %v5303_v29  ;;  %vm2334_vm7 = vcmask 1040384  }
 0x151   :  { %1822 = vmatprep.mubr.f32.mxu1 %v1325_v32  ;;  %5308 = vmatpush1.bf16.msk.msra.mxu1 %vm5301_vm8, %v5306_v9 }
 0x152   :  { %1495 = vmatmul.mubr.f32.gmra.mrb[40].mxu0 %v1321_v39 }
 0x153   :  { %1500 = vmatprep.mubr.f32.mxu0 %v1325_v32  ;;  %v1341_v32 = vld [vmem:[%s10494_s4 + $0x100] sm:$0xff] }
 0x154   :  { %1823 = vmatmul.mubr.f32.gmra.mrb[42].mxu1 %v1324_v35 }
 0x155   :  { %1828 = vmatprep.mubr.f32.mxu1 %v1328_v43 }
 0x156   :  { %1501 = vmatmul.mubr.f32.gmra.mrb[42].mxu0 %v1324_v35 }
 0x157   :  { %1506 = vmatprep.mubr.f32.mxu0 %v1328_v43 }
 0x158   :  { %1829 = vmatmul.mubr.f32.gmra.mrb[44].mxu1 %v1327_v17 }
 0x159   :  { %1834 = vmatprep.mubr.f32.mxu1 %v1331_v59 }
 0x15a   :  { %1507 = vmatmul.mubr.f32.gmra.mrb[44].mxu0 %v1327_v17 }
 0x15b   :  { %1512 = vmatprep.mubr.f32.mxu0 %v1331_v59 }
 0x15c   :  { %1835 = vmatmul.mubr.f32.gmra.mrb[46].mxu1 %v1330_v54 }
 0x15d   :  { %1840 = vmatprep.mubr.f32.mxu1 %v1334_v50 }
 0x15e   :  { %1513 = vmatmul.mubr.f32.gmra.mrb[46].mxu0 %v1330_v54 }
 0x15f   :  { %1518 = vmatprep.mubr.f32.mxu0 %v1334_v50 }
 0x160   :  { %1841 = vmatmul.mubr.f32.gmra.mrb[48].mxu1 %v1333_v31 }
 0x161   :  { %1846 = vmatprep.mubr.f32.mxu1 %v1337_v0 }
 0x162   :  { %1519 = vmatmul.mubr.f32.gmra.mrb[48].mxu0 %v1333_v31 }
 0x163   :  { %1524 = vmatprep.mubr.f32.mxu0 %v1337_v0 }
 0x164   :  { %1847 = vmatmul.mubr.f32.gmra.mrb[50].mxu1 %v1336_v15 }
 0x165   :  { %1852 = vmatprep.mubr.f32.mxu1 %v1340_v41 }
 0x166   :  { %1525 = vmatmul.mubr.f32.gmra.mrb[50].mxu0 %v1336_v15 }
 0x167   :  { %1530 = vmatprep.mubr.f32.mxu0 %v1340_v41 }
 0x168   :  { %1853 = vmatmul.mubr.f32.gmra.mrb[52].mxu1 %v1339_v11 }
 0x169   :  { %1858 = vmatprep.mubr.f32.mxu1 %v1343_v44 }
 0x16a   :  { %1531 = vmatmul.mubr.f32.gmra.mrb[52].mxu0 %v1339_v11  ;;  %v1344_v11 = vld [vmem:[%s10494_s4 + $0x118] sm:$0xff] }
 0x16b   :  { %1536 = vmatprep.mubr.f32.mxu0 %v1343_v44 }
 0x16c   :  { %1859 = vmatmul.mubr.f32.gmra.mrb[54].mxu1 %v1342_v55 }
 0x16d   :  { %1864 = vmatprep.mubr.f32.mxu1 %v1346_v46 }
 0x16e   :  { %1537 = vmatmul.mubr.f32.gmra.mrb[54].mxu0 %v1342_v55 }
 0x16f   :  { %1542 = vmatprep.mubr.f32.mxu0 %v1346_v46 }
 0x170   :  { %1865 = vmatmul.mubr.f32.gmra.mrb[56].mxu1 %v1345_v38 }
 0x171   :  { %1870 = vmatprep.mubr.f32.mxu1 %v1349_v14 }
 0x172   :  { %1543 = vmatmul.mubr.f32.gmra.mrb[56].mxu0 %v1345_v38 }
 0x173   :  { %1548 = vmatprep.mubr.f32.mxu0 %v1349_v14 }
 0x174   :  { %1871 = vmatmul.mubr.f32.gmra.mrb[58].mxu1 %v1348_v37 }
 0x175   :  { %1876 = vmatprep.mubr.f32.mxu1 %v1352_v3 }
 0x176   :  { %1549 = vmatmul.mubr.f32.gmra.mrb[58].mxu0 %v1348_v37 }
 0x177   :  { %1554 = vmatprep.mubr.f32.mxu0 %v1352_v3 }
 0x178   :  { %1877 = vmatmul.mubr.f32.gmra.mrb[60].mxu1 %v1351_v60 }
 0x179   :  { %1882 = vmatprep.mubr.f32.mxu1 %v1355_v4 }
 0x17a   :  { %1555 = vmatmul.mubr.f32.gmra.mrb[60].mxu0 %v1351_v60 }
 0x17b   :  { %1560 = vmatprep.mubr.f32.mxu0 %v1355_v4 }
 0x17c   :  { %1883 = vmatmul.mubr.f32.gmra.mrb[62].mxu1 %v1354_v53  ;;  %v7942_v20 = vpop.f32.mrb[0].mxu1 }
 0x17d   :  { %1953 = vmatprep.mubr.f32.mxu1 %v10911_v2  ;;  %v7940_v18 = vpop.f32.mrb[0].mxu0  ;;  %11089 = vst [vmem:[#allocation7_spill] sm:$0xff] %v7942_v20  ;;  %v7946_v25 = vpop.f32.mrb[1].mxu1  ;;  %v2136_v24 = vmul.f32 %v7942_v20, %v7942_v20 }
 0x17e   :  { %1561 = vmatmul.mubr.f32.gmra.mrb[62].mxu0 %v1354_v53  ;;  %11088 = vst [vmem:[#allocation6_spill] sm:$0xff] %v7940_v18  ;;  %v7944_v49 = vpop.f32.mrb[1].mxu0  ;;  %11091 = vst [vmem:[#allocation9_spill] sm:$0xff] %v7946_v25  ;;  %v2134_v36 = vmul.f32 %v7940_v18, %v7940_v18  ;;  %v2137_v19 = vmul.f32 %v7946_v25, %v7946_v25 }
 0x17f   :  { %1631 = vmatprep.mubr.f32.mxu0 %v10911_v2  ;;  %11090 = vst [vmem:[#allocation8_spill] sm:$0xff] %v7944_v49  ;;  %v2135_v1 = vmul.f32 %v7944_v49, %v7944_v49 }
 0x180   :  { %4989 = vmatmul.mubr.msk.f32.vlgmr.msra.gmra.mrb[32].mxu1 %vm1357_vm13, %v1311_v26  ;;  %v7965_v30 = vpop.f32.mrb[2].mxu1 }
 0x181   :  { %1959 = vmatprep.mubr.f32.mxu1 %v10911_v2  ;;  %v7963_v57 = vpop.f32.mrb[2].mxu0  ;;  %11093 = vst [vmem:[#allocation11_spill] sm:$0xff] %v7965_v30  ;;  %v2092_v22 = vadd.f32 %v7965_v30, %v7942_v20  ;;  %v2140_v8 = vmul.f32 %v7965_v30, %v7965_v30  ;;  %v7977_v58 = vpop.f32.mrb[3].mxu1 }
 0x182   :  { %4909 = vmatmul.mubr.msk.f32.vlgmr.msra.gmra.mrb[32].mxu0 %vm1357_vm13, %v1311_v26  ;;  %11092 = vst [vmem:[#allocation10_spill] sm:$0xff] %v7963_v57  ;;  %v2050_v7 = vadd.f32 %v7963_v57, %v7940_v18  ;;  %v2138_v10 = vmul.f32 %v7963_v57, %v7963_v57  ;;  %v7975_v62 = vpop.f32.mrb[3].mxu0  ;;  %11095 = vst [vmem:[#allocation13_spill] sm:$0xff] %v7977_v58  ;;  %v2113_v23 = vadd.f32 %v7977_v58, %v7946_v25 }
 0x183   :  { %1637 = vmatprep.mubr.f32.mxu0 %v10911_v2  ;;  %11094 = vst [vmem:[#allocation12_spill] sm:$0xff] %v7975_v62  ;;  %v2071_v56 = vadd.f32 %v7975_v62, %v7944_v49  ;;  %v2139_v39 = vmul.f32 %v7975_v62, %v7975_v62  ;;  %v2141_v33 = vmul.f32 %v7977_v58, %v7977_v58 }
 0x184   :  { %4990 = vmatmul.mubr.msk.f32.gmra.mrb[34].mxu1 %vm1357_vm13, %v1314_v12  ;;  %v2198_v52 = vadd.f32 %v2138_v10, %v2134_v36  ;;  %v2240_v6 = vadd.f32 %v2140_v8, %v2136_v24  ;;  %v7996_v9 = vpop.f32.mrb[4].mxu1 }
 0x185   :  { %1965 = vmatprep.mubr.f32.mxu1 %v10911_v2  ;;  %v2219_v16 = vadd.f32 %v2139_v39, %v2135_v1  ;;  %v2261_v28 = vadd.f32 %v2141_v33, %v2137_v19  ;;  %v7994_v29 = vpop.f32.mrb[4].mxu0  ;;  %11097 = vst [vmem:[#allocation15_spill] sm:$0xff] %v7996_v9  ;;  %v2093_v17 = vadd.f32 %v2092_v22, %v7996_v9  ;;  %v8006_v50 = vpop.f32.mrb[5].mxu1  ;;  %v1350_v33 = vld [vmem:[%s10494_s4 + $0x148] sm:$0xff] }
 0x186   :  { %4910 = vmatmul.mubr.msk.f32.gmra.mrb[34].mxu0 %vm1357_vm13, %v1314_v12  ;;  %11096 = vst [vmem:[#allocation14_spill] sm:$0xff] %v7994_v29  ;;  %v2051_v35 = vadd.f32 %v2050_v7, %v7994_v29  ;;  %v2142_v43 = vmul.f32 %v7994_v29, %v7994_v29  ;;  %v2144_v59 = vmul.f32 %v7996_v9, %v7996_v9  ;;  %v8004_v54 = vpop.f32.mrb[5].mxu0  ;;  %11099 = vst [vmem:[#allocation17_spill] sm:$0xff] %v8006_v50 }
 0x187   :  { %1643 = vmatprep.mubr.f32.mxu0 %v10911_v2  ;;  %11098 = vst [vmem:[#allocation16_spill] sm:$0xff] %v8004_v54  ;;  %v2072_v31 = vadd.f32 %v2071_v56, %v8004_v54  ;;  %v2143_v0 = vmul.f32 %v8004_v54, %v8004_v54  ;;  %v2114_v15 = vadd.f32 %v2113_v23, %v8006_v50 }
 0x188   :  { %4991 = vmatmul.mubr.msk.f32.gmra.mrb[36].mxu1 %vm1357_vm13, %v1317_v13  ;;  %v2145_v41 = vmul.f32 %v8006_v50, %v8006_v50  ;;  %v2199_v44 = vadd.f32 %v2198_v52, %v2142_v43  ;;  %v2241_v55 = vadd.f32 %v2240_v6, %v2144_v59  ;;  %v8026_v60 = vpop.f32.mrb[6].mxu1 }
 0x189   :  { %1971 = vmatprep.mubr.f32.mxu1 %v10911_v2  ;;  %v2220_v46 = vadd.f32 %v2219_v16, %v2143_v0  ;;  %v8021_v14 = vpop.f32.mrb[6].mxu0  ;;  %v2094_v53 = vadd.f32 %v2093_v17, %v8026_v60  ;;  %v2148_v26 = vmul.f32 %v8026_v60, %v8026_v60 }
 0x18a   :  { %4911 = vmatmul.mubr.msk.f32.gmra.mrb[36].mxu0 %vm1357_vm13, %v1317_v13  ;;  %v2262_v38 = vadd.f32 %v2261_v28, %v2145_v41  ;;  %v2052_v37 = vadd.f32 %v2051_v35, %v8021_v14  ;;  %v2146_v3 = vmul.f32 %v8021_v14, %v8021_v14  ;;  %v8028_v4 = vpop.f32.mrb[7].mxu0 }
 0x18b   :  { %1649 = vmatprep.mubr.f32.mxu0 %v10911_v2  ;;  %v2073_v12 = vadd.f32 %v2072_v31, %v8028_v4  ;;  %v2147_v13 = vmul.f32 %v8028_v4, %v8028_v4 }
 0x18c   :  { %4992 = vmatmul.mubr.msk.f32.gmra.mrb[38].mxu1 %vm1357_vm13, %v1320_v27 }
 0x18d   :  { %1977 = vmatprep.mubr.f32.mxu1 %v10911_v2  ;;  %v8048_v36 = vpop.f32.mrb[8].mxu0 }
 0x18e   :  { %4912 = vmatmul.mubr.msk.f32.gmra.mrb[38].mxu0 %vm1357_vm13, %v1320_v27  ;;  %v8037_v27 = vpop.f32.mrb[7].mxu1  ;;  %11100 = vst [vmem:[#allocation18_spill] sm:$0xff] %v8048_v36  ;;  %v2053_v1 = vadd.f32 %v2052_v37, %v8048_v36  ;;  %v2150_v19 = vmul.f32 %v8048_v36, %v8048_v36  ;;  %v8055_v10 = vpop.f32.mrb[9].mxu0 }
 0x18f   :  { %1655 = vmatprep.mubr.f32.mxu0 %v10911_v2  ;;  %v8053_v7 = vpop.f32.mrb[8].mxu1  ;;  %11102 = vst [vmem:[#allocation20_spill] sm:$0xff] %v8055_v10  ;;  %v2074_v56 = vadd.f32 %v2073_v12, %v8055_v10  ;;  %v2151_v39 = vmul.f32 %v8055_v10, %v8055_v10 }
 0x190   :  { %4993 = vmatmul.mubr.msk.f32.gmra.mrb[40].mxu1 %vm1357_vm13, %v1323_v21  ;;  %11101 = vst [vmem:[#allocation19_spill] sm:$0xff] %v8053_v7  ;;  %v2095_v22 = vadd.f32 %v2094_v53, %v8053_v7  ;;  %v2152_v8 = vmul.f32 %v8053_v7, %v8053_v7  ;;  %v8064_v23 = vpop.f32.mrb[9].mxu1 }
 0x191   :  { %1983 = vmatprep.mubr.f32.mxu1 %v10911_v2  ;;  %11103 = vst [vmem:[#allocation21_spill] sm:$0xff] %v8064_v23  ;;  %v2153_v6 = vmul.f32 %v8064_v23, %v8064_v23  ;;  %v8075_v35 = vpop.f32.mrb[10].mxu0 }
 0x192   :  { %4913 = vmatmul.mubr.msk.f32.gmra.mrb[40].mxu0 %vm1357_vm13, %v1323_v21  ;;  %v1347_v21 = vld [vmem:[%s10494_s4 + $0x130] sm:$0xff]  ;;  %11104 = vst [vmem:[#allocation22_spill] sm:$0xff] %v8075_v35  ;;  %v2054_v17 = vadd.f32 %v2053_v1, %v8075_v35  ;;  %v2154_v59 = vmul.f32 %v8075_v35, %v8075_v35  ;;  %v8082_v0 = vpop.f32.mrb[11].mxu0 }
 0x193   :  { %1661 = vmatprep.mubr.f32.mxu0 %v10911_v2  ;;  %11106 = vst [vmem:[#allocation24_spill] sm:$0xff] %v8082_v0 }
 0x194   :  { %4994 = vmatmul.mubr.msk.f32.gmra.mrb[42].mxu1 %vm1357_vm13, %v1326_v34 }
 0x195   :  { %1989 = vmatprep.mubr.f32.mxu1 %v10911_v2  ;;  %v8080_v31 = vpop.f32.mrb[10].mxu1 }
 0x196   :  { %4914 = vmatmul.mubr.msk.f32.gmra.mrb[42].mxu0 %vm1357_vm13, %v1326_v34  ;;  %v2200_v34 = vadd.f32 %v2199_v44, %v2146_v3  ;;  %11105 = vst [vmem:[#allocation23_spill] sm:$0xff] %v8080_v31  ;;  %v2156_v41 = vmul.f32 %v8080_v31, %v8080_v31  ;;  %v2155_v44 = vmul.f32 %v8082_v0, %v8082_v0 }
 0x197   :  { %1667 = vmatprep.mubr.f32.mxu0 %v10911_v2 }
 0x198   :  { %4995 = vmatmul.mubr.msk.f32.gmra.mrb[44].mxu1 %vm1357_vm13, %v1329_v48 }
 0x199   :  { %1995 = vmatprep.mubr.f32.mxu1 %v10911_v2  ;;  %v8102_v12 = vpop.f32.mrb[12].mxu0 }
 0x19a   :  { %4915 = vmatmul.mubr.msk.f32.gmra.mrb[44].mxu0 %vm1357_vm13, %v1329_v48  ;;  %v2115_v48 = vadd.f32 %v2114_v15, %v8037_v27  ;;  %v2096_v15 = vadd.f32 %v2095_v22, %v8080_v31  ;;  %11108 = vst [vmem:[#allocation26_spill] sm:$0xff] %v8102_v12  ;;  %v1356_v22 = vld [vmem:[%s10494_s4 + $0x178] sm:$0xff] }
 0x19b   :  { %1673 = vmatprep.mubr.f32.mxu0 %v10911_v2 }
 0x19c   :  { %4996 = vmatmul.mubr.msk.f32.gmra.mrb[46].mxu1 %vm1357_vm13, %v1332_v5  ;;  %v2116_v52 = vadd.f32 %v2115_v48, %v8064_v23 }
 0x19d   :  { %2001 = vmatprep.mubr.f32.mxu1 %v10911_v2 }
 0x19e   :  { %4916 = vmatmul.mubr.msk.f32.gmra.mrb[46].mxu0 %vm1357_vm13, %v1332_v5  ;;  %v2149_v5 = vmul.f32 %v8037_v27, %v8037_v27 }
 0x19f   :  { %1679 = vmatprep.mubr.f32.mxu0 %v10911_v2 }
 0x1a0   :  { %4997 = vmatmul.mubr.msk.f32.gmra.mrb[48].mxu1 %vm1357_vm13, %v1335_v61  ;;  %v2263_v24 = vadd.f32 %v2262_v38, %v2149_v5  ;;  %v8109_v5 = vpop.f32.mrb[13].mxu0 }
 0x1a1   :  { %2007 = vmatprep.mubr.f32.mxu1 %v10911_v2  ;;  %11110 = vst [vmem:[#allocation28_spill] sm:$0xff] %v8109_v5  ;;  %v2159_v1 = vmul.f32 %v8109_v5, %v8109_v5 }
 0x1a2   :  { %4917 = vmatmul.mubr.msk.f32.gmra.mrb[48].mxu0 %vm1357_vm13, %v1335_v61  ;;  %v2242_v61 = vadd.f32 %v2241_v55, %v2148_v26  ;;  %v2264_v43 = vadd.f32 %v2263_v24, %v2153_v6  ;;  %v8091_v55 = vpop.f32.mrb[11].mxu1 }
 0x1a3   :  { %1685 = vmatprep.mubr.f32.mxu0 %v10911_v2  ;;  %11107 = vst [vmem:[#allocation25_spill] sm:$0xff] %v8091_v55  ;;  %v2117_v37 = vadd.f32 %v2116_v52, %v8091_v55  ;;  %v2157_v3 = vmul.f32 %v8091_v55, %v8091_v55  ;;  %v8107_v48 = vpop.f32.mrb[12].mxu1  ;;  %v8129_v52 = vpop.f32.mrb[14].mxu0 }
 0x1a4   :  { %4998 = vmatmul.mubr.msk.f32.gmra.mrb[50].mxu1 %vm1357_vm13, %v1338_v63  ;;  %v2243_v16 = vadd.f32 %v2242_v61, %v2152_v8  ;;  %11109 = vst [vmem:[#allocation27_spill] sm:$0xff] %v8107_v48  ;;  %v2097_v61 = vadd.f32 %v2096_v15, %v8107_v48 }
 0x1a5   :  { %2013 = vmatprep.mubr.f32.mxu1 %v10911_v2 }
 0x1a6   :  { %4918 = vmatmul.mubr.msk.f32.gmra.mrb[50].mxu0 %vm1357_vm13, %v1338_v63  ;;  %v2221_v63 = vadd.f32 %v2220_v46, %v2147_v13  ;;  %v1353_v46 = vld [vmem:[%s10494_s4 + $0x160] sm:$0xff]  ;;  %v2244_v53 = vadd.f32 %v2243_v16, %v2156_v41  ;;  %v2265_v13 = vadd.f32 %v2264_v43, %v2157_v3 }
 0x1a7   :  { %1691 = vmatprep.mubr.f32.mxu0 %v10911_v2 }
 0x1a8   :  { %4999 = vmatmul.mubr.msk.f32.gmra.mrb[52].mxu1 %vm1357_vm13, %v1341_v32  ;;  %v2222_v28 = vadd.f32 %v2221_v63, %v2151_v39  ;;  %v2160_v63 = vmul.f32 %v8107_v48, %v8107_v48 }
 0x1a9   :  { %2019 = vmatprep.mubr.f32.mxu1 %v10911_v2 }
 0x1aa   :  { %4919 = vmatmul.mubr.msk.f32.gmra.mrb[52].mxu0 %vm1357_vm13, %v1341_v32  ;;  %v2201_v32 = vadd.f32 %v2200_v34, %v2150_v19  ;;  %v2223_v26 = vadd.f32 %v2222_v28, %v2155_v44  ;;  %v2158_v34 = vmul.f32 %v8102_v12, %v8102_v12  ;;  %v8118_v19 = vpop.f32.mrb[13].mxu1  ;;  %v2162_v28 = vmul.f32 %v8129_v52, %v8129_v52 }
 0x1ab   :  { %1697 = vmatprep.mubr.f32.mxu0 %v10911_v2  ;;  %11111 = vst [vmem:[#allocation29_spill] sm:$0xff] %v8118_v19  ;;  %v2161_v39 = vmul.f32 %v8118_v19, %v8118_v19  ;;  %v8134_v43 = vpop.f32.mrb[14].mxu1 }
 0x1ac   :  { %5000 = vmatmul.mubr.msk.f32.gmra.mrb[54].mxu1 %vm1357_vm13, %v1344_v11  ;;  %v2202_v38 = vadd.f32 %v2201_v32, %v2154_v59  ;;  %v2224_v32 = vadd.f32 %v2223_v26, %v2159_v1  ;;  %v2098_v59 = vadd.f32 %v2097_v61, %v8134_v43 }
 0x1ad   :  { %2025 = vmatprep.mubr.f32.mxu1 %v10911_v2  ;;  %v2266_v6 = vadd.f32 %v2265_v13, %v2161_v39 }
 0x1ae   :  { %4920 = vmatmul.mubr.msk.f32.gmra.mrb[54].mxu0 %vm1357_vm13, %v1344_v11  ;;  %v2075_v11 = vadd.f32 %v2074_v56, %v8082_v0  ;;  %v2203_v8 = vadd.f32 %v2202_v38, %v2158_v34  ;;  %v2118_v56 = vadd.f32 %v2117_v37, %v8118_v19 }
 0x1af   :  { %1703 = vmatprep.mubr.f32.mxu0 %v10911_v2 }
 0x1b0   :  { %5001 = vmatmul.mubr.msk.f32.gmra.mrb[56].mxu1 %vm1357_vm13, %v1347_v21  ;;  %v2076_v24 = vadd.f32 %v2075_v11, %v8109_v5  ;;  %v8145_v11 = vpop.f32.mrb[15].mxu1  ;;  %v2204_v44 = vadd.f32 %v2203_v8, %v2162_v28 }
 0x1b1   :  { %2031 = vmatprep.mubr.f32.mxu1 %v10911_v2  ;;  %v2165_v38 = vmul.f32 %v8145_v11, %v8145_v11  ;;  %v8156_v34 = vpop.f32.mrb[16].mxu1 }
 0x1b2   :  { %4921 = vmatmul.mubr.msk.f32.gmra.mrb[56].mxu0 %vm1357_vm13, %v1347_v21  ;;  %v2055_v21 = vadd.f32 %v2054_v17, %v8102_v12  ;;  %v8136_v17 = vpop.f32.mrb[15].mxu0  ;;  %11112 = vst [vmem:[#allocation30_spill] sm:$0xff] %v8156_v34  ;;  %v8166_v8 = vpop.f32.mrb[17].mxu1 }
 0x1b3   :  { %1709 = vmatprep.mubr.f32.mxu0 %v10911_v2  ;;  %v2077_v15 = vadd.f32 %v2076_v24, %v8136_v17  ;;  %v2163_v41 = vmul.f32 %v8136_v17, %v8136_v17  ;;  %v2267_v26 = vadd.f32 %v2266_v6, %v2165_v38  ;;  %v2168_v24 = vmul.f32 %v8156_v34, %v8156_v34 }
 0x1b4   :  { %5002 = vmatmul.mubr.msk.f32.gmra.mrb[58].mxu1 %vm1357_vm13, %v1350_v33  ;;  %v2056_v16 = vadd.f32 %v2055_v21, %v8129_v52  ;;  %11113 = vst [vmem:[#allocation31_spill] sm:$0xff] %v8166_v8 }
 0x1b5   :  { %2037 = vmatprep.mubr.f32.mxu1 %v10911_v2  ;;  %v2225_v3 = vadd.f32 %v2224_v32, %v2163_v41 }
 0x1b6   :  { %4922 = vmatmul.mubr.msk.f32.gmra.mrb[58].mxu0 %vm1357_vm13, %v1350_v33  ;;  %v2245_v33 = vadd.f32 %v2244_v53, %v2160_v63  ;;  %v8151_v53 = vpop.f32.mrb[16].mxu0  ;;  %v2099_v63 = vadd.f32 %v2098_v59, %v8156_v34 }
 0x1b7   :  { %1715 = vmatprep.mubr.f32.mxu0 %v10911_v2  ;;  %v2057_v13 = vadd.f32 %v2056_v16, %v8151_v53  ;;  %v2166_v21 = vmul.f32 %v8151_v53, %v8151_v53  ;;  %v8158_v61 = vpop.f32.mrb[17].mxu0 }
 0x1b8   :  { %5003 = vmatmul.mubr.msk.f32.gmra.mrb[60].mxu1 %vm1357_vm13, %v1353_v46  ;;  %v2078_v1 = vadd.f32 %v2077_v15, %v8158_v61  ;;  %v8171_v16 = vpop.f32.mrb[18].mxu0  ;;  %v8176_v15 = vpop.f32.mrb[18].mxu1 }
 0x1b9   :  { %2043 = vmatprep.mubr.f32.mxu1 %v10911_v2  ;;  %11114 = vst [vmem:[#allocation32_spill] sm:$0xff] %v8171_v16  ;;  %v2058_v59 = vadd.f32 %v2057_v13, %v8171_v16  ;;  %11115 = vst [vmem:[#allocation33_spill] sm:$0xff] %v8176_v15  ;;  %v8178_v41 = vpop.f32.mrb[19].mxu0 }
 0x1ba   :  { %4923 = vmatmul.mubr.msk.f32.gmra.mrb[60].mxu0 %vm1357_vm13, %v1353_v46  ;;  %v2119_v46 = vadd.f32 %v2118_v56, %v8145_v11  ;;  %v2205_v56 = vadd.f32 %v2204_v44, %v2166_v21  ;;  %11116 = vst [vmem:[#allocation34_spill] sm:$0xff] %v8178_v41  ;;  %v2100_v44 = vadd.f32 %v2099_v63, %v8176_v15 }
 0x1bb   :  { %1721 = vmatprep.mubr.f32.mxu0 %v10911_v2  ;;  %v2164_v2 = vmul.f32 %v8134_v43, %v8134_v43  ;;  %v2079_v38 = vadd.f32 %v2078_v1, %v8178_v41 }
 0x1bc   :  { %5004 = vmatmul.mubr.msk.f32.gmra.mrb[62].mxu1 %vm1357_vm13, %v1356_v22  ;;  %v2120_v39 = vadd.f32 %v2119_v46, %v8166_v8  ;;  %v2172_v46 = vmul.f32 %v8176_v15, %v8176_v15 }
 0x1bd   :  { %v2246_v37 = vadd.f32 %v2245_v33, %v2164_v2  ;;  %v2169_v33 = vmul.f32 %v8166_v8, %v8166_v8  ;;  %v2170_v2 = vmul.f32 %v8171_v16, %v8171_v16 }
 0x1be   :  { %4924 = vmatmul.mubr.msk.f32.gmra.mrb[62].mxu0 %vm1357_vm13, %v1356_v22  ;;  %v2167_v22 = vmul.f32 %v8158_v61, %v8158_v61 }
 0x1bf   :  { %v2247_v32 = vadd.f32 %v2246_v37, %v2168_v24  ;;  %v2268_v28 = vadd.f32 %v2267_v26, %v2169_v33  ;;  %v2171_v37 = vmul.f32 %v8178_v41, %v8178_v41  ;;  %v2206_v26 = vadd.f32 %v2205_v56, %v2170_v2  ;;  %v8191_v33 = vpop.f32.mrb[20].mxu0 }
 0x1c0   :  { %v2226_v6 = vadd.f32 %v2225_v3, %v2167_v22  ;;  %v8186_v3 = vpop.f32.mrb[19].mxu1  ;;  %11118 = vst [vmem:[#allocation36_spill] sm:$0xff] %v8191_v33  ;;  %v2059_v19 = vadd.f32 %v2058_v59, %v8191_v33  ;;  %v2174_v1 = vmul.f32 %v8191_v33, %v8191_v33  ;;  %v8198_v5 = vpop.f32.mrb[21].mxu0 }
 0x1c1   :  { %11117 = vst [vmem:[#allocation35_spill] sm:$0xff] %v8186_v3  ;;  %v2121_v13 = vadd.f32 %v2120_v39, %v8186_v3  ;;  %v2173_v21 = vmul.f32 %v8186_v3, %v8186_v3  ;;  %v2248_v24 = vadd.f32 %v2247_v32, %v2172_v46  ;;  %v8196_v48 = vpop.f32.mrb[20].mxu1  ;;  %11120 = vst [vmem:[#allocation38_spill] sm:$0xff] %v8198_v5  ;;  %v8211_v12 = vpop.f32.mrb[22].mxu0 }
 0x1c2   :  { %v2227_v22 = vadd.f32 %v2226_v6, %v2171_v37  ;;  %11119 = vst [vmem:[#allocation37_spill] sm:$0xff] %v8196_v48  ;;  %v2101_v56 = vadd.f32 %v2100_v44, %v8196_v48  ;;  %v2176_v39 = vmul.f32 %v8196_v48, %v8196_v48  ;;  %v2080_v32 = vadd.f32 %v2079_v38, %v8198_v5  ;;  %v8218_v54 = vpop.f32.mrb[23].mxu0 }
 0x1c3   :  { %v2269_v63 = vadd.f32 %v2268_v28, %v2173_v21  ;;  %v2175_v6 = vmul.f32 %v8198_v5, %v8198_v5  ;;  %v8206_v28 = vpop.f32.mrb[21].mxu1  ;;  %v2207_v59 = vadd.f32 %v2206_v26, %v2174_v1  ;;  %11122 = vst [vmem:[#allocation40_spill] sm:$0xff] %v8211_v12  ;;  %v2060_v50 = vadd.f32 %v2059_v19, %v8211_v12  ;;  %v8231_v29 = vpop.f32.mrb[24].mxu0 }
 0x1c4   :  { %11121 = vst [vmem:[#allocation39_spill] sm:$0xff] %v8206_v28  ;;  %v2122_v2 = vadd.f32 %v2121_v13, %v8206_v28  ;;  %v2177_v46 = vmul.f32 %v8206_v28, %v8206_v28  ;;  %v2249_v37 = vadd.f32 %v2248_v24, %v2176_v39  ;;  %v2178_v38 = vmul.f32 %v8211_v12, %v8211_v12  ;;  %v8216_v9 = vpop.f32.mrb[22].mxu1  ;;  %v8238_v0 = vpop.f32.mrb[25].mxu0 }
 0x1c5   :  { %v2228_v21 = vadd.f32 %v2227_v22, %v2175_v6  ;;  %11123 = vst [vmem:[#allocation41_spill] sm:$0xff] %v8216_v9  ;;  %11124 = vst [vmem:[#allocation42_spill] sm:$0xff] %v8218_v54  ;;  %v2102_v26 = vadd.f32 %v2101_v56, %v8216_v9  ;;  %v2180_v13 = vmul.f32 %v8216_v9, %v8216_v9 }
 0x1c6   :  { %v2270_v44 = vadd.f32 %v2269_v63, %v2177_v46  ;;  %v2081_v24 = vadd.f32 %v2080_v32, %v8218_v54  ;;  %v2179_v22 = vmul.f32 %v8218_v54, %v8218_v54  ;;  %v8226_v63 = vpop.f32.mrb[23].mxu1  ;;  %v2208_v19 = vadd.f32 %v2207_v59, %v2178_v38  ;;  %11126 = vst [vmem:[#allocation44_spill] sm:$0xff] %v8231_v29 }
 0x1c7   :  { %11125 = vst [vmem:[#allocation43_spill] sm:$0xff] %v8226_v63  ;;  %v2123_v1 = vadd.f32 %v2122_v2, %v8226_v63  ;;  %v2181_v39 = vmul.f32 %v8226_v63, %v8226_v63  ;;  %v2250_v6 = vadd.f32 %v2249_v37, %v2180_v13  ;;  %v2061_v55 = vadd.f32 %v2060_v50, %v8231_v29  ;;  %v8236_v31 = vpop.f32.mrb[24].mxu1 }
 0x1c8   :  { %v2229_v46 = vadd.f32 %v2228_v21, %v2179_v22  ;;  %v2182_v32 = vmul.f32 %v8231_v29, %v8231_v29  ;;  %11127 = vst [vmem:[#allocation45_spill] sm:$0xff] %v8236_v31  ;;  %11128 = vst [vmem:[#allocation46_spill] sm:$0xff] %v8238_v0  ;;  %v2103_v59 = vadd.f32 %v2102_v26, %v8236_v31  ;;  %v8251_v29 = vpop.f32.mrb[26].mxu0  ;;  %v6100_v26 = vmov 1966171168  }
 0x1c9   :  { %v2271_v56 = vadd.f32 %v2270_v44, %v2181_v39  ;;  %v2184_v2 = vmul.f32 %v8236_v31, %v8236_v31  ;;  %v2082_v37 = vadd.f32 %v2081_v24, %v8238_v0  ;;  %v2183_v21 = vmul.f32 %v8238_v0, %v8238_v0  ;;  %v8246_v44 = vpop.f32.mrb[25].mxu1 }
 0x1ca   :  { %11129 = vst [vmem:[#allocation47_spill] sm:$0xff] %v8246_v44  ;;  %v2209_v50 = vadd.f32 %v2208_v19, %v2182_v32  ;;  %v2124_v38 = vadd.f32 %v2123_v1, %v8246_v44  ;;  %v2185_v13 = vmul.f32 %v8246_v44, %v8246_v44  ;;  %v2290_v35 = vunpack.c.l.s4 %v6100_v26  ;;  %v8256_v58 = vpop.f32.mrb[26].mxu1  ;;  %v8258_v19 = vpop.f32.mrb[27].mxu0 }
 0x1cb   :  { %v2251_v22 = vadd.f32 %v2250_v6, %v2184_v2  ;;  %v2230_v39 = vadd.f32 %v2229_v46, %v2183_v21  ;;  %v2062_v24 = vadd.f32 %v2061_v55, %v8251_v29  ;;  %v2186_v0 = vmul.f32 %v8251_v29, %v8251_v29 }
 0x1cc   :  { %v2272_v31 = vadd.f32 %v2271_v56, %v2185_v13  ;;  %v2104_v1 = vadd.f32 %v2103_v59, %v8256_v58  ;;  %v2188_v6 = vmul.f32 %v8256_v58, %v8256_v58  ;;  %v2083_v46 = vadd.f32 %v2082_v37, %v8258_v19  ;;  %v8266_v56 = vpop.f32.mrb[27].mxu1 }
 0x1cd   :  { %v2187_v32 = vmul.f32 %v8258_v19, %v8258_v19  ;;  %v2210_v55 = vadd.f32 %v2209_v50, %v2186_v0  ;;  %v2125_v2 = vadd.f32 %v2124_v38, %v8266_v56  ;;  %v2189_v21 = vmul.f32 %v8266_v56, %v8266_v56  ;;  %v8271_v44 = vpop.f32.mrb[28].mxu0 }
 0x1ce   :  { %v2252_v13 = vadd.f32 %v2251_v22, %v2188_v6  ;;  %11130 = vst [vmem:[#allocation48_spill] sm:$0xff] %v8271_v44  ;;  %v2291_v59 = vunpack.c.0.s8 %v2290_v35  ;;  %v2063_v62 = vadd.f32 %v2062_v24, %v8271_v44  ;;  %v2190_v37 = vmul.f32 %v8271_v44, %v8271_v44  ;;  %v8278_v23 = vpop.f32.mrb[29].mxu0 }
 0x1cf   :  { %v2231_v26 = vadd.f32 %v2230_v39, %v2187_v32  ;;  %v2273_v30 = vadd.f32 %v2272_v31, %v2189_v21  ;;  %11132 = vst [vmem:[#allocation50_spill] sm:$0xff] %v8278_v23  ;;  %v2084_v38 = vadd.f32 %v2083_v46, %v8278_v23  ;;  %v2191_v35 = vmul.f32 %v8278_v23, %v8278_v23 }
 0x1d0   :  { %v8276_v57 = vpop.f32.mrb[28].mxu1  ;;  %v2211_v22 = vadd.f32 %v2210_v55, %v2190_v37 }
 0x1d1   :  { %11131 = vst [vmem:[#allocation49_spill] sm:$0xff] %v8276_v57  ;;  %v2105_v0 = vadd.f32 %v2104_v1, %v8276_v57  ;;  %v2192_v50 = vmul.f32 %v8276_v57, %v8276_v57  ;;  %v8286_v31 = vpop.f32.mrb[29].mxu1  ;;  %v2232_v32 = vadd.f32 %v2231_v26, %v2191_v35  ;;  %v8294_v1 = vsub.s32 %v2291_v59, %v6377_v40 }
 0x1d2   :  { %11133 = vst [vmem:[#allocation51_spill] sm:$0xff] %v8286_v31  ;;  %v2126_v39 = vadd.f32 %v2125_v2, %v8286_v31  ;;  %v2193_v24 = vmul.f32 %v8286_v31, %v8286_v31  ;;  %v8291_v21 = vpop.f32.mrb[30].mxu0 }
 0x1d3   :  { %v2253_v6 = vadd.f32 %v2252_v13, %v2192_v50  ;;  %11134 = vst [vmem:[#allocation52_spill] sm:$0xff] %v8294_v1  ;;  %v2064_v46 = vadd.f32 %v2063_v62, %v8291_v21  ;;  %v2194_v23 = vmul.f32 %v8291_v21, %v8291_v21  ;;  %v8301_v55 = vpop.f32.mrb[31].mxu0 }
 0x1d4   :  { %v2274_v57 = vadd.f32 %v2273_v30, %v2193_v24  ;;  %v8299_v44 = vpop.f32.mrb[30].mxu1  ;;  %v2085_v26 = vadd.f32 %v2084_v38, %v8301_v55  ;;  %v2195_v40 = vmul.f32 %v8301_v55, %v8301_v55 }
 0x1d5   :  { %v2106_v2 = vadd.f32 %v2105_v0, %v8299_v44  ;;  %v2196_v13 = vmul.f32 %v8299_v44, %v8299_v44  ;;  %v8309_v30 = vpop.f32.mrb[31].mxu1  ;;  %v2065_v62 = vrot.slane %v2064_v46, 4  ;;  %v2212_v59 = vadd.f32 %v2211_v22, %v2194_v23 }
 0x1d6   :  { %v2127_v37 = vadd.f32 %v2126_v39, %v8309_v30  ;;  %v2197_v50 = vmul.f32 %v8309_v30, %v8309_v30  ;;  %v2086_v0 = vrot.slane %v2085_v26, 4  ;;  %v2233_v31 = vadd.f32 %v2232_v32, %v2195_v40 }
 0x1d7   :  { %v2107_v35 = vrot.slane %v2106_v2, 4  ;;  %v2254_v24 = vadd.f32 %v2253_v6, %v2196_v13  ;;  %v2066_v7 = vadd.f32 %v2065_v62, %v2064_v46  ;;  %v2213_v10 = vrot.slane %v2212_v59, 4 }
 0x1d8   :  { %v2128_v36 = vrot.slane %v2127_v37, 4  ;;  %v2275_v38 = vadd.f32 %v2274_v57, %v2197_v50  ;;  %v2087_v49 = vadd.f32 %v2086_v0, %v2085_v26  ;;  %v2234_v18 = vrot.slane %v2233_v31, 4 }
 0x1d9   :  { %v2108_v25 = vadd.f32 %v2107_v35, %v2106_v2  ;;  %v2255_v20 = vrot.slane %v2254_v24, 4  ;;  %v2067_v3 = vrot.slane %v2066_v7, 2  ;;  %v2214_v15 = vadd.f32 %v2213_v10, %v2212_v59 }
 0x1da   :  { %v2129_v23 = vadd.f32 %v2128_v36, %v2127_v37  ;;  %v2276_v22 = vrot.slane %v2275_v38, 4  ;;  %v2088_v16 = vrot.slane %v2087_v49, 2  ;;  %v2235_v63 = vadd.f32 %v2234_v18, %v2233_v31 }
 0x1db   :  { %v2109_v39 = vrot.slane %v2108_v25, 2  ;;  %v2256_v41 = vadd.f32 %v2255_v20, %v2254_v24  ;;  %v2068_v9 = vadd.f32 %v2067_v3, %v2066_v7  ;;  %v2215_v6 = vrot.slane %v2214_v15, 2 }
 0x1dc   :  { %v2130_v13 = vrot.slane %v2129_v23, 2  ;;  %v2277_v32 = vadd.f32 %v2276_v22, %v2275_v38  ;;  %v2089_v62 = vadd.f32 %v2088_v16, %v2087_v49  ;;  %v2236_v57 = vrot.slane %v2235_v63, 2 }
 0x1dd   :  { %v2110_v46 = vadd.f32 %v2109_v39, %v2108_v25  ;;  %v2257_v40 = vrot.slane %v2256_v41, 2  ;;  %v2069_v2 = vrot.slane %v2068_v9, 1  ;;  %v2216_v50 = vadd.f32 %v2215_v6, %v2214_v15 }
 0x1de   :  { %v2131_v26 = vadd.f32 %v2130_v13, %v2129_v23  ;;  %v2278_v35 = vrot.slane %v2277_v32, 2  ;;  %v2090_v36 = vrot.slane %v2089_v62, 1  ;;  %v2237_v59 = vadd.f32 %v2236_v57, %v2235_v63 }
 0x1df   :  { %v2111_v0 = vrot.slane %v2110_v46, 1  ;;  %v2258_v10 = vadd.f32 %v2257_v40, %v2256_v41  ;;  %v2070_v37 = vadd.f32 %v2069_v2, %v2068_v9  ;;  %v2217_v20 = vrot.slane %v2216_v50, 1 }
 0x1e0   :  { %v2132_v24 = vrot.slane %v2131_v26, 1  ;;  %v2279_v18 = vadd.f32 %v2278_v35, %v2277_v32  ;;  %v2091_v31 = vadd.f32 %v2090_v36, %v2089_v62  ;;  %v2238_v38 = vrot.slane %v2237_v59, 1  ;;  %v8319_v32 = vld [vmem:[%s10495_s12] sm:$0xf] }
 0x1e1   :  { %v2112_v7 = vadd.f32 %v2111_v0, %v2110_v46  ;;  %v2259_v3 = vrot.slane %v2258_v10, 1  ;;  %v2218_v25 = vadd.f32 %v2217_v20, %v2216_v50  ;;  %11135 = vst [vmem:[#allocation53_spill] sm:$0xff] %v8319_v32  ;;  %vm2282_vm3 = vcmp.eq.s32.totalorder %v8319_v32, 0 }
 0x1e2   :  { %v2133_v22 = vadd.f32 %v2132_v24, %v2131_v26  ;;  %v2280_v49 = vrot.slane %v2279_v18, 1  ;;  %v2239_v39 = vadd.f32 %v2238_v38, %v2237_v59  ;;  %v2287_v15 = vcombine.low %v2070_v37, %v2091_v31 }
 0x1e3   :  { %v2260_v16 = vadd.f32 %v2259_v3, %v2258_v10  ;;  %vm2430_vm6 = vcmp.eq.s32.totalorder %v8319_v32, 1 }
 0x1e4   :  { %v2281_v23 = vadd.f32 %v2280_v49, %v2279_v18  ;;  %v2288_v6 = vcombine.low %v2112_v7, %v2133_v22  ;;  %v2295_v41 = vrot.slane %v2287_v15, %v8294_v1  ;;  %v2356_v13 = vcombine.low %v2218_v25, %v2239_v39 }
 0x1e6   :  { %v2302_v9 = vrot.slane %v2288_v6, %v8294_v1  ;;  %v2357_v63 = vcombine.low %v2260_v16, %v2281_v23  ;;  %v2364_v46 = vrot.slane %v2356_v13, %v8294_v1 }
 0x1e8   :  { %v2303_v40 = vcombine.low %v2295_v41, %v2302_v9  ;;  %v2371_v62 = vrot.slane %v2357_v63, %v8294_v1 }
 0x1ea   :  { %v2310_v57 = vrot.slane %v2303_v40, %v8294_v1  ;;  %v2372_v2 = vcombine.low %v2364_v46, %v2371_v62 }
 0x1ec   :  { %v2312_v50 = vsel %vm2282_vm3, %v2310_v57, 0.0  ;;  %v2379_v26 = vrot.slane %v2372_v2, %v8294_v1  ;;  %v2431_v35 = vsel %vm2430_vm6, %v2310_v57, 0.0 }
 0x1ed   :  { %v2317_v0 = vrot.slane %v2312_v50, %v6401_v45  ;;  %v2321_v10 = vrot.slane %v2312_v50, %v6392_v42  ;;  %v2325_v36 = vrot.slane %v2312_v50, %v6427_v51  ;;  %v2329_v59 = vrot.slane %v2312_v50, %v6414_v47 }
 0x1ee   :  { %v2381_v37 = vsel %vm2282_vm3, %v2379_v26, 0.0  ;;  %v2436_v20 = vrot.slane %v2431_v35, %v6401_v45  ;;  %v2440_v24 = vrot.slane %v2431_v35, %v6392_v42  ;;  %v2444_v18 = vrot.slane %v2431_v35, %v6427_v51 }
 0x1ef   :  { %v2335_v7 = vsel %vm2334_vm7, %v2317_v0, 0.0  ;;  %v2336_v3 = vsel %vm2334_vm7, %v2321_v10, 0.0  ;;  %v2338_v31 = vsel %vm2334_vm7, %v2325_v36, 0.0  ;;  %v2340_v38 = vsel %vm2334_vm7, %v2329_v59, 0.0 }
 0x1f0   :  { %v2337_v25 = vadd.f32 %v2336_v3, %v2335_v7  ;;  %v2386_v22 = vrot.slane %v2381_v37, %v6401_v45  ;;  %v2390_v49 = vrot.slane %v2381_v37, %v6392_v42  ;;  %v2394_v16 = vrot.slane %v2381_v37, %v6427_v51 }
 0x1f1   :  { %v2398_v39 = vrot.slane %v2381_v37, %v6414_v47  ;;  %v2448_v15 = vrot.slane %v2431_v35, %v6414_v47  ;;  %v2453_v23 = vsel %vm2334_vm7, %v2436_v20, 0.0  ;;  %v2454_v6 = vsel %vm2334_vm7, %v2440_v24, 0.0 }
 0x1f2   :  { %v2339_v41 = vadd.f32 %v2338_v31, %v2337_v25  ;;  %v2403_v13 = vsel %vm2334_vm7, %v2386_v22, 0.0  ;;  %v2404_v9 = vsel %vm2334_vm7, %v2390_v49, 0.0  ;;  %v2406_v63 = vsel %vm2334_vm7, %v2394_v16, 0.0 }
 0x1f3   :  { %v2405_v46 = vadd.f32 %v2404_v9, %v2403_v13  ;;  %v2455_v40 = vadd.f32 %v2454_v6, %v2453_v23  ;;  %v2456_v62 = vsel %vm2334_vm7, %v2444_v18, 0.0  ;;  %v2408_v2 = vsel %vm2334_vm7, %v2398_v39, 0.0 }
 0x1f4   :  { %v2341_v57 = vadd.f32 %v2340_v38, %v2339_v41  ;;  %v2458_v50 = vsel %vm2334_vm7, %v2448_v15, 0.0  ;;  %v2470_v35 = vsel %vm2430_vm6, %v2379_v26, 0.0 }
 0x1f5   :  { %v2407_v0 = vadd.f32 %v2406_v63, %v2405_v46  ;;  %v2457_v10 = vadd.f32 %v2456_v62, %v2455_v40  ;;  %v2475_v36 = vrot.slane %v2470_v35, %v6401_v45  ;;  %v2479_v59 = vrot.slane %v2470_v35, %v6392_v42 }
 0x1f6   :  { %2342 = vadd.xlane.f32.xlu0 %v2341_v57  ;;  %v2483_v37 = vrot.slane %v2470_v35, %v6427_v51  ;;  %v2487_v20 = vrot.slane %v2470_v35, %v6414_v47 }
 0x1f7   :  { %v2409_v24 = vadd.f32 %v2408_v2, %v2407_v0  ;;  %v2459_v18 = vadd.f32 %v2458_v50, %v2457_v10  ;;  %v2492_v7 = vsel %vm2334_vm7, %v2475_v36, 0.0  ;;  %v2493_v3 = vsel %vm2334_vm7, %v2479_v59, 0.0 }
 0x1f8   :  { %v2494_v31 = vadd.f32 %v2493_v3, %v2492_v7  ;;  %v2495_v26 = vsel %vm2334_vm7, %v2483_v37, 0.0  ;;  %v2497_v38 = vsel %vm2334_vm7, %v2487_v20, 0.0 }
 0x1f9   :  { %2410 = vadd.xlane.f32.xlu1 %v2409_v24 }
 0x1fa   :  { %2460 = vadd.xlane.f32.xlu0 %v2459_v18  ;;  %v2496_v25 = vadd.f32 %v2495_v26, %v2494_v31 }
 0x1fc   :  { %v2498_v22 = vadd.f32 %v2497_v38, %v2496_v25 }
 0x1fe   :  { %2499 = vadd.xlane.f32.xlu0 %v2498_v22 }
 0x253   :  { %v8367_v49 = vpop.f32.mrb[32].mxu1 }
 0x254   :  { %11136 = vst [vmem:[#allocation54_spill] sm:$0xff] %v8367_v49  ;;  %v8371_v39 = vpop.f32.mrb[33].mxu1  ;;  %v2604_v23 = vmul.f32 %v8367_v49, %v8367_v49 }
 0x255   :  { %v8369_v16 = vpop.f32.mrb[32].mxu0  ;;  %11138 = vst [vmem:[#allocation56_spill] sm:$0xff] %v8371_v39  ;;  %v2605_v13 = vmul.f32 %v8371_v39, %v8371_v39 }
 0x256   :  { %11137 = vst [vmem:[#allocation55_spill] sm:$0xff] %v8369_v16  ;;  %v8373_v15 = vpop.f32.mrb[33].mxu0  ;;  %v2602_v41 = vmul.f32 %v8369_v16, %v8369_v16 }
 0x257   :  { %11139 = vst [vmem:[#allocation57_spill] sm:$0xff] %v8373_v15  ;;  %v8377_v6 = vpop.f32.mrb[34].mxu1  ;;  %v2603_v0 = vmul.f32 %v8373_v15, %v8373_v15 }
 0x258   :  { %11140 = vst [vmem:[#allocation58_spill] sm:$0xff] %v8377_v6  ;;  %v2560_v63 = vadd.f32 %v8377_v6, %v8367_v49  ;;  %v2608_v46 = vmul.f32 %v8377_v6, %v8377_v6  ;;  %v8389_v40 = vpop.f32.mrb[35].mxu1 }
 0x259   :  { %v8383_v9 = vpop.f32.mrb[34].mxu0  ;;  %11142 = vst [vmem:[#allocation60_spill] sm:$0xff] %v8389_v40  ;;  %v2581_v50 = vadd.f32 %v8389_v40, %v8371_v39  ;;  %v2609_v35 = vmul.f32 %v8389_v40, %v8389_v40 }
 0x25a   :  { %11141 = vst [vmem:[#allocation59_spill] sm:$0xff] %v8383_v9  ;;  %v2518_v62 = vadd.f32 %v8383_v9, %v8369_v16  ;;  %v2606_v57 = vmul.f32 %v8383_v9, %v8383_v9  ;;  %v8395_v2 = vpop.f32.mrb[35].mxu0  ;;  %v2708_v10 = vadd.f32 %v2608_v46, %v2604_v23 }
 0x25b   :  { %11143 = vst [vmem:[#allocation61_spill] sm:$0xff] %v8395_v2  ;;  %v2539_v36 = vadd.f32 %v8395_v2, %v8373_v15  ;;  %v2607_v59 = vmul.f32 %v8395_v2, %v8395_v2  ;;  %v2729_v20 = vadd.f32 %v2609_v35, %v2605_v13  ;;  %v8407_v24 = vpop.f32.mrb[36].mxu1 }
 0x25c   :  { %v2666_v37 = vadd.f32 %v2606_v57, %v2602_v41  ;;  %11144 = vst [vmem:[#allocation62_spill] sm:$0xff] %v8407_v24  ;;  %v2561_v3 = vadd.f32 %v2560_v63, %v8407_v24  ;;  %v2612_v31 = vmul.f32 %v8407_v24, %v8407_v24  ;;  %v8414_v26 = vpop.f32.mrb[37].mxu1 }
 0x25d   :  { %v2687_v18 = vadd.f32 %v2607_v59, %v2603_v0  ;;  %v8409_v7 = vpop.f32.mrb[36].mxu0  ;;  %11146 = vst [vmem:[#allocation64_spill] sm:$0xff] %v8414_v26  ;;  %v2582_v23 = vadd.f32 %v2581_v50, %v8414_v26  ;;  %v2613_v41 = vmul.f32 %v8414_v26, %v8414_v26 }
 0x25e   :  { %11145 = vst [vmem:[#allocation63_spill] sm:$0xff] %v8409_v7  ;;  %v2519_v38 = vadd.f32 %v2518_v62, %v8409_v7  ;;  %v2610_v25 = vmul.f32 %v8409_v7, %v8409_v7  ;;  %v8419_v22 = vpop.f32.mrb[37].mxu0  ;;  %v2709_v13 = vadd.f32 %v2708_v10, %v2612_v31 }
 0x25f   :  { %11147 = vst [vmem:[#allocation65_spill] sm:$0xff] %v8419_v22  ;;  %v2540_v63 = vadd.f32 %v2539_v36, %v8419_v22  ;;  %v2611_v46 = vmul.f32 %v8419_v22, %v8419_v22  ;;  %v2730_v35 = vadd.f32 %v2729_v20, %v2613_v41  ;;  %v8427_v0 = vpop.f32.mrb[38].mxu1 }
 0x260   :  { %v2667_v57 = vadd.f32 %v2666_v37, %v2610_v25  ;;  %11148 = vst [vmem:[#allocation66_spill] sm:$0xff] %v8427_v0  ;;  %v2562_v40 = vadd.f32 %v2561_v3, %v8427_v0  ;;  %v2616_v50 = vmul.f32 %v8427_v0, %v8427_v0  ;;  %v8434_v6 = vpop.f32.mrb[39].mxu1 }
 0x261   :  { %v2688_v62 = vadd.f32 %v2687_v18, %v2611_v46  ;;  %v8429_v59 = vpop.f32.mrb[38].mxu0  ;;  %11150 = vst [vmem:[#allocation68_spill] sm:$0xff] %v8434_v6  ;;  %v2583_v37 = vadd.f32 %v2582_v23, %v8434_v6  ;;  %v2617_v20 = vmul.f32 %v8434_v6, %v8434_v6 }
 0x262   :  { %11149 = vst [vmem:[#allocation67_spill] sm:$0xff] %v8429_v59  ;;  %v2520_v10 = vadd.f32 %v2519_v38, %v8429_v59  ;;  %v2614_v36 = vmul.f32 %v8429_v59, %v8429_v59  ;;  %v8439_v31 = vpop.f32.mrb[39].mxu0  ;;  %v2710_v18 = vadd.f32 %v2709_v13, %v2616_v50 }
 0x263   :  { %11151 = vst [vmem:[#allocation69_spill] sm:$0xff] %v8439_v31  ;;  %v2541_v3 = vadd.f32 %v2540_v63, %v8439_v31  ;;  %v2615_v25 = vmul.f32 %v8439_v31, %v8439_v31  ;;  %v2731_v46 = vadd.f32 %v2730_v35, %v2617_v20  ;;  %v8447_v2 = vpop.f32.mrb[40].mxu1 }
 0x264   :  { %v2668_v41 = vadd.f32 %v2667_v57, %v2614_v36  ;;  %11152 = vst [vmem:[#allocation70_spill] sm:$0xff] %v8447_v2  ;;  %v2563_v39 = vadd.f32 %v2562_v40, %v8447_v2  ;;  %v2620_v23 = vmul.f32 %v8447_v2, %v8447_v2  ;;  %v8454_v49 = vpop.f32.mrb[41].mxu1 }
 0x265   :  { %v2689_v38 = vadd.f32 %v2688_v62, %v2615_v25  ;;  %v8449_v9 = vpop.f32.mrb[40].mxu0  ;;  %11154 = vst [vmem:[#allocation72_spill] sm:$0xff] %v8454_v49  ;;  %v2584_v57 = vadd.f32 %v2583_v37, %v8454_v49  ;;  %v2621_v35 = vmul.f32 %v8454_v49, %v8454_v49 }
 0x266   :  { %11153 = vst [vmem:[#allocation71_spill] sm:$0xff] %v8449_v9  ;;  %v2521_v13 = vadd.f32 %v2520_v10, %v8449_v9  ;;  %v2618_v63 = vmul.f32 %v8449_v9, %v8449_v9  ;;  %v8459_v50 = vpop.f32.mrb[41].mxu0  ;;  %v2711_v62 = vadd.f32 %v2710_v18, %v2620_v23 }
 0x267   :  { %11155 = vst [vmem:[#allocation73_spill] sm:$0xff] %v8459_v50  ;;  %v2542_v40 = vadd.f32 %v2541_v3, %v8459_v50  ;;  %v2619_v36 = vmul.f32 %v8459_v50, %v8459_v50  ;;  %v2732_v25 = vadd.f32 %v2731_v46, %v2621_v35  ;;  %v8467_v2 = vpop.f32.mrb[42].mxu1 }
 0x268   :  { %v2669_v20 = vadd.f32 %v2668_v41, %v2618_v63  ;;  %11156 = vst [vmem:[#allocation74_spill] sm:$0xff] %v8467_v2  ;;  %v2564_v9 = vadd.f32 %v2563_v39, %v8467_v2  ;;  %v2624_v37 = vmul.f32 %v8467_v2, %v8467_v2  ;;  %v8474_v16 = vpop.f32.mrb[43].mxu1 }
 0x269   :  { %v2690_v10 = vadd.f32 %v2689_v38, %v2619_v36  ;;  %v8469_v15 = vpop.f32.mrb[42].mxu0  ;;  %11158 = vst [vmem:[#allocation76_spill] sm:$0xff] %v8474_v16  ;;  %v2585_v41 = vadd.f32 %v2584_v57, %v8474_v16  ;;  %v2625_v46 = vmul.f32 %v8474_v16, %v8474_v16 }
 0x26a   :  { %11157 = vst [vmem:[#allocation75_spill] sm:$0xff] %v8469_v15  ;;  %v2522_v18 = vadd.f32 %v2521_v13, %v8469_v15  ;;  %v2622_v3 = vmul.f32 %v8469_v15, %v8469_v15  ;;  %v8479_v23 = vpop.f32.mrb[43].mxu0  ;;  %v2712_v38 = vadd.f32 %v2711_v62, %v2624_v37 }
 0x26b   :  { %11159 = vst [vmem:[#allocation77_spill] sm:$0xff] %v8479_v23  ;;  %v2543_v39 = vadd.f32 %v2542_v40, %v8479_v23  ;;  %v2623_v63 = vmul.f32 %v8479_v23, %v8479_v23  ;;  %v2733_v36 = vadd.f32 %v2732_v25, %v2625_v46  ;;  %v8487_v2 = vpop.f32.mrb[44].mxu1 }
 0x26c   :  { %v2670_v35 = vadd.f32 %v2669_v20, %v2622_v3  ;;  %11160 = vst [vmem:[#allocation78_spill] sm:$0xff] %v8487_v2  ;;  %v2565_v15 = vadd.f32 %v2564_v9, %v8487_v2  ;;  %v2628_v57 = vmul.f32 %v8487_v2, %v8487_v2  ;;  %v8494_v50 = vpop.f32.mrb[45].mxu1 }
 0x26d   :  { %v2691_v13 = vadd.f32 %v2690_v10, %v2623_v63  ;;  %v8489_v49 = vpop.f32.mrb[44].mxu0  ;;  %11162 = vst [vmem:[#allocation80_spill] sm:$0xff] %v8494_v50  ;;  %v2586_v20 = vadd.f32 %v2585_v41, %v8494_v50  ;;  %v2629_v25 = vmul.f32 %v8494_v50, %v8494_v50 }
 0x26e   :  { %11161 = vst [vmem:[#allocation79_spill] sm:$0xff] %v8489_v49  ;;  %v2523_v62 = vadd.f32 %v2522_v18, %v8489_v49  ;;  %v2626_v40 = vmul.f32 %v8489_v49, %v8489_v49  ;;  %v8499_v37 = vpop.f32.mrb[45].mxu0  ;;  %v2713_v10 = vadd.f32 %v2712_v38, %v2628_v57 }
 0x26f   :  { %11163 = vst [vmem:[#allocation81_spill] sm:$0xff] %v8499_v37  ;;  %v2544_v9 = vadd.f32 %v2543_v39, %v8499_v37  ;;  %v2627_v3 = vmul.f32 %v8499_v37, %v8499_v37  ;;  %v2734_v63 = vadd.f32 %v2733_v36, %v2629_v25  ;;  %v8507_v16 = vpop.f32.mrb[46].mxu1 }
 0x270   :  { %v2671_v46 = vadd.f32 %v2670_v35, %v2626_v40  ;;  %11164 = vst [vmem:[#allocation82_spill] sm:$0xff] %v8507_v16  ;;  %v2566_v6 = vadd.f32 %v2565_v15, %v8507_v16  ;;  %v2632_v41 = vmul.f32 %v8507_v16, %v8507_v16  ;;  %v8514_v0 = vpop.f32.mrb[47].mxu1 }
 0x271   :  { %v2692_v18 = vadd.f32 %v2691_v13, %v2627_v3  ;;  %v8509_v23 = vpop.f32.mrb[46].mxu0  ;;  %11166 = vst [vmem:[#allocation84_spill] sm:$0xff] %v8514_v0  ;;  %v2587_v35 = vadd.f32 %v2586_v20, %v8514_v0  ;;  %v2633_v36 = vmul.f32 %v8514_v0, %v8514_v0 }
 0x272   :  { %11165 = vst [vmem:[#allocation83_spill] sm:$0xff] %v8509_v23  ;;  %v2524_v38 = vadd.f32 %v2523_v62, %v8509_v23  ;;  %v2630_v39 = vmul.f32 %v8509_v23, %v8509_v23  ;;  %v8519_v57 = vpop.f32.mrb[47].mxu0  ;;  %v2714_v13 = vadd.f32 %v2713_v10, %v2632_v41 }
 0x273   :  { %11167 = vst [vmem:[#allocation85_spill] sm:$0xff] %v8519_v57  ;;  %v2545_v15 = vadd.f32 %v2544_v9, %v8519_v57  ;;  %v2631_v40 = vmul.f32 %v8519_v57, %v8519_v57  ;;  %v2735_v3 = vadd.f32 %v2734_v63, %v2633_v36  ;;  %v8527_v31 = vpop.f32.mrb[48].mxu1 }
 0x274   :  { %v2672_v25 = vadd.f32 %v2671_v46, %v2630_v39  ;;  %11168 = vst [vmem:[#allocation86_spill] sm:$0xff] %v8527_v31  ;;  %v2567_v50 = vadd.f32 %v2566_v6, %v8527_v31  ;;  %v2636_v20 = vmul.f32 %v8527_v31, %v8527_v31  ;;  %v8534_v2 = vpop.f32.mrb[49].mxu1 }
 0x275   :  { %v2693_v62 = vadd.f32 %v2692_v18, %v2631_v40  ;;  %v8529_v59 = vpop.f32.mrb[48].mxu0  ;;  %11170 = vst [vmem:[#allocation88_spill] sm:$0xff] %v8534_v2  ;;  %v2588_v46 = vadd.f32 %v2587_v35, %v8534_v2  ;;  %v2637_v63 = vmul.f32 %v8534_v2, %v8534_v2 }
 0x276   :  { %11169 = vst [vmem:[#allocation87_spill] sm:$0xff] %v8529_v59  ;;  %v2525_v10 = vadd.f32 %v2524_v38, %v8529_v59  ;;  %v2634_v9 = vmul.f32 %v8529_v59, %v8529_v59  ;;  %v8539_v41 = vpop.f32.mrb[49].mxu0  ;;  %v2715_v18 = vadd.f32 %v2714_v13, %v2636_v20 }
 0x277   :  { %11171 = vst [vmem:[#allocation89_spill] sm:$0xff] %v8539_v41  ;;  %v2546_v6 = vadd.f32 %v2545_v15, %v8539_v41  ;;  %v2635_v39 = vmul.f32 %v8539_v41, %v8539_v41  ;;  %v2736_v40 = vadd.f32 %v2735_v3, %v2637_v63  ;;  %v8547_v31 = vpop.f32.mrb[50].mxu1 }
 0x278   :  { %v2673_v36 = vadd.f32 %v2672_v25, %v2634_v9  ;;  %11172 = vst [vmem:[#allocation90_spill] sm:$0xff] %v8547_v31  ;;  %v2568_v59 = vadd.f32 %v2567_v50, %v8547_v31  ;;  %v2640_v35 = vmul.f32 %v8547_v31, %v8547_v31  ;;  %v8554_v49 = vpop.f32.mrb[51].mxu1 }
 0x279   :  { %v2694_v38 = vadd.f32 %v2693_v62, %v2635_v39  ;;  %v8549_v37 = vpop.f32.mrb[50].mxu0  ;;  %11174 = vst [vmem:[#allocation92_spill] sm:$0xff] %v8554_v49  ;;  %v2589_v25 = vadd.f32 %v2588_v46, %v8554_v49  ;;  %v2641_v3 = vmul.f32 %v8554_v49, %v8554_v49 }
 0x27a   :  { %11173 = vst [vmem:[#allocation91_spill] sm:$0xff] %v8549_v37  ;;  %v2526_v13 = vadd.f32 %v2525_v10, %v8549_v37  ;;  %v2638_v15 = vmul.f32 %v8549_v37, %v8549_v37  ;;  %v8559_v20 = vpop.f32.mrb[51].mxu0  ;;  %v2716_v62 = vadd.f32 %v2715_v18, %v2640_v35 }
 0x27b   :  { %11175 = vst [vmem:[#allocation93_spill] sm:$0xff] %v8559_v20  ;;  %v2547_v50 = vadd.f32 %v2546_v6, %v8559_v20  ;;  %v2639_v9 = vmul.f32 %v8559_v20, %v8559_v20  ;;  %v2737_v39 = vadd.f32 %v2736_v40, %v2641_v3  ;;  %v8567_v2 = vpop.f32.mrb[52].mxu1 }
 0x27c   :  { %v2674_v63 = vadd.f32 %v2673_v36, %v2638_v15  ;;  %11176 = vst [vmem:[#allocation94_spill] sm:$0xff] %v8567_v2  ;;  %v2569_v31 = vadd.f32 %v2568_v59, %v8567_v2  ;;  %v2644_v46 = vmul.f32 %v8567_v2, %v8567_v2  ;;  %v8574_v37 = vpop.f32.mrb[53].mxu1 }
 0x27d   :  { %v2695_v10 = vadd.f32 %v2694_v38, %v2639_v9  ;;  %v8569_v41 = vpop.f32.mrb[52].mxu0  ;;  %11178 = vst [vmem:[#allocation96_spill] sm:$0xff] %v8574_v37  ;;  %v2590_v36 = vadd.f32 %v2589_v25, %v8574_v37  ;;  %v2645_v40 = vmul.f32 %v8574_v37, %v8574_v37 }
 0x27e   :  { %11177 = vst [vmem:[#allocation95_spill] sm:$0xff] %v8569_v41  ;;  %v2527_v18 = vadd.f32 %v2526_v13, %v8569_v41  ;;  %v2642_v6 = vmul.f32 %v8569_v41, %v8569_v41  ;;  %v8579_v35 = vpop.f32.mrb[53].mxu0  ;;  %v2717_v38 = vadd.f32 %v2716_v62, %v2644_v46 }
 0x27f   :  { %11179 = vst [vmem:[#allocation97_spill] sm:$0xff] %v8579_v35  ;;  %v2548_v59 = vadd.f32 %v2547_v50, %v8579_v35  ;;  %v2643_v15 = vmul.f32 %v8579_v35, %v8579_v35  ;;  %v2738_v9 = vadd.f32 %v2737_v39, %v2645_v40  ;;  %v8587_v2 = vpop.f32.mrb[54].mxu1 }
 0x280   :  { %v2675_v3 = vadd.f32 %v2674_v63, %v2642_v6  ;;  %11180 = vst [vmem:[#allocation98_spill] sm:$0xff] %v8587_v2  ;;  %v2570_v41 = vadd.f32 %v2569_v31, %v8587_v2  ;;  %v2648_v25 = vmul.f32 %v8587_v2, %v8587_v2  ;;  %v8594_v20 = vpop.f32.mrb[55].mxu1 }
 0x281   :  { %v2696_v13 = vadd.f32 %v2695_v10, %v2643_v15  ;;  %v8589_v49 = vpop.f32.mrb[54].mxu0  ;;  %11182 = vst [vmem:[#allocation100_spill] sm:$0xff] %v8594_v20  ;;  %v2591_v63 = vadd.f32 %v2590_v36, %v8594_v20  ;;  %v2649_v39 = vmul.f32 %v8594_v20, %v8594_v20 }
 0x282   :  { %11181 = vst [vmem:[#allocation99_spill] sm:$0xff] %v8589_v49  ;;  %v2528_v62 = vadd.f32 %v2527_v18, %v8589_v49  ;;  %v2646_v50 = vmul.f32 %v8589_v49, %v8589_v49  ;;  %v8599_v46 = vpop.f32.mrb[55].mxu0  ;;  %v2718_v10 = vadd.f32 %v2717_v38, %v2648_v25 }
 0x283   :  { %11183 = vst [vmem:[#allocation101_spill] sm:$0xff] %v8599_v46  ;;  %v2549_v31 = vadd.f32 %v2548_v59, %v8599_v46  ;;  %v2647_v6 = vmul.f32 %v8599_v46, %v8599_v46  ;;  %v2739_v15 = vadd.f32 %v2738_v9, %v2649_v39  ;;  %v8607_v37 = vpop.f32.mrb[56].mxu1 }
 0x284   :  { %v2676_v40 = vadd.f32 %v2675_v3, %v2646_v50  ;;  %11184 = vst [vmem:[#allocation102_spill] sm:$0xff] %v8607_v37  ;;  %v2571_v2 = vadd.f32 %v2570_v41, %v8607_v37  ;;  %v2652_v36 = vmul.f32 %v8607_v37, %v8607_v37  ;;  %v8614_v49 = vpop.f32.mrb[57].mxu1 }
 0x285   :  { %v2697_v18 = vadd.f32 %v2696_v13, %v2647_v6  ;;  %v8609_v35 = vpop.f32.mrb[56].mxu0  ;;  %11186 = vst [vmem:[#allocation104_spill] sm:$0xff] %v8614_v49  ;;  %v2592_v3 = vadd.f32 %v2591_v63, %v8614_v49  ;;  %v2653_v9 = vmul.f32 %v8614_v49, %v8614_v49 }
 0x286   :  { %11185 = vst [vmem:[#allocation103_spill] sm:$0xff] %v8609_v35  ;;  %v2529_v38 = vadd.f32 %v2528_v62, %v8609_v35  ;;  %v2650_v59 = vmul.f32 %v8609_v35, %v8609_v35  ;;  %v8619_v25 = vpop.f32.mrb[57].mxu0  ;;  %v2719_v13 = vadd.f32 %v2718_v10, %v2652_v36 }
 0x287   :  { %11187 = vst [vmem:[#allocation105_spill] sm:$0xff] %v8619_v25  ;;  %v2550_v41 = vadd.f32 %v2549_v31, %v8619_v25  ;;  %v2651_v50 = vmul.f32 %v8619_v25, %v8619_v25  ;;  %v2740_v6 = vadd.f32 %v2739_v15, %v2653_v9  ;;  %v8627_v37 = vpop.f32.mrb[58].mxu1 }
 0x288   :  { %v2677_v39 = vadd.f32 %v2676_v40, %v2650_v59  ;;  %11188 = vst [vmem:[#allocation106_spill] sm:$0xff] %v8627_v37  ;;  %v2572_v35 = vadd.f32 %v2571_v2, %v8627_v37  ;;  %v2656_v63 = vmul.f32 %v8627_v37, %v8627_v37  ;;  %v8634_v46 = vpop.f32.mrb[59].mxu1  ;;  %v2343_v59 = vpop.xlane.xlu0 %2342 }
 0x289   :  { %v2698_v62 = vadd.f32 %v2697_v18, %v2651_v50  ;;  %v8629_v20 = vpop.f32.mrb[58].mxu0  ;;  %11190 = vst [vmem:[#allocation108_spill] sm:$0xff] %v8634_v46  ;;  %v2593_v40 = vadd.f32 %v2592_v3, %v8634_v46  ;;  %v2657_v15 = vmul.f32 %v8634_v46, %v8634_v46 }
 0x28a   :  { %11189 = vst [vmem:[#allocation107_spill] sm:$0xff] %v8629_v20  ;;  %v2530_v10 = vadd.f32 %v2529_v38, %v8629_v20  ;;  %v2654_v31 = vmul.f32 %v8629_v20, %v8629_v20  ;;  %v8642_v18 = vpop.f32.mrb[59].mxu0  ;;  %v2720_v36 = vadd.f32 %v2719_v13, %v2656_v63  ;;  %v2344_v38 = vrot.slane %v2343_v59, 4 }
 0x28b   :  { %11191 = vst [vmem:[#allocation109_spill] sm:$0xff] %v8642_v18  ;;  %v2551_v2 = vadd.f32 %v2550_v41, %v8642_v18  ;;  %v2655_v9 = vmul.f32 %v8642_v18, %v8642_v18  ;;  %v2741_v49 = vadd.f32 %v2740_v6, %v2657_v15  ;;  %v8647_v25 = vpop.f32.mrb[60].mxu1 }
 0x28c   :  { %v2678_v50 = vadd.f32 %v2677_v39, %v2654_v31  ;;  %11192 = vst [vmem:[#allocation110_spill] sm:$0xff] %v8647_v25  ;;  %v2573_v3 = vadd.f32 %v2572_v35, %v8647_v25  ;;  %v2660_v22 = vmul.f32 %v8647_v25, %v8647_v25  ;;  %v8654_v13 = vpop.f32.mrb[61].mxu1  ;;  %v8656_v63 = vadd.f32 %v2344_v38, %v2343_v59  ;;  %v2411_v31 = vpop.xlane.xlu1 %2410 }
 0x28d   :  { %v2699_v26 = vadd.f32 %v2698_v62, %v2655_v9  ;;  %v8649_v24 = vpop.f32.mrb[60].mxu0  ;;  %11194 = vst [vmem:[#allocation112_spill] sm:$0xff] %v8654_v13  ;;  %v2594_v6 = vadd.f32 %v2593_v40, %v8654_v13  ;;  %v2661_v35 = vmul.f32 %v8654_v13, %v8654_v13  ;;  %v2412_v9 = vrot.slane %v2411_v31, 4  ;;  %v2461_v25 = vpop.xlane.xlu0 %2460 }
 0x28e   :  { %11193 = vst [vmem:[#allocation111_spill] sm:$0xff] %v8649_v24  ;;  %v2531_v41 = vadd.f32 %v2530_v10, %v8649_v24  ;;  %v2658_v39 = vmul.f32 %v8649_v24, %v8649_v24  ;;  %v8662_v62 = vpop.f32.mrb[61].mxu0  ;;  %v2721_v15 = vadd.f32 %v2720_v36, %v2660_v22  ;;  %v2462_v38 = vrot.slane %v2461_v25, 4 }
 0x28f   :  { %11195 = vst [vmem:[#allocation113_spill] sm:$0xff] %v8662_v62  ;;  %v2552_v7 = vadd.f32 %v2551_v2, %v8662_v62  ;;  %v2659_v10 = vmul.f32 %v8662_v62, %v8662_v62  ;;  %v8669_v46 = vpop.f32.mrb[62].mxu1  ;;  %v2742_v24 = vadd.f32 %v2741_v49, %v2661_v35  ;;  %v8671_v40 = vadd.f32 %v2412_v9, %v2411_v31 }
 0x290   :  { %v2679_v59 = vadd.f32 %v2678_v50, %v2658_v39  ;;  %11196 = vst [vmem:[#allocation114_spill] sm:$0xff] %v8669_v46  ;;  %v2574_v22 = vadd.f32 %v2573_v3, %v8669_v46  ;;  %v2664_v36 = vmul.f32 %v8669_v46, %v8669_v46  ;;  %v8678_v13 = vpop.f32.mrb[63].mxu1  ;;  %v2346_v2 = vrot.slane %v8656_v63, 2 }
 0x291   :  { %v8673_v37 = vpop.f32.mrb[62].mxu0  ;;  %11198 = vst [vmem:[#allocation116_spill] sm:$0xff] %v8678_v13  ;;  %v2700_v50 = vadd.f32 %v2699_v26, %v2659_v10  ;;  %v2463_v31 = vadd.f32 %v2462_v38, %v2461_v25  ;;  %v2595_v3 = vadd.f32 %v2594_v6, %v8678_v13  ;;  %v2500_v18 = vpop.xlane.xlu0 %2499  ;;  %v2414_v46 = vrot.slane %v8671_v40, 2 }
 0x292   :  { %11197 = vst [vmem:[#allocation115_spill] sm:$0xff] %v8673_v37  ;;  %v2532_v39 = vadd.f32 %v2531_v41, %v8673_v37  ;;  %v2662_v62 = vmul.f32 %v8673_v37, %v8673_v37  ;;  %v8684_v49 = vpop.f32.mrb[63].mxu0  ;;  %v2575_v35 = vrot.slane %v2574_v22, 4  ;;  %v2722_v9 = vadd.f32 %v2721_v15, %v2664_v36 }
 0x293   :  { %11199 = vst [vmem:[#allocation117_spill] sm:$0xff] %v8684_v49  ;;  %v2665_v26 = vmul.f32 %v8678_v13, %v8678_v13  ;;  %v2596_v16 = vrot.slane %v2595_v3, 4  ;;  %v2501_v57 = vrot.slane %v2500_v18, 4  ;;  %v2553_v25 = vadd.f32 %v2552_v7, %v8684_v49 }
 0x294   :  { %v2533_v20 = vrot.slane %v2532_v39, 4  ;;  %v2680_v0 = vadd.f32 %v2679_v59, %v2662_v62  ;;  %v2576_v10 = vadd.f32 %v2575_v35, %v2574_v22  ;;  %v2723_v41 = vrot.slane %v2722_v9, 4 }
 0x295   :  { %v2743_v54 = vadd.f32 %v2742_v24, %v2665_v26  ;;  %v2464_v15 = vrot.slane %v2463_v31, 2  ;;  %v2597_v36 = vadd.f32 %v2596_v16, %v2595_v3  ;;  %v2554_v62 = vrot.slane %v2553_v25, 4 }
 0x296   :  { %v2534_v37 = vadd.f32 %v2533_v20, %v2532_v39  ;;  %v2681_v23 = vrot.slane %v2680_v0, 4  ;;  %v2577_v38 = vrot.slane %v2576_v10, 2  ;;  %v2724_v6 = vadd.f32 %v2723_v41, %v2722_v9 }
 0x297   :  { %v2744_v48 = vrot.slane %v2743_v54, 4  ;;  %v2598_v13 = vrot.slane %v2597_v36, 2  ;;  %v2502_v22 = vadd.f32 %v2501_v57, %v2500_v18  ;;  %v2555_v20 = vadd.f32 %v2554_v62, %v2553_v25 }
 0x298   :  { %v2535_v12 = vrot.slane %v2534_v37, 2  ;;  %v2682_v28 = vadd.f32 %v2681_v23, %v2680_v0  ;;  %v2578_v59 = vadd.f32 %v2577_v38, %v2576_v10  ;;  %v2725_v5 = vrot.slane %v2724_v6, 2 }
 0x299   :  { %v2745_v8 = vadd.f32 %v2744_v48, %v2743_v54  ;;  %v2599_v26 = vadd.f32 %v2598_v13, %v2597_v36  ;;  %v2663_v7 = vmul.f32 %v8684_v49, %v8684_v49  ;;  %v2556_v0 = vrot.slane %v2555_v20, 2 }
 0x29a   :  { %v2536_v35 = vadd.f32 %v2535_v12, %v2534_v37  ;;  %v2683_v33 = vrot.slane %v2682_v28, 2  ;;  %v2579_v39 = vrot.slane %v2578_v59, 1  ;;  %v2726_v24 = vadd.f32 %v2725_v5, %v2724_v6 }
 0x29b   :  { %v2746_v3 = vrot.slane %v2745_v8, 2  ;;  %v2600_v10 = vrot.slane %v2599_v26, 1  ;;  %v2701_v38 = vadd.f32 %v2700_v50, %v2663_v7  ;;  %v2503_v12 = vrot.slane %v2502_v22, 2 }
 0x29c   :  { %v2537_v9 = vrot.slane %v2536_v35, 1  ;;  %v2684_v16 = vadd.f32 %v2683_v33, %v2682_v28  ;;  %v2580_v23 = vadd.f32 %v2579_v39, %v2578_v59  ;;  %v2727_v41 = vrot.slane %v2726_v24, 1 }
 0x29d   :  { %v2747_v57 = vadd.f32 %v2746_v3, %v2745_v8  ;;  %v2557_v37 = vadd.f32 %v2556_v0, %v2555_v20  ;;  %v2601_v48 = vadd.f32 %v2600_v10, %v2599_v26  ;;  %v2702_v18 = vrot.slane %v2701_v38, 4 }
 0x29e   :  { %v2538_v34 = vadd.f32 %v2537_v9, %v2536_v35  ;;  %v2685_v54 = vrot.slane %v2684_v16, 1  ;;  %v2347_v5 = vadd.f32 %v2346_v2, %v8656_v63  ;;  %v2728_v13 = vadd.f32 %v2727_v41, %v2726_v24 }
 0x29f   :  { %v2748_v25 = vrot.slane %v2747_v57, 1  ;;  %v2558_v6 = vrot.slane %v2557_v37, 1  ;;  %v2415_v33 = vadd.f32 %v2414_v46, %v8671_v40  ;;  %v2755_v28 = vcombine.low %v2580_v23, %v2601_v48 }
 0x2a0   :  { %v2703_v36 = vadd.f32 %v2702_v18, %v2701_v38  ;;  %v2348_v62 = vrot.slane %v2347_v5, 1  ;;  %v2465_v59 = vadd.f32 %v2464_v15, %v2463_v31  ;;  %v2504_v8 = vadd.f32 %v2503_v12, %v2502_v22 }
 0x2a1   :  { %v2749_v39 = vadd.f32 %v2748_v25, %v2747_v57  ;;  %v2559_v50 = vadd.f32 %v2558_v6, %v2557_v37  ;;  %v2416_v35 = vrot.slane %v2415_v33, 1  ;;  %v2769_v20 = vrot.slane %v2755_v28, %v8294_v1 }
 0x2a2   :  { %v2704_v7 = vrot.slane %v2703_v36, 2  ;;  %v2349_v26 = vadd.f32 %v2348_v62, %v2347_v5  ;;  %v2466_v9 = vrot.slane %v2465_v59, 1  ;;  %v2505_v24 = vrot.slane %v2504_v8, 1 }
 0x2a3   :  { %v2823_v3 = vcombine.low %v2728_v13, %v2749_v39  ;;  %v2754_v63 = vcombine.low %v2538_v34, %v2559_v50  ;;  %v2417_v2 = vadd.f32 %v2416_v35, %v2415_v33  ;;  %v2686_v15 = vadd.f32 %v2685_v54, %v2684_v16 }
 0x2a4   :  { %v2705_v0 = vadd.f32 %v2704_v7, %v2703_v36  ;;  %5373 = vpush %v2349_v26  ;;  %v2467_v46 = vadd.f32 %v2466_v9, %v2465_v59  ;;  %v2506_v31 = vadd.f32 %v2505_v24, %v2504_v8 }
 0x2a5   :  { %v2762_v40 = vrot.slane %v2754_v63, %v8294_v1  ;;  %5375 = vpush %v2417_v2  ;;  %v2837_v38 = vrot.slane %v2823_v3, %v8294_v1 }
 0x2a6   :  { %v2706_v23 = vrot.slane %v2705_v0, 1  ;;  %5377 = vpush %v2467_v46 }
 0x2a7   :  { %5379 = vpush %v2506_v31  ;;  %v2770_v22 = vcombine.low %v2762_v40, %v2769_v20 }
 0x2a8   :  { %v2707_v41 = vadd.f32 %v2706_v23, %v2705_v0 }
 0x2a9   :  { %v2777_v10 = vrot.slane %v2770_v22, %v8294_v1 }
 0x2aa   :  { %v2822_v34 = vcombine.low %v2686_v15, %v2707_v41 }
 0x2ab   :  { %v2779_v57 = vsel %vm2282_vm3, %v2777_v10, 0.0  ;;  %v2895_v12 = vsel %vm2430_vm6, %v2777_v10, 0.0 }
 0x2ac   :  { %v2830_v37 = vrot.slane %v2822_v34, %v8294_v1  ;;  %v2784_v16 = vrot.slane %v2779_v57, %v6401_v45  ;;  %v2788_v54 = vrot.slane %v2779_v57, %v6392_v42  ;;  %v2792_v48 = vrot.slane %v2779_v57, %v6427_v51 }
 0x2ad   :  { %v2796_v18 = vrot.slane %v2779_v57, %v6414_v47  ;;  %v2900_v5 = vrot.slane %v2895_v12, %v6401_v45  ;;  %v2904_v13 = vrot.slane %v2895_v12, %v6392_v42  ;;  %v2908_v28 = vrot.slane %v2895_v12, %v6427_v51 }
 0x2ae   :  { %v2801_v25 = vsel %vm2334_vm7, %v2784_v16, 0.0  ;;  %v2802_v6 = vsel %vm2334_vm7, %v2788_v54, 0.0  ;;  %v2838_v33 = vcombine.low %v2830_v37, %v2837_v38  ;;  %v2804_v59 = vsel %vm2334_vm7, %v2792_v48, 0.0 }
 0x2af   :  { %v2803_v36 = vadd.f32 %v2802_v6, %v2801_v25  ;;  %v2917_v62 = vsel %vm2334_vm7, %v2900_v5, 0.0  ;;  %v2918_v50 = vsel %vm2334_vm7, %v2904_v13, 0.0  ;;  %v2806_v8 = vsel %vm2334_vm7, %v2796_v18, 0.0 }
 0x2b0   :  { %v2845_v39 = vrot.slane %v2838_v33, %v8294_v1  ;;  %v2919_v20 = vadd.f32 %v2918_v50, %v2917_v62  ;;  %v2912_v26 = vrot.slane %v2895_v12, %v6414_v47  ;;  %v2920_v9 = vsel %vm2334_vm7, %v2908_v28, 0.0  ;;  %v3152_v28 = vld [vmem:[%s10496_s5] sm:$0xff]  ;;  %v3157_v62 = vld [vmem:[%s10496_s5 + $0x28] sm:$0xff] }
 0x2b1   :  { %v2805_v35 = vadd.f32 %v2804_v59, %v2803_v36  ;;  %v3156_v36 = vld [vmem:[%s10496_s5 + $0x20] sm:$0xff]  ;;  %v3153_v59 = vld [vmem:[%s10496_s5 + $0x8] sm:$0xff] }
 0x2b2   :  { %v2847_v7 = vsel %vm2282_vm3, %v2845_v39, 0.0  ;;  %v2934_v3 = vsel %vm2430_vm6, %v2845_v39, 0.0  ;;  %v2921_v46 = vadd.f32 %v2920_v9, %v2919_v20  ;;  %v2922_v38 = vsel %vm2334_vm7, %v2912_v26, 0.0  ;;  %v3482_v39 = vld [vmem:[%s10497_s6] sm:$0xff]  ;;  %v3484_v20 = vld [vmem:[%s10497_s6 + $0x10] sm:$0xff] }
 0x2b3   :  { %v2807_v63 = vadd.f32 %v2806_v8, %v2805_v35  ;;  %v2852_v2 = vrot.slane %v2847_v7, %v6401_v45  ;;  %v2856_v24 = vrot.slane %v2847_v7, %v6392_v42  ;;  %v2860_v0 = vrot.slane %v2847_v7, %v6427_v51 }
 0x2b4   :  { %v2939_v40 = vrot.slane %v2934_v3, %v6401_v45  ;;  %v2943_v31 = vrot.slane %v2934_v3, %v6392_v42  ;;  %v2864_v15 = vrot.slane %v2847_v7, %v6414_v47  ;;  %v2947_v41 = vrot.slane %v2934_v3, %v6427_v51  ;;  %v3483_v7 = vld [vmem:[%s10497_s6 + $0x8] sm:$0xff] }
 0x2b5   :  { %2808 = vadd.xlane.f32.xlu1 %v2807_v63  ;;  %v2869_v23 = vsel %vm2334_vm7, %v2852_v2, 0.0  ;;  %v2870_v22 = vsel %vm2334_vm7, %v2856_v24, 0.0  ;;  %v2872_v34 = vsel %vm2334_vm7, %v2860_v0, 0.0  ;;  %v2923_v57 = vadd.f32 %v2922_v38, %v2921_v46 }
 0x2b6   :  { %v2871_v10 = vadd.f32 %v2870_v22, %v2869_v23  ;;  %v2956_v12 = vsel %vm2334_vm7, %v2939_v40, 0.0  ;;  %v2957_v37 = vsel %vm2334_vm7, %v2943_v31, 0.0  ;;  %v2874_v48 = vsel %vm2334_vm7, %v2864_v15, 0.0  ;;  %v3155_v31 = vld [vmem:[%s10496_s5 + $0x18] sm:$0xff]  ;;  %v3486_v15 = vld [vmem:[%s10497_s6 + $0x20] sm:$0xff] }
 0x2b7   :  { %v2958_v54 = vadd.f32 %v2957_v37, %v2956_v12  ;;  %v2951_v18 = vrot.slane %v2934_v3, %v6414_v47  ;;  %v2959_v5 = vsel %vm2334_vm7, %v2947_v41, 0.0  ;;  %v3487_v12 = vld [vmem:[%s10497_s6 + $0x28] sm:$0xff] }
 0x2b8   :  { %v2873_v16 = vadd.f32 %v2872_v34, %v2871_v10 }
 0x2b9   :  { %2924 = vadd.xlane.f32.xlu1 %v2923_v57  ;;  %v2960_v25 = vadd.f32 %v2959_v5, %v2958_v54  ;;  %v2961_v6 = vsel %vm2334_vm7, %v2951_v18, 0.0  ;;  %v3485_v57 = vld [vmem:[%s10497_s6 + $0x18] sm:$0xff]  ;;  %v3706_v18 = vld [vmem:[%s10498_s7] sm:$0xff]  ;;  %v3154_v5 = vld [vmem:[%s10496_s5 + $0x10] sm:$0xff] }
 0x2ba   :  { %v2875_v13 = vadd.f32 %v2874_v48, %v2873_v16 }
 0x2bb   :  { %v2962_v33 = vadd.f32 %v2961_v6, %v2960_v25 }
 0x2bc   :  { %2876 = vadd.xlane.f32.xlu0 %v2875_v13 }
 0x2c0   :  { %2963 = vadd.xlane.f32.xlu0 %v2962_v33 }
 0x2ca   :  { %3170 = vperm.xlu1 %5799, %v3152_v28   ;;  %v3710_v28 = vld [vmem:[%s10498_s7 + $0x20] sm:$0xff] }
 0x2ce   :  { %3190 = vperm.xlu1 %5799, %v3156_v36   ;;  %v3158_v36 = vld [vmem:[%s10496_s5 + $0x30] sm:$0xff] }
 0x2d2   :  { %3195 = vperm.xlu1 %5799, %v3157_v62  }
 0x2d5   :  { %s5374_s26 = spop %5373 }
 0x2d6   :  { %v2351_v50 = vstv %s5374_s26  ;;  %s5376_s1 = spop %5375  ;;  %3175 = vperm.xlu0 %5800, %v3153_v59   ;;  %3500 = vperm.xlu1 %5799, %v3482_v39  }
 0x2d7   :  { %v2421_v35 = vmul.f32 3.0517578e-05, %v2351_v50  ;;  %v2419_v8 = vstv %s5376_s1  ;;  %s5378_s19 = spop %5377 }
 0x2d8   :  { %v2422_v26 = vmul.f32 3.0517578e-05, %v2419_v8  ;;  %v2469_v9 = vstv %s5378_s19  ;;  %s5380_s27 = spop %5379 }
 0x2d9   :  { %v2423_v3 = vmul.f32 %v2421_v35, %v2421_v35  ;;  %v2428_v63 = vsel %vm2282_vm3, %v2421_v35, 0.0  ;;  %v2509_v2 = vmul.f32 3.0517578e-05, %v2469_v9  ;;  %v2508_v24 = vstv %s5380_s27 }
 0x2da   :  { %v2510_v0 = vmul.f32 3.0517578e-05, %v2508_v24  ;;  %3510 = vperm.xlu0 %5800, %v3484_v20   ;;  %3505 = vperm.xlu1 %5799, %v3483_v7  }
 0x2db   :  { %v2424_v46 = vsub.f32 %v2422_v26, %v2423_v3  ;;  %v2511_v40 = vmul.f32 %v2509_v2, %v2509_v2  ;;  %v2516_v23 = vsel %vm2430_vm6, %v2509_v2, %v2428_v63  ;;  %v11203_v3 = vld [vmem:[#allocation38_spill] sm:$0xff]  ;;  %v11205_v2 = vld [vmem:[#allocation39_spill] sm:$0xff] }
 0x2dc   :  { %v8773_v38 = vrot.slane %v2516_v23, %v6401_v45  ;;  %v8782_v37 = vrot.slane %v2516_v23, %v6392_v42  ;;  %v8785_v16 = vrot.slane %v2516_v23, %v6427_v51  ;;  %v8788_v54 = vrot.slane %v2516_v23, %v6414_v47 }
 0x2dd   :  { %v2425_v22 = vmax.f32 %v2424_v46, 0.0  ;;  %v2512_v41 = vsub.f32 %v2510_v0, %v2511_v40  ;;  %v3709_v0 = vld [vmem:[%s10498_s7 + $0x18] sm:$0xff]  ;;  %v11206_v40 = vld [vmem:[#allocation40_spill] sm:$0xff] }
 0x2de   :  { %3185 = vperm.xlu0 %5800, %v3155_v31   ;;  %3520 = vperm.xlu1 %5799, %v3486_v15   ;;  %v3015_v13 = vsub.f32 %v8021_v14, %v8773_v38  ;;  %v3016_v25 = vsub.f32 %v8028_v4, %v8782_v37  ;;  %v3017_v6 = vsub.f32 %v8026_v60, %v8785_v16  ;;  %v3159_v46 = vld [vmem:[%s10496_s5 + $0x38] sm:$0xff]  ;;  %v11207_v15 = vld [vmem:[#allocation42_spill] sm:$0xff] }
 0x2df   :  { %v2426_v10 = vadd.f32 1e-05, %v2425_v22  ;;  %v2513_v34 = vmax.f32 %v2512_v41, 0.0  ;;  %v3018_v33 = vsub.f32 %v8037_v27, %v8788_v54  ;;  %v3031_v14 = vsub.f32 %v8129_v52, %v8773_v38  ;;  %v11208_v22 = vld [vmem:[#allocation41_spill] sm:$0xff] }
 0x2e0   :  { %v3032_v4 = vsub.f32 %v8136_v17, %v8782_v37  ;;  %v3033_v60 = vsub.f32 %v8134_v43, %v8785_v16  ;;  %v3034_v27 = vsub.f32 %v8145_v11, %v8788_v54  ;;  %v3063_v62 = vsub.f32 %v8291_v21, %v8773_v38  ;;  %v3708_v17 = vld [vmem:[%s10498_s7 + $0x10] sm:$0xff] }
 0x2e1   :  { %5801 = vrsqrt.f32 %v2426_v10  ;;  %v2514_v48 = vadd.f32 1e-05, %v2513_v34  ;;  %v3064_v59 = vsub.f32 %v8301_v55, %v8782_v37  ;;  %v3065_v52 = vsub.f32 %v8299_v44, %v8785_v16  ;;  %v3488_v43 = vld [vmem:[%s10497_s6 + $0x30] sm:$0xff]  ;;  %v11209_v10 = vld [vmem:[#allocation43_spill] sm:$0xff] }
 0x2e2   :  { %3515 = vperm.xlu0 %5800, %v3485_v57   ;;  %3525 = vperm.xlu1 %5799, %v3487_v12   ;;  %v3066_v11 = vsub.f32 %v8309_v30, %v8788_v54  ;;  %v3055_v21 = vsub.f32 %v8251_v29, %v8773_v38  ;;  %v3056_v55 = vsub.f32 %v8258_v19, %v8782_v37  ;;  %v11200_v29 = vld [vmem:[#allocation30_spill] sm:$0xff]  ;;  %v11201_v19 = vld [vmem:[#allocation31_spill] sm:$0xff] }
 0x2e3   :  { %5803 = vrsqrt.f32 %v2514_v48  ;;  %v3057_v44 = vsub.f32 %v8256_v58, %v8785_v16  ;;  %v3058_v35 = vsub.f32 %v8266_v56, %v8788_v54  ;;  %v3035_v8 = vsub.f32 %v8151_v53, %v8773_v38  ;;  %v11202_v58 = vld [vmem:[#allocation36_spill] sm:$0xff]  ;;  %v11204_v53 = vld [vmem:[#allocation37_spill] sm:$0xff] }
 0x2e4   :  { %v3036_v30 = vsub.f32 %v8158_v61, %v8782_v37  ;;  %v3037_v7 = vsub.f32 %v11200_v29, %v8785_v16  ;;  %v3038_v26 = vsub.f32 %v11201_v19, %v8788_v54  ;;  %v3043_v9 = vsub.f32 %v11202_v58, %v8773_v38  ;;  %v3166_v29 = vld [vmem:[%s10496_s5 + $0x70] sm:$0xff] }
 0x2e5   :  { %v3044_v63 = vsub.f32 %v11203_v3, %v8782_v37  ;;  %v3045_v61 = vsub.f32 %v11204_v53, %v8785_v16  ;;  %v3046_v24 = vsub.f32 %v11205_v2, %v8788_v54  ;;  %v3047_v31 = vsub.f32 %v11206_v40, %v8773_v38 }
 0x2e6   :  { %3724 = vperm.xlu0 %5800, %v3706_v18   ;;  %3180 = vperm.xlu1 %5799, %v3154_v5   ;;  %v3048_v23 = vsub.f32 %v11207_v15, %v8782_v37  ;;  %v3049_v41 = vsub.f32 %v11208_v22, %v8785_v16  ;;  %v3050_v34 = vsub.f32 %v11209_v10, %v8788_v54  ;;  %v3164_v5 = vld [vmem:[%s10496_s5 + $0x60] sm:$0xff]  ;;  %v3713_v22 = vld [vmem:[%s10498_s7 + $0x38] sm:$0xff] }
 0x2ea   :  { %3744 = vperm.xlu0 %5800, %v3710_v28   ;;  %3200 = vperm.xlu1 %5799, %v3158_v36   ;;  %v3489_v28 = vld [vmem:[%s10497_s6 + $0x38] sm:$0xff] }
 0x2eb   :  { %v5802_v39 = vpop.eup %5801 }
 0x2ec   :  { %v2429_v50 = vsel %vm2282_vm3, %v5802_v39, 0.0 }
 0x2ed   :  { %v5804_v20 = vpop.eup %5803 }
 0x2ee   :  { %v2517_v56 = vsel %vm2430_vm6, %v5804_v20, %v2429_v50  ;;  %3734 = vperm.xlu0 %5800, %v3708_v17   ;;  %3530 = vperm.xlu1 %5799, %v3488_v43   ;;  %v3494_v50 = vld [vmem:[%s10497_s6 + $0x60] sm:$0xff] }
 0x2ef   :  { %v8875_v57 = vrot.slane %v2517_v56, %v6401_v45  ;;  %v8878_v12 = vrot.slane %v2517_v56, %v6392_v42  ;;  %v8881_v48 = vrot.slane %v2517_v56, %v6427_v51  ;;  %v8884_v18 = vrot.slane %v2517_v56, %v6414_v47 }
 0x2f1   :  { %v8893_v36 = vmul.f32 %v8875_v57, %v3015_v13  ;;  %v8896_v39 = vmul.f32 %v8878_v12, %v3016_v25  ;;  %v8899_v17 = vmul.f32 %v8881_v48, %v3017_v6  ;;  %v8902_v43 = vmul.f32 %v8884_v18, %v3018_v33  ;;  %v3707_v13 = vld [vmem:[%s10498_s7 + $0x8] sm:$0xff] }
 0x2f2   :  { %3739 = vperm.xlu0 %5800, %v3709_v0   ;;  %3205 = vperm.xlu1 %5799, %v3159_v46   ;;  %v8911_v20 = vmul.f32 %v8875_v57, %v3031_v14  ;;  %v8914_v25 = vmul.f32 %v8878_v12, %v3032_v4  ;;  %v8917_v6 = vmul.f32 %v8881_v48, %v3033_v60  ;;  %v3711_v14 = vld [vmem:[%s10498_s7 + $0x28] sm:$0xff] }
 0x2f3   :  { %v8920_v33 = vmul.f32 %v8884_v18, %v3034_v27  ;;  %v8929_v19 = vmul.f32 %v8875_v57, %v3063_v62  ;;  %v8932_v4 = vmul.f32 %v8878_v12, %v3064_v59  ;;  %v8935_v60 = vmul.f32 %v8881_v48, %v3065_v52 }
 0x2f4   :  { %v8938_v27 = vmul.f32 %v8884_v18, %v3066_v11  ;;  %v8941_v58 = vmul.f32 %v8875_v57, %v3055_v21  ;;  %v8944_v3 = vmul.f32 %v8878_v12, %v3056_v55  ;;  %v8947_v56 = vmul.f32 %v8881_v48, %v3057_v44  ;;  %v3167_v55 = vld [vmem:[%s10496_s5 + $0x78] sm:$0xff]  ;;  %v3712_v44 = vld [vmem:[%s10498_s7 + $0x30] sm:$0xff] }
 0x2f5   :  { %v8950_v62 = vmul.f32 %v8884_v18, %v3058_v35  ;;  %v8953_v59 = vmul.f32 %v8875_v57, %v3035_v8  ;;  %v8956_v52 = vmul.f32 %v8878_v12, %v3036_v30  ;;  %v8959_v11 = vmul.f32 %v8881_v48, %v3037_v7 }
 0x2f6   :  { %3230 = vperm.xlu0 %5800, %v3164_v5   ;;  %3535 = vperm.xlu1 %5799, %v3489_v28   ;;  %v8962_v21 = vmul.f32 %v8884_v18, %v3038_v26  ;;  %v8971_v35 = vmul.f32 %v8875_v57, %v3043_v9  ;;  %v8974_v8 = vmul.f32 %v8878_v12, %v3044_v63  ;;  %v11222_v63 = vld [vmem:[#allocation32_spill] sm:$0xff] }
 0x2f7   :  { %11210 = vst [vmem:[#allocation30_spill] sm:$0xff] %v8953_v59  ;;  %11211 = vst [vmem:[#allocation31_spill] sm:$0xff] %v8956_v52  ;;  %v8977_v30 = vmul.f32 %v8881_v48, %v3045_v61  ;;  %v8980_v7 = vmul.f32 %v8884_v18, %v3046_v24  ;;  %v8983_v26 = vmul.f32 %v8875_v57, %v3047_v31  ;;  %v11223_v61 = vld [vmem:[#allocation34_spill] sm:$0xff]  ;;  %v11224_v24 = vld [vmem:[#allocation33_spill] sm:$0xff] }
 0x2f8   :  { %11212 = vst [vmem:[#allocation36_spill] sm:$0xff] %v8959_v11  ;;  %11213 = vst [vmem:[#allocation38_spill] sm:$0xff] %v8962_v21  ;;  %v8986_v53 = vmul.f32 %v8878_v12, %v3048_v23  ;;  %v8989_v2 = vmul.f32 %v8881_v48, %v3049_v41  ;;  %v8992_v9 = vmul.f32 %v8884_v18, %v3050_v34  ;;  %v11225_v31 = vld [vmem:[#allocation35_spill] sm:$0xff]  ;;  %v3718_v23 = vld [vmem:[%s10498_s7 + $0x60] sm:$0xff] }
 0x2f9   :  { %11214 = vst [vmem:[#allocation37_spill] sm:$0xff] %v8971_v35  ;;  %11215 = vst [vmem:[#allocation39_spill] sm:$0xff] %v8974_v8  ;;  %v3039_v0 = vsub.f32 %v11222_v63, %v8773_v38  ;;  %v3040_v46 = vsub.f32 %v11223_v61, %v8782_v37  ;;  %v3041_v40 = vsub.f32 %v11224_v24, %v8785_v16  ;;  %v3720_v28 = vld [vmem:[%s10498_s7 + $0x70] sm:$0xff]  ;;  %v11230_v61 = vld [vmem:[#allocation6_spill] sm:$0xff] }
 0x2fa   :  { %3560 = vperm.xlu0 %5800, %v3494_v50   ;;  %3729 = vperm.xlu1 %5799, %v3707_v13   ;;  %11216 = vst [vmem:[#allocation40_spill] sm:$0xff] %v8977_v30  ;;  %11217 = vst [vmem:[#allocation42_spill] sm:$0xff] %v8980_v7  ;;  %v3042_v15 = vsub.f32 %v11225_v31, %v8788_v54  ;;  %v3165_v50 = vld [vmem:[%s10496_s5 + $0x68] sm:$0xff]  ;;  %v11243_v35 = vld [vmem:[#allocation24_spill] sm:$0xff] }
 0x2fb   :  { %11218 = vst [vmem:[#allocation41_spill] sm:$0xff] %v8983_v26  ;;  %11219 = vst [vmem:[#allocation43_spill] sm:$0xff] %v8986_v53  ;;  %v9009_v41 = vmul.f32 %v8875_v57, %v3039_v0  ;;  %v9012_v10 = vmul.f32 %v8878_v12, %v3040_v46  ;;  %v9015_v34 = vmul.f32 %v8881_v48, %v3041_v40  ;;  %v3495_v13 = vld [vmem:[%s10497_s6 + $0x68] sm:$0xff]  ;;  %v11231_v40 = vld [vmem:[#allocation8_spill] sm:$0xff] }
 0x2fc   :  { %11220 = vst [vmem:[#allocation118_spill] sm:$0xff] %v8989_v2  ;;  %11221 = vst [vmem:[#allocation119_spill] sm:$0xff] %v8992_v9  ;;  %v9018_v5 = vmul.f32 %v8884_v18, %v3042_v15  ;;  %v3003_v46 = vsub.f32 %v11230_v61, %v8773_v38  ;;  %v3004_v31 = vsub.f32 %v11231_v40, %v8782_v37  ;;  %v11232_v15 = vld [vmem:[#allocation7_spill] sm:$0xff] }
 0x2fd   :  { %11226 = vst [vmem:[#allocation32_spill] sm:$0xff] %v9009_v41  ;;  %11227 = vst [vmem:[#allocation34_spill] sm:$0xff] %v9012_v10  ;;  %v11244_v21 = vld [vmem:[#allocation23_spill] sm:$0xff] }
 0x2fe   :  { %3240 = vperm.xlu0 %5800, %v3166_v29   ;;  %3749 = vperm.xlu1 %5799, %v3711_v14   ;;  %11228 = vst [vmem:[#allocation33_spill] sm:$0xff] %v9015_v34  ;;  %11229 = vst [vmem:[#allocation35_spill] sm:$0xff] %v9018_v5  ;;  %v3496_v29 = vld [vmem:[%s10497_s6 + $0x70] sm:$0xff]  ;;  %v3497_v14 = vld [vmem:[%s10497_s6 + $0x78] sm:$0xff]  ;;  %v3088_v10 = vmul.f32 %v8875_v57, %v3003_v46  ;;  %v3089_v26 = vmul.f32 %v8878_v12, %v3004_v31 }
 0x302   :  { %3245 = vperm.xlu0 %5800, %v3167_v55   ;;  %3754 = vperm.xlu1 %5799, %v3712_v44   ;;  %v3719_v55 = vld [vmem:[%s10498_s7 + $0x68] sm:$0xff]  ;;  %v3721_v44 = vld [vmem:[%s10498_s7 + $0x78] sm:$0xff] }
 0x306   :  { %3784 = vperm.xlu0 %5800, %v3718_v23   ;;  %3759 = vperm.xlu1 %5799, %v3713_v22   ;;  %v3005_v23 = vsub.f32 %v11232_v15, %v8785_v16  ;;  %v11233_v22 = vld [vmem:[#allocation9_spill] sm:$0xff]  ;;  %v11238_v15 = vld [vmem:[#allocation10_spill] sm:$0xff] }
 0x307   :  { %v3007_v5 = vsub.f32 %v11238_v15, %v8773_v38 }
 0x308   :  { %v3090_v15 = vmul.f32 %v8881_v48, %v3005_v23 }
 0x30a   :  { %3794 = vperm.xlu0 %5800, %v3720_v28   ;;  %3235 = vperm.xlu1 %5799, %v3165_v50   ;;  %v3006_v28 = vsub.f32 %v11233_v22, %v8788_v54  ;;  %v11239_v22 = vld [vmem:[#allocation12_spill] sm:$0xff] }
 0x30b   :  { %v3008_v34 = vsub.f32 %v11239_v22, %v8782_v37 }
 0x30c   :  { %v3091_v22 = vmul.f32 %v8884_v18, %v3006_v28 }
 0x30e   :  { %3565 = vperm.xlu1 %5799, %v3495_v13   ;;  %v11234_v13 = vld [vmem:[#allocation18_spill] sm:$0xff] }
 0x312   :  { %3570 = vperm.xlu1 %5799, %v3496_v29   ;;  %v3019_v29 = vsub.f32 %v11234_v13, %v8773_v38  ;;  %v11240_v13 = vld [vmem:[#allocation11_spill] sm:$0xff] }
 0x313   :  { %v3009_v41 = vsub.f32 %v11240_v13, %v8785_v16  ;;  %v3024_v13 = vsub.f32 %v11243_v35, %v8782_v37 }
 0x316   :  { %3575 = vperm.xlu1 %5799, %v3497_v14   ;;  %v11235_v14 = vld [vmem:[#allocation20_spill] sm:$0xff] }
 0x31a   :  { %3789 = vperm.xlu1 %5799, %v3719_v55   ;;  %v3020_v55 = vsub.f32 %v11235_v14, %v8782_v37  ;;  %v11241_v14 = vld [vmem:[#allocation13_spill] sm:$0xff] }
 0x31b   :  { %v3010_v9 = vsub.f32 %v11241_v14, %v8788_v54  ;;  %v3025_v14 = vsub.f32 %v11244_v21, %v8785_v16 }
 0x31e   :  { %3799 = vperm.xlu1 %5799, %v3721_v44   ;;  %v11236_v44 = vld [vmem:[#allocation19_spill] sm:$0xff] }
 0x31f   :  { %v3021_v61 = vsub.f32 %v11236_v44, %v8785_v16  ;;  %v11242_v44 = vld [vmem:[#allocation22_spill] sm:$0xff] }
 0x320   :  { %v3023_v2 = vsub.f32 %v11242_v44, %v8773_v38 }
 0x321   :  { %v3106_v35 = vmul.f32 %v8881_v48, %v3021_v61  ;;  %v3092_v61 = vmul.f32 %v8875_v57, %v3007_v5 }
 0x342   :  { %v2809_v63 = vpop.xlane.xlu1 %2808 }
 0x343   :  { %v2810_v0 = vrot.slane %v2809_v63, 4 }
 0x345   :  { %v2811_v24 = vadd.f32 %v2810_v0, %v2809_v63  ;;  %v11237_v63 = vld [vmem:[#allocation21_spill] sm:$0xff] }
 0x346   :  { %v2925_v50 = vpop.xlane.xlu1 %2924  ;;  %v3022_v0 = vsub.f32 %v11237_v63, %v8788_v54 }
 0x347   :  { %v2812_v40 = vrot.slane %v2811_v24, 2  ;;  %v2926_v7 = vrot.slane %v2925_v50, 4 }
 0x348   :  { %v3107_v21 = vmul.f32 %v8884_v18, %v3022_v0  ;;  %v3108_v0 = vmul.f32 %v8875_v57, %v3023_v2  ;;  %v3094_v2 = vmul.f32 %v8881_v48, %v3009_v41 }
 0x349   :  { %v2877_v63 = vpop.xlane.xlu0 %2876  ;;  %v2927_v53 = vadd.f32 %v2926_v7, %v2925_v50  ;;  %v2813_v30 = vadd.f32 %v2812_v40, %v2811_v24  ;;  %v3104_v24 = vmul.f32 %v8875_v57, %v3019_v29  ;;  %v3105_v40 = vmul.f32 %v8878_v12, %v3020_v55 }
 0x34a   :  { %v2878_v8 = vrot.slane %v2877_v63, 4  ;;  %v3171_v46 = vpop.permute.xlu1 %3170 }
 0x34b   :  { %v2928_v11 = vrot.slane %v2927_v53, 2  ;;  %v9075_v52 = vmul.f32 %v3171_v46, %v3088_v10  ;;  %v9077_v44 = vmul.f32 %v3171_v46, %v3089_v26  ;;  %v9079_v7 = vmul.f32 %v3171_v46, %v3090_v15  ;;  %v11249_v15 = vld [vmem:[#allocation25_spill] sm:$0xff] }
 0x34c   :  { %v2879_v31 = vadd.f32 %v2878_v8, %v2877_v63  ;;  %v9081_v23 = vmul.f32 %v3171_v46, %v3091_v22  ;;  %v2814_v28 = vrot.slane %v2813_v30, 1  ;;  %v3026_v8 = vsub.f32 %v11249_v15, %v8788_v54 }
 0x34d   :  { %11245 = vst [vmem:[#allocation6_spill] sm:$0xff] %v9075_v52  ;;  %11246 = vst [vmem:[#allocation8_spill] sm:$0xff] %v9077_v44  ;;  %v2964_v50 = vpop.xlane.xlu0 %2963  ;;  %v2929_v59 = vadd.f32 %v2928_v11, %v2927_v53  ;;  %v11304_v52 = vld [vmem:[#allocation82_spill] sm:$0xff] }
 0x34e   :  { %11247 = vst [vmem:[#allocation7_spill] sm:$0xff] %v9079_v7  ;;  %11248 = vst [vmem:[#allocation9_spill] sm:$0xff] %v9081_v23  ;;  %v2880_v10 = vrot.slane %v2879_v31, 2  ;;  %v2965_v1 = vrot.slane %v2964_v50, 4  ;;  %v3191_v26 = vpop.permute.xlu1 %3190  ;;  %v2815_v44 = vadd.f32 %v2814_v28, %v2813_v30  ;;  %v3109_v30 = vmul.f32 %v8878_v12, %v3024_v13 }
 0x34f   :  { %v9089_v63 = vmul.f32 %v3191_v26, %v3104_v24  ;;  %v9091_v22 = vmul.f32 %v3191_v26, %v3105_v40  ;;  %v9093_v29 = vmul.f32 %v3191_v26, %v3106_v35  ;;  %v9095_v46 = vmul.f32 %v3191_v26, %v3107_v21 }
 0x350   :  { %v2966_v55 = vadd.f32 %v2965_v1, %v2964_v50  ;;  %5381 = vpush %v2815_v44  ;;  %v2881_v11 = vadd.f32 %v2880_v10, %v2879_v31  ;;  %v2930_v53 = vrot.slane %v2929_v59, 1  ;;  %v3110_v28 = vmul.f32 %v8881_v48, %v3025_v14 }
 0x351   :  { %11250 = vst [vmem:[#allocation18_spill] sm:$0xff] %v9089_v63  ;;  %11251 = vst [vmem:[#allocation20_spill] sm:$0xff] %v9091_v22  ;;  %v3111_v24 = vmul.f32 %v8884_v18, %v3026_v8  ;;  %v3093_v35 = vmul.f32 %v8878_v12, %v3008_v34  ;;  %v3095_v13 = vmul.f32 %v8884_v18, %v3010_v9 }
 0x352   :  { %11252 = vst [vmem:[#allocation19_spill] sm:$0xff] %v9093_v29  ;;  %11253 = vst [vmem:[#allocation21_spill] sm:$0xff] %v9095_v46  ;;  %v2967_v40 = vrot.slane %v2966_v55, 2  ;;  %v2882_v15 = vrot.slane %v2881_v11, 1  ;;  %v3196_v21 = vpop.permute.xlu1 %3195  ;;  %v2931_v26 = vadd.f32 %v2930_v53, %v2929_v59  ;;  %v11296_v46 = vld [vmem:[#allocation46_spill] sm:$0xff] }
 0x353   :  { %v9103_v1 = vmul.f32 %v3196_v21, %v3108_v0  ;;  %v9105_v44 = vmul.f32 %v3196_v21, %v3109_v30  ;;  %v9107_v5 = vmul.f32 %v3196_v21, %v3110_v28  ;;  %v9109_v31 = vmul.f32 %v3196_v21, %v3111_v24 }
 0x354   :  { %v2883_v14 = vadd.f32 %v2882_v15, %v2881_v11  ;;  %v2968_v50 = vadd.f32 %v2967_v40, %v2966_v55 }
 0x355   :  { %11254 = vst [vmem:[#allocation10_spill] sm:$0xff] %v9103_v1  ;;  %11255 = vst [vmem:[#allocation12_spill] sm:$0xff] %v9105_v44  ;;  %v3176_v10 = vpop.permute.xlu0 %3175  ;;  %v11295_v1 = vld [vmem:[#allocation44_spill] sm:$0xff] }
 0x356   :  { %11256 = vst [vmem:[#allocation11_spill] sm:$0xff] %v9107_v5  ;;  %11257 = vst [vmem:[#allocation13_spill] sm:$0xff] %v9109_v31  ;;  %v9113_v8 = vmul.f32 %v3176_v10, %v3092_v61  ;;  %v9115_v34 = vmul.f32 %v3176_v10, %v3093_v35  ;;  %v9117_v59 = vmul.f32 %v3176_v10, %v3094_v2  ;;  %v9121_v0 = vpop.permute.xlu1 %3500  ;;  %v2969_v30 = vrot.slane %v2968_v50, 1  ;;  %v11288_v31 = vld [vmem:[#allocation16_spill] sm:$0xff] }
 0x357   :  { %v9119_v53 = vmul.f32 %v3176_v10, %v3095_v13  ;;  %5383 = vpush %v2883_v14  ;;  %11262 = vst [vmem:[#allocation120_spill] sm:$0xff] %v9121_v0  ;;  %v11275_v14 = vld [vmem:[#allocation45_spill] sm:$0xff]  ;;  %v11276_v10 = vld [vmem:[#allocation47_spill] sm:$0xff] }
 0x358   :  { %11258 = vst [vmem:[#allocation22_spill] sm:$0xff] %v9113_v8  ;;  %11259 = vst [vmem:[#allocation24_spill] sm:$0xff] %v9115_v34  ;;  %v2970_v41 = vadd.f32 %v2969_v30, %v2968_v50  ;;  %v3053_v50 = vsub.f32 %v11275_v14, %v8785_v16  ;;  %v3054_v30 = vsub.f32 %v11276_v10, %v8788_v54 }
 0x359   :  { %11260 = vst [vmem:[#allocation23_spill] sm:$0xff] %v9117_v59  ;;  %11261 = vst [vmem:[#allocation25_spill] sm:$0xff] %v9119_v53  ;;  %v9123_v28 = vpop.permute.xlu0 %3510 }
 0x35a   :  { %5385 = vpush %v2931_v26  ;;  %v9125_v9 = vpop.permute.xlu1 %3505  ;;  %v3139_v14 = vmul.f32 %v8884_v18, %v3054_v30 }
 0x35b   :  { %11263 = vst [vmem:[#allocation121_spill] sm:$0xff] %v9125_v9  ;;  %5387 = vpush %v2970_v41  ;;  %v11327_v9 = vld [vmem:[#allocation113_spill] sm:$0xff] }
 0x35d   :  { %v3186_v55 = vpop.permute.xlu0 %3185 }
 0x35e   :  { %v9128_v61 = vmul.f32 %v3186_v55, %v8893_v36  ;;  %v9131_v11 = vmul.f32 %v3186_v55, %v8896_v39  ;;  %v9134_v24 = vmul.f32 %v3186_v55, %v8899_v17  ;;  %v9137_v40 = vmul.f32 %v3186_v55, %v8902_v43  ;;  %v9139_v35 = vpop.permute.xlu1 %3520 }
 0x35f   :  { %11268 = vst [vmem:[#allocation126_spill] sm:$0xff] %v9139_v35 }
 0x360   :  { %11264 = vst [vmem:[#allocation122_spill] sm:$0xff] %v9128_v61  ;;  %11265 = vst [vmem:[#allocation123_spill] sm:$0xff] %v9131_v11 }
 0x361   :  { %11266 = vst [vmem:[#allocation124_spill] sm:$0xff] %v9134_v24  ;;  %11267 = vst [vmem:[#allocation125_spill] sm:$0xff] %v9137_v40  ;;  %v9141_v15 = vpop.permute.xlu0 %3515 }
 0x362   :  { %11269 = vst [vmem:[#allocation127_spill] sm:$0xff] %v9141_v15  ;;  %v9143_v21 = vpop.permute.xlu1 %3525 }
 0x363   :  { %11270 = vst [vmem:[#allocation128_spill] sm:$0xff] %v9143_v21  ;;  %v11305_v21 = vld [vmem:[#allocation84_spill] sm:$0xff] }
 0x365   :  { %v9145_v26 = vpop.permute.xlu0 %3724 }
 0x366   :  { %11271 = vst [vmem:[#allocation129_spill] sm:$0xff] %v9145_v26  ;;  %v9147_v2 = vpop.permute.xlu1 %3180 }
 0x369   :  { %v9149_v36 = vpop.permute.xlu0 %3744 }
 0x36a   :  { %11272 = vst [vmem:[#allocation130_spill] sm:$0xff] %v9149_v36  ;;  %v9151_v39 = vpop.permute.xlu1 %3200 }
 0x36d   :  { %v9153_v13 = vpop.permute.xlu0 %3734 }
 0x36e   :  { %11273 = vst [vmem:[#allocation131_spill] sm:$0xff] %v9153_v13  ;;  %v9155_v17 = vpop.permute.xlu1 %3530 }
 0x371   :  { %v9157_v43 = vpop.permute.xlu0 %3739 }
 0x372   :  { %11274 = vst [vmem:[#allocation132_spill] sm:$0xff] %v9157_v43  ;;  %v3206_v41 = vpop.permute.xlu1 %3205  ;;  %v3138_v43 = vmul.f32 %v8881_v48, %v3053_v50 }
 0x373   :  { %v9164_v55 = vmul.f32 %v3206_v41, %v8911_v20  ;;  %v9167_v40 = vmul.f32 %v3206_v41, %v8914_v25  ;;  %v9170_v24 = vmul.f32 %v3206_v41, %v8917_v6  ;;  %v9173_v11 = vmul.f32 %v3206_v41, %v8920_v33 }
 0x375   :  { %v9177_v61 = vpop.permute.xlu0 %3230 }
 0x376   :  { %v9180_v10 = vmul.f32 %v9177_v61, %v3138_v43  ;;  %v9183_v20 = vmul.f32 %v9177_v61, %v3139_v14  ;;  %v9185_v25 = vpop.permute.xlu1 %3535 }
 0x378   :  { %11277 = vst [vmem:[#allocation45_spill] sm:$0xff] %v9180_v10  ;;  %11278 = vst [vmem:[#allocation47_spill] sm:$0xff] %v9183_v20 }
 0x379   :  { %v9187_v15 = vpop.permute.xlu0 %3560 }
 0x37a   :  { %11279 = vst [vmem:[#allocation133_spill] sm:$0xff] %v9187_v15  ;;  %v9189_v6 = vpop.permute.xlu1 %3729 }
 0x37b   :  { %11280 = vst [vmem:[#allocation134_spill] sm:$0xff] %v9189_v6 }
 0x37d   :  { %v9191_v33 = vpop.permute.xlu0 %3240 }
 0x37e   :  { %v9193_v41 = vpop.permute.xlu1 %3749 }
 0x37f   :  { %11281 = vst [vmem:[#allocation135_spill] sm:$0xff] %v9193_v41  ;;  %v11287_v41 = vld [vmem:[#allocation14_spill] sm:$0xff] }
 0x380   :  { %v3011_v10 = vsub.f32 %v11287_v41, %v8773_v38  ;;  %v11294_v41 = vld [vmem:[#allocation29_spill] sm:$0xff] }
 0x381   :  { %v3246_v50 = vpop.permute.xlu0 %3245  ;;  %s5382_s0 = spop %5381 }
 0x382   :  { %v9196_v30 = vmul.f32 %v3246_v50, %v8929_v19  ;;  %v9199_v43 = vmul.f32 %v3246_v50, %v8932_v4  ;;  %v9202_v14 = vmul.f32 %v3246_v50, %v8935_v60  ;;  %v9205_v36 = vmul.f32 %v3246_v50, %v8938_v27  ;;  %v9207_v26 = vpop.permute.xlu1 %3754  ;;  %v11292_v50 = vld [vmem:[#allocation28_spill] sm:$0xff] }
 0x383   :  { %11286 = vst [vmem:[#allocation140_spill] sm:$0xff] %v9207_v26  ;;  %v2817_v6 = vstv %s5382_s0  ;;  %v3012_v19 = vsub.f32 %v11288_v31, %v8782_v37  ;;  %v3030_v31 = vsub.f32 %v11294_v41, %v8788_v54  ;;  %v3096_v41 = vmul.f32 %v8875_v57, %v3011_v10 }
 0x384   :  { %11282 = vst [vmem:[#allocation136_spill] sm:$0xff] %v9196_v30  ;;  %11283 = vst [vmem:[#allocation137_spill] sm:$0xff] %v9199_v43  ;;  %v2886_v20 = vmul.f32 3.0517578e-05, %v2817_v6  ;;  %v11289_v30 = vld [vmem:[#allocation15_spill] sm:$0xff]  ;;  %v11290_v43 = vld [vmem:[#allocation17_spill] sm:$0xff] }
 0x385   :  { %11284 = vst [vmem:[#allocation138_spill] sm:$0xff] %v9202_v14  ;;  %11285 = vst [vmem:[#allocation139_spill] sm:$0xff] %v9205_v36  ;;  %v3013_v4 = vsub.f32 %v11289_v30, %v8785_v16  ;;  %v3014_v60 = vsub.f32 %v11290_v43, %v8788_v54  ;;  %v11291_v14 = vld [vmem:[#allocation26_spill] sm:$0xff]  ;;  %v3028_v36 = vsub.f32 %v11292_v50, %v8782_v37  ;;  %v11293_v6 = vld [vmem:[#allocation27_spill] sm:$0xff] }
 0x386   :  { %v3027_v27 = vsub.f32 %v11291_v14, %v8773_v38  ;;  %v3029_v5 = vsub.f32 %v11293_v6, %v8785_v16  ;;  %v9223_v44 = vpop.permute.xlu1 %3759  ;;  %v3051_v30 = vsub.f32 %v11295_v1, %v8773_v38  ;;  %v3052_v43 = vsub.f32 %v11296_v46, %v8782_v37  ;;  %v11297_v14 = vld [vmem:[#allocation48_spill] sm:$0xff]  ;;  %v11298_v50 = vld [vmem:[#allocation50_spill] sm:$0xff]  ;;  %v11299_v6 = vld [vmem:[#allocation49_spill] sm:$0xff] }
 0x387   :  { %v2888_v29 = vmul.f32 %v2886_v20, %v2886_v20  ;;  %v3059_v22 = vsub.f32 %v11297_v14, %v8773_v38  ;;  %v3060_v63 = vsub.f32 %v11298_v50, %v8782_v37  ;;  %v3061_v53 = vsub.f32 %v11299_v6, %v8785_v16  ;;  %v11300_v1 = vld [vmem:[#allocation51_spill] sm:$0xff] }
 0x388   :  { %s5384_s24 = spop %5383  ;;  %v3062_v34 = vsub.f32 %v11300_v1, %v8788_v54  ;;  %v3097_v23 = vmul.f32 %v8878_v12, %v3012_v19  ;;  %v3098_v7 = vmul.f32 %v8881_v48, %v3013_v4  ;;  %v3099_v38 = vmul.f32 %v8884_v18, %v3014_v60 }
 0x389   :  { %v2885_v59 = vstv %s5384_s24  ;;  %v3112_v50 = vmul.f32 %v8875_v57, %v3027_v27  ;;  %v3113_v16 = vmul.f32 %v8878_v12, %v3028_v36  ;;  %v2893_v10 = vsel %vm2282_vm3, %v2886_v20, 0.0 }
 0x38a   :  { %v2887_v8 = vmul.f32 3.0517578e-05, %v2885_v59  ;;  %v3236_v37 = vpop.permute.xlu1 %3235  ;;  %v3114_v54 = vmul.f32 %v8881_v48, %v3029_v5  ;;  %v3136_v5 = vmul.f32 %v8875_v57, %v3051_v30  ;;  %v3144_v15 = vmul.f32 %v8875_v57, %v3059_v22 }
 0x38b   :  { %s5386_s25 = spop %5385  ;;  %v9251_v4 = vmul.f32 %v3236_v37, %v8950_v62  ;;  %v3145_v13 = vmul.f32 %v8878_v12, %v3060_v63  ;;  %v3147_v35 = vmul.f32 %v8884_v18, %v3062_v34  ;;  %v9289_v30 = vmul.f32 %v9147_v2, %v3096_v41  ;;  %v11326_v63 = vld [vmem:[#allocation111_spill] sm:$0xff] }
 0x38c   :  { %v2933_v46 = vstv %s5386_s25  ;;  %v2889_v6 = vsub.f32 %v2887_v8, %v2888_v29  ;;  %s5388_s26 = spop %5387  ;;  %v3115_v29 = vmul.f32 %v8884_v18, %v3030_v31  ;;  %v3146_v31 = vmul.f32 %v8881_v48, %v3061_v53  ;;  %v11350_v41 = vld [vmem:[#allocation55_spill] sm:$0xff]  ;;  %v11351_v53 = vld [vmem:[#allocation57_spill] sm:$0xff] }
 0x38d   :  { %v2973_v14 = vmul.f32 3.0517578e-05, %v2933_v46  ;;  %11301 = vst [vmem:[#allocation14_spill] sm:$0xff] %v9251_v4  ;;  %v2972_v27 = vstv %s5388_s26  ;;  %v11309_v4 = vld [vmem:[#allocation108_spill] sm:$0xff]  ;;  %v9298_v26 = vmul.f32 %v9147_v2, %v3099_v38  ;;  %v9301_v57 = vmul.f32 %v9151_v39, %v3112_v50 }
 0x38e   :  { %v2890_v60 = vmax.f32 %v2889_v6, 0.0  ;;  %v2974_v46 = vmul.f32 3.0517578e-05, %v2972_v27  ;;  %v11303_v6 = vld [vmem:[#allocation85_spill] sm:$0xff]  ;;  %v9307_v48 = vmul.f32 %v9151_v39, %v3114_v54  ;;  %v9314_v22 = vmul.f32 %v9151_v39, %v3115_v29 }
 0x38f   :  { %v2975_v59 = vmul.f32 %v2973_v14, %v2973_v14  ;;  %v2980_v19 = vsel %vm2430_vm6, %v2973_v14, %v2893_v10  ;;  %v11302_v14 = vld [vmem:[#allocation83_spill] sm:$0xff]  ;;  %v11308_v10 = vld [vmem:[#allocation106_spill] sm:$0xff]  ;;  %v9317_v34 = vmul.f32 %v9177_v61, %v3136_v5  ;;  %v9330_v54 = vmul.f32 %v9191_v33, %v3145_v13  ;;  %v11349_v13 = vld [vmem:[#allocation112_spill] sm:$0xff] }
 0x390   :  { %v9254_v1 = vrot.slane %v2980_v19, %v6401_v45  ;;  %v9257_v36 = vrot.slane %v2980_v19, %v6392_v42  ;;  %v9260_v20 = vrot.slane %v2980_v19, %v6427_v51  ;;  %v9265_v8 = vrot.slane %v2980_v19, %v6414_v47  ;;  %v11307_v19 = vld [vmem:[#allocation109_spill] sm:$0xff] }
 0x391   :  { %v2891_v62 = vadd.f32 1e-05, %v2890_v60  ;;  %v3137_v60 = vmul.f32 %v8878_v12, %v3052_v43  ;;  %v2976_v27 = vsub.f32 %v2974_v46, %v2975_v59  ;;  %v9292_v43 = vmul.f32 %v9147_v2, %v3097_v23  ;;  %v11310_v23 = vld [vmem:[#allocation115_spill] sm:$0xff]  ;;  %11311 = vst [vmem:[#allocation16_spill] sm:$0xff] %v9317_v34 }
 0x392   :  { %v9295_v59 = vmul.f32 %v9147_v2, %v3098_v7  ;;  %v9304_v12 = vmul.f32 %v9151_v39, %v3113_v16  ;;  %v9327_v16 = vmul.f32 %v9191_v33, %v3144_v15  ;;  %v9333_v39 = vmul.f32 %v9191_v33, %v3146_v31  ;;  %v11318_v15 = vld [vmem:[#allocation63_spill] sm:$0xff]  ;;  %v11320_v31 = vld [vmem:[#allocation62_spill] sm:$0xff]  ;;  %v11325_v2 = vld [vmem:[#allocation80_spill] sm:$0xff] }
 0x393   :  { %v2977_v46 = vmax.f32 %v2976_v27, 0.0  ;;  %5805 = vrsqrt.f32 %v2891_v62  ;;  %v9324_v50 = vmul.f32 %v9177_v61, %v3137_v60  ;;  %v9336_v29 = vmul.f32 %v9191_v33, %v3147_v35  ;;  %v11319_v60 = vld [vmem:[#allocation65_spill] sm:$0xff]  ;;  %v11321_v35 = vld [vmem:[#allocation64_spill] sm:$0xff] }
 0x394   :  { %v9339_v5 = vmul.f32 %v3236_v37, %v8941_v58  ;;  %v9342_v62 = vmul.f32 %v3236_v37, %v8944_v3  ;;  %v9345_v61 = vmul.f32 %v3236_v37, %v8947_v56  ;;  %v11322_v58 = vld [vmem:[#allocation79_spill] sm:$0xff]  ;;  %v11323_v3 = vld [vmem:[#allocation81_spill] sm:$0xff]  ;;  %v11324_v56 = vld [vmem:[#allocation78_spill] sm:$0xff]  ;;  %v11361_v0 = vsub.f32 %v11304_v52, %v9260_v20 }
 0x395   :  { %v2978_v18 = vadd.f32 1e-05, %v2977_v46  ;;  %11314 = vst [vmem:[#allocation15_spill] sm:$0xff] %v9324_v50  ;;  %v11362_v32 = vsub.f32 %v11305_v21, %v9265_v8  ;;  %v11372_v7 = vsub.f32 %v11319_v60, %v9257_v36  ;;  %v11375_v60 = vsub.f32 %v11321_v35, %v9265_v8 }
 0x396   :  { %11315 = vst [vmem:[#allocation17_spill] sm:$0xff] %v9339_v5  ;;  %11316 = vst [vmem:[#allocation26_spill] sm:$0xff] %v9342_v62  ;;  %v11352_v62 = vld [vmem:[#allocation54_spill] sm:$0xff]  ;;  %v11367_v5 = vld [vmem:[#allocation77_spill] sm:$0xff] }
 0x397   :  { %5807 = vrsqrt.f32 %v2978_v18  ;;  %11317 = vst [vmem:[#allocation28_spill] sm:$0xff] %v9345_v61  ;;  %v11329_v18 = vld [vmem:[#allocation110_spill] sm:$0xff] }
 0x39d   :  { %v5806_v34 = vpop.eup %5805 }
 0x39e   :  { %v2894_v27 = vsel %vm2282_vm3, %v5806_v34, 0.0 }
 0x3a1   :  { %v5808_v49 = vpop.eup %5807 }
 0x3a2   :  { %v2981_v61 = vsel %vm2430_vm6, %v5808_v49, %v2894_v27  ;;  %v11373_v27 = vsub.f32 %v11320_v31, %v9260_v20  ;;  %v11376_v31 = vsub.f32 %v11322_v58, %v9254_v1 }
 0x3a3   :  { %v9426_v50 = vrot.slane %v2981_v61, %v6401_v45  ;;  %v9429_v38 = vrot.slane %v2981_v61, %v6392_v42  ;;  %v9432_v37 = vrot.slane %v2981_v61, %v6427_v51  ;;  %v9435_v49 = vrot.slane %v2981_v61, %v6414_v47  ;;  %v11368_v45 = vld [vmem:[#allocation74_spill] sm:$0xff] }
 0x3a4   :  { %v11359_v42 = vsub.f32 %v11302_v14, %v9254_v1  ;;  %v11360_v61 = vsub.f32 %v11303_v6, %v9257_v36  ;;  %v11370_v6 = vld [vmem:[#allocation103_spill] sm:$0xff] }
 0x3a5   :  { %v3448_v33 = vmul.f32 %v9432_v37, %v11361_v0  ;;  %v3449_v34 = vmul.f32 %v9435_v49, %v11362_v32  ;;  %v3427_v46 = vmul.f32 %v9429_v38, %v11372_v7  ;;  %v3429_v7 = vmul.f32 %v9435_v49, %v11375_v60 }
 0x3a6   :  { %v3446_v51 = vmul.f32 %v9426_v50, %v11359_v42  ;;  %v3447_v47 = vmul.f32 %v9429_v38, %v11360_v61  ;;  %v11366_v61 = vld [vmem:[#allocation75_spill] sm:$0xff]  ;;  %v11369_v42 = vld [vmem:[#allocation76_spill] sm:$0xff]  ;;  %v11380_v60 = vsub.f32 %v11326_v63, %v9254_v1 }
 0x3a7   :  { %v3608_v21 = vmul.f32 %v9185_v25, %v3448_v33  ;;  %v3609_v32 = vmul.f32 %v9185_v25, %v3449_v34  ;;  %v11371_v34 = vsub.f32 %v11318_v15, %v9254_v1 }
 0x3a8   :  { %v3606_v52 = vmul.f32 %v9185_v25, %v3446_v51  ;;  %v3607_v0 = vmul.f32 %v9185_v25, %v3447_v47 }
 0x3a9   :  { %v3672_v33 = vadd.f32 %v3608_v21, %v9170_v24  ;;  %v3673_v25 = vadd.f32 %v3609_v32, %v9173_v11  ;;  %v3426_v14 = vmul.f32 %v9426_v50, %v11371_v34  ;;  %v11377_v21 = vsub.f32 %v11323_v3, %v9257_v36 }
 0x3aa   :  { %v3670_v51 = vadd.f32 %v3606_v52, %v9164_v55  ;;  %v3671_v47 = vadd.f32 %v3607_v0, %v9167_v40  ;;  %v3428_v55 = vmul.f32 %v9432_v37, %v11373_v27  ;;  %v11374_v40 = vld [vmem:[#allocation105_spill] sm:$0xff]  ;;  %v3442_v27 = vmul.f32 %v9426_v50, %v11376_v31 }
 0x3ab   :  { %v3382_v24 = vsub.f32 %v11374_v40, %v9257_v36  ;;  %v3832_v15 = vadd.f32 %v9223_v44, %v3672_v33  ;;  %v3833_v0 = vadd.f32 %v9223_v44, %v3673_v25  ;;  %v3443_v32 = vmul.f32 %v9429_v38, %v11377_v21 }
 0x3ac   :  { %v3830_v11 = vadd.f32 %v9223_v44, %v3670_v51  ;;  %v3831_v52 = vadd.f32 %v9223_v44, %v3671_v47  ;;  %v11378_v51 = vsub.f32 %v11324_v56, %v9260_v20  ;;  %v11379_v25 = vsub.f32 %v11325_v2, %v9265_v8  ;;  %v9535_v2 = vpop.permute.xlu1 %3565 }
 0x3ad   :  { %v5035_v35 = vmul.f32 -1.442695, %v3832_v15  ;;  %v5036_v34 = vmul.f32 -1.442695, %v3833_v0  ;;  %v3474_v3 = vmul.f32 %v9426_v50, %v11380_v60  ;;  %v11381_v31 = vsub.f32 %v11327_v9, %v9257_v36 }
 0x3ae   :  { %v3444_v44 = vmul.f32 %v9432_v37, %v11378_v51  ;;  %v5033_v47 = vmul.f32 -1.442695, %v3830_v11  ;;  %v5034_v33 = vmul.f32 -1.442695, %v3831_v52  ;;  %v3445_v58 = vmul.f32 %v9435_v49, %v11379_v25 }
 0x3af   :  { %v3475_v56 = vmul.f32 %v9429_v38, %v11381_v31  ;;  %v11382_v11 = vsub.f32 %v11329_v18, %v9260_v20  ;;  %v3586_v15 = vmul.f32 %v9123_v28, %v3426_v14  ;;  %v3587_v0 = vmul.f32 %v9123_v28, %v3427_v46 }
 0x3b0   :  { %5809 = vpow2.f32 %v5033_v47  ;;  %v3588_v63 = vmul.f32 %v9123_v28, %v3428_v55  ;;  %v3589_v21 = vmul.f32 %v9123_v28, %v3429_v7  ;;  %v3602_v9 = vmul.f32 %v9155_v17, %v3442_v27  ;;  %v3571_v60 = vpop.permute.xlu1 %3570 }
 0x3b1   :  { %v3476_v52 = vmul.f32 %v9432_v37, %v11382_v11  ;;  %5811 = vpow2.f32 %v5034_v33  ;;  %v3603_v51 = vmul.f32 %v9155_v17, %v3443_v32  ;;  %v3604_v18 = vmul.f32 %v9155_v17, %v3444_v44  ;;  %v11383_v44 = vld [vmem:[#allocation131_spill] sm:$0xff] }
 0x3b2   :  { %5813 = vpow2.f32 %v5035_v35  ;;  %v3605_v47 = vmul.f32 %v9155_v17, %v3445_v58  ;;  %v3650_v25 = vadd.f32 %v3586_v15, %v9289_v30  ;;  %v3651_v14 = vadd.f32 %v3587_v0, %v9292_v43  ;;  %v11384_v35 = vld [vmem:[#allocation107_spill] sm:$0xff] }
 0x3b3   :  { %5815 = vpow2.f32 %v5036_v34  ;;  %v3652_v46 = vadd.f32 %v3588_v63, %v9295_v59  ;;  %v3653_v55 = vadd.f32 %v3589_v21, %v9298_v26  ;;  %v3666_v28 = vadd.f32 %v3602_v9, %v9301_v57  ;;  %v9573_v63 = vpop.permute.xlu0 %3784 }
 0x3b4   :  { %v3667_v7 = vadd.f32 %v3603_v51, %v9304_v12  ;;  %v3668_v27 = vadd.f32 %v3604_v18, %v9307_v48  ;;  %v3669_v32 = vadd.f32 %v3605_v47, %v9314_v22  ;;  %v3810_v33 = vadd.f32 %v11383_v44, %v3650_v25 }
 0x3b5   :  { %v3811_v17 = vadd.f32 %v11383_v44, %v3651_v14  ;;  %v3812_v30 = vadd.f32 %v11383_v44, %v3652_v46  ;;  %v3813_v43 = vadd.f32 %v11383_v44, %v3653_v55  ;;  %v11385_v59 = vsub.f32 %v11384_v35, %v9254_v1 }
 0x3b6   :  { %v11386_v57 = vsub.f32 %v11307_v19, %v9257_v36  ;;  %v11387_v48 = vsub.f32 %v11308_v10, %v9260_v20  ;;  %v11388_v58 = vsub.f32 %v11349_v13, %v9265_v8  ;;  %v5013_v31 = vmul.f32 -1.442695, %v3810_v33  ;;  %v11390_v10 = vld [vmem:[#allocation140_spill] sm:$0xff] }
 0x3b7   :  { %v3470_v26 = vmul.f32 %v9426_v50, %v11385_v59  ;;  %v5014_v11 = vmul.f32 -1.442695, %v3811_v17  ;;  %v5015_v15 = vmul.f32 -1.442695, %v3812_v30  ;;  %v3634_v0 = vmul.f32 %v3571_v60, %v3474_v3 }
 0x3b8   :  { %v3471_v12 = vmul.f32 %v9429_v38, %v11386_v57  ;;  %v3472_v22 = vmul.f32 %v9432_v37, %v11387_v48  ;;  %v3477_v34 = vmul.f32 %v9435_v49, %v11388_v58  ;;  %v11389_v19 = vsub.f32 %v11309_v4, %v9265_v8 }
 0x3b9   :  { %v3826_v9 = vadd.f32 %v11390_v10, %v3666_v28  ;;  %v5016_v51 = vmul.f32 -1.442695, %v3813_v43  ;;  %v3635_v18 = vmul.f32 %v3571_v60, %v3475_v56  ;;  %v3827_v13 = vadd.f32 %v11390_v10, %v3667_v7 }
 0x3ba   :  { %v3473_v21 = vmul.f32 %v9435_v49, %v11389_v19  ;;  %v3828_v47 = vadd.f32 %v11390_v10, %v3668_v27  ;;  %5817 = vpow2.f32 %v5013_v31  ;;  %v3636_v25 = vmul.f32 %v3571_v60, %v3476_v52  ;;  %v5810_v14 = vpop.eup %5809  ;;  %v11391_v52 = vld [vmem:[#allocation102_spill] sm:$0xff] }
 0x3bb   :  { %5819 = vpow2.f32 %v5014_v11  ;;  %v3637_v3 = vmul.f32 %v3571_v60, %v3477_v34  ;;  %v3698_v46 = vadd.f32 %v3634_v0, %v9327_v16  ;;  %v3699_v55 = vadd.f32 %v3635_v18, %v9330_v54  ;;  %v5812_v4 = vpop.eup %5811 }
 0x3bc   :  { %v4054_v44 = vadd.f32 1.0, %v5810_v14  ;;  %v3829_v33 = vadd.f32 %v11390_v10, %v3669_v32  ;;  %5821 = vpow2.f32 %v5015_v15  ;;  %v3700_v56 = vadd.f32 %v3636_v25, %v9333_v39  ;;  %v5814_v28 = vpop.eup %5813  ;;  %v11392_v32 = vld [vmem:[#allocation104_spill] sm:$0xff]  ;;  %v3795_v39 = vpop.permute.xlu0 %3794 }
 0x3bd   :  { %v4055_v7 = vadd.f32 1.0, %v5812_v4  ;;  %5823 = vpow2.f32 %v5016_v51  ;;  %v3701_v27 = vadd.f32 %v3637_v3, %v9336_v29  ;;  %v3383_v17 = vsub.f32 %v11391_v52, %v9260_v20  ;;  %v5816_v30 = vpop.eup %5815 }
 0x3be   :  { %v9590_v16 = vmul.f32 %v9535_v2, %v3470_v26  ;;  %v9593_v54 = vmul.f32 %v9535_v2, %v3471_v12  ;;  %v5029_v43 = vmul.f32 -1.442695, %v3826_v9  ;;  %v3384_v35 = vsub.f32 %v11392_v32, %v9265_v8  ;;  %v11397_v9 = vld [vmem:[#allocation56_spill] sm:$0xff]  ;;  %v11409_v32 = vld [vmem:[#allocation73_spill] sm:$0xff] }
 0x3bf   :  { %v9598_v59 = vmul.f32 %v9535_v2, %v3472_v22  ;;  %v9601_v29 = vmul.f32 %v9535_v2, %v3473_v21  ;;  %v5030_v57 = vmul.f32 -1.442695, %v3827_v13  ;;  %v5031_v48 = vmul.f32 -1.442695, %v3828_v47 }
 0x3c0   :  { %5825 = vrcp.f32 %v4054_v44  ;;  %v5032_v58 = vmul.f32 -1.442695, %v3829_v33  ;;  %v3858_v26 = vadd.f32 %v3795_v39, %v3698_v46  ;;  %v11393_v12 = vsub.f32 %v11310_v23, %v9254_v1  ;;  %v11405_v33 = vld [vmem:[#allocation60_spill] sm:$0xff] }
 0x3c1   :  { %v9609_v60 = vadd.f32 1.0, %v5814_v28  ;;  %5827 = vrcp.f32 %v4055_v7  ;;  %v3859_v31 = vadd.f32 %v3795_v39, %v3699_v55  ;;  %v3860_v22 = vadd.f32 %v3795_v39, %v3700_v56  ;;  %v11407_v7 = vld [vmem:[#allocation71_spill] sm:$0xff] }
 0x3c2   :  { %v9607_v34 = vmul.f32 %v9426_v50, %v11393_v12  ;;  %v9611_v11 = vadd.f32 1.0, %v5816_v30  ;;  %5829 = vpow2.f32 %v5029_v43  ;;  %v3861_v2 = vadd.f32 %v3795_v39, %v3701_v27 }
 0x3c3   :  { %v11394_v15 = vsub.f32 %v11350_v41, %v9254_v1  ;;  %5831 = vpow2.f32 %v5030_v57  ;;  %v11395_v23 = vsub.f32 %v11351_v53, %v9257_v36  ;;  %v11396_v21 = vsub.f32 %v11352_v62, %v9260_v20  ;;  %v11399_v41 = vld [vmem:[#allocation59_spill] sm:$0xff]  ;;  %v11401_v53 = vld [vmem:[#allocation61_spill] sm:$0xff]  ;;  %v11403_v62 = vld [vmem:[#allocation58_spill] sm:$0xff] }
 0x3c4   :  { %v11398_v51 = vsub.f32 %v11397_v9, %v9265_v8  ;;  %v5818_v13 = vpop.eup %5817  ;;  %5833 = vpow2.f32 %v5031_v48  ;;  %v11400_v47 = vsub.f32 %v11399_v41, %v9254_v1  ;;  %v11402_v14 = vsub.f32 %v11401_v53, %v9257_v36  ;;  %v11411_v48 = vld [vmem:[#allocation70_spill] sm:$0xff] }
 0x3c5   :  { %v3418_v0 = vmul.f32 %v9426_v50, %v11394_v15  ;;  %v3419_v19 = vmul.f32 %v9429_v38, %v11395_v23  ;;  %v3420_v10 = vmul.f32 %v9432_v37, %v11396_v21  ;;  %v11404_v46 = vsub.f32 %v11403_v62, %v9260_v20  ;;  %v5820_v4 = vpop.eup %5819  ;;  %v11413_v21 = vld [vmem:[#allocation72_spill] sm:$0xff] }
 0x3c6   :  { %v3421_v18 = vmul.f32 %v9435_v49, %v11398_v51  ;;  %v3422_v25 = vmul.f32 %v9426_v50, %v11400_v47  ;;  %v3423_v3 = vmul.f32 %v9429_v38, %v11402_v14  ;;  %v3938_v44 = vadd.f32 1.0, %v5818_v13  ;;  %v5822_v30 = vpop.eup %5821 }
 0x3c7   :  { %v3424_v55 = vmul.f32 %v9432_v37, %v11404_v46  ;;  %5835 = vpow2.f32 %v5032_v58  ;;  %v11406_v56 = vsub.f32 %v11405_v33, %v9265_v8  ;;  %v11408_v27 = vsub.f32 %v11407_v7, %v9254_v1  ;;  %v5824_v15 = vpop.eup %5823 }
 0x3c8   :  { %v3939_v43 = vadd.f32 1.0, %v5820_v4  ;;  %5837 = vtanh.f32 %v3858_v26  ;;  %v11410_v39 = vsub.f32 %v11409_v32, %v9257_v36  ;;  %v11412_v58 = vsub.f32 %v11411_v48, %v9260_v20 }
 0x3c9   :  { %v3425_v28 = vmul.f32 %v9435_v49, %v11406_v56  ;;  %v3434_v52 = vmul.f32 %v9426_v50, %v11408_v27  ;;  %v3940_v23 = vadd.f32 1.0, %v5822_v30  ;;  %5839 = vrcp.f32 %v3938_v44 }
 0x3ca   :  { %v3435_v57 = vmul.f32 %v9429_v38, %v11410_v39  ;;  %v3436_v12 = vmul.f32 %v9432_v37, %v11412_v58  ;;  %v11414_v9 = vsub.f32 %v11413_v21, %v9265_v8  ;;  %v11415_v26 = vsub.f32 %v11366_v61, %v9254_v1  ;;  %v9685_v33 = vpop.eup %5825 }
 0x3cb   :  { %v3941_v41 = vadd.f32 1.0, %v5824_v15  ;;  %5841 = vrcp.f32 %v3939_v43  ;;  %v11416_v47 = vsub.f32 %v11367_v5, %v9257_v36  ;;  %v11417_v14 = vsub.f32 %v11368_v45, %v9260_v20  ;;  %11420 = vst [vmem:[#allocation27_spill] sm:$0xff] %v9685_v33  ;;  %v9690_v27 = vpop.eup %5827 }
 0x3cc   :  { %v3437_v51 = vmul.f32 %v9435_v49, %v11414_v9  ;;  %v3438_v13 = vmul.f32 %v9426_v50, %v11415_v26  ;;  %5843 = vrcp.f32 %v3940_v23  ;;  %v11418_v46 = vsub.f32 %v11369_v42, %v9265_v8  ;;  %v11421_v42 = vld [vmem:[#allocation120_spill] sm:$0xff]  ;;  %11422 = vst [vmem:[#allocation29_spill] sm:$0xff] %v9690_v27  ;;  %v5830_v43 = vpop.eup %5829 }
 0x3cd   :  { %v3439_v53 = vmul.f32 %v9429_v38, %v11416_v47  ;;  %v3440_v62 = vmul.f32 %v9432_v37, %v11417_v14  ;;  %v11419_v4 = vsub.f32 %v11370_v6, %v9254_v1  ;;  %v3467_v5 = vmul.f32 %v9429_v38, %v3382_v24  ;;  %v11423_v24 = vld [vmem:[#allocation121_spill] sm:$0xff] }
 0x3ce   :  { %v3441_v61 = vmul.f32 %v9435_v49, %v11418_v46  ;;  %5845 = vrcp.f32 %v3941_v41  ;;  %v3468_v45 = vmul.f32 %v9432_v37, %v3383_v17  ;;  %v3469_v56 = vmul.f32 %v9435_v49, %v3384_v35  ;;  %v5832_v35 = vpop.eup %5831  ;;  %v11427_v41 = vld [vmem:[#allocation6_spill] sm:$0xff]  ;;  %v11428_v46 = vld [vmem:[#allocation8_spill] sm:$0xff] }
 0x3cf   :  { %v3466_v44 = vmul.f32 %v9426_v50, %v11419_v4  ;;  %v3578_v7 = vmul.f32 %v11421_v42, %v3418_v0  ;;  %5847 = vtanh.f32 %v3859_v31  ;;  %v3579_v6 = vmul.f32 %v11421_v42, %v3419_v19  ;;  %v11424_v31 = vld [vmem:[#allocation126_spill] sm:$0xff]  ;;  %v5834_v19 = vpop.eup %5833  ;;  %v11429_v4 = vld [vmem:[#allocation7_spill] sm:$0xff] }
 0x3d0   :  { %v3580_v30 = vmul.f32 %v11421_v42, %v3420_v10  ;;  %v3581_v40 = vmul.f32 %v11421_v42, %v3421_v18  ;;  %5849 = vtanh.f32 %v3860_v22  ;;  %v3582_v32 = vmul.f32 %v11423_v24, %v3422_v25 }
 0x3d1   :  { %v3583_v39 = vmul.f32 %v11423_v24, %v3423_v3  ;;  %v3584_v17 = vmul.f32 %v11423_v24, %v3424_v55  ;;  %v4050_v48 = vadd.f32 1.0, %v5830_v43  ;;  %5851 = vtanh.f32 %v3861_v2  ;;  %v5836_v25 = vpop.eup %5835  ;;  %v11425_v3 = vld [vmem:[#allocation128_spill] sm:$0xff] }
 0x3d2   :  { %v3585_v0 = vmul.f32 %v11423_v24, %v3425_v28  ;;  %v3594_v58 = vmul.f32 %v11424_v31, %v3434_v52  ;;  %v4051_v15 = vadd.f32 1.0, %v5832_v35  ;;  %v3595_v10 = vmul.f32 %v11424_v31, %v3435_v57  ;;  %v5838_v2 = vpop.eup %5837  ;;  %v11426_v57 = vld [vmem:[#allocation133_spill] sm:$0xff] }
 0x3d3   :  { %v3596_v18 = vmul.f32 %v11424_v31, %v3436_v12  ;;  %v3597_v22 = vmul.f32 %v11424_v31, %v3437_v51  ;;  %v4052_v23 = vadd.f32 1.0, %v5834_v19  ;;  %5853 = vrcp.f32 %v4050_v48  ;;  %v5840_v26 = vpop.eup %5839  ;;  %v11433_v19 = vld [vmem:[#allocation117_spill] sm:$0xff] }
 0x3d4   :  { %v3598_v55 = vmul.f32 %v11425_v3, %v3438_v13  ;;  %v3599_v21 = vmul.f32 %v11425_v3, %v3439_v53  ;;  %v4053_v9 = vadd.f32 1.0, %v5836_v25  ;;  %5855 = vrcp.f32 %v4051_v15  ;;  %v3874_v13 = vld [vmem:[%s10499_s2 + $0x40] sm:$0xff] }
 0x3d5   :  { %v3600_v28 = vmul.f32 %v11425_v3, %v3440_v62  ;;  %v3601_v52 = vmul.f32 %v11425_v3, %v3441_v61  ;;  %5857 = vrcp.f32 %v4052_v23  ;;  %v3626_v12 = vmul.f32 %v11426_v57, %v3466_v44  ;;  %v5842_v14 = vpop.eup %5841  ;;  %v11430_v44 = vld [vmem:[#allocation9_spill] sm:$0xff]  ;;  %v11437_v3 = vld [vmem:[#allocation18_spill] sm:$0xff] }
 0x3d6   :  { %v3627_v51 = vmul.f32 %v11426_v57, %v3467_v5  ;;  %v3642_v47 = vadd.f32 %v3578_v7, %v11427_v41  ;;  %5859 = vrcp.f32 %v4053_v9  ;;  %v3628_v53 = vmul.f32 %v11426_v57, %v3468_v45  ;;  %v5844_v42 = vpop.eup %5843  ;;  %v11431_v5 = vld [vmem:[#allocation22_spill] sm:$0xff]  ;;  %v11432_v7 = vld [vmem:[#allocation24_spill] sm:$0xff]  ;;  %v11435_v45 = vld [vmem:[#allocation23_spill] sm:$0xff] }
 0x3d7   :  { %v3643_v62 = vadd.f32 %v3579_v6, %v11428_v46  ;;  %v3644_v61 = vadd.f32 %v3580_v30, %v11429_v4  ;;  %v3629_v43 = vmul.f32 %v11426_v57, %v3469_v56  ;;  %v3645_v24 = vadd.f32 %v3581_v40, %v11430_v44  ;;  %v11436_v23 = vld [vmem:[#allocation25_spill] sm:$0xff]  ;;  %v11438_v57 = vld [vmem:[#allocation20_spill] sm:$0xff] }
 0x3d8   :  { %v3646_v35 = vadd.f32 %v3582_v32, %v11431_v5  ;;  %v3647_v48 = vadd.f32 %v3583_v39, %v11432_v7  ;;  %v5846_v31 = vpop.eup %5845  ;;  %v11434_v15 = vsub.f32 %v11433_v19, %v9257_v36  ;;  %v3648_v6 = vadd.f32 %v3584_v17, %v11435_v45  ;;  %v11439_v39 = vld [vmem:[#allocation19_spill] sm:$0xff]  ;;  %v11440_v46 = vld [vmem:[#allocation21_spill] sm:$0xff]  ;;  %v11441_v17 = vld [vmem:[#allocation10_spill] sm:$0xff] }
 0x3d9   :  { %v3649_v30 = vadd.f32 %v3585_v0, %v11436_v23  ;;  %v9729_v9 = vadd.f32 %v3594_v58, %v11437_v3  ;;  %v5848_v56 = vpop.eup %5847  ;;  %v3986_v40 = vmul.f32 %v5840_v26, %v3874_v13  ;;  %v9732_v32 = vadd.f32 %v3595_v10, %v11438_v57  ;;  %v3875_v5 = vld [vmem:[%s10499_s2 + $0x48] sm:$0xff]  ;;  %v11442_v0 = vld [vmem:[#allocation12_spill] sm:$0xff]  ;;  %v11444_v26 = vld [vmem:[#allocation13_spill] sm:$0xff] }
 0x3da   :  { %v9724_v25 = vmul.f32 %v9429_v38, %v11434_v15  ;;  %v3660_v41 = vadd.f32 %v3596_v18, %v11439_v39  ;;  %v3661_v4 = vadd.f32 %v3597_v22, %v11440_v46  ;;  %v5850_v44 = vpop.eup %5849  ;;  %v3662_v7 = vadd.f32 %v3598_v55, %v11441_v17  ;;  %v11443_v58 = vld [vmem:[#allocation11_spill] sm:$0xff]  ;;  %v3876_v18 = vld [vmem:[%s10499_s2 + $0x50] sm:$0xff]  ;;  %v3877_v22 = vld [vmem:[%s10499_s2 + $0x58] sm:$0xff] }
 0x3db   :  { %v9741_v19 = vadd.f32 %v3599_v21, %v11442_v0  ;;  %v9744_v15 = vadd.f32 %v3600_v28, %v11443_v58  ;;  %v3665_v10 = vadd.f32 %v3601_v52, %v11444_v26  ;;  %v5852_v13 = vpop.eup %5851  ;;  %v11445_v45 = vld [vmem:[#allocation16_spill] sm:$0xff]  ;;  %v11446_v55 = vld [vmem:[#allocation15_spill] sm:$0xff]  ;;  %v11447_v21 = vld [vmem:[#allocation45_spill] sm:$0xff]  ;;  %5861 = vrcp.f32 %v9609_v60 }
 0x3dc   :  { %v3690_v23 = vadd.f32 %v3626_v12, %v11445_v45  ;;  %v3691_v3 = vadd.f32 %v3627_v51, %v11446_v55  ;;  %v9756_v57 = vadd.f32 %v3628_v53, %v11447_v21  ;;  %v11448_v28 = vld [vmem:[#allocation47_spill] sm:$0xff]  ;;  %v11449_v52 = vld [vmem:[#allocation17_spill] sm:$0xff]  ;;  %v11450_v17 = vld [vmem:[#allocation26_spill] sm:$0xff]  ;;  %5863 = vrcp.f32 %v9611_v11 }
 0x3dd   :  { %v9759_v39 = vadd.f32 %v3629_v43, %v11448_v28  ;;  %v9763_v46 = vadd.f32 %v9590_v16, %v11449_v52  ;;  %v9767_v0 = vadd.f32 %v9593_v54, %v11450_v17  ;;  %v11451_v58 = vld [vmem:[#allocation28_spill] sm:$0xff]  ;;  %v11452_v12 = vld [vmem:[#allocation14_spill] sm:$0xff]  ;;  %v5854_v53 = vpop.eup %5853  ;;  %v3987_v43 = vmul.f32 %v5842_v14, %v3875_v5  ;;  %v11458_v60 = vld [vmem:[#allocation129_spill] sm:$0xff] }
 0x3de   :  { %v9771_v26 = vadd.f32 %v9598_v59, %v11451_v58  ;;  %v9775_v51 = vadd.f32 %v9601_v29, %v11452_v12  ;;  %v11454_v45 = vld [vmem:[#allocation114_spill] sm:$0xff]  ;;  %v11456_v21 = vld [vmem:[#allocation116_spill] sm:$0xff]  ;;  %v5856_v59 = vpop.eup %5855  ;;  %v3988_v52 = vmul.f32 %v5844_v42, %v3876_v18  ;;  %v3989_v29 = vmul.f32 %v5846_v31, %v3877_v22 }
 0x3df   :  { %v11455_v16 = vsub.f32 %v11454_v45, %v9260_v20  ;;  %v11457_v54 = vsub.f32 %v11456_v21, %v9265_v8  ;;  %v4114_v17 = vmul.f32 %v5854_v53, %v5838_v2  ;;  %v5858_v58 = vpop.eup %5857  ;;  %v4115_v12 = vmul.f32 %v5856_v59, %v5848_v56  ;;  %v11459_v21 = vld [vmem:[#allocation130_spill] sm:$0xff] }
 0x3e0   :  { %11453 = vst [vmem:[#allocation44_spill] sm:$0xff] %v9775_v51  ;;  %v3802_v14 = vadd.f32 %v11458_v60, %v3642_v47  ;;  %v3803_v5 = vadd.f32 %v11458_v60, %v3643_v62  ;;  %v3804_v45 = vadd.f32 %v11458_v60, %v3644_v61  ;;  %v4116_v27 = vmul.f32 %v5858_v58, %v5850_v44  ;;  %v11460_v31 = vld [vmem:[#allocation134_spill] sm:$0xff]  ;;  %v11461_v61 = vld [vmem:[#allocation135_spill] sm:$0xff] }
 0x3e1   :  { %v3480_v55 = vmul.f32 %v9432_v37, %v11455_v16  ;;  %v3481_v28 = vmul.f32 %v9435_v49, %v11457_v54  ;;  %v5860_v16 = vpop.eup %5859  ;;  %v9790_v33 = vadd.f32 %v4114_v17, %v3986_v40  ;;  %v3820_v54 = vadd.f32 %v11459_v21, %v3660_v41 }
 0x3e2   :  { %v3821_v51 = vadd.f32 %v11459_v21, %v3661_v4  ;;  %v4117_v11 = vmul.f32 %v5860_v16, %v5852_v13  ;;  %v9794_v42 = vadd.f32 %v4115_v12, %v3987_v43  ;;  %v3805_v2 = vadd.f32 %v11458_v60, %v3645_v24  ;;  %v3576_v13 = vpop.permute.xlu1 %3575  ;;  %v11466_v16 = vld [vmem:[#allocation66_spill] sm:$0xff] }
 0x3e3   :  { %v3806_v56 = vadd.f32 %v11460_v31, %v3646_v35  ;;  %v9798_v47 = vadd.f32 %v4116_v27, %v3988_v52  ;;  %4765 = vst [vmem:[%s10500_s14 + $0x40] sm:$0xff] %v9790_v33  ;;  %v3807_v62 = vadd.f32 %v11460_v31, %v3647_v48  ;;  %v9806_v40 = vadd.f32 %v11461_v61, %v3665_v10 }
 0x3e4   :  { %v3850_v41 = vadd.f32 %v9573_v63, %v3690_v23  ;;  %v9809_v4 = vadd.f32 %v4117_v11, %v3989_v29  ;;  %4766 = vst [vmem:[%s10500_s14 + $0x48] sm:$0xff] %v9794_v42  ;;  %v3808_v27 = vadd.f32 %v11460_v31, %v3648_v6  ;;  %v3809_v24 = vadd.f32 %v11460_v31, %v3649_v30  ;;  %v11470_v31 = vld [vmem:[#allocation127_spill] sm:$0xff] }
 0x3e5   :  { %v3851_v35 = vadd.f32 %v9573_v63, %v3691_v3  ;;  %4767 = vst [vmem:[%s10500_s14 + $0x50] sm:$0xff] %v9798_v47  ;;  %v5005_v48 = vmul.f32 -1.442695, %v3802_v14  ;;  %v5006_v44 = vmul.f32 -1.442695, %v3803_v5  ;;  %v3818_v6 = vadd.f32 %v11459_v21, %v9729_v9  ;;  %v9832_v53 = vpop.eup %5861  ;;  %v11462_v14 = vld [vmem:[#allocation67_spill] sm:$0xff] }
 0x3e6   :  { %v5007_v10 = vmul.f32 -1.442695, %v3804_v45  ;;  %5865 = vtanh.f32 %v3850_v41  ;;  %4768 = vst [vmem:[%s10500_s14 + $0x58] sm:$0xff] %v9809_v4  ;;  %v3819_v30 = vadd.f32 %v11459_v21, %v9732_v32  ;;  %v5008_v18 = vmul.f32 -1.442695, %v3805_v2  ;;  %v9835_v29 = vpop.eup %5863 }
 0x3e7   :  { %5867 = vtanh.f32 %v3851_v35  ;;  %v3638_v22 = vmul.f32 %v3576_v13, %v9607_v34  ;;  %v3822_v23 = vadd.f32 %v11461_v61, %v3662_v7  ;;  %v5009_v3 = vmul.f32 -1.442695, %v3806_v56 }
 0x3e8   :  { %5869 = vpow2.f32 %v5005_v48  ;;  %v3639_v43 = vmul.f32 %v3576_v13, %v9724_v25  ;;  %v3640_v59 = vmul.f32 %v3576_v13, %v3480_v55  ;;  %v5010_v52 = vmul.f32 -1.442695, %v3807_v62  ;;  %v11464_v55 = vld [vmem:[#allocation69_spill] sm:$0xff]  ;;  %v11471_v62 = vld [vmem:[#allocation136_spill] sm:$0xff] }
 0x3e9   :  { %5871 = vpow2.f32 %v5006_v44  ;;  %v3641_v9 = vmul.f32 %v3576_v13, %v3481_v28  ;;  %v5011_v32 = vmul.f32 -1.442695, %v3808_v27  ;;  %v5012_v17 = vmul.f32 -1.442695, %v3809_v24  ;;  %v11472_v27 = vld [vmem:[#allocation137_spill] sm:$0xff]  ;;  %v11473_v13 = vld [vmem:[#allocation122_spill] sm:$0xff] }
 0x3ea   :  { %5873 = vpow2.f32 %v5007_v10  ;;  %v5021_v58 = vmul.f32 -1.442695, %v3818_v6  ;;  %v5022_v34 = vmul.f32 -1.442695, %v3819_v30  ;;  %v5023_v12 = vmul.f32 -1.442695, %v3820_v54 }
 0x3eb   :  { %5875 = vpow2.f32 %v5008_v18  ;;  %v5024_v7 = vmul.f32 -1.442695, %v3821_v51  ;;  %v5025_v60 = vmul.f32 -1.442695, %v3822_v23  ;;  %v11463_v5 = vsub.f32 %v11462_v14, %v9254_v1  ;;  %v11468_v54 = vld [vmem:[#allocation68_spill] sm:$0xff]  ;;  %v11474_v30 = vld [vmem:[#allocation138_spill] sm:$0xff] }
 0x3ec   :  { %5877 = vpow2.f32 %v5009_v3  ;;  %v11465_v45 = vsub.f32 %v11464_v55, %v9257_v36  ;;  %v11467_v21 = vsub.f32 %v11466_v16, %v9260_v20  ;;  %v11469_v51 = vsub.f32 %v11468_v54, %v9265_v8  ;;  %v11478_v14 = vld [vmem:[#allocation125_spill] sm:$0xff] }
 0x3ed   :  { %v3430_v25 = vmul.f32 %v9426_v50, %v11463_v5  ;;  %5879 = vpow2.f32 %v5010_v52  ;;  %v9855_v41 = vadd.f32 %v3638_v22, %v11471_v62  ;;  %v9858_v24 = vadd.f32 %v3639_v43, %v11472_v27  ;;  %v11475_v22 = vld [vmem:[#allocation139_spill] sm:$0xff] }
 0x3ee   :  { %v3431_v28 = vmul.f32 %v9429_v38, %v11465_v45  ;;  %v3432_v11 = vmul.f32 %v9432_v37, %v11467_v21  ;;  %v3433_v2 = vmul.f32 %v9435_v49, %v11469_v51  ;;  %5881 = vpow2.f32 %v5011_v32  ;;  %v11476_v43 = vld [vmem:[#allocation123_spill] sm:$0xff]  ;;  %v11477_v32 = vld [vmem:[#allocation124_spill] sm:$0xff] }
 0x3ef   :  { %v3590_v56 = vmul.f32 %v11470_v31, %v3430_v25  ;;  %5883 = vpow2.f32 %v5012_v17  ;;  %v9869_v18 = vadd.f32 %v3640_v59, %v11474_v30  ;;  %v9872_v23 = vadd.f32 %v3641_v9, %v11475_v22 }
 0x3f0   :  { %v3591_v35 = vmul.f32 %v11470_v31, %v3431_v28  ;;  %v3592_v48 = vmul.f32 %v11470_v31, %v3432_v11  ;;  %v3593_v44 = vmul.f32 %v11470_v31, %v3433_v2  ;;  %v9863_v10 = vpop.eup %5865  ;;  %5885 = vpow2.f32 %v5021_v58 }
 0x3f1   :  { %v9866_v6 = vadd.f32 %v3590_v56, %v11473_v13  ;;  %v9874_v3 = vpop.eup %5867  ;;  %5887 = vpow2.f32 %v5022_v34  ;;  %v3823_v34 = vadd.f32 %v11461_v61, %v9741_v19  ;;  %v3824_v21 = vadd.f32 %v11461_v61, %v9744_v15 }
 0x3f2   :  { %v9877_v52 = vadd.f32 %v3591_v35, %v11476_v43  ;;  %v9880_v17 = vadd.f32 %v3592_v48, %v11477_v32  ;;  %v9883_v58 = vadd.f32 %v3593_v44, %v11478_v14  ;;  %v5870_v5 = vpop.eup %5869  ;;  %5889 = vpow2.f32 %v5023_v12 }
 0x3f3   :  { %v5872_v25 = vpop.eup %5871  ;;  %v3930_v59 = vadd.f32 1.0, %v5870_v5  ;;  %5891 = vpow2.f32 %v5024_v7  ;;  %v5026_v31 = vmul.f32 -1.442695, %v3823_v34  ;;  %v5027_v62 = vmul.f32 -1.442695, %v3824_v21 }
 0x3f4   :  { %v5874_v55 = vpop.eup %5873  ;;  %v3931_v9 = vadd.f32 1.0, %v5872_v25  ;;  %5893 = vpow2.f32 %v5025_v60  ;;  %v5028_v15 = vmul.f32 -1.442695, %v9806_v40  ;;  %v3852_v25 = vadd.f32 %v9573_v63, %v9756_v57 }
 0x3f5   :  { %v5876_v45 = vpop.eup %5875  ;;  %v3932_v28 = vadd.f32 1.0, %v5874_v55  ;;  %5895 = vrcp.f32 %v3930_v59  ;;  %v3853_v59 = vadd.f32 %v9573_v63, %v9759_v39  ;;  %v3790_v55 = vpop.permute.xlu1 %3789  ;;  %v3866_v63 = vld [vmem:[%s10499_s2] sm:$0xff]  ;;  %v11479_v39 = vld [vmem:[#allocation132_spill] sm:$0xff] }
 0x3f6   :  { %v5878_v16 = vpop.eup %5877  ;;  %v3933_v11 = vadd.f32 1.0, %v5876_v45  ;;  %5897 = vrcp.f32 %v3931_v9  ;;  %v3854_v45 = vadd.f32 %v3790_v55, %v9763_v46  ;;  %v3856_v57 = vadd.f32 %v3790_v55, %v9771_v26 }
 0x3f7   :  { %v5880_v54 = vpop.eup %5879  ;;  %v3934_v12 = vadd.f32 1.0, %v5878_v16  ;;  %5899 = vrcp.f32 %v3932_v28  ;;  %v3855_v28 = vadd.f32 %v3790_v55, %v9767_v0  ;;  %v3814_v46 = vadd.f32 %v11479_v39, %v9866_v6  ;;  %v3867_v0 = vld [vmem:[%s10499_s2 + $0x8] sm:$0xff] }
 0x3f8   :  { %v5882_v51 = vpop.eup %5881  ;;  %v3935_v7 = vadd.f32 1.0, %v5880_v54  ;;  %5901 = vrcp.f32 %v3933_v11  ;;  %v3815_v54 = vadd.f32 %v11479_v39, %v9877_v52 }
 0x3f9   :  { %v5884_v2 = vpop.eup %5883  ;;  %v3936_v60 = vadd.f32 1.0, %v5882_v51  ;;  %5903 = vrcp.f32 %v3934_v12  ;;  %v11480_v51 = vld [vmem:[#allocation44_spill] sm:$0xff]  ;;  %v5017_v52 = vmul.f32 -1.442695, %v3814_v46 }
 0x3fa   :  { %v5886_v56 = vpop.eup %5885  ;;  %v3937_v19 = vadd.f32 1.0, %v5884_v2  ;;  %5905 = vrcp.f32 %v3935_v7  ;;  %v3857_v7 = vadd.f32 %v3790_v55, %v11480_v51  ;;  %v3816_v2 = vadd.f32 %v11479_v39, %v9880_v17 }
 0x3fb   :  { %v5888_v27 = vpop.eup %5887  ;;  %5907 = vrcp.f32 %v3936_v60  ;;  %v4042_v35 = vadd.f32 1.0, %v5886_v56  ;;  %v3817_v56 = vadd.f32 %v11479_v39, %v9883_v58 }
 0x3fc   :  { %v5890_v61 = vpop.eup %5889  ;;  %5909 = vrcp.f32 %v3937_v19  ;;  %v4043_v44 = vadd.f32 1.0, %v5888_v27 }
 0x3fd   :  { %v5892_v48 = vpop.eup %5891  ;;  %5911 = vpow2.f32 %v5026_v31  ;;  %v4044_v30 = vadd.f32 1.0, %v5890_v61  ;;  %v3868_v61 = vld [vmem:[%s10499_s2 + $0x10] sm:$0xff] }
 0x3fe   :  { %v5894_v13 = vpop.eup %5893  ;;  %5913 = vpow2.f32 %v5027_v62  ;;  %v4045_v43 = vadd.f32 1.0, %v5892_v48 }
 0x3ff   :  { %v5896_v22 = vpop.eup %5895  ;;  %5915 = vpow2.f32 %v5028_v15  ;;  %v4046_v14 = vadd.f32 1.0, %v5894_v13  ;;  %v5019_v13 = vmul.f32 -1.442695, %v3816_v2 }
 0x400   :  { %v5898_v32 = vpop.eup %5897  ;;  %5917 = vrcp.f32 %v4042_v35  ;;  %v3978_v31 = vmul.f32 %v5896_v22, %v3866_v63  ;;  %v5018_v35 = vmul.f32 -1.442695, %v3815_v54  ;;  %v3870_v22 = vld [vmem:[%s10499_s2 + $0x20] sm:$0xff] }
 0x401   :  { %v5900_v5 = vpop.eup %5899  ;;  %5919 = vrcp.f32 %v4043_v44  ;;  %v3979_v62 = vmul.f32 %v5898_v32, %v3867_v0  ;;  %v3869_v44 = vld [vmem:[%s10499_s2 + $0x18] sm:$0xff]  ;;  %v5020_v32 = vmul.f32 -1.442695, %v3817_v56 }
 0x402   :  { %v5902_v40 = vpop.eup %5901  ;;  %5921 = vrcp.f32 %v4044_v30 }
 0x403   :  { %v5904_v9 = vpop.eup %5903  ;;  %5923 = vrcp.f32 %v4045_v43 }
 0x404   :  { %v9895_v34 = vpop.eup %5905  ;;  %5925 = vrcp.f32 %v4046_v14  ;;  %v3982_v63 = vmul.f32 %v5904_v9, %v3870_v22  ;;  %v11485_v22 = vld [vmem:[#allocation27_spill] sm:$0xff] }
 0x405   :  { %v9898_v16 = vpop.eup %5907  ;;  %5927 = vtanh.f32 %v3852_v25  ;;  %v3980_v25 = vmul.f32 %v5900_v5, %v3868_v61  ;;  %v3871_v5 = vld [vmem:[%s10499_s2 + $0x28] sm:$0xff] }
 0x406   :  { %v9901_v21 = vpop.eup %5909  ;;  %5929 = vtanh.f32 %v3853_v59 }
 0x407   :  { %v5912_v11 = vpop.eup %5911  ;;  %5931 = vtanh.f32 %v3854_v45 }
 0x408   :  { %v5914_v26 = vpop.eup %5913  ;;  %v4047_v12 = vadd.f32 1.0, %v5912_v11  ;;  %5933 = vtanh.f32 %v3855_v28 }
 0x409   :  { %v5916_v60 = vpop.eup %5915  ;;  %v4048_v6 = vadd.f32 1.0, %v5914_v26  ;;  %5935 = vtanh.f32 %v3856_v57 }
 0x40a   :  { %v5918_v19 = vpop.eup %5917  ;;  %v4049_v27 = vadd.f32 1.0, %v5916_v60  ;;  %5937 = vrcp.f32 %v4047_v12  ;;  %v3873_v12 = vld [vmem:[%s10499_s2 + $0x38] sm:$0xff] }
 0x40b   :  { %v5920_v15 = vpop.eup %5919  ;;  %5939 = vrcp.f32 %v4048_v6  ;;  %v4106_v17 = vmul.f32 %v5918_v19, %v9863_v10  ;;  %v3800_v10 = vpop.permute.xlu1 %3799  ;;  %v3985_v6 = vmul.f32 %v9901_v21, %v3873_v12 }
 0x40c   :  { %v5922_v48 = vpop.eup %5921  ;;  %5941 = vrcp.f32 %v4049_v27  ;;  %v4107_v58 = vmul.f32 %v5920_v15, %v9874_v3  ;;  %v3862_v55 = vadd.f32 %v3800_v10, %v9855_v41  ;;  %v3981_v3 = vmul.f32 %v5902_v40, %v3869_v44 }
 0x40d   :  { %v5924_v30 = vpop.eup %5923  ;;  %v9929_v43 = vadd.f32 %v4106_v17, %v3978_v31  ;;  %5943 = vtanh.f32 %v3857_v7  ;;  %v3863_v28 = vadd.f32 %v3800_v10, %v9858_v24  ;;  %v3864_v41 = vadd.f32 %v3800_v10, %v9869_v18  ;;  %v3872_v24 = vld [vmem:[%s10499_s2 + $0x30] sm:$0xff] }
 0x40e   :  { %v5926_v14 = vpop.eup %5925  ;;  %v9931_v59 = vadd.f32 %v4107_v58, %v3979_v62  ;;  %5945 = vpow2.f32 %v5017_v52  ;;  %v3865_v11 = vadd.f32 %v3800_v10, %v9872_v23  ;;  %v3983_v18 = vmul.f32 %v9895_v34, %v3871_v5 }
 0x40f   :  { %v5928_v45 = vpop.eup %5927  ;;  %4757 = vst [vmem:[%s10500_s14] sm:$0xff] %v9929_v43  ;;  %5947 = vpow2.f32 %v5018_v35  ;;  %v3984_v2 = vmul.f32 %v9898_v16, %v3872_v24 }
 0x410   :  { %v5930_v57 = vpop.eup %5929  ;;  %v4108_v39 = vmul.f32 %v5928_v45, %v5922_v48  ;;  %4758 = vst [vmem:[%s10500_s14 + $0x8] sm:$0xff] %v9931_v59  ;;  %5949 = vpow2.f32 %v5019_v13 }
 0x411   :  { %v5932_v40 = vpop.eup %5931  ;;  %v4109_v46 = vmul.f32 %v5930_v57, %v5924_v30  ;;  %5951 = vpow2.f32 %v5020_v32 }
 0x412   :  { %v5934_v0 = vpop.eup %5933  ;;  %v9951_v9 = vadd.f32 %v4108_v39, %v3980_v25  ;;  %v4110_v54 = vmul.f32 %v5932_v40, %v5926_v14  ;;  %5953 = vtanh.f32 %v3862_v55  ;;  %v11486_v14 = vld [vmem:[#allocation29_spill] sm:$0xff] }
 0x413   :  { %v5936_v26 = vpop.eup %5935  ;;  %v9957_v51 = vadd.f32 %v4109_v46, %v3981_v3  ;;  %5955 = vtanh.f32 %v3863_v28  ;;  %v4174_v28 = vmul.f32 %v9929_v43, %v9929_v43 }
 0x414   :  { %v5938_v7 = vpop.eup %5937  ;;  %4759 = vst [vmem:[%s10500_s14 + $0x10] sm:$0xff] %v9951_v9  ;;  %v9964_v23 = vadd.f32 %v4110_v54, %v3982_v63  ;;  %5957 = vtanh.f32 %v3864_v41  ;;  %v4175_v63 = vmul.f32 %v9931_v59, %v9931_v59  ;;  %v4176_v39 = vmul.f32 %v9951_v9, %v9951_v9  ;;  %v3878_v41 = vld [vmem:[%s10499_s2 + $0x60] sm:$0xff] }
 0x415   :  { %v5940_v60 = vpop.eup %5939  ;;  %4760 = vst [vmem:[%s10500_s14 + $0x18] sm:$0xff] %v9957_v51  ;;  %v4111_v34 = vmul.f32 %v5938_v7, %v5934_v0  ;;  %5959 = vtanh.f32 %v3865_v11  ;;  %v4177_v40 = vmul.f32 %v9957_v51, %v9957_v51 }
 0x416   :  { %11481 = vst [vmem:[#allocation46_spill] sm:$0xff] %v9964_v23  ;;  %v5942_v31 = vpop.eup %5941  ;;  %v4112_v16 = vmul.f32 %v5940_v60, %v5936_v26  ;;  %4761 = vst [vmem:[%s10500_s14 + $0x20] sm:$0xff] %v9964_v23  ;;  %v4178_v57 = vmul.f32 %v9964_v23, %v9964_v23  ;;  %v4138_v5 = vadd.f32 %v9964_v23, %v9929_v43  ;;  %v3879_v26 = vld [vmem:[%s10499_s2 + $0x68] sm:$0xff] }
 0x417   :  { %v5944_v56 = vpop.eup %5943  ;;  %v9975_v19 = vadd.f32 %v4111_v34, %v3983_v18  ;;  %v3880_v18 = vld [vmem:[%s10499_s2 + $0x70] sm:$0xff]  ;;  %v4182_v60 = vmul.f32 %v9790_v33, %v9790_v33 }
 0x418   :  { %v5946_v62 = vpop.eup %5945  ;;  %v4113_v27 = vmul.f32 %v5944_v56, %v5942_v31  ;;  %v9977_v52 = vadd.f32 %v4112_v16, %v3984_v2  ;;  %v4190_v54 = vadd.f32 %v4178_v57, %v4174_v28  ;;  %v4139_v2 = vadd.f32 %v4138_v5, %v9790_v33  ;;  %v3881_v16 = vld [vmem:[%s10499_s2 + $0x78] sm:$0xff] }
 0x419   :  { %11482 = vst [vmem:[#allocation48_spill] sm:$0xff] %v9975_v19  ;;  %v5948_v15 = vpop.eup %5947  ;;  %4762 = vst [vmem:[%s10500_s14 + $0x28] sm:$0xff] %v9975_v19  ;;  %v3942_v21 = vadd.f32 1.0, %v5946_v62  ;;  %v4147_v24 = vadd.f32 %v9975_v19, %v9931_v59  ;;  %v4183_v56 = vmul.f32 %v9794_v42, %v9794_v42  ;;  %v4184_v62 = vmul.f32 %v9798_v47, %v9798_v47 }
 0x41a   :  { %11483 = vst [vmem:[#allocation50_spill] sm:$0xff] %v9977_v52  ;;  %v5950_v61 = vpop.eup %5949  ;;  %v9983_v17 = vadd.f32 %v4113_v27, %v3985_v6  ;;  %4763 = vst [vmem:[%s10500_s14 + $0x30] sm:$0xff] %v9977_v52  ;;  %v3943_v35 = vadd.f32 1.0, %v5948_v15  ;;  %v4156_v0 = vadd.f32 %v9977_v52, %v9951_v9 }
 0x41b   :  { %v5952_v48 = vpop.eup %5951  ;;  %v3944_v44 = vadd.f32 1.0, %v5950_v61  ;;  %5961 = vrcp.f32 %v3942_v21  ;;  %v4148_v33 = vadd.f32 %v4147_v24, %v9794_v42 }
 0x41c   :  { %11484 = vst [vmem:[#allocation49_spill] sm:$0xff] %v9983_v17  ;;  %v5954_v58 = vpop.eup %5953  ;;  %4764 = vst [vmem:[%s10500_s14 + $0x38] sm:$0xff] %v9983_v17  ;;  %v3945_v13 = vadd.f32 1.0, %v5952_v48  ;;  %5963 = vrcp.f32 %v3943_v35  ;;  %v4181_v46 = vmul.f32 %v9983_v17, %v9983_v17  ;;  %v4165_v12 = vadd.f32 %v9983_v17, %v9957_v51 }
 0x41d   :  { %v5956_v30 = vpop.eup %5955  ;;  %v4118_v32 = vmul.f32 %v5954_v58, %v11485_v22  ;;  %5965 = vrcp.f32 %v3944_v44  ;;  %v4157_v44 = vadd.f32 %v4156_v0, %v9798_v47  ;;  %v4185_v58 = vmul.f32 %v9809_v4, %v9809_v4 }
 0x41e   :  { %v5958_v10 = vpop.eup %5957  ;;  %v4119_v25 = vmul.f32 %v5956_v30, %v11486_v14  ;;  %5967 = vrcp.f32 %v3945_v13  ;;  %v4217_v15 = vadd.f32 %v4181_v46, %v4177_v40  ;;  %v4191_v13 = vadd.f32 %v4190_v54, %v4182_v60 }
 0x41f   :  { %v5960_v55 = vpop.eup %5959  ;;  %v4120_v45 = vmul.f32 %v5958_v10, %v9832_v53  ;;  %v4179_v53 = vmul.f32 %v9975_v19, %v9975_v19  ;;  %v4166_v42 = vadd.f32 %v4165_v12, %v9809_v4 }
 0x420   :  { %v4121_v3 = vmul.f32 %v5960_v55, %v9835_v29  ;;  %v4180_v29 = vmul.f32 %v9977_v52, %v9977_v52  ;;  %v4218_v5 = vadd.f32 %v4217_v15, %v4185_v58 }
 0x421   :  { %v4199_v31 = vadd.f32 %v4179_v53, %v4175_v63 }
 0x422   :  { %v4208_v6 = vadd.f32 %v4180_v29, %v4176_v39 }
 0x423   :  { %v4200_v14 = vadd.f32 %v4199_v31, %v4183_v56 }
 0x424   :  { %v4209_v55 = vadd.f32 %v4208_v6, %v4184_v62 }
 0x425   :  { %v5962_v11 = vpop.eup %5961 }
 0x426   :  { %v3990_v7 = vmul.f32 %v5962_v11, %v3878_v41  ;;  %v5964_v34 = vpop.eup %5963 }
 0x427   :  { %v5966_v27 = vpop.eup %5965  ;;  %v3991_v21 = vmul.f32 %v5964_v34, %v3879_v26 }
 0x428   :  { %v10040_v61 = vadd.f32 %v4118_v32, %v3990_v7  ;;  %v5968_v35 = vpop.eup %5967  ;;  %v3992_v48 = vmul.f32 %v5966_v27, %v3880_v18 }
 0x429   :  { %v3993_v30 = vmul.f32 %v5968_v35, %v3881_v16  ;;  %v10046_v22 = vadd.f32 %v4119_v25, %v3991_v21 }
 0x42a   :  { %11487 = vst [vmem:[#allocation51_spill] sm:$0xff] %v10040_v61  ;;  %4769 = vst [vmem:[%s10500_s14 + $0x60] sm:$0xff] %v10040_v61  ;;  %v4140_v32 = vadd.f32 %v4139_v2, %v10040_v61  ;;  %v10054_v10 = vadd.f32 %v4120_v45, %v3992_v48  ;;  %v4186_v47 = vmul.f32 %v10040_v61, %v10040_v61 }
 0x42b   :  { %11488 = vst [vmem:[#allocation83_spill] sm:$0xff] %v10046_v22  ;;  %v10058_v28 = vadd.f32 %v4121_v3, %v3993_v30  ;;  %4770 = vst [vmem:[%s10500_s14 + $0x68] sm:$0xff] %v10046_v22  ;;  %v4149_v57 = vadd.f32 %v4148_v33, %v10046_v22  ;;  %v4187_v4 = vmul.f32 %v10046_v22, %v10046_v22 }
 0x42c   :  { %11489 = vst [vmem:[#allocation85_spill] sm:$0xff] %v10054_v10  ;;  %v4141_v25 = vrot.slane %v4140_v32, 4  ;;  %v4188_v45 = vmul.f32 %v10054_v10, %v10054_v10  ;;  %4771 = vst [vmem:[%s10500_s14 + $0x70] sm:$0xff] %v10054_v10  ;;  %v4158_v3 = vadd.f32 %v4157_v44, %v10054_v10  ;;  %v4192_v63 = vadd.f32 %v4191_v13, %v4186_v47 }
 0x42d   :  { %11490 = vst [vmem:[#allocation82_spill] sm:$0xff] %v10058_v28  ;;  %v4189_v39 = vmul.f32 %v10058_v28, %v10058_v28  ;;  %4772 = vst [vmem:[%s10500_s14 + $0x78] sm:$0xff] %v10058_v28  ;;  %v4150_v29 = vrot.slane %v4149_v57, 4  ;;  %v4167_v41 = vadd.f32 %v4166_v42, %v10058_v28  ;;  %v4201_v46 = vadd.f32 %v4200_v14, %v4187_v4 }
 0x42e   :  { %v4142_v53 = vadd.f32 %v4141_v25, %v4140_v32  ;;  %v4159_v40 = vrot.slane %v4158_v3, 4  ;;  %v4193_v24 = vrot.slane %v4192_v63, 4  ;;  %v4210_v11 = vadd.f32 %v4209_v55, %v4188_v45 }
 0x42f   :  { %v4151_v54 = vadd.f32 %v4150_v29, %v4149_v57  ;;  %v4168_v26 = vrot.slane %v4167_v41, 4  ;;  %v4219_v12 = vadd.f32 %v4218_v5, %v4189_v39  ;;  %v4202_v2 = vrot.slane %v4201_v46, 4 }
 0x430   :  { %v4143_v0 = vrot.slane %v4142_v53, 2  ;;  %v4160_v18 = vadd.f32 %v4159_v40, %v4158_v3  ;;  %v4194_v7 = vadd.f32 %v4193_v24, %v4192_v63  ;;  %v4211_v60 = vrot.slane %v4210_v11, 4 }
 0x431   :  { %v4152_v31 = vrot.slane %v4151_v54, 2  ;;  %v4169_v6 = vadd.f32 %v4168_v26, %v4167_v41  ;;  %v4220_v16 = vrot.slane %v4219_v12, 4  ;;  %v4203_v27 = vadd.f32 %v4202_v2, %v4201_v46 }
 0x432   :  { %v4144_v34 = vadd.f32 %v4143_v0, %v4142_v53  ;;  %v4161_v56 = vrot.slane %v4160_v18, 2  ;;  %v4195_v62 = vrot.slane %v4194_v7, 2  ;;  %v4212_v15 = vadd.f32 %v4211_v60, %v4210_v11 }
 0x433   :  { %v4153_v33 = vadd.f32 %v4152_v31, %v4151_v54  ;;  %v4170_v35 = vrot.slane %v4169_v6, 2  ;;  %v4221_v48 = vadd.f32 %v4220_v16, %v4219_v12  ;;  %v4204_v13 = vrot.slane %v4203_v27, 2  ;;  %v11491_v54 = vld [vmem:[#allocation52_spill] sm:$0xff] }
 0x434   :  { %v4145_v21 = vrot.slane %v4144_v34, 1  ;;  %v4162_v44 = vadd.f32 %v4161_v56, %v4160_v18  ;;  %v4196_v58 = vadd.f32 %v4195_v62, %v4194_v7  ;;  %v4213_v30 = vrot.slane %v4212_v15, 2 }
 0x435   :  { %v4154_v42 = vrot.slane %v4153_v33, 1  ;;  %v4171_v47 = vadd.f32 %v4170_v35, %v4169_v6  ;;  %v4222_v14 = vrot.slane %v4221_v48, 2  ;;  %v4205_v57 = vadd.f32 %v4204_v13, %v4203_v27  ;;  %v11494_v35 = vld [vmem:[#allocation2_spill] sm:$0xff] }
 0x436   :  { %v4146_v32 = vadd.f32 %v4145_v21, %v4144_v34  ;;  %v4163_v55 = vrot.slane %v4162_v44, 1  ;;  %v4197_v25 = vrot.slane %v4196_v58, 1  ;;  %v4214_v5 = vadd.f32 %v4213_v30, %v4212_v15  ;;  %v11493_v21 = vld [vmem:[#allocation3_spill] sm:$0xff] }
 0x437   :  { %v4155_v4 = vadd.f32 %v4154_v42, %v4153_v33  ;;  %v4172_v45 = vrot.slane %v4171_v47, 1  ;;  %v4223_v3 = vadd.f32 %v4222_v14, %v4221_v48  ;;  %v4206_v53 = vrot.slane %v4205_v57, 1  ;;  %v11496_v42 = vld [vmem:[#allocation4_spill] sm:$0xff] }
 0x438   :  { %v4164_v63 = vadd.f32 %v4163_v55, %v4162_v44  ;;  %v4198_v39 = vadd.f32 %v4197_v25, %v4196_v58  ;;  %v4215_v29 = vrot.slane %v4214_v5, 1  ;;  %v11495_v44 = vld [vmem:[#allocation5_spill] sm:$0xff] }
 0x439   :  { %v4173_v41 = vadd.f32 %v4172_v45, %v4171_v47  ;;  %v4230_v40 = vcombine.low %v4146_v32, %v4155_v4  ;;  %v4224_v24 = vrot.slane %v4223_v3, 1  ;;  %v4207_v46 = vadd.f32 %v4206_v53, %v4205_v57 }
 0x43a   :  { %v4216_v11 = vadd.f32 %v4215_v29, %v4214_v5 }
 0x43b   :  { %v4231_v0 = vcombine.low %v4164_v63, %v4173_v41  ;;  %v4238_v26 = vrot.slane %v4230_v40, %v11491_v54  ;;  %v4225_v12 = vadd.f32 %v4224_v24, %v4223_v3  ;;  %v4298_v18 = vcombine.low %v4198_v39, %v4207_v46 }
 0x43d   :  { %v4245_v7 = vrot.slane %v4231_v0, %v11491_v54  ;;  %v4299_v2 = vcombine.low %v4216_v11, %v4225_v12  ;;  %v4306_v60 = vrot.slane %v4298_v18, %v11491_v54 }
 0x43f   :  { %v4246_v34 = vcombine.low %v4238_v26, %v4245_v7  ;;  %v4313_v31 = vrot.slane %v4299_v2, %v11491_v54 }
 0x441   :  { %v4253_v6 = vrot.slane %v4246_v34, %v11491_v54  ;;  %v4314_v16 = vcombine.low %v4306_v60, %v4313_v31 }
 0x443   :  { %v4255_v62 = vsel %vm2282_vm3, %v4253_v6, 0.0  ;;  %v4321_v27 = vrot.slane %v4314_v16, %v11491_v54  ;;  %v4372_v15 = vsel %vm2430_vm6, %v4253_v6, 0.0 }
 0x444   :  { %v4260_v33 = vrot.slane %v4255_v62, %v11493_v21  ;;  %v4264_v48 = vrot.slane %v4255_v62, %v11494_v35  ;;  %v4268_v58 = vrot.slane %v4255_v62, %v11495_v44  ;;  %v4377_v30 = vrot.slane %v4372_v15, %v11493_v21 }
 0x445   :  { %v4323_v13 = vsel %vm2282_vm3, %v4321_v27, 0.0  ;;  %v4381_v32 = vrot.slane %v4372_v15, %v11494_v35  ;;  %v4272_v47 = vrot.slane %v4255_v62, %v11496_v42  ;;  %v4385_v25 = vrot.slane %v4372_v15, %v11495_v44 }
 0x446   :  { %v4277_v14 = vsel %vm2334_vm7, %v4260_v33, 0.0  ;;  %v4278_v55 = vsel %vm2334_vm7, %v4264_v48, 0.0  ;;  %v4328_v5 = vrot.slane %v4323_v13, %v11493_v21  ;;  %v4332_v4 = vrot.slane %v4323_v13, %v11494_v35 }
 0x447   :  { %v4279_v57 = vadd.f32 %v4278_v55, %v4277_v14  ;;  %v4336_v45 = vrot.slane %v4323_v13, %v11495_v44  ;;  %v4280_v3 = vsel %vm2334_vm7, %v4268_v58, 0.0  ;;  %v4340_v63 = vrot.slane %v4323_v13, %v11496_v42  ;;  %v3160_v14 = vld [vmem:[%s10496_s5 + $0x40] sm:$0xff]  ;;  %v3162_v55 = vld [vmem:[%s10496_s5 + $0x50] sm:$0xff] }
 0x448   :  { %v4394_v39 = vsel %vm2334_vm7, %v4377_v30, 0.0  ;;  %v4395_v53 = vsel %vm2334_vm7, %v4381_v32, 0.0  ;;  %v4345_v41 = vsel %vm2334_vm7, %v4328_v5, 0.0  ;;  %v4346_v40 = vsel %vm2334_vm7, %v4332_v4, 0.0  ;;  %v3491_v5 = vld [vmem:[%s10497_s6 + $0x48] sm:$0xff]  ;;  %v3490_v4 = vld [vmem:[%s10497_s6 + $0x40] sm:$0xff] }
 0x449   :  { %v4281_v29 = vadd.f32 %v4280_v3, %v4279_v57  ;;  %v4389_v24 = vrot.slane %v4372_v15, %v11496_v42  ;;  %v4282_v46 = vsel %vm2334_vm7, %v4272_v47, 0.0  ;;  %v4347_v11 = vadd.f32 %v4346_v40, %v4345_v41  ;;  %v3161_v57 = vld [vmem:[%s10496_s5 + $0x48] sm:$0xff]  ;;  %v3492_v3 = vld [vmem:[%s10497_s6 + $0x50] sm:$0xff]  ;;  %v4533_v40 = vld [vmem:[%s10501_s8] sm:$0xff] }
 0x44a   :  { %v4396_v0 = vadd.f32 %v4395_v53, %v4394_v39  ;;  %v4348_v26 = vsel %vm2334_vm7, %v4336_v45, 0.0  ;;  %v4397_v12 = vsel %vm2334_vm7, %v4385_v25, 0.0  ;;  %v4411_v18 = vsel %vm2430_vm6, %v4321_v27, 0.0  ;;  %v3163_v25 = vld [vmem:[%s10496_s5 + $0x58] sm:$0xff]  ;;  %v3714_v39 = vld [vmem:[%s10498_s7 + $0x40] sm:$0xff]  ;;  %v4534_v41 = vld [vmem:[%s10501_s8 + $0x8] sm:$0xff] }
 0x44b   :  { %v4283_v54 = vadd.f32 %v4282_v46, %v4281_v29  ;;  %v4349_v7 = vadd.f32 %v4348_v26, %v4347_v11  ;;  %v4416_v60 = vrot.slane %v4411_v18, %v11493_v21  ;;  %v4420_v34 = vrot.slane %v4411_v18, %v11494_v35  ;;  %v3493_v45 = vld [vmem:[%s10497_s6 + $0x58] sm:$0xff]  ;;  %v3716_v29 = vld [vmem:[%s10498_s7 + $0x50] sm:$0xff]  ;;  %v4574_v11 = vld [vmem:[%s10502_s9 + $0x8] sm:$0xff] }
 0x44c   :  { %v4398_v2 = vadd.f32 %v4397_v12, %v4396_v0  ;;  %v4350_v31 = vsel %vm2334_vm7, %v4340_v63, 0.0  ;;  %v4399_v6 = vsel %vm2334_vm7, %v4389_v24, 0.0  ;;  %v4424_v16 = vrot.slane %v4411_v18, %v11495_v44  ;;  %v3715_v63 = vld [vmem:[%s10498_s7 + $0x48] sm:$0xff]  ;;  %v3717_v53 = vld [vmem:[%s10498_s7 + $0x58] sm:$0xff]  ;;  %v4535_v46 = vld [vmem:[%s10501_s8 + $0x10] sm:$0xff] }
 0x44d   :  { %4284 = vadd.xlane.f32.xlu0 %v4283_v54  ;;  %v4351_v62 = vadd.f32 %v4350_v31, %v4349_v7  ;;  %v4428_v15 = vrot.slane %v4411_v18, %v11496_v42  ;;  %v4433_v33 = vsel %vm2334_vm7, %v4416_v60, 0.0  ;;  %v4434_v27 = vsel %vm2334_vm7, %v4420_v34, 0.0  ;;  %v4536_v24 = vld [vmem:[%s10501_s8 + $0x18] sm:$0xff]  ;;  %v4573_v0 = vld [vmem:[%s10502_s9] sm:$0xff]  ;;  %v4575_v26 = vld [vmem:[%s10502_s9 + $0x10] sm:$0xff] }
 0x44e   :  { %v4400_v48 = vadd.f32 %v4399_v6, %v4398_v2  ;;  %v4435_v58 = vadd.f32 %v4434_v27, %v4433_v33  ;;  %v4436_v13 = vsel %vm2334_vm7, %v4424_v16, 0.0  ;;  %v4576_v54 = vld [vmem:[%s10502_s9 + $0x18] sm:$0xff] }
 0x44f   :  { %4352 = vadd.xlane.f32.xlu1 %v4351_v62  ;;  %v4438_v32 = vsel %vm2334_vm7, %v4428_v15, 0.0 }
 0x450   :  { %v4437_v30 = vadd.f32 %v4436_v13, %v4435_v58  ;;  %v11497_v58 = vld [vmem:[#allocation91_spill] sm:$0xff] }
 0x451   :  { %4401 = vadd.xlane.f32.xlu0 %v4400_v48  ;;  %v11498_v13 = vsub.f32 %v11497_v58, %v9254_v1 }
 0x452   :  { %v4439_v47 = vadd.f32 %v4438_v32, %v4437_v30 }
 0x453   :  { %v3454_v30 = vmul.f32 %v9426_v50, %v11498_v13 }
 0x455   :  { %4440 = vadd.xlane.f32.xlu0 %v4439_v47 }
 0x460   :  { %3210 = vperm.xlu1 %5799, %v3160_v14  }
 0x464   :  { %3220 = vperm.xlu1 %5799, %v3162_v55   ;;  %v11499_v55 = vld [vmem:[#allocation93_spill] sm:$0xff] }
 0x468   :  { %3225 = vperm.xlu1 %5799, %v3163_v25   ;;  %v11500_v25 = vsub.f32 %v11499_v55, %v9257_v36 }
 0x46b   :  { %3215 = vperm.xlu0 %5800, %v3161_v57   ;;  %v3455_v57 = vmul.f32 %v9429_v38, %v11500_v25  ;;  %v11519_v25 = vld [vmem:[#allocation100_spill] sm:$0xff] }
 0x46c   :  { %3545 = vperm.xlu1 %5799, %v3491_v5  }
 0x46f   :  { %3540 = vperm.xlu0 %5800, %v3490_v4   ;;  %v11501_v4 = vld [vmem:[#allocation90_spill] sm:$0xff] }
 0x470   :  { %3555 = vperm.xlu1 %5799, %v3493_v45   ;;  %v11502_v45 = vsub.f32 %v11501_v4, %v9260_v20  ;;  %v11520_v4 = vsub.f32 %v11519_v25, %v9265_v8  ;;  %v11531_v25 = vld [vmem:[#allocation36_spill] sm:$0xff] }
 0x473   :  { %3550 = vperm.xlu0 %5800, %v3492_v3   ;;  %v3456_v3 = vmul.f32 %v9432_v37, %v11502_v45  ;;  %v3465_v45 = vmul.f32 %v9435_v49, %v11520_v4  ;;  %v11532_v4 = vld [vmem:[#allocation38_spill] sm:$0xff] }
 0x474   :  { %3769 = vperm.xlu1 %5799, %v3715_v63   ;;  %v11503_v63 = vld [vmem:[#allocation92_spill] sm:$0xff] }
 0x477   :  { %3764 = vperm.xlu0 %5800, %v3714_v39   ;;  %v11504_v39 = vsub.f32 %v11503_v63, %v9265_v8  ;;  %v11521_v63 = vld [vmem:[#allocation95_spill] sm:$0xff] }
 0x478   :  { %3779 = vperm.xlu1 %5799, %v3717_v53  }
 0x479   :  { %v3457_v53 = vmul.f32 %v9435_v49, %v11504_v39  ;;  %v11522_v39 = vsub.f32 %v11521_v63, %v9254_v1 }
 0x47b   :  { %3774 = vperm.xlu0 %5800, %v3716_v29   ;;  %v11505_v29 = vld [vmem:[#allocation87_spill] sm:$0xff] }
 0x47c   :  { %4544 = vperm.xlu1 %5799, %v4534_v41   ;;  %v11506_v41 = vsub.f32 %v11505_v29, %v9254_v1  ;;  %v3458_v29 = vmul.f32 %v9426_v50, %v11522_v39  ;;  %v11533_v39 = vld [vmem:[#allocation37_spill] sm:$0xff] }
 0x47f   :  { %4539 = vperm.xlu0 %5800, %v4533_v40   ;;  %v3450_v40 = vmul.f32 %v9426_v50, %v11506_v41  ;;  %v11523_v41 = vld [vmem:[#allocation97_spill] sm:$0xff] }
 0x480   :  { %4554 = vperm.xlu1 %5799, %v4536_v24  }
 0x483   :  { %4549 = vperm.xlu0 %5800, %v4535_v46  }
 0x484   :  { %4584 = vperm.xlu1 %5799, %v4574_v11  }
 0x487   :  { %4579 = vperm.xlu0 %5800, %v4573_v0  }
 0x488   :  { %4594 = vperm.xlu1 %5799, %v4576_v54   ;;  %v11507_v54 = vld [vmem:[#allocation89_spill] sm:$0xff] }
 0x48b   :  { %4589 = vperm.xlu0 %5800, %v4575_v26   ;;  %v11508_v26 = vsub.f32 %v11507_v54, %v9257_v36 }
 0x4da   :  { %v4285_v12 = vpop.xlane.xlu0 %4284 }
 0x4db   :  { %v4286_v18 = vrot.slane %v4285_v12, 4 }
 0x4dc   :  { %v4353_v2 = vpop.xlane.xlu1 %4352 }
 0x4dd   :  { %v4287_v7 = vadd.f32 %v4286_v18, %v4285_v12  ;;  %v4354_v60 = vrot.slane %v4353_v2, 4  ;;  %v3451_v12 = vmul.f32 %v9429_v38, %v11508_v26  ;;  %v11509_v18 = vld [vmem:[#allocation86_spill] sm:$0xff] }
 0x4de   :  { %v4402_v34 = vpop.xlane.xlu0 %4401  ;;  %v11525_v26 = vld [vmem:[#allocation94_spill] sm:$0xff] }
 0x4df   :  { %v4288_v31 = vrot.slane %v4287_v7, 2  ;;  %v4403_v6 = vrot.slane %v4402_v34, 4  ;;  %v4355_v16 = vadd.f32 %v4354_v60, %v4353_v2  ;;  %v11511_v60 = vld [vmem:[#allocation88_spill] sm:$0xff] }
 0x4e0   :  { %v3211_v15 = vpop.permute.xlu1 %3210 }
 0x4e1   :  { %v4404_v62 = vadd.f32 %v4403_v6, %v4402_v34  ;;  %v4289_v33 = vadd.f32 %v4288_v31, %v4287_v7  ;;  %v4356_v27 = vrot.slane %v4355_v16, 2  ;;  %v11510_v7 = vsub.f32 %v11509_v18, %v9260_v20  ;;  %v11513_v6 = vld [vmem:[#allocation99_spill] sm:$0xff] }
 0x4e2   :  { %v4441_v48 = vpop.xlane.xlu0 %4440  ;;  %v11512_v34 = vsub.f32 %v11511_v60, %v9265_v8  ;;  %v11526_v18 = vsub.f32 %v11525_v26, %v9260_v20  ;;  %v3283_v63 = vmul.f32 %v3211_v15, %v11532_v4  ;;  %v11539_v26 = vld [vmem:[#allocation119_spill] sm:$0xff] }
 0x4e3   :  { %v4405_v32 = vrot.slane %v4404_v62, 2  ;;  %v4442_v47 = vrot.slane %v4441_v48, 4  ;;  %v4290_v14 = vrot.slane %v4289_v33, 1  ;;  %v4357_v5 = vadd.f32 %v4356_v27, %v4355_v16 }
 0x4e4   :  { %v10207_v46 = vpop.permute.xlu1 %3220  ;;  %v3452_v2 = vmul.f32 %v9432_v37, %v11510_v7  ;;  %v3453_v31 = vmul.f32 %v9435_v49, %v11512_v34  ;;  %v11514_v16 = vsub.f32 %v11513_v6, %v9254_v1  ;;  %v3460_v7 = vmul.f32 %v9432_v37, %v11526_v18 }
 0x4e5   :  { %v4443_v24 = vadd.f32 %v4442_v47, %v4441_v48  ;;  %v4291_v11 = vadd.f32 %v4290_v14, %v4289_v33  ;;  %v4406_v0 = vadd.f32 %v4405_v32, %v4404_v62  ;;  %v11515_v33 = vld [vmem:[#allocation101_spill] sm:$0xff]  ;;  %v4358_v13 = vrot.slane %v4357_v5, 1  ;;  %v11517_v47 = vld [vmem:[#allocation98_spill] sm:$0xff] }
 0x4e6   :  { %v3462_v62 = vmul.f32 %v9426_v50, %v11514_v16  ;;  %v11516_v27 = vsub.f32 %v11515_v33, %v9257_v36  ;;  %v11518_v14 = vsub.f32 %v11517_v47, %v9260_v20  ;;  %v11527_v33 = vld [vmem:[#allocation96_spill] sm:$0xff]  ;;  %v11529_v50 = vld [vmem:[#allocation30_spill] sm:$0xff] }
 0x4e7   :  { %v4444_v58 = vrot.slane %v4443_v24, 2  ;;  %5389 = vpush %v4291_v11  ;;  %v4407_v32 = vrot.slane %v4406_v0, 1  ;;  %v11524_v11 = vsub.f32 %v11523_v41, %v9257_v36  ;;  %v4359_v34 = vadd.f32 %v4358_v13, %v4357_v5  ;;  %v11534_v5 = vld [vmem:[#allocation39_spill] sm:$0xff]  ;;  %v11538_v41 = vld [vmem:[#allocation118_spill] sm:$0xff] }
 0x4e8   :  { %v3463_v48 = vmul.f32 %v9429_v38, %v11516_v27  ;;  %v3464_v55 = vmul.f32 %v9432_v37, %v11518_v14  ;;  %v3226_v60 = vpop.permute.xlu1 %3225  ;;  %v11528_v27 = vsub.f32 %v11527_v33, %v9265_v8  ;;  %v3280_v47 = vmul.f32 %v3211_v15, %v11529_v50  ;;  %v11530_v14 = vld [vmem:[#allocation31_spill] sm:$0xff]  ;;  %v11540_v33 = vld [vmem:[#allocation32_spill] sm:$0xff]  ;;  %v11541_v50 = vld [vmem:[#allocation34_spill] sm:$0xff] }
 0x4e9   :  { %v3459_v54 = vmul.f32 %v9429_v38, %v11524_v11  ;;  %v4408_v6 = vadd.f32 %v4407_v32, %v4406_v0  ;;  %v4445_v16 = vadd.f32 %v4444_v58, %v4443_v24  ;;  %v3281_v36 = vmul.f32 %v3211_v15, %v11530_v14  ;;  %v11535_v0 = vld [vmem:[#allocation40_spill] sm:$0xff]  ;;  %v11536_v58 = vld [vmem:[#allocation41_spill] sm:$0xff]  ;;  %5391 = vpush %v4359_v34  ;;  %v11537_v13 = vld [vmem:[#allocation43_spill] sm:$0xff] }
 0x4ea   :  { %v3461_v1 = vmul.f32 %v9435_v49, %v11528_v27  ;;  %v3282_v38 = vmul.f32 %v3211_v15, %v11531_v25  ;;  %v3216_v20 = vpop.permute.xlu0 %3215  ;;  %v3288_v37 = vmul.f32 %v10207_v46, %v11533_v39  ;;  %v3289_v24 = vmul.f32 %v10207_v46, %v11534_v5  ;;  %v11542_v25 = vld [vmem:[#allocation33_spill] sm:$0xff]  ;;  %v11543_v39 = vld [vmem:[#allocation35_spill] sm:$0xff] }
 0x4eb   :  { %v3290_v8 = vmul.f32 %v10207_v46, %v11535_v0  ;;  %v3292_v49 = vmul.f32 %v3226_v60, %v11536_v58  ;;  %v3293_v32 = vmul.f32 %v3226_v60, %v11537_v13  ;;  %v3294_v11 = vmul.f32 %v3226_v60, %v11538_v41  ;;  %5393 = vpush %v4408_v6 }
 0x4ec   :  { %v3295_v18 = vmul.f32 %v3226_v60, %v11539_v26  ;;  %v4446_v15 = vrot.slane %v4445_v16, 1  ;;  %v3284_v27 = vmul.f32 %v3216_v20, %v11540_v33  ;;  %v3285_v14 = vmul.f32 %v3216_v20, %v11541_v50  ;;  %v3546_v0 = vpop.permute.xlu1 %3545 }
 0x4ed   :  { %v3286_v4 = vmul.f32 %v3216_v20, %v11542_v25  ;;  %v3287_v5 = vmul.f32 %v3216_v20, %v11543_v39  ;;  %v3614_v28 = vmul.f32 %v3546_v0, %v3454_v30  ;;  %v3615_v58 = vmul.f32 %v3546_v0, %v3455_v57 }
 0x4ee   :  { %v3616_v34 = vmul.f32 %v3546_v0, %v3456_v3  ;;  %v3617_v10 = vmul.f32 %v3546_v0, %v3457_v53  ;;  %v3541_v13 = vpop.permute.xlu0 %3540  ;;  %v4447_v6 = vadd.f32 %v4446_v15, %v4445_v16 }
 0x4ef   :  { %v3610_v22 = vmul.f32 %v3541_v13, %v3450_v40  ;;  %v3611_v41 = vmul.f32 %v3541_v13, %v3451_v12  ;;  %v3612_v61 = vmul.f32 %v3541_v13, %v3452_v2  ;;  %v3613_v60 = vmul.f32 %v3541_v13, %v3453_v31 }
 0x4f0   :  { %v3678_v26 = vadd.f32 %v3614_v28, %v3284_v27  ;;  %v3679_v17 = vadd.f32 %v3615_v58, %v3285_v14  ;;  %v3680_v33 = vadd.f32 %v3616_v34, %v3286_v4  ;;  %v3556_v52 = vpop.permute.xlu1 %3555  ;;  %v3681_v50 = vadd.f32 %v3617_v10, %v3287_v5  ;;  %5395 = vpush %v4447_v6 }
 0x4f1   :  { %v3674_v19 = vadd.f32 %v3610_v22, %v3280_v47  ;;  %v3675_v25 = vadd.f32 %v3611_v41, %v3281_v36  ;;  %v3676_v23 = vadd.f32 %v3612_v61, %v3282_v38  ;;  %v3622_v20 = vmul.f32 %v3556_v52, %v3462_v62  ;;  %v11544_v47 = vld [vmem:[#allocation42_spill] sm:$0xff] }
 0x4f2   :  { %v3623_v30 = vmul.f32 %v3556_v52, %v3463_v48  ;;  %v3624_v57 = vmul.f32 %v3556_v52, %v3464_v55  ;;  %v3625_v3 = vmul.f32 %v3556_v52, %v3465_v45  ;;  %v3551_v53 = vpop.permute.xlu0 %3550  ;;  %v3677_v31 = vadd.f32 %v3613_v60, %v3283_v63 }
 0x4f3   :  { %v3618_v39 = vmul.f32 %v3551_v53, %v3458_v29  ;;  %v3619_v40 = vmul.f32 %v3551_v53, %v3459_v54  ;;  %v3620_v12 = vmul.f32 %v3551_v53, %v3460_v7  ;;  %v3621_v2 = vmul.f32 %v3551_v53, %v3461_v1 }
 0x4f4   :  { %v3686_v16 = vadd.f32 %v3622_v20, %v3292_v49  ;;  %v3687_v28 = vadd.f32 %v3623_v30, %v3293_v32  ;;  %v3688_v15 = vadd.f32 %v3624_v57, %v3294_v11  ;;  %v3689_v27 = vadd.f32 %v3625_v3, %v3295_v18  ;;  %v3770_v48 = vpop.permute.xlu1 %3769 }
 0x4f5   :  { %v3682_v14 = vadd.f32 %v3618_v39, %v3288_v37  ;;  %v3683_v10 = vadd.f32 %v3619_v40, %v3289_v24  ;;  %v3684_v22 = vadd.f32 %v3620_v12, %v3290_v8  ;;  %v3291_v61 = vmul.f32 %v10207_v46, %v11544_v47 }
 0x4f6   :  { %v3838_v52 = vadd.f32 %v3770_v48, %v3678_v26  ;;  %v3839_v45 = vadd.f32 %v3770_v48, %v3679_v17  ;;  %v3765_v54 = vpop.permute.xlu0 %3764  ;;  %v3840_v1 = vadd.f32 %v3770_v48, %v3680_v33  ;;  %v3841_v36 = vadd.f32 %v3770_v48, %v3681_v50 }
 0x4f7   :  { %v10273_v62 = vadd.f32 %v3621_v2, %v3291_v61  ;;  %v3834_v38 = vadd.f32 %v3765_v54, %v3674_v19  ;;  %v3835_v63 = vadd.f32 %v3765_v54, %v3675_v25  ;;  %v3836_v11 = vadd.f32 %v3765_v54, %v3676_v23 }
 0x4f8   :  { %v5041_v29 = vmul.f32 -1.442695, %v3838_v52  ;;  %v5042_v24 = vmul.f32 -1.442695, %v3839_v45  ;;  %v3780_v46 = vpop.permute.xlu1 %3779  ;;  %v5043_v32 = vmul.f32 -1.442695, %v3840_v1  ;;  %v3837_v18 = vadd.f32 %v3765_v54, %v3677_v31 }
 0x4f9   :  { %v5044_v17 = vmul.f32 -1.442695, %v3841_v36  ;;  %v5037_v4 = vmul.f32 -1.442695, %v3834_v38  ;;  %v5038_v5 = vmul.f32 -1.442695, %v3835_v63  ;;  %v3846_v0 = vadd.f32 %v3780_v46, %v3686_v16 }
 0x4fa   :  { %5969 = vpow2.f32 %v5041_v29  ;;  %v3847_v58 = vadd.f32 %v3780_v46, %v3687_v28  ;;  %v3775_v19 = vpop.permute.xlu0 %3774  ;;  %v5039_v41 = vmul.f32 -1.442695, %v3836_v11  ;;  %v3848_v60 = vadd.f32 %v3780_v46, %v3688_v15 }
 0x4fb   :  { %5971 = vpow2.f32 %v5042_v24  ;;  %v5040_v6 = vmul.f32 -1.442695, %v3837_v18  ;;  %v3849_v26 = vadd.f32 %v3780_v46, %v3689_v27  ;;  %v5049_v33 = vmul.f32 -1.442695, %v3846_v0 }
 0x4fc   :  { %5973 = vpow2.f32 %v5043_v32  ;;  %v3842_v23 = vadd.f32 %v3775_v19, %v3682_v14  ;;  %v5050_v25 = vmul.f32 -1.442695, %v3847_v58  ;;  %v5051_v30 = vmul.f32 -1.442695, %v3848_v60 }
 0x4fd   :  { %5975 = vpow2.f32 %v5044_v17  ;;  %v5052_v3 = vmul.f32 -1.442695, %v3849_v26  ;;  %v3843_v53 = vadd.f32 %v3775_v19, %v3683_v10  ;;  %v3844_v31 = vadd.f32 %v3775_v19, %v3684_v22 }
 0x4fe   :  { %5977 = vpow2.f32 %v5037_v4  ;;  %v5045_v40 = vmul.f32 -1.442695, %v3842_v23  ;;  %v3845_v15 = vadd.f32 %v3775_v19, %v10273_v62 }
 0x4ff   :  { %5979 = vpow2.f32 %v5038_v5  ;;  %v5046_v47 = vmul.f32 -1.442695, %v3843_v53  ;;  %v5047_v52 = vmul.f32 -1.442695, %v3844_v31  ;;  %v10318_v31 = vpop.permute.xlu1 %4544 }
 0x500   :  { %5981 = vpow2.f32 %v5039_v41  ;;  %v5048_v45 = vmul.f32 -1.442695, %v3845_v15 }
 0x501   :  { %5983 = vpow2.f32 %v5040_v6 }
 0x502   :  { %5985 = vpow2.f32 %v5049_v33 }
 0x503   :  { %5987 = vpow2.f32 %v5050_v25 }
 0x504   :  { %v5970_v57 = vpop.eup %5969  ;;  %5989 = vpow2.f32 %v5051_v30 }
 0x505   :  { %v4665_v28 = vadd.f32 1.0, %v5970_v57  ;;  %v5972_v14 = vpop.eup %5971  ;;  %5991 = vpow2.f32 %v5052_v3 }
 0x506   :  { %v5974_v61 = vpop.eup %5973  ;;  %5993 = vpow2.f32 %v5045_v40  ;;  %v4666_v54 = vadd.f32 1.0, %v5972_v14 }
 0x507   :  { %v5976_v10 = vpop.eup %5975  ;;  %v4667_v36 = vadd.f32 1.0, %v5974_v61 }
 0x508   :  { %v4668_v38 = vadd.f32 1.0, %v5976_v10  ;;  %v11546_v10 = vld [vmem:[#allocation48_spill] sm:$0xff] }
 0x518   :  { %s5390_s8 = spop %5389 }
 0x519   :  { %v4293_v55 = vstv %s5390_s8 }
 0x51a   :  { %v10275_v7 = vmul.f32 0.00012207031, %v4293_v55  ;;  %s5392_s9 = spop %5391  ;;  %v5978_v55 = vpop.eup %5977 }
 0x51b   :  { %v4361_v37 = vstv %s5392_s9  ;;  %v5980_v22 = vpop.eup %5979 }
 0x51c   :  { %v4365_v8 = vmul.f32 %v10275_v7, %v10275_v7  ;;  %v4364_v49 = vmul.f32 0.00012207031, %v4361_v37  ;;  %s5394_s15 = spop %5393  ;;  %v5982_v1 = vpop.eup %5981  ;;  %v4661_v37 = vadd.f32 1.0, %v5978_v55  ;;  %v4662_v46 = vadd.f32 1.0, %v5980_v22 }
 0x51d   :  { %v4410_v13 = vstv %s5394_s15  ;;  %v5984_v62 = vpop.eup %5983  ;;  %v4370_v32 = vsel %vm2282_vm3, %v10275_v7, 0.0 }
 0x51e   :  { %v4366_v34 = vsub.f32 %v4364_v49, %v4365_v8  ;;  %v4450_v50 = vmul.f32 0.00012207031, %v4410_v13  ;;  %v5986_v63 = vpop.eup %5985  ;;  %v4663_v49 = vadd.f32 1.0, %v5982_v1  ;;  %v4664_v17 = vadd.f32 1.0, %v5984_v62  ;;  %v10290_v13 = vpop.permute.xlu0 %4539  ;;  %v11548_v62 = vld [vmem:[#allocation49_spill] sm:$0xff] }
 0x51f   :  { %v5988_v24 = vpop.eup %5987  ;;  %v4673_v5 = vadd.f32 1.0, %v5986_v63 }
 0x520   :  { %v4367_v20 = vmax.f32 %v4366_v34, 0.0  ;;  %v4452_v12 = vmul.f32 %v4450_v50, %v4450_v50  ;;  %v5990_v8 = vpop.eup %5989  ;;  %v4457_v18 = vsel %vm2430_vm6, %v4450_v50, %v4370_v32  ;;  %v4674_v7 = vadd.f32 1.0, %v5988_v24 }
 0x521   :  { %s5396_s16 = spop %5395  ;;  %v5992_v11 = vpop.eup %5991  ;;  %v10288_v19 = vrot.slane %v4457_v18, %v11493_v21  ;;  %v10293_v41 = vrot.slane %v4457_v18, %v11494_v35  ;;  %v4675_v6 = vadd.f32 1.0, %v5990_v8  ;;  %v10298_v33 = vrot.slane %v4457_v18, %v11495_v44 }
 0x522   :  { %v4449_v39 = vstv %s5396_s16  ;;  %v4368_v16 = vadd.f32 1e-05, %v4367_v20  ;;  %v5994_v4 = vpop.eup %5993  ;;  %v4676_v50 = vadd.f32 1.0, %v5992_v11  ;;  %v10301_v20 = vrot.slane %v4457_v18, %v11496_v42 }
 0x523   :  { %v4451_v2 = vmul.f32 0.00012207031, %v4449_v39  ;;  %v4669_v25 = vadd.f32 1.0, %v5994_v4  ;;  %v4480_v3 = vsub.f32 %v9929_v43, %v10288_v19  ;;  %v4481_v56 = vsub.f32 %v9931_v59, %v10293_v41  ;;  %v6087_v4 = vld [vmem:[%s10500_s14 + $0x50] sm:$0xff] }
 0x524   :  { %5995 = vrsqrt.f32 %v4368_v16  ;;  %v4483_v59 = vsub.f32 %v9957_v51, %v10301_v20  ;;  %v11547_v51 = vld [vmem:[#allocation50_spill] sm:$0xff] }
 0x525   :  { %v4453_v27 = vsub.f32 %v4451_v2, %v4452_v12  ;;  %5997 = vrcp.f32 %v4665_v28 }
 0x526   :  { %5999 = vpow2.f32 %v5046_v47  ;;  %v11545_v47 = vld [vmem:[#allocation46_spill] sm:$0xff] }
 0x527   :  { %v4454_v48 = vmax.f32 %v4453_v27, 0.0  ;;  %v10332_v27 = vpop.permute.xlu0 %4549  ;;  %v4484_v61 = vsub.f32 %v11545_v47, %v10288_v19 }
 0x529   :  { %v4455_v29 = vadd.f32 1e-05, %v4454_v48 }
 0x52b   :  { %6001 = vrsqrt.f32 %v4455_v29  ;;  %v4486_v29 = vsub.f32 %v11547_v51, %v10298_v33  ;;  %v4580_v18 = vpop.permute.xlu0 %4579 }
 0x52c   :  { %6003 = vpow2.f32 %v5047_v52  ;;  %v4485_v52 = vsub.f32 %v11546_v10, %v10293_v41 }
 0x52d   :  { %6005 = vpow2.f32 %v5048_v45 }
 0x52e   :  { %6007 = vrcp.f32 %v4666_v54  ;;  %v5996_v0 = vpop.eup %5995 }
 0x52f   :  { %6009 = vrcp.f32 %v4667_v36  ;;  %v10285_v58 = vpop.eup %5997  ;;  %v4371_v26 = vsel %vm2282_vm3, %v5996_v0, 0.0  ;;  %v10355_v36 = vpop.permute.xlu1 %4554  ;;  %v6088_v0 = vld [vmem:[%s10500_s14 + $0x58] sm:$0xff] }
 0x530   :  { %6011 = vrcp.f32 %v4668_v38  ;;  %v6000_v34 = vpop.eup %5999  ;;  %v4487_v38 = vsub.f32 %v11548_v62, %v10301_v20 }
 0x531   :  { %6013 = vrcp.f32 %v4661_v37  ;;  %v4670_v2 = vadd.f32 1.0, %v6000_v34  ;;  %v4491_v34 = vsub.f32 %v6088_v0, %v10301_v20 }
 0x532   :  { %6015 = vrcp.f32 %v4662_v46  ;;  %v6085_v46 = vld [vmem:[%s10500_s14 + $0x40] sm:$0xff] }
 0x533   :  { %6017 = vrcp.f32 %v4663_v49  ;;  %v4488_v8 = vsub.f32 %v6085_v46, %v10288_v19  ;;  %v6086_v49 = vld [vmem:[%s10500_s14 + $0x48] sm:$0xff]  ;;  %v4585_v47 = vpop.permute.xlu1 %4584  ;;  %v4590_v46 = vpop.permute.xlu0 %4589 }
 0x534   :  { %6019 = vrcp.f32 %v4664_v17  ;;  %v4489_v32 = vsub.f32 %v6086_v49, %v10293_v41 }
 0x535   :  { %v6002_v60 = vpop.eup %6001  ;;  %6021 = vrcp.f32 %v4673_v5  ;;  %v4490_v5 = vsub.f32 %v6087_v4, %v10298_v33 }
 0x536   :  { %v6004_v23 = vpop.eup %6003  ;;  %v4458_v30 = vsel %vm2430_vm6, %v6002_v60, %v4371_v26  ;;  %6023 = vrcp.f32 %v4674_v7 }
 0x537   :  { %v6006_v57 = vpop.eup %6005  ;;  %v10308_v53 = vrot.slane %v4458_v30, %v11493_v21  ;;  %v10311_v39 = vrot.slane %v4458_v30, %v11494_v35  ;;  %v10314_v40 = vrot.slane %v4458_v30, %v11495_v44  ;;  %v10323_v43 = vrot.slane %v4458_v30, %v11496_v42 }
 0x538   :  { %v10316_v12 = vpop.eup %6007  ;;  %6025 = vrcp.f32 %v4675_v6  ;;  %v4671_v35 = vadd.f32 1.0, %v6004_v23  ;;  %v4482_v44 = vsub.f32 %v9951_v9, %v10298_v33  ;;  %v4672_v15 = vadd.f32 1.0, %v6006_v57  ;;  %v11549_v6 = vld [vmem:[#allocation51_spill] sm:$0xff] }
 0x539   :  { %v10325_v21 = vpop.eup %6009  ;;  %v4517_v16 = vmul.f32 %v10308_v53, %v4480_v3  ;;  %6027 = vrcp.f32 %v4676_v50  ;;  %v4518_v42 = vmul.f32 %v10311_v39, %v4481_v56  ;;  %v4520_v55 = vmul.f32 %v10323_v43, %v4483_v59  ;;  %v11550_v57 = vld [vmem:[#allocation83_spill] sm:$0xff] }
 0x53a   :  { %v10330_v28 = vpop.eup %6011  ;;  %6029 = vrcp.f32 %v4669_v25  ;;  %v4519_v9 = vmul.f32 %v10314_v40, %v4482_v44  ;;  %v4521_v22 = vmul.f32 %v10308_v53, %v4484_v61  ;;  %v4522_v63 = vmul.f32 %v10311_v39, %v4485_v52 }
 0x53b   :  { %v10337_v14 = vpop.eup %6013  ;;  %6031 = vrcp.f32 %v4670_v2  ;;  %v4557_v54 = vmul.f32 %v10290_v13, %v4517_v16  ;;  %v4558_v37 = vmul.f32 %v10290_v13, %v4518_v42  ;;  %v4523_v11 = vmul.f32 %v10314_v40, %v4486_v29 }
 0x53c   :  { %v10342_v48 = vpop.eup %6015  ;;  %6033 = vrcp.f32 %v4671_v35  ;;  %v4559_v17 = vmul.f32 %v10290_v13, %v4519_v9  ;;  %v4524_v7 = vmul.f32 %v10323_v43, %v4487_v38  ;;  %v4560_v60 = vmul.f32 %v10290_v13, %v4520_v55  ;;  %v11551_v13 = vld [vmem:[#allocation85_spill] sm:$0xff] }
 0x53d   :  { %v10347_v45 = vpop.eup %6017  ;;  %6035 = vrcp.f32 %v4672_v15  ;;  %v4492_v26 = vsub.f32 %v11549_v6, %v10288_v19  ;;  %v4525_v23 = vmul.f32 %v10308_v53, %v4488_v8  ;;  %v4561_v50 = vmul.f32 %v10318_v31, %v4521_v22 }
 0x53e   :  { %v10353_v1 = vpop.eup %6019  ;;  %v4597_v25 = vadd.f32 %v4580_v18, %v4557_v54  ;;  %v4493_v3 = vsub.f32 %v11550_v57, %v10293_v41  ;;  %v4526_v2 = vmul.f32 %v10311_v39, %v4489_v32  ;;  %v4562_v56 = vmul.f32 %v10318_v31, %v4522_v63  ;;  %v11552_v41 = vld [vmem:[#allocation82_spill] sm:$0xff] }
 0x53f   :  { %v10361_v24 = vpop.eup %6021  ;;  %v4598_v35 = vadd.f32 %v4580_v18, %v4558_v37  ;;  %v4494_v19 = vsub.f32 %v11551_v13, %v10298_v33  ;;  %v4527_v16 = vmul.f32 %v10314_v40, %v4490_v5  ;;  %v4563_v15 = vmul.f32 %v10318_v31, %v4523_v11  ;;  %v4595_v5 = vpop.permute.xlu1 %4594 }
 0x540   :  { %v10387_v30 = vpop.eup %6023  ;;  %v4599_v59 = vadd.f32 %v4580_v18, %v4559_v17  ;;  %v4495_v61 = vsub.f32 %v11552_v41, %v10301_v20  ;;  %v4528_v9 = vmul.f32 %v10323_v43, %v4491_v34  ;;  %v4564_v10 = vmul.f32 %v10318_v31, %v4524_v7 }
 0x541   :  { %v4600_v52 = vadd.f32 %v4580_v18, %v4560_v60  ;;  %v4529_v33 = vmul.f32 %v10308_v53, %v4492_v26  ;;  %v4565_v51 = vmul.f32 %v10332_v27, %v4525_v23  ;;  %v4601_v29 = vadd.f32 %v4585_v47, %v4561_v50 }
 0x542   :  { %v10393_v44 = vpop.eup %6025  ;;  %6037 = vtanh.f32 %v4597_v25  ;;  %v4530_v54 = vmul.f32 %v10311_v39, %v4493_v3  ;;  %v4566_v62 = vmul.f32 %v10332_v27, %v4526_v2  ;;  %v4602_v20 = vadd.f32 %v4585_v47, %v4562_v56 }
 0x543   :  { %v10399_v42 = vpop.eup %6027  ;;  %6039 = vtanh.f32 %v4598_v35  ;;  %v4531_v31 = vmul.f32 %v10314_v40, %v4494_v19  ;;  %v4567_v63 = vmul.f32 %v10332_v27, %v4527_v16  ;;  %v4603_v37 = vadd.f32 %v4585_v47, %v4563_v15 }
 0x544   :  { %v10405_v55 = vpop.eup %6029  ;;  %6041 = vtanh.f32 %v4599_v59  ;;  %v4532_v8 = vmul.f32 %v10323_v43, %v4495_v61  ;;  %v4568_v49 = vmul.f32 %v10332_v27, %v4528_v9  ;;  %v4604_v39 = vadd.f32 %v4585_v47, %v4564_v10 }
 0x545   :  { %v10409_v22 = vpop.eup %6031  ;;  %6043 = vtanh.f32 %v4600_v52  ;;  %v4569_v32 = vmul.f32 %v10355_v36, %v4529_v33  ;;  %v4605_v11 = vadd.f32 %v4590_v46, %v4565_v51  ;;  %v4570_v17 = vmul.f32 %v10355_v36, %v4530_v54 }
 0x546   :  { %v10413_v38 = vpop.eup %6033  ;;  %6045 = vtanh.f32 %v4601_v29  ;;  %v4606_v40 = vadd.f32 %v4590_v46, %v4566_v62  ;;  %v4571_v18 = vmul.f32 %v10355_v36, %v4531_v31  ;;  %v4607_v4 = vadd.f32 %v4590_v46, %v4567_v63 }
 0x547   :  { %v10417_v53 = vpop.eup %6035  ;;  %6047 = vtanh.f32 %v4602_v20  ;;  %v4572_v0 = vmul.f32 %v10355_v36, %v4532_v8  ;;  %v4608_v43 = vadd.f32 %v4590_v46, %v4568_v49  ;;  %v4609_v27 = vadd.f32 %v4595_v5, %v4569_v32 }
 0x548   :  { %6049 = vtanh.f32 %v4603_v37  ;;  %v4610_v34 = vadd.f32 %v4595_v5, %v4570_v17  ;;  %v4611_v60 = vadd.f32 %v4595_v5, %v4571_v18 }
 0x549   :  { %6051 = vtanh.f32 %v4604_v39  ;;  %v4612_v26 = vadd.f32 %v4595_v5, %v4572_v0 }
 0x54a   :  { %6053 = vtanh.f32 %v4605_v11 }
 0x54b   :  { %6055 = vtanh.f32 %v4606_v40 }
 0x54c   :  { %v6038_v7 = vpop.eup %6037  ;;  %6057 = vtanh.f32 %v4607_v4 }
 0x54d   :  { %v6040_v6 = vpop.eup %6039  ;;  %6059 = vtanh.f32 %v4608_v43  ;;  %v4725_v23 = vmul.f32 %v6038_v7, %v10337_v14 }
 0x54e   :  { %v6042_v50 = vpop.eup %6041  ;;  %6061 = vtanh.f32 %v4609_v27  ;;  %v4726_v25 = vmul.f32 %v6040_v6, %v10342_v48 }
 0x54f   :  { %v6044_v57 = vpop.eup %6043  ;;  %6063 = vtanh.f32 %v4610_v34  ;;  %v4727_v36 = vmul.f32 %v6042_v50, %v10347_v45  ;;  %4741 = vst [vmem:[%s10503_s13] sm:$0xff] %v4725_v23 }
 0x550   :  { %v6046_v3 = vpop.eup %6045  ;;  %6065 = vtanh.f32 %v4611_v60  ;;  %v4728_v2 = vmul.f32 %v6044_v57, %v10353_v1  ;;  %4742 = vst [vmem:[%s10503_s13 + $0x8] sm:$0xff] %v4726_v25 }
 0x551   :  { %v6048_v14 = vpop.eup %6047  ;;  %6067 = vtanh.f32 %v4612_v26  ;;  %v4729_v48 = vmul.f32 %v6046_v3, %v10285_v58  ;;  %4743 = vst [vmem:[%s10503_s13 + $0x10] sm:$0xff] %v4727_v36 }
 0x552   :  { %v6050_v45 = vpop.eup %6049  ;;  %v4730_v56 = vmul.f32 %v6048_v14, %v10316_v12  ;;  %4744 = vst [vmem:[%s10503_s13 + $0x18] sm:$0xff] %v4728_v2 }
 0x553   :  { %v6052_v1 = vpop.eup %6051  ;;  %v4731_v35 = vmul.f32 %v6050_v45, %v10325_v21  ;;  %4745 = vst [vmem:[%s10503_s13 + $0x20] sm:$0xff] %v4729_v48 }
 0x554   :  { %v6054_v13 = vpop.eup %6053  ;;  %v4732_v58 = vmul.f32 %v6052_v1, %v10330_v28  ;;  %4746 = vst [vmem:[%s10503_s13 + $0x28] sm:$0xff] %v4730_v56 }
 0x555   :  { %v6056_v19 = vpop.eup %6055  ;;  %v4733_v12 = vmul.f32 %v6054_v13, %v10405_v55  ;;  %4747 = vst [vmem:[%s10503_s13 + $0x30] sm:$0xff] %v4731_v35 }
 0x556   :  { %v6058_v16 = vpop.eup %6057  ;;  %v4734_v21 = vmul.f32 %v6056_v19, %v10409_v22  ;;  %4748 = vst [vmem:[%s10503_s13 + $0x38] sm:$0xff] %v4732_v58 }
 0x557   :  { %v6060_v15 = vpop.eup %6059  ;;  %v4735_v28 = vmul.f32 %v6058_v16, %v10413_v38  ;;  %4749 = vst [vmem:[%s10503_s13 + $0x40] sm:$0xff] %v4733_v12 }
 0x558   :  { %v6062_v59 = vpop.eup %6061  ;;  %v4736_v47 = vmul.f32 %v6060_v15, %v10417_v53  ;;  %4750 = vst [vmem:[%s10503_s13 + $0x48] sm:$0xff] %v4734_v21 }
 0x559   :  { %v6064_v41 = vpop.eup %6063  ;;  %v4737_v61 = vmul.f32 %v6062_v59, %v10361_v24  ;;  %4751 = vst [vmem:[%s10503_s13 + $0x50] sm:$0xff] %v4735_v28 }
 0x55a   :  { %v6066_v9 = vpop.eup %6065  ;;  %v4738_v10 = vmul.f32 %v6064_v41, %v10387_v30  ;;  %4752 = vst [vmem:[%s10503_s13 + $0x58] sm:$0xff] %v4736_v47 }
 0x55b   :  { %v6068_v52 = vpop.eup %6067  ;;  %v4739_v55 = vmul.f32 %v6066_v9, %v10393_v44  ;;  %4753 = vst [vmem:[%s10503_s13 + $0x60] sm:$0xff] %v4737_v61 }
 0x55c   :  { %v4740_v24 = vmul.f32 %v6068_v52, %v10399_v42  ;;  %4754 = vst [vmem:[%s10503_s13 + $0x68] sm:$0xff] %v4738_v10 }
 0x55d   :  { %4755 = vst [vmem:[%s10503_s13 + $0x70] sm:$0xff] %v4739_v55 }
 0x55e   :  { %4756 = vst [vmem:[%s10503_s13 + $0x78] sm:$0xff] %v4740_v24 }

</bundles_post_ra>
